<compile_context>
chip_gen: v6e
topology: v6e:2x2x1
jax: 0.10.0
libtpu: 0.0.40
codegen_flags: <defaults>
</compile_context>

<pallas_src>
import functools

import jax
import jax.numpy as jnp
from jax import lax
from jax.experimental import pallas as pl
from jax.experimental.pallas import tpu as pltpu


# --------------------------------------------------------------------------- helpers

def _pick_tile(n, cap, align):
    """Largest divisor of n that is <= cap and a multiple of `align` (n itself if n <= cap)."""
    if n <= cap:
        return n
    for t in range(cap, align - 1, -1):
        if n % t == 0 and t % align == 0:
            return t
    return n


# --------------------------------------------------------------------------- linear kernels

def linear_t_kernel(x_ref, wt_ref, b_ref, o_ref):
    """Transposed-output linear: o = (x @ w + b)^T  (channel-major, queries on lanes).

    x_ref : (TILE_N, Din)  bf16     wt_ref: (Dout, Din)  bf16  (weight pre-transposed)
    b_ref : (Dout, 1)      f32      o_ref : (Dout, TILE_N)
    """
    acc = lax.dot_general(wt_ref[...], x_ref[...],
                          dimension_numbers=(((1,), (1,)), ((), ())),
                          preferred_element_type=jnp.float32)
    o_ref[...] = (acc + b_ref[...]).astype(o_ref.dtype)


def linear_from_t_kernel(xt_ref, w_ref, b_ref, o_ref):
    """Linear whose input arrives channel-major: o = xT^T @ w + b.

    xt_ref: (Din, TILE_N)  bf16     w_ref : (Din, Dout)  bf16
    b_ref : (1, Dout)      f32      o_ref : (TILE_N, Dout)
    """
    acc = lax.dot_general(xt_ref[...], w_ref[...],
                          dimension_numbers=(((0,), (0,)), ((), ())),
                          preferred_element_type=jnp.float32)
    o_ref[...] = (acc + b_ref[...]).astype(o_ref.dtype)


def linear_t(x3, wt, b, *, tile_n, out_dtype):
    """x3: (B, N, Din) bf16 -> (B, Dout, N)  (channel-major output, no HBM transpose)."""
    B, N, Din = x3.shape
    Dout = wt.shape[0]
    return pl.pallas_call(
        linear_t_kernel,
        grid=(B, N // tile_n),
        in_specs=[
            pl.BlockSpec((None, tile_n, Din), lambda b, i: (b, i, 0)),
            pl.BlockSpec((Dout, Din), lambda b, i: (0, 0)),
            pl.BlockSpec((Dout, 1), lambda b, i: (0, 0)),
        ],
        out_specs=pl.BlockSpec((None, Dout, tile_n), lambda b, i: (b, 0, i)),
        out_shape=jax.ShapeDtypeStruct((B, Dout, N), out_dtype),
        compiler_params=pltpu.CompilerParams(
            dimension_semantics=("parallel", "parallel")),
    )(x3, wt, b.reshape(Dout, 1).astype(jnp.float32))


def linear_from_t(xt3, w, b, *, tile_n, out_dtype=jnp.float32):
    """xt3: (B, Din, N) bf16 -> (B, N, Dout); fuses the channel-major -> row-major
    relayout of the deform output into the wm matmul."""
    B, Din, N = xt3.shape
    Dout = w.shape[1]
    return pl.pallas_call(
        linear_from_t_kernel,
        grid=(B, N // tile_n),
        in_specs=[
            pl.BlockSpec((None, Din, tile_n), lambda b, i: (b, 0, i)),
            pl.BlockSpec((Din, Dout), lambda b, i: (0, 0)),
            pl.BlockSpec((1, Dout), lambda b, i: (0, 0)),
        ],
        out_specs=pl.BlockSpec((None, tile_n, Dout), lambda b, i: (b, i, 0)),
        out_shape=jax.ShapeDtypeStruct((B, N, Dout), out_dtype),
        compiler_params=pltpu.CompilerParams(
            dimension_semantics=("parallel", "parallel")),
    )(xt3, w, b.reshape(1, Dout).astype(jnp.float32))


# --------------------------------------------------------------------------- deform kernel

def deform_kernel(ref_ref, oa_ref, kf_ref, o_ref, *, h, K, scales, scale_hw,
                  d_k, off_cols, unroll_keys):
    """Deformable sampling + attention aggregation for one (batch, query-tile) block.

    Everything is transposed so the query axis sits on the 128-lane axis:
      ref_ref : (h*2K, TILE_LQ)     f32   rows: m*2K + 2k + {y,x}
      oa_ref  : (Doa,  TILE_LQ)     f32   rows [0, off_cols): raw offsets
                                          rows [off_cols, Doa): A logits (pre-softmax)
      kf_ref  : (h*d_k, Lk_all)     bf16  rows m*d_k + d; cols per-scale flat y*w+x
      o_ref   : (h*d_k, TILE_LQ)    bf16
    """
    sK = scales * K
    tile_lq = o_ref.shape[1]

    def corner_update(py, px, ak, row_iota, h_l, w_l):
        # torch grid_sample(bilinear, zeros, align_corners=False):
        #   vgrid = 2*p/max(dim-1,1)-1 ; ix = ((vgrid+1)*dim-1)/2 = p*dim/max(dim-1,1)-0.5
        sx = float(w_l) / float(max(w_l - 1, 1))
        sy = float(h_l) / float(max(h_l - 1, 1))
        ix = px * sx - 0.5
        iy = py * sy - 0.5
        x0 = jnp.floor(ix)
        y0 = jnp.floor(iy)
        wx1 = ix - x0
        wx0 = 1.0 - wx1
        wy1 = iy - y0
        wy0 = 1.0 - wy1
        x0i = x0.astype(jnp.int32)
        y0i = y0.astype(jnp.int32)
        okx0 = (x0i >= 0) & (x0i < w_l)
        okx1 = (x0i >= -1) & (x0i < w_l - 1)
        oky0 = (y0i >= 0) & (y0i < h_l)
        oky1 = (y0i >= -1) & (y0i < h_l - 1)
        # validity (zeros padding) folded into the (1, TILE_LQ) weights
        w00 = jnp.where(okx0 & oky0, wx0 * wy0 * ak, 0.0)
        w10 = jnp.where(okx1 & oky0, wx1 * wy0 * ak, 0.0)
        w01 = jnp.where(okx0 & oky1, wx0 * wy1 * ak, 0.0)
        w11 = jnp.where(okx1 & oky1, wx1 * wy1 * ak, 0.0)
        d = row_iota - (y0i * w_l + x0i)
        if w_l >= 2:
            # distances {0,1,w_l,w_l+1} are distinct; any "wrapped" collision corresponds
            # to an out-of-bounds corner whose weight is already zero.
            return jnp.where(d == 0, w00,
                   jnp.where(d == 1, w10,
                   jnp.where(d == w_l, w01,
                   jnp.where(d == w_l + 1, w11, 0.0))))
        return (jnp.where(d == 0, w00, 0.0) + jnp.where(d == 1, w10, 0.0)
                + jnp.where(d == w_l, w01, 0.0) + jnp.where(d == w_l + 1, w11, 0.0))

    for m in range(h):
        # grouped softmax statistics over this head's sK logit rows (lane-dense rows,
        # exact reciprocal; exp goes to the EUP slot)
        a_start = off_cols + m * sK
        a_slab = oa_ref[a_start:a_start + sK, :]
        a_max = jnp.max(a_slab, axis=0, keepdims=True)
        inv_den = 1.0 / jnp.sum(jnp.exp(a_slab - a_max), axis=0, keepdims=True)

        acc = jnp.zeros((d_k, tile_lq), jnp.float32)
        base = 0
        for l, (h_l, w_l) in enumerate(scale_hw):
            n_l = h_l * w_l
            row_iota = lax.broadcasted_iota(jnp.int32, (n_l, tile_lq), 0)
            r_base = m * 2 * K
            o_base = (m * scales + l) * K * 2
            a_base = off_cols + (m * scales + l) * K

            if unroll_keys:
                M = jnp.zeros((n_l, tile_lq), jnp.float32)
                for kk in range(K):
                    py = (ref_ref[r_base + 2 * kk:r_base + 2 * kk + 1, :]
                          + oa_ref[o_base + 2 * kk:o_base + 2 * kk + 1, :])
                    px = (ref_ref[r_base + 2 * kk + 1:r_base + 2 * kk + 2, :]
                          + oa_ref[o_base + 2 * kk + 1:o_base + 2 * kk + 2, :])
                    ak = jnp.exp(oa_ref[a_base + kk:a_base + kk + 1, :] - a_max) * inv_den
                    M = M + corner_update(py, px, ak, row_iota, h_l, w_l)
            else:
                def body(kk, M, r_base=r_base, o_base=o_base, a_base=a_base,
                         a_max=a_max, inv_den=inv_den, row_iota=row_iota,
                         h_l=h_l, w_l=w_l):
                    py = (ref_ref[pl.ds(r_base + 2 * kk, 1), :]
                          + oa_ref[pl.ds(o_base + 2 * kk, 1), :])
                    px = (ref_ref[pl.ds(r_base + 2 * kk + 1, 1), :]
                          + oa_ref[pl.ds(o_base + 2 * kk + 1, 1), :])
                    ak = jnp.exp(oa_ref[pl.ds(a_base + kk, 1), :] - a_max) * inv_den
                    return M + corner_update(py, px, ak, row_iota, h_l, w_l)
                M = lax.fori_loop(0, K, body, jnp.zeros((n_l, tile_lq), jnp.float32))

            kf_ml = kf_ref[m * d_k:(m + 1) * d_k, base:base + n_l]        # bf16
            acc = acc + jnp.dot(kf_ml, M.astype(jnp.bfloat16),
                                preferred_element_type=jnp.float32)
            base += n_l
        o_ref[m * d_k:(m + 1) * d_k, :] = acc.astype(o_ref.dtype)


def deform_aggregate(refT, oaT, kfT, *, h, K, scales, scale_hw, d_k, off_cols, tile_lq):
    B, ref_rows, Lq = refT.shape
    Doa = oaT.shape[1]
    C = kfT.shape[1]
    Lk = kfT.shape[2]
    unroll_keys = (h * scales * K) <= 32
    kernel = functools.partial(deform_kernel, h=h, K=K, scales=scales,
                               scale_hw=scale_hw, d_k=d_k, off_cols=off_cols,
                               unroll_keys=unroll_keys)
    return pl.pallas_call(
        kernel,
        grid=(B, Lq // tile_lq),
        in_specs=[
            pl.BlockSpec((None, ref_rows, tile_lq), lambda b, qi: (b, 0, qi)),
            pl.BlockSpec((None, Doa, tile_lq), lambda b, qi: (b, 0, qi)),
            pl.BlockSpec((None, C, Lk), lambda b, qi: (b, 0, 0)),
        ],
        out_specs=pl.BlockSpec((None, C, tile_lq), lambda b, qi: (b, 0, qi)),
        out_shape=jax.ShapeDtypeStruct((B, C, Lq), jnp.bfloat16),
        compiler_params=pltpu.CompilerParams(
            dimension_semantics=("parallel", "parallel"),
            vmem_limit_bytes=32 * 1024 * 1024),
    )(refT, oaT, kfT)


# --------------------------------------------------------------------------- module

def init_params(key, d_model, h, k, scales):
    """Deterministic synthetic parameters (Linear weights stored as (in, out))."""
    ks = jax.random.split(key, 10)

    def w(kk, din, dout, scale=0.05):
        return jax.random.normal(kk, (din, dout), jnp.float32) * scale

    def b(kk, dout, scale=0.05):
        return jax.random.normal(kk, (dout,), jnp.float32) * scale

    offset_dims = 2 * h * k * scales
    a_dims = h * k * scales
    return dict(
        q_w=w(ks[0], d_model, d_model), q_b=b(ks[1], d_model),
        k_w=w(ks[2], d_model, d_model), k_b=b(ks[3], d_model),
        off_w=w(ks[4], d_model, offset_dims, 0.02), off_b=b(ks[5], offset_dims, 0.5),
        a_w=w(ks[6], d_model, a_dims, 0.02), a_b=b(ks[7], a_dims, 0.5),
        wm_w=w(ks[8], d_model, d_model), wm_b=b(ks[9], d_model),
    )


def pano_self_attention(params, query, keys, ref_point, *, h, k, scales):
    B, H, W, C = query.shape
    assert C % h == 0
    d_k = C // h
    K = k
    sK = scales * K
    Lq = H * W
    off_cols = 2 * h * sK

    tile_q = _pick_tile(Lq, 512, 128)     # projection / wm row-tiles (HBM-bound matmuls)
    tile_lq = _pick_tile(Lq, 128, 128)    # deform query tile (bounds one-hot M footprint)

    # ---- fold q_proj into the offset|A projection (exact: q only feeds offset/A) ----
    woa = jnp.concatenate([params["off_w"], params["a_w"]], axis=1)      # (C, Doa)
    boa = jnp.concatenate([params["off_b"], params["a_b"]], axis=0)      # (Doa,)
    w_eff = params["q_w"] @ woa                                          # (C, Doa)
    b_eff = params["q_b"] @ woa + boa                                    # (Doa,)

    # one channel-major projection launch -> rows: [0, off_cols) offsets, rest A logits
    x3 = query.reshape(B, Lq, C).astype(jnp.bfloat16)
    oaT = linear_t(x3, w_eff.T.astype(jnp.bfloat16), b_eff,
                   tile_n=tile_q, out_dtype=jnp.float32)                 # (B, Doa, Lq)

    # ---- reference points, replicated with torch's repeat pairing ------------------
    # torch does `ref_point.repeat(h,1,1,1,1)` (head-major tiling) while offsets / A /
    # keys are batch-major (n = b*h + m), so (batch b, head m) pairs with
    # ref_point[(b*h + m) % B].  Replicated faithfully.
    ref_sel = ref_point[(jnp.arange(B * h) % B)]                         # (B*h, H, W, K, 2)
    refT = jnp.transpose(ref_sel, (0, 3, 4, 1, 2)).astype(jnp.float32)   # (B*h, K, 2, H, W)
    refT = refT.reshape(B, h * 2 * K, Lq)

    # ---- k_proj per scale, channel-major, concatenated along the key axis ----------
    kwt = params["k_w"].T.astype(jnp.bfloat16)
    kfT_parts = []
    scale_hw = []
    for l in range(scales):
        feat_map = keys[l]
        _, h_l, w_l, _ = feat_map.shape
        scale_hw.append((h_l, w_l))
        Lk_l = h_l * w_l
        kfT_parts.append(
            linear_t(feat_map.reshape(B, Lk_l, C).astype(jnp.bfloat16), kwt, params["k_b"],
                     tile_n=_pick_tile(Lk_l, 512, 128), out_dtype=jnp.bfloat16))
    kfT = kfT_parts[0] if scales == 1 else jnp.concatenate(kfT_parts, axis=-1)

    # ---- deformable sampling + attention aggregation -------------------------------
    outT = deform_aggregate(refT, oaT, kfT, h=h, K=K, scales=scales,
                            scale_hw=tuple(scale_hw), d_k=d_k,
                            off_cols=off_cols, tile_lq=tile_lq)          # (B, C, Lq) bf16

    # ---- output projection (fused with the channel-major -> row-major relayout) ----
    out = linear_from_t(outT, params["wm_w"].astype(jnp.bfloat16), params["wm_b"],
                        tile_n=tile_q, out_dtype=jnp.float32)            # (B, Lq, C)
    return out.reshape(B, H, W, C)


# --------------------------------------------------------------------------- main

if __name__ == "__main__":
    # small but non-trivial shapes: B=2, d_model=32, heads=2, k=4, scales=1, feat 16x16
    B, H, W, C = 2, 16, 16, 32
    heads, K, scales = 2, 4, 1

    key = jax.random.PRNGKey(0)
    kp, kq, kk0, kr = jax.random.split(key, 4)

    params = init_params(kp, C, heads, K, scales)
    query = jax.random.normal(kq, (B, H, W, C), jnp.float32)
    keys_list = [jax.random.normal(kk0, (B, H, W, C), jnp.float32)]
    # reference points: (B, H, W, K, 2) in pixel coords (y, x)
    ref_point = jax.random.uniform(kr, (B, H, W, K, 2), jnp.float32) * jnp.array(
        [H - 1, W - 1], jnp.float32)

    fwd = jax.jit(functools.partial(pano_self_attention, h=heads, k=K, scales=scales))
    out = fwd(params, query, keys_list, ref_point)
    out = jax.block_until_ready(out)
    assert out.shape == (B, H, W, C) and bool(jnp.all(jnp.isfinite(out)))
    print("KERNEL_OK")
</pallas_src>

<mosaic_0001>
module attributes {stable_mosaic.version = 11 : i64} {
  func.func @linear_t_kernel(%arg0: i32, %arg1: i32, %arg2: memref<1x256x32xbf16, #tpu.memory_space<vmem>>, %arg3: memref<24x32xbf16, #tpu.memory_space<vmem>>, %arg4: memref<24x1xf32, #tpu.memory_space<vmem>>, %arg5: memref<1x24x256xf32, #tpu.memory_space<vmem>>) attributes {dimension_semantics = [#tpu.dimension_semantics<parallel>, #tpu.dimension_semantics<parallel>], iteration_bounds = array<i64: 2, 1>, scalar_prefetch = 0 : i64, scratch_operands = 0 : i64, tpu.core_type = #tpu.core_type<tc>, window_params = [{transform_indices = @transform_0, window_bounds = array<i64: 1, 256, 32>}, {pipeline_mode = #tpu.pipeline_mode<synchronous>, transform_indices = @transform_1, window_bounds = array<i64: 24, 32>}, {pipeline_mode = #tpu.pipeline_mode<synchronous>, transform_indices = @transform_2, window_bounds = array<i64: 24, 1>}, {transform_indices = @transform_3, window_bounds = array<i64: 1, 24, 256>}]} {
    %c0 = arith.constant 0 : index
    %c0_0 = arith.constant 0 : index
    %0 = vector.load %arg3[%c0, %c0_0] : memref<24x32xbf16, #tpu.memory_space<vmem>>, vector<24x32xbf16>
    %c0_1 = arith.constant 0 : index
    %c0_2 = arith.constant 0 : index
    %c0_3 = arith.constant 0 : index
    %1 = vector.load %arg2[%c0_1, %c0_2, %c0_3] : memref<1x256x32xbf16, #tpu.memory_space<vmem>>, vector<1x256x32xbf16>
    %2 = vector.shape_cast %1 : vector<1x256x32xbf16> to vector<256x32xbf16>
    %cst = arith.constant dense<0.000000e+00> : vector<24x256xf32>
    %3 = tpu.matmul %0, %2, %cst {dimension_numbers = #tpu.dot_dimension_numbers<[1], [1], [0], [0], [0, 0, 1, 0], [], []>} : vector<24x32xbf16>, vector<256x32xbf16>, vector<24x256xf32> -> vector<24x256xf32>
    %c0_4 = arith.constant 0 : index
    %c0_5 = arith.constant 0 : index
    %4 = vector.load %arg4[%c0_4, %c0_5] : memref<24x1xf32, #tpu.memory_space<vmem>>, vector<24x1xf32>
    %5 = vector.broadcast %4 : vector<24x1xf32> to vector<24x256xf32>
    %6 = arith.addf %3, %5 : vector<24x256xf32>
    %c0_6 = arith.constant 0 : index
    %c0_7 = arith.constant 0 : index
    %c0_8 = arith.constant 0 : index
    %7 = vector.load %arg5[%c0_6, %c0_7, %c0_8] : memref<1x24x256xf32, #tpu.memory_space<vmem>>, vector<1x24x256xf32>
    %8 = vector.shape_cast %7 : vector<1x24x256xf32> to vector<24x256xf32>
    %9 = vector.shape_cast %6 : vector<24x256xf32> to vector<1x24x256xf32>
    tpu.vector_store %arg5[%c0_6, %c0_7, %c0_8], %9 {strides = array<i32>} : memref<1x24x256xf32, #tpu.memory_space<vmem>>, vector<1x24x256xf32>,
    return
  }
  func.func @transform_0(%arg0: i32, %arg1: i32) -> (i32, i32, i32) {
    %c0_i32 = arith.constant 0 : i32
    %c0_i32_0 = arith.constant 0 : i32
    return %arg0, %arg1, %c0_i32 : i32, i32, i32
  }
  func.func @transform_1(%arg0: i32, %arg1: i32) -> (i32, i32) {
    %c0_i32 = arith.constant 0 : i32
    %c0_i32_0 = arith.constant 0 : i32
    %c0_i32_1 = arith.constant 0 : i32
    return %c0_i32, %c0_i32_0 : i32, i32
  }
  func.func @transform_2(%arg0: i32, %arg1: i32) -> (i32, i32) {
    %c0_i32 = arith.constant 0 : i32
    %c0_i32_0 = arith.constant 0 : i32
    %c0_i32_1 = arith.constant 0 : i32
    return %c0_i32, %c0_i32_0 : i32, i32
  }
  func.func @transform_3(%arg0: i32, %arg1: i32) -> (i32, i32, i32) {
    %c0_i32 = arith.constant 0 : i32
    %c0_i32_0 = arith.constant 0 : i32
    return %arg0, %c0_i32, %arg1 : i32, i32, i32
  }
}

module attributes {stable_mosaic.version = 11 : i64} {
  func.func @linear_t_kernel(%arg0: i32, %arg1: i32, %arg2: memref<1x256x32xbf16, #tpu.memory_space<vmem>>, %arg3: memref<32x32xbf16, #tpu.memory_space<vmem>>, %arg4: memref<32x1xf32, #tpu.memory_space<vmem>>, %arg5: memref<1x32x256xbf16, #tpu.memory_space<vmem>>) attributes {dimension_semantics = [#tpu.dimension_semantics<parallel>, #tpu.dimension_semantics<parallel>], iteration_bounds = array<i64: 2, 1>, scalar_prefetch = 0 : i64, scratch_operands = 0 : i64, tpu.core_type = #tpu.core_type<tc>, window_params = [{transform_indices = @transform_0, window_bounds = array<i64: 1, 256, 32>}, {pipeline_mode = #tpu.pipeline_mode<synchronous>, transform_indices = @transform_1, window_bounds = array<i64: 32, 32>}, {pipeline_mode = #tpu.pipeline_mode<synchronous>, transform_indices = @transform_2, window_bounds = array<i64: 32, 1>}, {transform_indices = @transform_3, window_bounds = array<i64: 1, 32, 256>}]} {
    %c0 = arith.constant 0 : index
    %c0_0 = arith.constant 0 : index
    %0 = vector.load %arg3[%c0, %c0_0] : memref<32x32xbf16, #tpu.memory_space<vmem>>, vector<32x32xbf16>
    %c0_1 = arith.constant 0 : index
    %c0_2 = arith.constant 0 : index
    %c0_3 = arith.constant 0 : index
    %1 = vector.load %arg2[%c0_1, %c0_2, %c0_3] : memref<1x256x32xbf16, #tpu.memory_space<vmem>>, vector<1x256x32xbf16>
    %2 = vector.shape_cast %1 : vector<1x256x32xbf16> to vector<256x32xbf16>
    %cst = arith.constant dense<0.000000e+00> : vector<32x256xf32>
    %3 = tpu.matmul %0, %2, %cst {dimension_numbers = #tpu.dot_dimension_numbers<[1], [1], [0], [0], [0, 0, 1, 0], [], []>} : vector<32x32xbf16>, vector<256x32xbf16>, vector<32x256xf32> -> vector<32x256xf32>
    %c0_4 = arith.constant 0 : index
    %c0_5 = arith.constant 0 : index
    %4 = vector.load %arg4[%c0_4, %c0_5] : memref<32x1xf32, #tpu.memory_space<vmem>>, vector<32x1xf32>
    %5 = vector.broadcast %4 : vector<32x1xf32> to vector<32x256xf32>
    %6 = arith.addf %3, %5 : vector<32x256xf32>
    %7 = arith.truncf %6 : vector<32x256xf32> to vector<32x256xbf16>
    %c0_6 = arith.constant 0 : index
    %c0_7 = arith.constant 0 : index
    %c0_8 = arith.constant 0 : index
    %8 = vector.load %arg5[%c0_6, %c0_7, %c0_8] : memref<1x32x256xbf16, #tpu.memory_space<vmem>>, vector<1x32x256xbf16>
    %9 = vector.shape_cast %8 : vector<1x32x256xbf16> to vector<32x256xbf16>
    %10 = vector.shape_cast %7 : vector<32x256xbf16> to vector<1x32x256xbf16>
    tpu.vector_store %arg5[%c0_6, %c0_7, %c0_8], %10 {strides = array<i32>} : memref<1x32x256xbf16, #tpu.memory_space<vmem>>, vector<1x32x256xbf16>,
    return
  }
  func.func @transform_0(%arg0: i32, %arg1: i32) -> (i32, i32, i32) {
    %c0_i32 = arith.constant 0 : i32
    %c0_i32_0 = arith.constant 0 : i32
    return %arg0, %arg1, %c0_i32 : i32, i32, i32
  }
  func.func @transform_1(%arg0: i32, %arg1: i32) -> (i32, i32) {
    %c0_i32 = arith.constant 0 : i32
    %c0_i32_0 = arith.constant 0 : i32
    %c0_i32_1 = arith.constant 0 : i32
    return %c0_i32, %c0_i32_0 : i32, i32
  }
  func.func @transform_2(%arg0: i32, %arg1: i32) -> (i32, i32) {
    %c0_i32 = arith.constant 0 : i32
    %c0_i32_0 = arith.constant 0 : i32
    %c0_i32_1 = arith.constant 0 : i32
    return %c0_i32, %c0_i32_0 : i32, i32
  }
  func.func @transform_3(%arg0: i32, %arg1: i32) -> (i32, i32, i32) {
    %c0_i32 = arith.constant 0 : i32
    %c0_i32_0 = arith.constant 0 : i32
    return %arg0, %c0_i32, %arg1 : i32, i32, i32
  }
}

module attributes {stable_mosaic.version = 11 : i64} {
  func.func @deform_kernel(%arg0: i32, %arg1: i32, %arg2: memref<1x16x128xf32, #tpu.memory_space<vmem>>, %arg3: memref<1x24x128xf32, #tpu.memory_space<vmem>>, %arg4: memref<1x32x256xbf16, #tpu.memory_space<vmem>>, %arg5: memref<1x32x128xbf16, #tpu.memory_space<vmem>>) attributes {dimension_semantics = [#tpu.dimension_semantics<parallel>, #tpu.dimension_semantics<parallel>], iteration_bounds = array<i64: 2, 2>, scalar_prefetch = 0 : i64, scratch_operands = 0 : i64, tpu.core_type = #tpu.core_type<tc>, window_params = [{transform_indices = @transform_0, window_bounds = array<i64: 1, 16, 128>}, {transform_indices = @transform_1, window_bounds = array<i64: 1, 24, 128>}, {transform_indices = @transform_2, window_bounds = array<i64: 1, 32, 256>}, {transform_indices = @transform_3, window_bounds = array<i64: 1, 32, 128>}]} {
    %c0 = arith.constant 0 : index
    %c16 = arith.constant 16 : index
    %c0_0 = arith.constant 0 : index
    %0 = vector.load %arg3[%c0, %c16, %c0_0] : memref<1x24x128xf32, #tpu.memory_space<vmem>>, vector<1x4x128xf32>
    %1 = vector.shape_cast %0 : vector<1x4x128xf32> to vector<4x128xf32>
    %cst = arith.constant dense<0xFF800000> : vector<128xf32>
    %2 = vector.multi_reduction <maximumf>, %1, %cst [0] : vector<4x128xf32> to vector<128xf32>
    %3 = vector.shape_cast %2 : vector<128xf32> to vector<1x128xf32>
    %4 = vector.broadcast %3 : vector<1x128xf32> to vector<4x128xf32>
    %5 = arith.subf %1, %4 : vector<4x128xf32>
    %6 = math.exp %5 : vector<4x128xf32>
    %cst_1 = arith.constant dense<0.000000e+00> : vector<128xf32>
    %7 = vector.multi_reduction <add>, %6, %cst_1 [0] : vector<4x128xf32> to vector<128xf32>
    %8 = vector.shape_cast %7 : vector<128xf32> to vector<1x128xf32>
    %cst_2 = arith.constant 1.000000e+00 : f32
    %9 = vector.broadcast %cst_2 : f32 to vector<1x128xf32>
    %10 = arith.divf %9, %8 : vector<1x128xf32>
    %cst_3 = arith.constant 0.000000e+00 : f32
    %11 = vector.broadcast %cst_3 : f32 to vector<16x128xf32>
    %12 = tpu.iota {dimensions = array<i32: 0>} : vector<256x128xi32>
    %cst_4 = arith.constant 0.000000e+00 : f32
    %13 = vector.broadcast %cst_4 : f32 to vector<256x128xf32>
    %c0_5 = arith.constant 0 : index
    %c0_6 = arith.constant 0 : index
    %c0_7 = arith.constant 0 : index
    %14 = vector.load %arg2[%c0_5, %c0_6, %c0_7] : memref<1x16x128xf32, #tpu.memory_space<vmem>>, vector<1x1x128xf32>
    %15 = vector.shape_cast %14 : vector<1x1x128xf32> to vector<1x128xf32>
    %c0_8 = arith.constant 0 : index
    %c0_9 = arith.constant 0 : index
    %c0_10 = arith.constant 0 : index
    %16 = vector.load %arg3[%c0_8, %c0_9, %c0_10] : memref<1x24x128xf32, #tpu.memory_space<vmem>>, vector<1x1x128xf32>
    %17 = vector.shape_cast %16 : vector<1x1x128xf32> to vector<1x128xf32>
    %18 = arith.addf %15, %17 : vector<1x128xf32>
    %c0_11 = arith.constant 0 : index
    %c1 = arith.constant 1 : index
    %c0_12 = arith.constant 0 : index
    %19 = vector.load %arg2[%c0_11, %c1, %c0_12] : memref<1x16x128xf32, #tpu.memory_space<vmem>>, vector<1x1x128xf32>
    %20 = vector.shape_cast %19 : vector<1x1x128xf32> to vector<1x128xf32>
    %c0_13 = arith.constant 0 : index
    %c1_14 = arith.constant 1 : index
    %c0_15 = arith.constant 0 : index
    %21 = vector.load %arg3[%c0_13, %c1_14, %c0_15] : memref<1x24x128xf32, #tpu.memory_space<vmem>>, vector<1x1x128xf32>
    %22 = vector.shape_cast %21 : vector<1x1x128xf32> to vector<1x128xf32>
    %23 = arith.addf %20, %22 : vector<1x128xf32>
    %c0_16 = arith.constant 0 : index
    %c16_17 = arith.constant 16 : index
    %c0_18 = arith.constant 0 : index
    %24 = vector.load %arg3[%c0_16, %c16_17, %c0_18] : memref<1x24x128xf32, #tpu.memory_space<vmem>>, vector<1x1x128xf32>
    %25 = vector.shape_cast %24 : vector<1x1x128xf32> to vector<1x128xf32>
    %26 = arith.subf %25, %3 : vector<1x128xf32>
    %27 = math.exp %26 : vector<1x128xf32>
    %28 = arith.mulf %27, %10 : vector<1x128xf32>
    %cst_19 = arith.constant 1.06666672 : f32
    %29 = vector.broadcast %cst_19 : f32 to vector<1x128xf32>
    %30 = arith.mulf %23, %29 : vector<1x128xf32>
    %cst_20 = arith.constant 5.000000e-01 : f32
    %31 = vector.broadcast %cst_20 : f32 to vector<1x128xf32>
    %32 = arith.subf %30, %31 : vector<1x128xf32>
    %cst_21 = arith.constant 1.06666672 : f32
    %33 = vector.broadcast %cst_21 : f32 to vector<1x128xf32>
    %34 = arith.mulf %18, %33 : vector<1x128xf32>
    %cst_22 = arith.constant 5.000000e-01 : f32
    %35 = vector.broadcast %cst_22 : f32 to vector<1x128xf32>
    %36 = arith.subf %34, %35 : vector<1x128xf32>
    %37 = math.floor %32 : vector<1x128xf32>
    %38 = math.floor %36 : vector<1x128xf32>
    %39 = arith.subf %32, %37 : vector<1x128xf32>
    %cst_23 = arith.constant 1.000000e+00 : f32
    %40 = vector.broadcast %cst_23 : f32 to vector<1x128xf32>
    %41 = arith.subf %40, %39 : vector<1x128xf32>
    %42 = arith.subf %36, %38 : vector<1x128xf32>
    %cst_24 = arith.constant 1.000000e+00 : f32
    %43 = vector.broadcast %cst_24 : f32 to vector<1x128xf32>
    %44 = arith.subf %43, %42 : vector<1x128xf32>
    %45 = arith.fptosi %37 : vector<1x128xf32> to vector<1x128xi32>
    %46 = arith.fptosi %38 : vector<1x128xf32> to vector<1x128xi32>
    %c0_i32 = arith.constant 0 : i32
    %47 = vector.broadcast %c0_i32 : i32 to vector<1x128xi32>
    %48 = arith.cmpi sge, %45, %47 : vector<1x128xi32>
    %c16_i32 = arith.constant 16 : i32
    %49 = vector.broadcast %c16_i32 : i32 to vector<1x128xi32>
    %50 = arith.cmpi slt, %45, %49 : vector<1x128xi32>
    %51 = arith.andi %48, %50 : vector<1x128xi1>
    %c-1_i32 = arith.constant -1 : i32
    %52 = vector.broadcast %c-1_i32 : i32 to vector<1x128xi32>
    %53 = arith.cmpi sge, %45, %52 : vector<1x128xi32>
    %c15_i32 = arith.constant 15 : i32
    %54 = vector.broadcast %c15_i32 : i32 to vector<1x128xi32>
    %55 = arith.cmpi slt, %45, %54 : vector<1x128xi32>
    %56 = arith.andi %53, %55 : vector<1x128xi1>
    %c0_i32_25 = arith.constant 0 : i32
    %57 = vector.broadcast %c0_i32_25 : i32 to vector<1x128xi32>
    %58 = arith.cmpi sge, %46, %57 : vector<1x128xi32>
    %c16_i32_26 = arith.constant 16 : i32
    %59 = vector.broadcast %c16_i32_26 : i32 to vector<1x128xi32>
    %60 = arith.cmpi slt, %46, %59 : vector<1x128xi32>
    %61 = arith.andi %58, %60 : vector<1x128xi1>
    %c-1_i32_27 = arith.constant -1 : i32
    %62 = vector.broadcast %c-1_i32_27 : i32 to vector<1x128xi32>
    %63 = arith.cmpi sge, %46, %62 : vector<1x128xi32>
    %c15_i32_28 = arith.constant 15 : i32
    %64 = vector.broadcast %c15_i32_28 : i32 to vector<1x128xi32>
    %65 = arith.cmpi slt, %46, %64 : vector<1x128xi32>
    %66 = arith.andi %63, %65 : vector<1x128xi1>
    %67 = arith.andi %51, %61 : vector<1x128xi1>
    %68 = arith.mulf %41, %44 : vector<1x128xf32>
    %69 = arith.mulf %68, %28 : vector<1x128xf32>
    %cst_29 = arith.constant 0.000000e+00 : f32
    %70 = vector.broadcast %cst_29 : f32 to vector<1x128xf32>
    %71 = arith.select %67, %69, %70 : vector<1x128xi1>, vector<1x128xf32>
    %72 = arith.andi %56, %61 : vector<1x128xi1>
    %73 = arith.mulf %39, %44 : vector<1x128xf32>
    %74 = arith.mulf %73, %28 : vector<1x128xf32>
    %cst_30 = arith.constant 0.000000e+00 : f32
    %75 = vector.broadcast %cst_30 : f32 to vector<1x128xf32>
    %76 = arith.select %72, %74, %75 : vector<1x128xi1>, vector<1x128xf32>
    %77 = arith.andi %51, %66 : vector<1x128xi1>
    %78 = arith.mulf %41, %42 : vector<1x128xf32>
    %79 = arith.mulf %78, %28 : vector<1x128xf32>
    %cst_31 = arith.constant 0.000000e+00 : f32
    %80 = vector.broadcast %cst_31 : f32 to vector<1x128xf32>
    %81 = arith.select %77, %79, %80 : vector<1x128xi1>, vector<1x128xf32>
    %82 = arith.andi %56, %66 : vector<1x128xi1>
    %83 = arith.mulf %39, %42 : vector<1x128xf32>
    %84 = arith.mulf %83, %28 : vector<1x128xf32>
    %cst_32 = arith.constant 0.000000e+00 : f32
    %85 = vector.broadcast %cst_32 : f32 to vector<1x128xf32>
    %86 = arith.select %82, %84, %85 : vector<1x128xi1>, vector<1x128xf32>
    %c16_i32_33 = arith.constant 16 : i32
    %87 = vector.broadcast %c16_i32_33 : i32 to vector<1x128xi32>
    %88 = arith.muli %46, %87 : vector<1x128xi32>
    %89 = arith.addi %88, %45 : vector<1x128xi32>
    %90 = vector.broadcast %89 : vector<1x128xi32> to vector<256x128xi32>
    %91 = arith.subi %12, %90 : vector<256x128xi32>
    %c0_i32_34 = arith.constant 0 : i32
    %92 = vector.broadcast %c0_i32_34 : i32 to vector<256x128xi32>
    %93 = arith.cmpi eq, %91, %92 : vector<256x128xi32>
    %c1_i32 = arith.constant 1 : i32
    %94 = vector.broadcast %c1_i32 : i32 to vector<256x128xi32>
    %95 = arith.cmpi eq, %91, %94 : vector<256x128xi32>
    %c16_i32_35 = arith.constant 16 : i32
    %96 = vector.broadcast %c16_i32_35 : i32 to vector<256x128xi32>
    %97 = arith.cmpi eq, %91, %96 : vector<256x128xi32>
    %c17_i32 = arith.constant 17 : i32
    %98 = vector.broadcast %c17_i32 : i32 to vector<256x128xi32>
    %99 = arith.cmpi eq, %91, %98 : vector<256x128xi32>
    %cst_36 = arith.constant 0.000000e+00 : f32
    %100 = vector.shape_cast %86 : vector<1x128xf32> to vector<1x128xf32>
    %101 = vector.broadcast %100 : vector<1x128xf32> to vector<256x128xf32>
    %102 = vector.broadcast %cst_36 : f32 to vector<256x128xf32>
    %103 = arith.select %99, %101, %102 : vector<256x128xi1>, vector<256x128xf32>
    %104 = vector.shape_cast %81 : vector<1x128xf32> to vector<1x128xf32>
    %105 = vector.broadcast %104 : vector<1x128xf32> to vector<256x128xf32>
    %106 = arith.select %97, %105, %103 : vector<256x128xi1>, vector<256x128xf32>
    %107 = vector.shape_cast %76 : vector<1x128xf32> to vector<1x128xf32>
    %108 = vector.broadcast %107 : vector<1x128xf32> to vector<256x128xf32>
    %109 = arith.select %95, %108, %106 : vector<256x128xi1>, vector<256x128xf32>
    %110 = vector.shape_cast %71 : vector<1x128xf32> to vector<1x128xf32>
    %111 = vector.broadcast %110 : vector<1x128xf32> to vector<256x128xf32>
    %112 = arith.select %93, %111, %109 : vector<256x128xi1>, vector<256x128xf32>
    %113 = arith.addf %13, %112 : vector<256x128xf32>
    %c0_37 = arith.constant 0 : index
    %c2 = arith.constant 2 : index
    %c0_38 = arith.constant 0 : index
    %114 = vector.load %arg2[%c0_37, %c2, %c0_38] : memref<1x16x128xf32, #tpu.memory_space<vmem>>, vector<1x1x128xf32>
    %115 = vector.shape_cast %114 : vector<1x1x128xf32> to vector<1x128xf32>
    %c0_39 = arith.constant 0 : index
    %c2_40 = arith.constant 2 : index
    %c0_41 = arith.constant 0 : index
    %116 = vector.load %arg3[%c0_39, %c2_40, %c0_41] : memref<1x24x128xf32, #tpu.memory_space<vmem>>, vector<1x1x128xf32>
    %117 = vector.shape_cast %116 : vector<1x1x128xf32> to vector<1x128xf32>
    %118 = arith.addf %115, %117 : vector<1x128xf32>
    %c0_42 = arith.constant 0 : index
    %c3 = arith.constant 3 : index
    %c0_43 = arith.constant 0 : index
    %119 = vector.load %arg2[%c0_42, %c3, %c0_43] : memref<1x16x128xf32, #tpu.memory_space<vmem>>, vector<1x1x128xf32>
    %120 = vector.shape_cast %119 : vector<1x1x128xf32> to vector<1x128xf32>
    %c0_44 = arith.constant 0 : index
    %c3_45 = arith.constant 3 : index
    %c0_46 = arith.constant 0 : index
    %121 = vector.load %arg3[%c0_44, %c3_45, %c0_46] : memref<1x24x128xf32, #tpu.memory_space<vmem>>, vector<1x1x128xf32>
    %122 = vector.shape_cast %121 : vector<1x1x128xf32> to vector<1x128xf32>
    %123 = arith.addf %120, %122 : vector<1x128xf32>
    %c0_47 = arith.constant 0 : index
    %c17 = arith.constant 17 : index
    %c0_48 = arith.constant 0 : index
    %124 = vector.load %arg3[%c0_47, %c17, %c0_48] : memref<1x24x128xf32, #tpu.memory_space<vmem>>, vector<1x1x128xf32>
    %125 = vector.shape_cast %124 : vector<1x1x128xf32> to vector<1x128xf32>
    %126 = arith.subf %125, %3 : vector<1x128xf32>
    %127 = math.exp %126 : vector<1x128xf32>
    %128 = arith.mulf %127, %10 : vector<1x128xf32>
    %cst_49 = arith.constant 1.06666672 : f32
    %129 = vector.broadcast %cst_49 : f32 to vector<1x128xf32>
    %130 = arith.mulf %123, %129 : vector<1x128xf32>
    %cst_50 = arith.constant 5.000000e-01 : f32
    %131 = vector.broadcast %cst_50 : f32 to vector<1x128xf32>
    %132 = arith.subf %130, %131 : vector<1x128xf32>
    %cst_51 = arith.constant 1.06666672 : f32
    %133 = vector.broadcast %cst_51 : f32 to vector<1x128xf32>
    %134 = arith.mulf %118, %133 : vector<1x128xf32>
    %cst_52 = arith.constant 5.000000e-01 : f32
    %135 = vector.broadcast %cst_52 : f32 to vector<1x128xf32>
    %136 = arith.subf %134, %135 : vector<1x128xf32>
    %137 = math.floor %132 : vector<1x128xf32>
    %138 = math.floor %136 : vector<1x128xf32>
    %139 = arith.subf %132, %137 : vector<1x128xf32>
    %cst_53 = arith.constant 1.000000e+00 : f32
    %140 = vector.broadcast %cst_53 : f32 to vector<1x128xf32>
    %141 = arith.subf %140, %139 : vector<1x128xf32>
    %142 = arith.subf %136, %138 : vector<1x128xf32>
    %cst_54 = arith.constant 1.000000e+00 : f32
    %143 = vector.broadcast %cst_54 : f32 to vector<1x128xf32>
    %144 = arith.subf %143, %142 : vector<1x128xf32>
    %145 = arith.fptosi %137 : vector<1x128xf32> to vector<1x128xi32>
    %146 = arith.fptosi %138 : vector<1x128xf32> to vector<1x128xi32>
    %c0_i32_55 = arith.constant 0 : i32
    %147 = vector.broadcast %c0_i32_55 : i32 to vector<1x128xi32>
    %148 = arith.cmpi sge, %145, %147 : vector<1x128xi32>
    %c16_i32_56 = arith.constant 16 : i32
    %149 = vector.broadcast %c16_i32_56 : i32 to vector<1x128xi32>
    %150 = arith.cmpi slt, %145, %149 : vector<1x128xi32>
    %151 = arith.andi %148, %150 : vector<1x128xi1>
    %c-1_i32_57 = arith.constant -1 : i32
    %152 = vector.broadcast %c-1_i32_57 : i32 to vector<1x128xi32>
    %153 = arith.cmpi sge, %145, %152 : vector<1x128xi32>
    %c15_i32_58 = arith.constant 15 : i32
    %154 = vector.broadcast %c15_i32_58 : i32 to vector<1x128xi32>
    %155 = arith.cmpi slt, %145, %154 : vector<1x128xi32>
    %156 = arith.andi %153, %155 : vector<1x128xi1>
    %c0_i32_59 = arith.constant 0 : i32
    %157 = vector.broadcast %c0_i32_59 : i32 to vector<1x128xi32>
    %158 = arith.cmpi sge, %146, %157 : vector<1x128xi32>
    %c16_i32_60 = arith.constant 16 : i32
    %159 = vector.broadcast %c16_i32_60 : i32 to vector<1x128xi32>
    %160 = arith.cmpi slt, %146, %159 : vector<1x128xi32>
    %161 = arith.andi %158, %160 : vector<1x128xi1>
    %c-1_i32_61 = arith.constant -1 : i32
    %162 = vector.broadcast %c-1_i32_61 : i32 to vector<1x128xi32>
    %163 = arith.cmpi sge, %146, %162 : vector<1x128xi32>
    %c15_i32_62 = arith.constant 15 : i32
    %164 = vector.broadcast %c15_i32_62 : i32 to vector<1x128xi32>
    %165 = arith.cmpi slt, %146, %164 : vector<1x128xi32>
    %166 = arith.andi %163, %165 : vector<1x128xi1>
    %167 = arith.andi %151, %161 : vector<1x128xi1>
    %168 = arith.mulf %141, %144 : vector<1x128xf32>
    %169 = arith.mulf %168, %128 : vector<1x128xf32>
    %cst_63 = arith.constant 0.000000e+00 : f32
    %170 = vector.broadcast %cst_63 : f32 to vector<1x128xf32>
    %171 = arith.select %167, %169, %170 : vector<1x128xi1>, vector<1x128xf32>
    %172 = arith.andi %156, %161 : vector<1x128xi1>
    %173 = arith.mulf %139, %144 : vector<1x128xf32>
    %174 = arith.mulf %173, %128 : vector<1x128xf32>
    %cst_64 = arith.constant 0.000000e+00 : f32
    %175 = vector.broadcast %cst_64 : f32 to vector<1x128xf32>
    %176 = arith.select %172, %174, %175 : vector<1x128xi1>, vector<1x128xf32>
    %177 = arith.andi %151, %166 : vector<1x128xi1>
    %178 = arith.mulf %141, %142 : vector<1x128xf32>
    %179 = arith.mulf %178, %128 : vector<1x128xf32>
    %cst_65 = arith.constant 0.000000e+00 : f32
    %180 = vector.broadcast %cst_65 : f32 to vector<1x128xf32>
    %181 = arith.select %177, %179, %180 : vector<1x128xi1>, vector<1x128xf32>
    %182 = arith.andi %156, %166 : vector<1x128xi1>
    %183 = arith.mulf %139, %142 : vector<1x128xf32>
    %184 = arith.mulf %183, %128 : vector<1x128xf32>
    %cst_66 = arith.constant 0.000000e+00 : f32
    %185 = vector.broadcast %cst_66 : f32 to vector<1x128xf32>
    %186 = arith.select %182, %184, %185 : vector<1x128xi1>, vector<1x128xf32>
    %c16_i32_67 = arith.constant 16 : i32
    %187 = vector.broadcast %c16_i32_67 : i32 to vector<1x128xi32>
    %188 = arith.muli %146, %187 : vector<1x128xi32>
    %189 = arith.addi %188, %145 : vector<1x128xi32>
    %190 = vector.broadcast %189 : vector<1x128xi32> to vector<256x128xi32>
    %191 = arith.subi %12, %190 : vector<256x128xi32>
    %c0_i32_68 = arith.constant 0 : i32
    %192 = vector.broadcast %c0_i32_68 : i32 to vector<256x128xi32>
    %193 = arith.cmpi eq, %191, %192 : vector<256x128xi32>
    %c1_i32_69 = arith.constant 1 : i32
    %194 = vector.broadcast %c1_i32_69 : i32 to vector<256x128xi32>
    %195 = arith.cmpi eq, %191, %194 : vector<256x128xi32>
    %c16_i32_70 = arith.constant 16 : i32
    %196 = vector.broadcast %c16_i32_70 : i32 to vector<256x128xi32>
    %197 = arith.cmpi eq, %191, %196 : vector<256x128xi32>
    %c17_i32_71 = arith.constant 17 : i32
    %198 = vector.broadcast %c17_i32_71 : i32 to vector<256x128xi32>
    %199 = arith.cmpi eq, %191, %198 : vector<256x128xi32>
    %cst_72 = arith.constant 0.000000e+00 : f32
    %200 = vector.shape_cast %186 : vector<1x128xf32> to vector<1x128xf32>
    %201 = vector.broadcast %200 : vector<1x128xf32> to vector<256x128xf32>
    %202 = vector.broadcast %cst_72 : f32 to vector<256x128xf32>
    %203 = arith.select %199, %201, %202 : vector<256x128xi1>, vector<256x128xf32>
    %204 = vector.shape_cast %181 : vector<1x128xf32> to vector<1x128xf32>
    %205 = vector.broadcast %204 : vector<1x128xf32> to vector<256x128xf32>
    %206 = arith.select %197, %205, %203 : vector<256x128xi1>, vector<256x128xf32>
    %207 = vector.shape_cast %176 : vector<1x128xf32> to vector<1x128xf32>
    %208 = vector.broadcast %207 : vector<1x128xf32> to vector<256x128xf32>
    %209 = arith.select %195, %208, %206 : vector<256x128xi1>, vector<256x128xf32>
    %210 = vector.shape_cast %171 : vector<1x128xf32> to vector<1x128xf32>
    %211 = vector.broadcast %210 : vector<1x128xf32> to vector<256x128xf32>
    %212 = arith.select %193, %211, %209 : vector<256x128xi1>, vector<256x128xf32>
    %213 = arith.addf %113, %212 : vector<256x128xf32>
    %c0_73 = arith.constant 0 : index
    %c4 = arith.constant 4 : index
    %c0_74 = arith.constant 0 : index
    %214 = vector.load %arg2[%c0_73, %c4, %c0_74] : memref<1x16x128xf32, #tpu.memory_space<vmem>>, vector<1x1x128xf32>
    %215 = vector.shape_cast %214 : vector<1x1x128xf32> to vector<1x128xf32>
    %c0_75 = arith.constant 0 : index
    %c4_76 = arith.constant 4 : index
    %c0_77 = arith.constant 0 : index
    %216 = vector.load %arg3[%c0_75, %c4_76, %c0_77] : memref<1x24x128xf32, #tpu.memory_space<vmem>>, vector<1x1x128xf32>
    %217 = vector.shape_cast %216 : vector<1x1x128xf32> to vector<1x128xf32>
    %218 = arith.addf %215, %217 : vector<1x128xf32>
    %c0_78 = arith.constant 0 : index
    %c5 = arith.constant 5 : index
    %c0_79 = arith.constant 0 : index
    %219 = vector.load %arg2[%c0_78, %c5, %c0_79] : memref<1x16x128xf32, #tpu.memory_space<vmem>>, vector<1x1x128xf32>
    %220 = vector.shape_cast %219 : vector<1x1x128xf32> to vector<1x128xf32>
    %c0_80 = arith.constant 0 : index
    %c5_81 = arith.constant 5 : index
    %c0_82 = arith.constant 0 : index
    %221 = vector.load %arg3[%c0_80, %c5_81, %c0_82] : memref<1x24x128xf32, #tpu.memory_space<vmem>>, vector<1x1x128xf32>
    %222 = vector.shape_cast %221 : vector<1x1x128xf32> to vector<1x128xf32>
    %223 = arith.addf %220, %222 : vector<1x128xf32>
    %c0_83 = arith.constant 0 : index
    %c18 = arith.constant 18 : index
    %c0_84 = arith.constant 0 : index
    %224 = vector.load %arg3[%c0_83, %c18, %c0_84] : memref<1x24x128xf32, #tpu.memory_space<vmem>>, vector<1x1x128xf32>
    %225 = vector.shape_cast %224 : vector<1x1x128xf32> to vector<1x128xf32>
    %226 = arith.subf %225, %3 : vector<1x128xf32>
    %227 = math.exp %226 : vector<1x128xf32>
    %228 = arith.mulf %227, %10 : vector<1x128xf32>
    %cst_85 = arith.constant 1.06666672 : f32
    %229 = vector.broadcast %cst_85 : f32 to vector<1x128xf32>
    %230 = arith.mulf %223, %229 : vector<1x128xf32>
    %cst_86 = arith.constant 5.000000e-01 : f32
    %231 = vector.broadcast %cst_86 : f32 to vector<1x128xf32>
    %232 = arith.subf %230, %231 : vector<1x128xf32>
    %cst_87 = arith.constant 1.06666672 : f32
    %233 = vector.broadcast %cst_87 : f32 to vector<1x128xf32>
    %234 = arith.mulf %218, %233 : vector<1x128xf32>
    %cst_88 = arith.constant 5.000000e-01 : f32
    %235 = vector.broadcast %cst_88 : f32 to vector<1x128xf32>
    %236 = arith.subf %234, %235 : vector<1x128xf32>
    %237 = math.floor %232 : vector<1x128xf32>
    %238 = math.floor %236 : vector<1x128xf32>
    %239 = arith.subf %232, %237 : vector<1x128xf32>
    %cst_89 = arith.constant 1.000000e+00 : f32
    %240 = vector.broadcast %cst_89 : f32 to vector<1x128xf32>
    %241 = arith.subf %240, %239 : vector<1x128xf32>
    %242 = arith.subf %236, %238 : vector<1x128xf32>
    %cst_90 = arith.constant 1.000000e+00 : f32
    %243 = vector.broadcast %cst_90 : f32 to vector<1x128xf32>
    %244 = arith.subf %243, %242 : vector<1x128xf32>
    %245 = arith.fptosi %237 : vector<1x128xf32> to vector<1x128xi32>
    %246 = arith.fptosi %238 : vector<1x128xf32> to vector<1x128xi32>
    %c0_i32_91 = arith.constant 0 : i32
    %247 = vector.broadcast %c0_i32_91 : i32 to vector<1x128xi32>
    %248 = arith.cmpi sge, %245, %247 : vector<1x128xi32>
    %c16_i32_92 = arith.constant 16 : i32
    %249 = vector.broadcast %c16_i32_92 : i32 to vector<1x128xi32>
    %250 = arith.cmpi slt, %245, %249 : vector<1x128xi32>
    %251 = arith.andi %248, %250 : vector<1x128xi1>
    %c-1_i32_93 = arith.constant -1 : i32
    %252 = vector.broadcast %c-1_i32_93 : i32 to vector<1x128xi32>
    %253 = arith.cmpi sge, %245, %252 : vector<1x128xi32>
    %c15_i32_94 = arith.constant 15 : i32
    %254 = vector.broadcast %c15_i32_94 : i32 to vector<1x128xi32>
    %255 = arith.cmpi slt, %245, %254 : vector<1x128xi32>
    %256 = arith.andi %253, %255 : vector<1x128xi1>
    %c0_i32_95 = arith.constant 0 : i32
    %257 = vector.broadcast %c0_i32_95 : i32 to vector<1x128xi32>
    %258 = arith.cmpi sge, %246, %257 : vector<1x128xi32>
    %c16_i32_96 = arith.constant 16 : i32
    %259 = vector.broadcast %c16_i32_96 : i32 to vector<1x128xi32>
    %260 = arith.cmpi slt, %246, %259 : vector<1x128xi32>
    %261 = arith.andi %258, %260 : vector<1x128xi1>
    %c-1_i32_97 = arith.constant -1 : i32
    %262 = vector.broadcast %c-1_i32_97 : i32 to vector<1x128xi32>
    %263 = arith.cmpi sge, %246, %262 : vector<1x128xi32>
    %c15_i32_98 = arith.constant 15 : i32
    %264 = vector.broadcast %c15_i32_98 : i32 to vector<1x128xi32>
    %265 = arith.cmpi slt, %246, %264 : vector<1x128xi32>
    %266 = arith.andi %263, %265 : vector<1x128xi1>
    %267 = arith.andi %251, %261 : vector<1x128xi1>
    %268 = arith.mulf %241, %244 : vector<1x128xf32>
    %269 = arith.mulf %268, %228 : vector<1x128xf32>
    %cst_99 = arith.constant 0.000000e+00 : f32
    %270 = vector.broadcast %cst_99 : f32 to vector<1x128xf32>
    %271 = arith.select %267, %269, %270 : vector<1x128xi1>, vector<1x128xf32>
    %272 = arith.andi %256, %261 : vector<1x128xi1>
    %273 = arith.mulf %239, %244 : vector<1x128xf32>
    %274 = arith.mulf %273, %228 : vector<1x128xf32>
    %cst_100 = arith.constant 0.000000e+00 : f32
    %275 = vector.broadcast %cst_100 : f32 to vector<1x128xf32>
    %276 = arith.select %272, %274, %275 : vector<1x128xi1>, vector<1x128xf32>
    %277 = arith.andi %251, %266 : vector<1x128xi1>
    %278 = arith.mulf %241, %242 : vector<1x128xf32>
    %279 = arith.mulf %278, %228 : vector<1x128xf32>
    %cst_101 = arith.constant 0.000000e+00 : f32
    %280 = vector.broadcast %cst_101 : f32 to vector<1x128xf32>
    %281 = arith.select %277, %279, %280 : vector<1x128xi1>, vector<1x128xf32>
    %282 = arith.andi %256, %266 : vector<1x128xi1>
    %283 = arith.mulf %239, %242 : vector<1x128xf32>
    %284 = arith.mulf %283, %228 : vector<1x128xf32>
    %cst_102 = arith.constant 0.000000e+00 : f32
    %285 = vector.broadcast %cst_102 : f32 to vector<1x128xf32>
    %286 = arith.select %282, %284, %285 : vector<1x128xi1>, vector<1x128xf32>
    %c16_i32_103 = arith.constant 16 : i32
    %287 = vector.broadcast %c16_i32_103 : i32 to vector<1x128xi32>
    %288 = arith.muli %246, %287 : vector<1x128xi32>
    %289 = arith.addi %288, %245 : vector<1x128xi32>
    %290 = vector.broadcast %289 : vector<1x128xi32> to vector<256x128xi32>
    %291 = arith.subi %12, %290 : vector<256x128xi32>
    %c0_i32_104 = arith.constant 0 : i32
    %292 = vector.broadcast %c0_i32_104 : i32 to vector<256x128xi32>
    %293 = arith.cmpi eq, %291, %292 : vector<256x128xi32>
    %c1_i32_105 = arith.constant 1 : i32
    %294 = vector.broadcast %c1_i32_105 : i32 to vector<256x128xi32>
    %295 = arith.cmpi eq, %291, %294 : vector<256x128xi32>
    %c16_i32_106 = arith.constant 16 : i32
    %296 = vector.broadcast %c16_i32_106 : i32 to vector<256x128xi32>
    %297 = arith.cmpi eq, %291, %296 : vector<256x128xi32>
    %c17_i32_107 = arith.constant 17 : i32
    %298 = vector.broadcast %c17_i32_107 : i32 to vector<256x128xi32>
    %299 = arith.cmpi eq, %291, %298 : vector<256x128xi32>
    %cst_108 = arith.constant 0.000000e+00 : f32
    %300 = vector.shape_cast %286 : vector<1x128xf32> to vector<1x128xf32>
    %301 = vector.broadcast %300 : vector<1x128xf32> to vector<256x128xf32>
    %302 = vector.broadcast %cst_108 : f32 to vector<256x128xf32>
    %303 = arith.select %299, %301, %302 : vector<256x128xi1>, vector<256x128xf32>
    %304 = vector.shape_cast %281 : vector<1x128xf32> to vector<1x128xf32>
    %305 = vector.broadcast %304 : vector<1x128xf32> to vector<256x128xf32>
    %306 = arith.select %297, %305, %303 : vector<256x128xi1>, vector<256x128xf32>
    %307 = vector.shape_cast %276 : vector<1x128xf32> to vector<1x128xf32>
    %308 = vector.broadcast %307 : vector<1x128xf32> to vector<256x128xf32>
    %309 = arith.select %295, %308, %306 : vector<256x128xi1>, vector<256x128xf32>
    %310 = vector.shape_cast %271 : vector<1x128xf32> to vector<1x128xf32>
    %311 = vector.broadcast %310 : vector<1x128xf32> to vector<256x128xf32>
    %312 = arith.select %293, %311, %309 : vector<256x128xi1>, vector<256x128xf32>
    %313 = arith.addf %213, %312 : vector<256x128xf32>
    %c0_109 = arith.constant 0 : index
    %c6 = arith.constant 6 : index
    %c0_110 = arith.constant 0 : index
    %314 = vector.load %arg2[%c0_109, %c6, %c0_110] : memref<1x16x128xf32, #tpu.memory_space<vmem>>, vector<1x1x128xf32>
    %315 = vector.shape_cast %314 : vector<1x1x128xf32> to vector<1x128xf32>
    %c0_111 = arith.constant 0 : index
    %c6_112 = arith.constant 6 : index
    %c0_113 = arith.constant 0 : index
    %316 = vector.load %arg3[%c0_111, %c6_112, %c0_113] : memref<1x24x128xf32, #tpu.memory_space<vmem>>, vector<1x1x128xf32>
    %317 = vector.shape_cast %316 : vector<1x1x128xf32> to vector<1x128xf32>
    %318 = arith.addf %315, %317 : vector<1x128xf32>
    %c0_114 = arith.constant 0 : index
    %c7 = arith.constant 7 : index
    %c0_115 = arith.constant 0 : index
    %319 = vector.load %arg2[%c0_114, %c7, %c0_115] : memref<1x16x128xf32, #tpu.memory_space<vmem>>, vector<1x1x128xf32>
    %320 = vector.shape_cast %319 : vector<1x1x128xf32> to vector<1x128xf32>
    %c0_116 = arith.constant 0 : index
    %c7_117 = arith.constant 7 : index
    %c0_118 = arith.constant 0 : index
    %321 = vector.load %arg3[%c0_116, %c7_117, %c0_118] : memref<1x24x128xf32, #tpu.memory_space<vmem>>, vector<1x1x128xf32>
    %322 = vector.shape_cast %321 : vector<1x1x128xf32> to vector<1x128xf32>
    %323 = arith.addf %320, %322 : vector<1x128xf32>
    %c0_119 = arith.constant 0 : index
    %c19 = arith.constant 19 : index
    %c0_120 = arith.constant 0 : index
    %324 = vector.load %arg3[%c0_119, %c19, %c0_120] : memref<1x24x128xf32, #tpu.memory_space<vmem>>, vector<1x1x128xf32>
    %325 = vector.shape_cast %324 : vector<1x1x128xf32> to vector<1x128xf32>
    %326 = arith.subf %325, %3 : vector<1x128xf32>
    %327 = math.exp %326 : vector<1x128xf32>
    %328 = arith.mulf %327, %10 : vector<1x128xf32>
    %cst_121 = arith.constant 1.06666672 : f32
    %329 = vector.broadcast %cst_121 : f32 to vector<1x128xf32>
    %330 = arith.mulf %323, %329 : vector<1x128xf32>
    %cst_122 = arith.constant 5.000000e-01 : f32
    %331 = vector.broadcast %cst_122 : f32 to vector<1x128xf32>
    %332 = arith.subf %330, %331 : vector<1x128xf32>
    %cst_123 = arith.constant 1.06666672 : f32
    %333 = vector.broadcast %cst_123 : f32 to vector<1x128xf32>
    %334 = arith.mulf %318, %333 : vector<1x128xf32>
    %cst_124 = arith.constant 5.000000e-01 : f32
    %335 = vector.broadcast %cst_124 : f32 to vector<1x128xf32>
    %336 = arith.subf %334, %335 : vector<1x128xf32>
    %337 = math.floor %332 : vector<1x128xf32>
    %338 = math.floor %336 : vector<1x128xf32>
    %339 = arith.subf %332, %337 : vector<1x128xf32>
    %cst_125 = arith.constant 1.000000e+00 : f32
    %340 = vector.broadcast %cst_125 : f32 to vector<1x128xf32>
    %341 = arith.subf %340, %339 : vector<1x128xf32>
    %342 = arith.subf %336, %338 : vector<1x128xf32>
    %cst_126 = arith.constant 1.000000e+00 : f32
    %343 = vector.broadcast %cst_126 : f32 to vector<1x128xf32>
    %344 = arith.subf %343, %342 : vector<1x128xf32>
    %345 = arith.fptosi %337 : vector<1x128xf32> to vector<1x128xi32>
    %346 = arith.fptosi %338 : vector<1x128xf32> to vector<1x128xi32>
    %c0_i32_127 = arith.constant 0 : i32
    %347 = vector.broadcast %c0_i32_127 : i32 to vector<1x128xi32>
    %348 = arith.cmpi sge, %345, %347 : vector<1x128xi32>
    %c16_i32_128 = arith.constant 16 : i32
    %349 = vector.broadcast %c16_i32_128 : i32 to vector<1x128xi32>
    %350 = arith.cmpi slt, %345, %349 : vector<1x128xi32>
    %351 = arith.andi %348, %350 : vector<1x128xi1>
    %c-1_i32_129 = arith.constant -1 : i32
    %352 = vector.broadcast %c-1_i32_129 : i32 to vector<1x128xi32>
    %353 = arith.cmpi sge, %345, %352 : vector<1x128xi32>
    %c15_i32_130 = arith.constant 15 : i32
    %354 = vector.broadcast %c15_i32_130 : i32 to vector<1x128xi32>
    %355 = arith.cmpi slt, %345, %354 : vector<1x128xi32>
    %356 = arith.andi %353, %355 : vector<1x128xi1>
    %c0_i32_131 = arith.constant 0 : i32
    %357 = vector.broadcast %c0_i32_131 : i32 to vector<1x128xi32>
    %358 = arith.cmpi sge, %346, %357 : vector<1x128xi32>
    %c16_i32_132 = arith.constant 16 : i32
    %359 = vector.broadcast %c16_i32_132 : i32 to vector<1x128xi32>
    %360 = arith.cmpi slt, %346, %359 : vector<1x128xi32>
    %361 = arith.andi %358, %360 : vector<1x128xi1>
    %c-1_i32_133 = arith.constant -1 : i32
    %362 = vector.broadcast %c-1_i32_133 : i32 to vector<1x128xi32>
    %363 = arith.cmpi sge, %346, %362 : vector<1x128xi32>
    %c15_i32_134 = arith.constant 15 : i32
    %364 = vector.broadcast %c15_i32_134 : i32 to vector<1x128xi32>
    %365 = arith.cmpi slt, %346, %364 : vector<1x128xi32>
    %366 = arith.andi %363, %365 : vector<1x128xi1>
    %367 = arith.andi %351, %361 : vector<1x128xi1>
    %368 = arith.mulf %341, %344 : vector<1x128xf32>
    %369 = arith.mulf %368, %328 : vector<1x128xf32>
    %cst_135 = arith.constant 0.000000e+00 : f32
    %370 = vector.broadcast %cst_135 : f32 to vector<1x128xf32>
    %371 = arith.select %367, %369, %370 : vector<1x128xi1>, vector<1x128xf32>
    %372 = arith.andi %356, %361 : vector<1x128xi1>
    %373 = arith.mulf %339, %344 : vector<1x128xf32>
    %374 = arith.mulf %373, %328 : vector<1x128xf32>
    %cst_136 = arith.constant 0.000000e+00 : f32
    %375 = vector.broadcast %cst_136 : f32 to vector<1x128xf32>
    %376 = arith.select %372, %374, %375 : vector<1x128xi1>, vector<1x128xf32>
    %377 = arith.andi %351, %366 : vector<1x128xi1>
    %378 = arith.mulf %341, %342 : vector<1x128xf32>
    %379 = arith.mulf %378, %328 : vector<1x128xf32>
    %cst_137 = arith.constant 0.000000e+00 : f32
    %380 = vector.broadcast %cst_137 : f32 to vector<1x128xf32>
    %381 = arith.select %377, %379, %380 : vector<1x128xi1>, vector<1x128xf32>
    %382 = arith.andi %356, %366 : vector<1x128xi1>
    %383 = arith.mulf %339, %342 : vector<1x128xf32>
    %384 = arith.mulf %383, %328 : vector<1x128xf32>
    %cst_138 = arith.constant 0.000000e+00 : f32
    %385 = vector.broadcast %cst_138 : f32 to vector<1x128xf32>
    %386 = arith.select %382, %384, %385 : vector<1x128xi1>, vector<1x128xf32>
    %c16_i32_139 = arith.constant 16 : i32
    %387 = vector.broadcast %c16_i32_139 : i32 to vector<1x128xi32>
    %388 = arith.muli %346, %387 : vector<1x128xi32>
    %389 = arith.addi %388, %345 : vector<1x128xi32>
    %390 = vector.broadcast %389 : vector<1x128xi32> to vector<256x128xi32>
    %391 = arith.subi %12, %390 : vector<256x128xi32>
    %c0_i32_140 = arith.constant 0 : i32
    %392 = vector.broadcast %c0_i32_140 : i32 to vector<256x128xi32>
    %393 = arith.cmpi eq, %391, %392 : vector<256x128xi32>
    %c1_i32_141 = arith.constant 1 : i32
    %394 = vector.broadcast %c1_i32_141 : i32 to vector<256x128xi32>
    %395 = arith.cmpi eq, %391, %394 : vector<256x128xi32>
    %c16_i32_142 = arith.constant 16 : i32
    %396 = vector.broadcast %c16_i32_142 : i32 to vector<256x128xi32>
    %397 = arith.cmpi eq, %391, %396 : vector<256x128xi32>
    %c17_i32_143 = arith.constant 17 : i32
    %398 = vector.broadcast %c17_i32_143 : i32 to vector<256x128xi32>
    %399 = arith.cmpi eq, %391, %398 : vector<256x128xi32>
    %cst_144 = arith.constant 0.000000e+00 : f32
    %400 = vector.shape_cast %386 : vector<1x128xf32> to vector<1x128xf32>
    %401 = vector.broadcast %400 : vector<1x128xf32> to vector<256x128xf32>
    %402 = vector.broadcast %cst_144 : f32 to vector<256x128xf32>
    %403 = arith.select %399, %401, %402 : vector<256x128xi1>, vector<256x128xf32>
    %404 = vector.shape_cast %381 : vector<1x128xf32> to vector<1x128xf32>
    %405 = vector.broadcast %404 : vector<1x128xf32> to vector<256x128xf32>
    %406 = arith.select %397, %405, %403 : vector<256x128xi1>, vector<256x128xf32>
    %407 = vector.shape_cast %376 : vector<1x128xf32> to vector<1x128xf32>
    %408 = vector.broadcast %407 : vector<1x128xf32> to vector<256x128xf32>
    %409 = arith.select %395, %408, %406 : vector<256x128xi1>, vector<256x128xf32>
    %410 = vector.shape_cast %371 : vector<1x128xf32> to vector<1x128xf32>
    %411 = vector.broadcast %410 : vector<1x128xf32> to vector<256x128xf32>
    %412 = arith.select %393, %411, %409 : vector<256x128xi1>, vector<256x128xf32>
    %413 = arith.addf %313, %412 : vector<256x128xf32>
    %c0_145 = arith.constant 0 : index
    %c0_146 = arith.constant 0 : index
    %c0_147 = arith.constant 0 : index
    %414 = vector.load %arg4[%c0_145, %c0_146, %c0_147] : memref<1x32x256xbf16, #tpu.memory_space<vmem>>, vector<1x16x256xbf16>
    %415 = vector.shape_cast %414 : vector<1x16x256xbf16> to vector<16x256xbf16>
    %416 = arith.truncf %413 : vector<256x128xf32> to vector<256x128xbf16>
    %cst_148 = arith.constant dense<0.000000e+00> : vector<16x128xf32>
    %417 = tpu.matmul %415, %416, %cst_148 {dimension_numbers = #tpu.dot_dimension_numbers<[1], [0], [0], [1], [0, 0, 1, 1], [], []>} : vector<16x256xbf16>, vector<256x128xbf16>, vector<16x128xf32> -> vector<16x128xf32>
    %418 = arith.addf %11, %417 : vector<16x128xf32>
    %419 = arith.truncf %418 : vector<16x128xf32> to vector<16x128xbf16>
    %c0_149 = arith.constant 0 : index
    %c0_150 = arith.constant 0 : index
    %c0_151 = arith.constant 0 : index
    %420 = vector.load %arg5[%c0_149, %c0_150, %c0_151] : memref<1x32x128xbf16, #tpu.memory_space<vmem>>, vector<1x16x128xbf16>
    %421 = vector.shape_cast %420 : vector<1x16x128xbf16> to vector<16x128xbf16>
    %422 = vector.shape_cast %419 : vector<16x128xbf16> to vector<1x16x128xbf16>
    tpu.vector_store %arg5[%c0_149, %c0_150, %c0_151], %422 {strides = array<i32>} : memref<1x32x128xbf16, #tpu.memory_space<vmem>>, vector<1x16x128xbf16>,
    %c0_152 = arith.constant 0 : index
    %c20 = arith.constant 20 : index
    %c0_153 = arith.constant 0 : index
    %423 = vector.load %arg3[%c0_152, %c20, %c0_153] : memref<1x24x128xf32, #tpu.memory_space<vmem>>, vector<1x4x128xf32>
    %424 = vector.shape_cast %423 : vector<1x4x128xf32> to vector<4x128xf32>
    %cst_154 = arith.constant dense<0xFF800000> : vector<128xf32>
    %425 = vector.multi_reduction <maximumf>, %424, %cst_154 [0] : vector<4x128xf32> to vector<128xf32>
    %426 = vector.shape_cast %425 : vector<128xf32> to vector<1x128xf32>
    %427 = vector.broadcast %426 : vector<1x128xf32> to vector<4x128xf32>
    %428 = arith.subf %424, %427 : vector<4x128xf32>
    %429 = math.exp %428 : vector<4x128xf32>
    %cst_155 = arith.constant dense<0.000000e+00> : vector<128xf32>
    %430 = vector.multi_reduction <add>, %429, %cst_155 [0] : vector<4x128xf32> to vector<128xf32>
    %431 = vector.shape_cast %430 : vector<128xf32> to vector<1x128xf32>
    %cst_156 = arith.constant 1.000000e+00 : f32
    %432 = vector.broadcast %cst_156 : f32 to vector<1x128xf32>
    %433 = arith.divf %432, %431 : vector<1x128xf32>
    %cst_157 = arith.constant 0.000000e+00 : f32
    %434 = vector.broadcast %cst_157 : f32 to vector<16x128xf32>
    %435 = tpu.iota {dimensions = array<i32: 0>} : vector<256x128xi32>
    %cst_158 = arith.constant 0.000000e+00 : f32
    %436 = vector.broadcast %cst_158 : f32 to vector<256x128xf32>
    %c0_159 = arith.constant 0 : index
    %c8 = arith.constant 8 : index
    %c0_160 = arith.constant 0 : index
    %437 = vector.load %arg2[%c0_159, %c8, %c0_160] : memref<1x16x128xf32, #tpu.memory_space<vmem>>, vector<1x1x128xf32>
    %438 = vector.shape_cast %437 : vector<1x1x128xf32> to vector<1x128xf32>
    %c0_161 = arith.constant 0 : index
    %c8_162 = arith.constant 8 : index
    %c0_163 = arith.constant 0 : index
    %439 = vector.load %arg3[%c0_161, %c8_162, %c0_163] : memref<1x24x128xf32, #tpu.memory_space<vmem>>, vector<1x1x128xf32>
    %440 = vector.shape_cast %439 : vector<1x1x128xf32> to vector<1x128xf32>
    %441 = arith.addf %438, %440 : vector<1x128xf32>
    %c0_164 = arith.constant 0 : index
    %c9 = arith.constant 9 : index
    %c0_165 = arith.constant 0 : index
    %442 = vector.load %arg2[%c0_164, %c9, %c0_165] : memref<1x16x128xf32, #tpu.memory_space<vmem>>, vector<1x1x128xf32>
    %443 = vector.shape_cast %442 : vector<1x1x128xf32> to vector<1x128xf32>
    %c0_166 = arith.constant 0 : index
    %c9_167 = arith.constant 9 : index
    %c0_168 = arith.constant 0 : index
    %444 = vector.load %arg3[%c0_166, %c9_167, %c0_168] : memref<1x24x128xf32, #tpu.memory_space<vmem>>, vector<1x1x128xf32>
    %445 = vector.shape_cast %444 : vector<1x1x128xf32> to vector<1x128xf32>
    %446 = arith.addf %443, %445 : vector<1x128xf32>
    %c0_169 = arith.constant 0 : index
    %c20_170 = arith.constant 20 : index
    %c0_171 = arith.constant 0 : index
    %447 = vector.load %arg3[%c0_169, %c20_170, %c0_171] : memref<1x24x128xf32, #tpu.memory_space<vmem>>, vector<1x1x128xf32>
    %448 = vector.shape_cast %447 : vector<1x1x128xf32> to vector<1x128xf32>
    %449 = arith.subf %448, %426 : vector<1x128xf32>
    %450 = math.exp %449 : vector<1x128xf32>
    %451 = arith.mulf %450, %433 : vector<1x128xf32>
    %cst_172 = arith.constant 1.06666672 : f32
    %452 = vector.broadcast %cst_172 : f32 to vector<1x128xf32>
    %453 = arith.mulf %446, %452 : vector<1x128xf32>
    %cst_173 = arith.constant 5.000000e-01 : f32
    %454 = vector.broadcast %cst_173 : f32 to vector<1x128xf32>
    %455 = arith.subf %453, %454 : vector<1x128xf32>
    %cst_174 = arith.constant 1.06666672 : f32
    %456 = vector.broadcast %cst_174 : f32 to vector<1x128xf32>
    %457 = arith.mulf %441, %456 : vector<1x128xf32>
    %cst_175 = arith.constant 5.000000e-01 : f32
    %458 = vector.broadcast %cst_175 : f32 to vector<1x128xf32>
    %459 = arith.subf %457, %458 : vector<1x128xf32>
    %460 = math.floor %455 : vector<1x128xf32>
    %461 = math.floor %459 : vector<1x128xf32>
    %462 = arith.subf %455, %460 : vector<1x128xf32>
    %cst_176 = arith.constant 1.000000e+00 : f32
    %463 = vector.broadcast %cst_176 : f32 to vector<1x128xf32>
    %464 = arith.subf %463, %462 : vector<1x128xf32>
    %465 = arith.subf %459, %461 : vector<1x128xf32>
    %cst_177 = arith.constant 1.000000e+00 : f32
    %466 = vector.broadcast %cst_177 : f32 to vector<1x128xf32>
    %467 = arith.subf %466, %465 : vector<1x128xf32>
    %468 = arith.fptosi %460 : vector<1x128xf32> to vector<1x128xi32>
    %469 = arith.fptosi %461 : vector<1x128xf32> to vector<1x128xi32>
    %c0_i32_178 = arith.constant 0 : i32
    %470 = vector.broadcast %c0_i32_178 : i32 to vector<1x128xi32>
    %471 = arith.cmpi sge, %468, %470 : vector<1x128xi32>
    %c16_i32_179 = arith.constant 16 : i32
    %472 = vector.broadcast %c16_i32_179 : i32 to vector<1x128xi32>
    %473 = arith.cmpi slt, %468, %472 : vector<1x128xi32>
    %474 = arith.andi %471, %473 : vector<1x128xi1>
    %c-1_i32_180 = arith.constant -1 : i32
    %475 = vector.broadcast %c-1_i32_180 : i32 to vector<1x128xi32>
    %476 = arith.cmpi sge, %468, %475 : vector<1x128xi32>
    %c15_i32_181 = arith.constant 15 : i32
    %477 = vector.broadcast %c15_i32_181 : i32 to vector<1x128xi32>
    %478 = arith.cmpi slt, %468, %477 : vector<1x128xi32>
    %479 = arith.andi %476, %478 : vector<1x128xi1>
    %c0_i32_182 = arith.constant 0 : i32
    %480 = vector.broadcast %c0_i32_182 : i32 to vector<1x128xi32>
    %481 = arith.cmpi sge, %469, %480 : vector<1x128xi32>
    %c16_i32_183 = arith.constant 16 : i32
    %482 = vector.broadcast %c16_i32_183 : i32 to vector<1x128xi32>
    %483 = arith.cmpi slt, %469, %482 : vector<1x128xi32>
    %484 = arith.andi %481, %483 : vector<1x128xi1>
    %c-1_i32_184 = arith.constant -1 : i32
    %485 = vector.broadcast %c-1_i32_184 : i32 to vector<1x128xi32>
    %486 = arith.cmpi sge, %469, %485 : vector<1x128xi32>
    %c15_i32_185 = arith.constant 15 : i32
    %487 = vector.broadcast %c15_i32_185 : i32 to vector<1x128xi32>
    %488 = arith.cmpi slt, %469, %487 : vector<1x128xi32>
    %489 = arith.andi %486, %488 : vector<1x128xi1>
    %490 = arith.andi %474, %484 : vector<1x128xi1>
    %491 = arith.mulf %464, %467 : vector<1x128xf32>
    %492 = arith.mulf %491, %451 : vector<1x128xf32>
    %cst_186 = arith.constant 0.000000e+00 : f32
    %493 = vector.broadcast %cst_186 : f32 to vector<1x128xf32>
    %494 = arith.select %490, %492, %493 : vector<1x128xi1>, vector<1x128xf32>
    %495 = arith.andi %479, %484 : vector<1x128xi1>
    %496 = arith.mulf %462, %467 : vector<1x128xf32>
    %497 = arith.mulf %496, %451 : vector<1x128xf32>
    %cst_187 = arith.constant 0.000000e+00 : f32
    %498 = vector.broadcast %cst_187 : f32 to vector<1x128xf32>
    %499 = arith.select %495, %497, %498 : vector<1x128xi1>, vector<1x128xf32>
    %500 = arith.andi %474, %489 : vector<1x128xi1>
    %501 = arith.mulf %464, %465 : vector<1x128xf32>
    %502 = arith.mulf %501, %451 : vector<1x128xf32>
    %cst_188 = arith.constant 0.000000e+00 : f32
    %503 = vector.broadcast %cst_188 : f32 to vector<1x128xf32>
    %504 = arith.select %500, %502, %503 : vector<1x128xi1>, vector<1x128xf32>
    %505 = arith.andi %479, %489 : vector<1x128xi1>
    %506 = arith.mulf %462, %465 : vector<1x128xf32>
    %507 = arith.mulf %506, %451 : vector<1x128xf32>
    %cst_189 = arith.constant 0.000000e+00 : f32
    %508 = vector.broadcast %cst_189 : f32 to vector<1x128xf32>
    %509 = arith.select %505, %507, %508 : vector<1x128xi1>, vector<1x128xf32>
    %c16_i32_190 = arith.constant 16 : i32
    %510 = vector.broadcast %c16_i32_190 : i32 to vector<1x128xi32>
    %511 = arith.muli %469, %510 : vector<1x128xi32>
    %512 = arith.addi %511, %468 : vector<1x128xi32>
    %513 = vector.broadcast %512 : vector<1x128xi32> to vector<256x128xi32>
    %514 = arith.subi %435, %513 : vector<256x128xi32>
    %c0_i32_191 = arith.constant 0 : i32
    %515 = vector.broadcast %c0_i32_191 : i32 to vector<256x128xi32>
    %516 = arith.cmpi eq, %514, %515 : vector<256x128xi32>
    %c1_i32_192 = arith.constant 1 : i32
    %517 = vector.broadcast %c1_i32_192 : i32 to vector<256x128xi32>
    %518 = arith.cmpi eq, %514, %517 : vector<256x128xi32>
    %c16_i32_193 = arith.constant 16 : i32
    %519 = vector.broadcast %c16_i32_193 : i32 to vector<256x128xi32>
    %520 = arith.cmpi eq, %514, %519 : vector<256x128xi32>
    %c17_i32_194 = arith.constant 17 : i32
    %521 = vector.broadcast %c17_i32_194 : i32 to vector<256x128xi32>
    %522 = arith.cmpi eq, %514, %521 : vector<256x128xi32>
    %cst_195 = arith.constant 0.000000e+00 : f32
    %523 = vector.shape_cast %509 : vector<1x128xf32> to vector<1x128xf32>
    %524 = vector.broadcast %523 : vector<1x128xf32> to vector<256x128xf32>
    %525 = vector.broadcast %cst_195 : f32 to vector<256x128xf32>
    %526 = arith.select %522, %524, %525 : vector<256x128xi1>, vector<256x128xf32>
    %527 = vector.shape_cast %504 : vector<1x128xf32> to vector<1x128xf32>
    %528 = vector.broadcast %527 : vector<1x128xf32> to vector<256x128xf32>
    %529 = arith.select %520, %528, %526 : vector<256x128xi1>, vector<256x128xf32>
    %530 = vector.shape_cast %499 : vector<1x128xf32> to vector<1x128xf32>
    %531 = vector.broadcast %530 : vector<1x128xf32> to vector<256x128xf32>
    %532 = arith.select %518, %531, %529 : vector<256x128xi1>, vector<256x128xf32>
    %533 = vector.shape_cast %494 : vector<1x128xf32> to vector<1x128xf32>
    %534 = vector.broadcast %533 : vector<1x128xf32> to vector<256x128xf32>
    %535 = arith.select %516, %534, %532 : vector<256x128xi1>, vector<256x128xf32>
    %536 = arith.addf %436, %535 : vector<256x128xf32>
    %c0_196 = arith.constant 0 : index
    %c10 = arith.constant 10 : index
    %c0_197 = arith.constant 0 : index
    %537 = vector.load %arg2[%c0_196, %c10, %c0_197] : memref<1x16x128xf32, #tpu.memory_space<vmem>>, vector<1x1x128xf32>
    %538 = vector.shape_cast %537 : vector<1x1x128xf32> to vector<1x128xf32>
    %c0_198 = arith.constant 0 : index
    %c10_199 = arith.constant 10 : index
    %c0_200 = arith.constant 0 : index
    %539 = vector.load %arg3[%c0_198, %c10_199, %c0_200] : memref<1x24x128xf32, #tpu.memory_space<vmem>>, vector<1x1x128xf32>
    %540 = vector.shape_cast %539 : vector<1x1x128xf32> to vector<1x128xf32>
    %541 = arith.addf %538, %540 : vector<1x128xf32>
    %c0_201 = arith.constant 0 : index
    %c11 = arith.constant 11 : index
    %c0_202 = arith.constant 0 : index
    %542 = vector.load %arg2[%c0_201, %c11, %c0_202] : memref<1x16x128xf32, #tpu.memory_space<vmem>>, vector<1x1x128xf32>
    %543 = vector.shape_cast %542 : vector<1x1x128xf32> to vector<1x128xf32>
    %c0_203 = arith.constant 0 : index
    %c11_204 = arith.constant 11 : index
    %c0_205 = arith.constant 0 : index
    %544 = vector.load %arg3[%c0_203, %c11_204, %c0_205] : memref<1x24x128xf32, #tpu.memory_space<vmem>>, vector<1x1x128xf32>
    %545 = vector.shape_cast %544 : vector<1x1x128xf32> to vector<1x128xf32>
    %546 = arith.addf %543, %545 : vector<1x128xf32>
    %c0_206 = arith.constant 0 : index
    %c21 = arith.constant 21 : index
    %c0_207 = arith.constant 0 : index
    %547 = vector.load %arg3[%c0_206, %c21, %c0_207] : memref<1x24x128xf32, #tpu.memory_space<vmem>>, vector<1x1x128xf32>
    %548 = vector.shape_cast %547 : vector<1x1x128xf32> to vector<1x128xf32>
    %549 = arith.subf %548, %426 : vector<1x128xf32>
    %550 = math.exp %549 : vector<1x128xf32>
    %551 = arith.mulf %550, %433 : vector<1x128xf32>
    %cst_208 = arith.constant 1.06666672 : f32
    %552 = vector.broadcast %cst_208 : f32 to vector<1x128xf32>
    %553 = arith.mulf %546, %552 : vector<1x128xf32>
    %cst_209 = arith.constant 5.000000e-01 : f32
    %554 = vector.broadcast %cst_209 : f32 to vector<1x128xf32>
    %555 = arith.subf %553, %554 : vector<1x128xf32>
    %cst_210 = arith.constant 1.06666672 : f32
    %556 = vector.broadcast %cst_210 : f32 to vector<1x128xf32>
    %557 = arith.mulf %541, %556 : vector<1x128xf32>
    %cst_211 = arith.constant 5.000000e-01 : f32
    %558 = vector.broadcast %cst_211 : f32 to vector<1x128xf32>
    %559 = arith.subf %557, %558 : vector<1x128xf32>
    %560 = math.floor %555 : vector<1x128xf32>
    %561 = math.floor %559 : vector<1x128xf32>
    %562 = arith.subf %555, %560 : vector<1x128xf32>
    %cst_212 = arith.constant 1.000000e+00 : f32
    %563 = vector.broadcast %cst_212 : f32 to vector<1x128xf32>
    %564 = arith.subf %563, %562 : vector<1x128xf32>
    %565 = arith.subf %559, %561 : vector<1x128xf32>
    %cst_213 = arith.constant 1.000000e+00 : f32
    %566 = vector.broadcast %cst_213 : f32 to vector<1x128xf32>
    %567 = arith.subf %566, %565 : vector<1x128xf32>
    %568 = arith.fptosi %560 : vector<1x128xf32> to vector<1x128xi32>
    %569 = arith.fptosi %561 : vector<1x128xf32> to vector<1x128xi32>
    %c0_i32_214 = arith.constant 0 : i32
    %570 = vector.broadcast %c0_i32_214 : i32 to vector<1x128xi32>
    %571 = arith.cmpi sge, %568, %570 : vector<1x128xi32>
    %c16_i32_215 = arith.constant 16 : i32
    %572 = vector.broadcast %c16_i32_215 : i32 to vector<1x128xi32>
    %573 = arith.cmpi slt, %568, %572 : vector<1x128xi32>
    %574 = arith.andi %571, %573 : vector<1x128xi1>
    %c-1_i32_216 = arith.constant -1 : i32
    %575 = vector.broadcast %c-1_i32_216 : i32 to vector<1x128xi32>
    %576 = arith.cmpi sge, %568, %575 : vector<1x128xi32>
    %c15_i32_217 = arith.constant 15 : i32
    %577 = vector.broadcast %c15_i32_217 : i32 to vector<1x128xi32>
    %578 = arith.cmpi slt, %568, %577 : vector<1x128xi32>
    %579 = arith.andi %576, %578 : vector<1x128xi1>
    %c0_i32_218 = arith.constant 0 : i32
    %580 = vector.broadcast %c0_i32_218 : i32 to vector<1x128xi32>
    %581 = arith.cmpi sge, %569, %580 : vector<1x128xi32>
    %c16_i32_219 = arith.constant 16 : i32
    %582 = vector.broadcast %c16_i32_219 : i32 to vector<1x128xi32>
    %583 = arith.cmpi slt, %569, %582 : vector<1x128xi32>
    %584 = arith.andi %581, %583 : vector<1x128xi1>
    %c-1_i32_220 = arith.constant -1 : i32
    %585 = vector.broadcast %c-1_i32_220 : i32 to vector<1x128xi32>
    %586 = arith.cmpi sge, %569, %585 : vector<1x128xi32>
    %c15_i32_221 = arith.constant 15 : i32
    %587 = vector.broadcast %c15_i32_221 : i32 to vector<1x128xi32>
    %588 = arith.cmpi slt, %569, %587 : vector<1x128xi32>
    %589 = arith.andi %586, %588 : vector<1x128xi1>
    %590 = arith.andi %574, %584 : vector<1x128xi1>
    %591 = arith.mulf %564, %567 : vector<1x128xf32>
    %592 = arith.mulf %591, %551 : vector<1x128xf32>
    %cst_222 = arith.constant 0.000000e+00 : f32
    %593 = vector.broadcast %cst_222 : f32 to vector<1x128xf32>
    %594 = arith.select %590, %592, %593 : vector<1x128xi1>, vector<1x128xf32>
    %595 = arith.andi %579, %584 : vector<1x128xi1>
    %596 = arith.mulf %562, %567 : vector<1x128xf32>
    %597 = arith.mulf %596, %551 : vector<1x128xf32>
    %cst_223 = arith.constant 0.000000e+00 : f32
    %598 = vector.broadcast %cst_223 : f32 to vector<1x128xf32>
    %599 = arith.select %595, %597, %598 : vector<1x128xi1>, vector<1x128xf32>
    %600 = arith.andi %574, %589 : vector<1x128xi1>
    %601 = arith.mulf %564, %565 : vector<1x128xf32>
    %602 = arith.mulf %601, %551 : vector<1x128xf32>
    %cst_224 = arith.constant 0.000000e+00 : f32
    %603 = vector.broadcast %cst_224 : f32 to vector<1x128xf32>
    %604 = arith.select %600, %602, %603 : vector<1x128xi1>, vector<1x128xf32>
    %605 = arith.andi %579, %589 : vector<1x128xi1>
    %606 = arith.mulf %562, %565 : vector<1x128xf32>
    %607 = arith.mulf %606, %551 : vector<1x128xf32>
    %cst_225 = arith.constant 0.000000e+00 : f32
    %608 = vector.broadcast %cst_225 : f32 to vector<1x128xf32>
    %609 = arith.select %605, %607, %608 : vector<1x128xi1>, vector<1x128xf32>
    %c16_i32_226 = arith.constant 16 : i32
    %610 = vector.broadcast %c16_i32_226 : i32 to vector<1x128xi32>
    %611 = arith.muli %569, %610 : vector<1x128xi32>
    %612 = arith.addi %611, %568 : vector<1x128xi32>
    %613 = vector.broadcast %612 : vector<1x128xi32> to vector<256x128xi32>
    %614 = arith.subi %435, %613 : vector<256x128xi32>
    %c0_i32_227 = arith.constant 0 : i32
    %615 = vector.broadcast %c0_i32_227 : i32 to vector<256x128xi32>
    %616 = arith.cmpi eq, %614, %615 : vector<256x128xi32>
    %c1_i32_228 = arith.constant 1 : i32
    %617 = vector.broadcast %c1_i32_228 : i32 to vector<256x128xi32>
    %618 = arith.cmpi eq, %614, %617 : vector<256x128xi32>
    %c16_i32_229 = arith.constant 16 : i32
    %619 = vector.broadcast %c16_i32_229 : i32 to vector<256x128xi32>
    %620 = arith.cmpi eq, %614, %619 : vector<256x128xi32>
    %c17_i32_230 = arith.constant 17 : i32
    %621 = vector.broadcast %c17_i32_230 : i32 to vector<256x128xi32>
    %622 = arith.cmpi eq, %614, %621 : vector<256x128xi32>
    %cst_231 = arith.constant 0.000000e+00 : f32
    %623 = vector.shape_cast %609 : vector<1x128xf32> to vector<1x128xf32>
    %624 = vector.broadcast %623 : vector<1x128xf32> to vector<256x128xf32>
    %625 = vector.broadcast %cst_231 : f32 to vector<256x128xf32>
    %626 = arith.select %622, %624, %625 : vector<256x128xi1>, vector<256x128xf32>
    %627 = vector.shape_cast %604 : vector<1x128xf32> to vector<1x128xf32>
    %628 = vector.broadcast %627 : vector<1x128xf32> to vector<256x128xf32>
    %629 = arith.select %620, %628, %626 : vector<256x128xi1>, vector<256x128xf32>
    %630 = vector.shape_cast %599 : vector<1x128xf32> to vector<1x128xf32>
    %631 = vector.broadcast %630 : vector<1x128xf32> to vector<256x128xf32>
    %632 = arith.select %618, %631, %629 : vector<256x128xi1>, vector<256x128xf32>
    %633 = vector.shape_cast %594 : vector<1x128xf32> to vector<1x128xf32>
    %634 = vector.broadcast %633 : vector<1x128xf32> to vector<256x128xf32>
    %635 = arith.select %616, %634, %632 : vector<256x128xi1>, vector<256x128xf32>
    %636 = arith.addf %536, %635 : vector<256x128xf32>
    %c0_232 = arith.constant 0 : index
    %c12 = arith.constant 12 : index
    %c0_233 = arith.constant 0 : index
    %637 = vector.load %arg2[%c0_232, %c12, %c0_233] : memref<1x16x128xf32, #tpu.memory_space<vmem>>, vector<1x1x128xf32>
    %638 = vector.shape_cast %637 : vector<1x1x128xf32> to vector<1x128xf32>
    %c0_234 = arith.constant 0 : index
    %c12_235 = arith.constant 12 : index
    %c0_236 = arith.constant 0 : index
    %639 = vector.load %arg3[%c0_234, %c12_235, %c0_236] : memref<1x24x128xf32, #tpu.memory_space<vmem>>, vector<1x1x128xf32>
    %640 = vector.shape_cast %639 : vector<1x1x128xf32> to vector<1x128xf32>
    %641 = arith.addf %638, %640 : vector<1x128xf32>
    %c0_237 = arith.constant 0 : index
    %c13 = arith.constant 13 : index
    %c0_238 = arith.constant 0 : index
    %642 = vector.load %arg2[%c0_237, %c13, %c0_238] : memref<1x16x128xf32, #tpu.memory_space<vmem>>, vector<1x1x128xf32>
    %643 = vector.shape_cast %642 : vector<1x1x128xf32> to vector<1x128xf32>
    %c0_239 = arith.constant 0 : index
    %c13_240 = arith.constant 13 : index
    %c0_241 = arith.constant 0 : index
    %644 = vector.load %arg3[%c0_239, %c13_240, %c0_241] : memref<1x24x128xf32, #tpu.memory_space<vmem>>, vector<1x1x128xf32>
    %645 = vector.shape_cast %644 : vector<1x1x128xf32> to vector<1x128xf32>
    %646 = arith.addf %643, %645 : vector<1x128xf32>
    %c0_242 = arith.constant 0 : index
    %c22 = arith.constant 22 : index
    %c0_243 = arith.constant 0 : index
    %647 = vector.load %arg3[%c0_242, %c22, %c0_243] : memref<1x24x128xf32, #tpu.memory_space<vmem>>, vector<1x1x128xf32>
    %648 = vector.shape_cast %647 : vector<1x1x128xf32> to vector<1x128xf32>
    %649 = arith.subf %648, %426 : vector<1x128xf32>
    %650 = math.exp %649 : vector<1x128xf32>
    %651 = arith.mulf %650, %433 : vector<1x128xf32>
    %cst_244 = arith.constant 1.06666672 : f32
    %652 = vector.broadcast %cst_244 : f32 to vector<1x128xf32>
    %653 = arith.mulf %646, %652 : vector<1x128xf32>
    %cst_245 = arith.constant 5.000000e-01 : f32
    %654 = vector.broadcast %cst_245 : f32 to vector<1x128xf32>
    %655 = arith.subf %653, %654 : vector<1x128xf32>
    %cst_246 = arith.constant 1.06666672 : f32
    %656 = vector.broadcast %cst_246 : f32 to vector<1x128xf32>
    %657 = arith.mulf %641, %656 : vector<1x128xf32>
    %cst_247 = arith.constant 5.000000e-01 : f32
    %658 = vector.broadcast %cst_247 : f32 to vector<1x128xf32>
    %659 = arith.subf %657, %658 : vector<1x128xf32>
    %660 = math.floor %655 : vector<1x128xf32>
    %661 = math.floor %659 : vector<1x128xf32>
    %662 = arith.subf %655, %660 : vector<1x128xf32>
    %cst_248 = arith.constant 1.000000e+00 : f32
    %663 = vector.broadcast %cst_248 : f32 to vector<1x128xf32>
    %664 = arith.subf %663, %662 : vector<1x128xf32>
    %665 = arith.subf %659, %661 : vector<1x128xf32>
    %cst_249 = arith.constant 1.000000e+00 : f32
    %666 = vector.broadcast %cst_249 : f32 to vector<1x128xf32>
    %667 = arith.subf %666, %665 : vector<1x128xf32>
    %668 = arith.fptosi %660 : vector<1x128xf32> to vector<1x128xi32>
    %669 = arith.fptosi %661 : vector<1x128xf32> to vector<1x128xi32>
    %c0_i32_250 = arith.constant 0 : i32
    %670 = vector.broadcast %c0_i32_250 : i32 to vector<1x128xi32>
    %671 = arith.cmpi sge, %668, %670 : vector<1x128xi32>
    %c16_i32_251 = arith.constant 16 : i32
    %672 = vector.broadcast %c16_i32_251 : i32 to vector<1x128xi32>
    %673 = arith.cmpi slt, %668, %672 : vector<1x128xi32>
    %674 = arith.andi %671, %673 : vector<1x128xi1>
    %c-1_i32_252 = arith.constant -1 : i32
    %675 = vector.broadcast %c-1_i32_252 : i32 to vector<1x128xi32>
    %676 = arith.cmpi sge, %668, %675 : vector<1x128xi32>
    %c15_i32_253 = arith.constant 15 : i32
    %677 = vector.broadcast %c15_i32_253 : i32 to vector<1x128xi32>
    %678 = arith.cmpi slt, %668, %677 : vector<1x128xi32>
    %679 = arith.andi %676, %678 : vector<1x128xi1>
    %c0_i32_254 = arith.constant 0 : i32
    %680 = vector.broadcast %c0_i32_254 : i32 to vector<1x128xi32>
    %681 = arith.cmpi sge, %669, %680 : vector<1x128xi32>
    %c16_i32_255 = arith.constant 16 : i32
    %682 = vector.broadcast %c16_i32_255 : i32 to vector<1x128xi32>
    %683 = arith.cmpi slt, %669, %682 : vector<1x128xi32>
    %684 = arith.andi %681, %683 : vector<1x128xi1>
    %c-1_i32_256 = arith.constant -1 : i32
    %685 = vector.broadcast %c-1_i32_256 : i32 to vector<1x128xi32>
    %686 = arith.cmpi sge, %669, %685 : vector<1x128xi32>
    %c15_i32_257 = arith.constant 15 : i32
    %687 = vector.broadcast %c15_i32_257 : i32 to vector<1x128xi32>
    %688 = arith.cmpi slt, %669, %687 : vector<1x128xi32>
    %689 = arith.andi %686, %688 : vector<1x128xi1>
    %690 = arith.andi %674, %684 : vector<1x128xi1>
    %691 = arith.mulf %664, %667 : vector<1x128xf32>
    %692 = arith.mulf %691, %651 : vector<1x128xf32>
    %cst_258 = arith.constant 0.000000e+00 : f32
    %693 = vector.broadcast %cst_258 : f32 to vector<1x128xf32>
    %694 = arith.select %690, %692, %693 : vector<1x128xi1>, vector<1x128xf32>
    %695 = arith.andi %679, %684 : vector<1x128xi1>
    %696 = arith.mulf %662, %667 : vector<1x128xf32>
    %697 = arith.mulf %696, %651 : vector<1x128xf32>
    %cst_259 = arith.constant 0.000000e+00 : f32
    %698 = vector.broadcast %cst_259 : f32 to vector<1x128xf32>
    %699 = arith.select %695, %697, %698 : vector<1x128xi1>, vector<1x128xf32>
    %700 = arith.andi %674, %689 : vector<1x128xi1>
    %701 = arith.mulf %664, %665 : vector<1x128xf32>
    %702 = arith.mulf %701, %651 : vector<1x128xf32>
    %cst_260 = arith.constant 0.000000e+00 : f32
    %703 = vector.broadcast %cst_260 : f32 to vector<1x128xf32>
    %704 = arith.select %700, %702, %703 : vector<1x128xi1>, vector<1x128xf32>
    %705 = arith.andi %679, %689 : vector<1x128xi1>
    %706 = arith.mulf %662, %665 : vector<1x128xf32>
    %707 = arith.mulf %706, %651 : vector<1x128xf32>
    %cst_261 = arith.constant 0.000000e+00 : f32
    %708 = vector.broadcast %cst_261 : f32 to vector<1x128xf32>
    %709 = arith.select %705, %707, %708 : vector<1x128xi1>, vector<1x128xf32>
    %c16_i32_262 = arith.constant 16 : i32
    %710 = vector.broadcast %c16_i32_262 : i32 to vector<1x128xi32>
    %711 = arith.muli %669, %710 : vector<1x128xi32>
    %712 = arith.addi %711, %668 : vector<1x128xi32>
    %713 = vector.broadcast %712 : vector<1x128xi32> to vector<256x128xi32>
    %714 = arith.subi %435, %713 : vector<256x128xi32>
    %c0_i32_263 = arith.constant 0 : i32
    %715 = vector.broadcast %c0_i32_263 : i32 to vector<256x128xi32>
    %716 = arith.cmpi eq, %714, %715 : vector<256x128xi32>
    %c1_i32_264 = arith.constant 1 : i32
    %717 = vector.broadcast %c1_i32_264 : i32 to vector<256x128xi32>
    %718 = arith.cmpi eq, %714, %717 : vector<256x128xi32>
    %c16_i32_265 = arith.constant 16 : i32
    %719 = vector.broadcast %c16_i32_265 : i32 to vector<256x128xi32>
    %720 = arith.cmpi eq, %714, %719 : vector<256x128xi32>
    %c17_i32_266 = arith.constant 17 : i32
    %721 = vector.broadcast %c17_i32_266 : i32 to vector<256x128xi32>
    %722 = arith.cmpi eq, %714, %721 : vector<256x128xi32>
    %cst_267 = arith.constant 0.000000e+00 : f32
    %723 = vector.shape_cast %709 : vector<1x128xf32> to vector<1x128xf32>
    %724 = vector.broadcast %723 : vector<1x128xf32> to vector<256x128xf32>
    %725 = vector.broadcast %cst_267 : f32 to vector<256x128xf32>
    %726 = arith.select %722, %724, %725 : vector<256x128xi1>, vector<256x128xf32>
    %727 = vector.shape_cast %704 : vector<1x128xf32> to vector<1x128xf32>
    %728 = vector.broadcast %727 : vector<1x128xf32> to vector<256x128xf32>
    %729 = arith.select %720, %728, %726 : vector<256x128xi1>, vector<256x128xf32>
    %730 = vector.shape_cast %699 : vector<1x128xf32> to vector<1x128xf32>
    %731 = vector.broadcast %730 : vector<1x128xf32> to vector<256x128xf32>
    %732 = arith.select %718, %731, %729 : vector<256x128xi1>, vector<256x128xf32>
    %733 = vector.shape_cast %694 : vector<1x128xf32> to vector<1x128xf32>
    %734 = vector.broadcast %733 : vector<1x128xf32> to vector<256x128xf32>
    %735 = arith.select %716, %734, %732 : vector<256x128xi1>, vector<256x128xf32>
    %736 = arith.addf %636, %735 : vector<256x128xf32>
    %c0_268 = arith.constant 0 : index
    %c14 = arith.constant 14 : index
    %c0_269 = arith.constant 0 : index
    %737 = vector.load %arg2[%c0_268, %c14, %c0_269] : memref<1x16x128xf32, #tpu.memory_space<vmem>>, vector<1x1x128xf32>
    %738 = vector.shape_cast %737 : vector<1x1x128xf32> to vector<1x128xf32>
    %c0_270 = arith.constant 0 : index
    %c14_271 = arith.constant 14 : index
    %c0_272 = arith.constant 0 : index
    %739 = vector.load %arg3[%c0_270, %c14_271, %c0_272] : memref<1x24x128xf32, #tpu.memory_space<vmem>>, vector<1x1x128xf32>
    %740 = vector.shape_cast %739 : vector<1x1x128xf32> to vector<1x128xf32>
    %741 = arith.addf %738, %740 : vector<1x128xf32>
    %c0_273 = arith.constant 0 : index
    %c15 = arith.constant 15 : index
    %c0_274 = arith.constant 0 : index
    %742 = vector.load %arg2[%c0_273, %c15, %c0_274] : memref<1x16x128xf32, #tpu.memory_space<vmem>>, vector<1x1x128xf32>
    %743 = vector.shape_cast %742 : vector<1x1x128xf32> to vector<1x128xf32>
    %c0_275 = arith.constant 0 : index
    %c15_276 = arith.constant 15 : index
    %c0_277 = arith.constant 0 : index
    %744 = vector.load %arg3[%c0_275, %c15_276, %c0_277] : memref<1x24x128xf32, #tpu.memory_space<vmem>>, vector<1x1x128xf32>
    %745 = vector.shape_cast %744 : vector<1x1x128xf32> to vector<1x128xf32>
    %746 = arith.addf %743, %745 : vector<1x128xf32>
    %c0_278 = arith.constant 0 : index
    %c23 = arith.constant 23 : index
    %c0_279 = arith.constant 0 : index
    %747 = vector.load %arg3[%c0_278, %c23, %c0_279] : memref<1x24x128xf32, #tpu.memory_space<vmem>>, vector<1x1x128xf32>
    %748 = vector.shape_cast %747 : vector<1x1x128xf32> to vector<1x128xf32>
    %749 = arith.subf %748, %426 : vector<1x128xf32>
    %750 = math.exp %749 : vector<1x128xf32>
    %751 = arith.mulf %750, %433 : vector<1x128xf32>
    %cst_280 = arith.constant 1.06666672 : f32
    %752 = vector.broadcast %cst_280 : f32 to vector<1x128xf32>
    %753 = arith.mulf %746, %752 : vector<1x128xf32>
    %cst_281 = arith.constant 5.000000e-01 : f32
    %754 = vector.broadcast %cst_281 : f32 to vector<1x128xf32>
    %755 = arith.subf %753, %754 : vector<1x128xf32>
    %cst_282 = arith.constant 1.06666672 : f32
    %756 = vector.broadcast %cst_282 : f32 to vector<1x128xf32>
    %757 = arith.mulf %741, %756 : vector<1x128xf32>
    %cst_283 = arith.constant 5.000000e-01 : f32
    %758 = vector.broadcast %cst_283 : f32 to vector<1x128xf32>
    %759 = arith.subf %757, %758 : vector<1x128xf32>
    %760 = math.floor %755 : vector<1x128xf32>
    %761 = math.floor %759 : vector<1x128xf32>
    %762 = arith.subf %755, %760 : vector<1x128xf32>
    %cst_284 = arith.constant 1.000000e+00 : f32
    %763 = vector.broadcast %cst_284 : f32 to vector<1x128xf32>
    %764 = arith.subf %763, %762 : vector<1x128xf32>
    %765 = arith.subf %759, %761 : vector<1x128xf32>
    %cst_285 = arith.constant 1.000000e+00 : f32
    %766 = vector.broadcast %cst_285 : f32 to vector<1x128xf32>
    %767 = arith.subf %766, %765 : vector<1x128xf32>
    %768 = arith.fptosi %760 : vector<1x128xf32> to vector<1x128xi32>
    %769 = arith.fptosi %761 : vector<1x128xf32> to vector<1x128xi32>
    %c0_i32_286 = arith.constant 0 : i32
    %770 = vector.broadcast %c0_i32_286 : i32 to vector<1x128xi32>
    %771 = arith.cmpi sge, %768, %770 : vector<1x128xi32>
    %c16_i32_287 = arith.constant 16 : i32
    %772 = vector.broadcast %c16_i32_287 : i32 to vector<1x128xi32>
    %773 = arith.cmpi slt, %768, %772 : vector<1x128xi32>
    %774 = arith.andi %771, %773 : vector<1x128xi1>
    %c-1_i32_288 = arith.constant -1 : i32
    %775 = vector.broadcast %c-1_i32_288 : i32 to vector<1x128xi32>
    %776 = arith.cmpi sge, %768, %775 : vector<1x128xi32>
    %c15_i32_289 = arith.constant 15 : i32
    %777 = vector.broadcast %c15_i32_289 : i32 to vector<1x128xi32>
    %778 = arith.cmpi slt, %768, %777 : vector<1x128xi32>
    %779 = arith.andi %776, %778 : vector<1x128xi1>
    %c0_i32_290 = arith.constant 0 : i32
    %780 = vector.broadcast %c0_i32_290 : i32 to vector<1x128xi32>
    %781 = arith.cmpi sge, %769, %780 : vector<1x128xi32>
    %c16_i32_291 = arith.constant 16 : i32
    %782 = vector.broadcast %c16_i32_291 : i32 to vector<1x128xi32>
    %783 = arith.cmpi slt, %769, %782 : vector<1x128xi32>
    %784 = arith.andi %781, %783 : vector<1x128xi1>
    %c-1_i32_292 = arith.constant -1 : i32
    %785 = vector.broadcast %c-1_i32_292 : i32 to vector<1x128xi32>
    %786 = arith.cmpi sge, %769, %785 : vector<1x128xi32>
    %c15_i32_293 = arith.constant 15 : i32
    %787 = vector.broadcast %c15_i32_293 : i32 to vector<1x128xi32>
    %788 = arith.cmpi slt, %769, %787 : vector<1x128xi32>
    %789 = arith.andi %786, %788 : vector<1x128xi1>
    %790 = arith.andi %774, %784 : vector<1x128xi1>
    %791 = arith.mulf %764, %767 : vector<1x128xf32>
    %792 = arith.mulf %791, %751 : vector<1x128xf32>
    %cst_294 = arith.constant 0.000000e+00 : f32
    %793 = vector.broadcast %cst_294 : f32 to vector<1x128xf32>
    %794 = arith.select %790, %792, %793 : vector<1x128xi1>, vector<1x128xf32>
    %795 = arith.andi %779, %784 : vector<1x128xi1>
    %796 = arith.mulf %762, %767 : vector<1x128xf32>
    %797 = arith.mulf %796, %751 : vector<1x128xf32>
    %cst_295 = arith.constant 0.000000e+00 : f32
    %798 = vector.broadcast %cst_295 : f32 to vector<1x128xf32>
    %799 = arith.select %795, %797, %798 : vector<1x128xi1>, vector<1x128xf32>
    %800 = arith.andi %774, %789 : vector<1x128xi1>
    %801 = arith.mulf %764, %765 : vector<1x128xf32>
    %802 = arith.mulf %801, %751 : vector<1x128xf32>
    %cst_296 = arith.constant 0.000000e+00 : f32
    %803 = vector.broadcast %cst_296 : f32 to vector<1x128xf32>
    %804 = arith.select %800, %802, %803 : vector<1x128xi1>, vector<1x128xf32>
    %805 = arith.andi %779, %789 : vector<1x128xi1>
    %806 = arith.mulf %762, %765 : vector<1x128xf32>
    %807 = arith.mulf %806, %751 : vector<1x128xf32>
    %cst_297 = arith.constant 0.000000e+00 : f32
    %808 = vector.broadcast %cst_297 : f32 to vector<1x128xf32>
    %809 = arith.select %805, %807, %808 : vector<1x128xi1>, vector<1x128xf32>
    %c16_i32_298 = arith.constant 16 : i32
    %810 = vector.broadcast %c16_i32_298 : i32 to vector<1x128xi32>
    %811 = arith.muli %769, %810 : vector<1x128xi32>
    %812 = arith.addi %811, %768 : vector<1x128xi32>
    %813 = vector.broadcast %812 : vector<1x128xi32> to vector<256x128xi32>
    %814 = arith.subi %435, %813 : vector<256x128xi32>
    %c0_i32_299 = arith.constant 0 : i32
    %815 = vector.broadcast %c0_i32_299 : i32 to vector<256x128xi32>
    %816 = arith.cmpi eq, %814, %815 : vector<256x128xi32>
    %c1_i32_300 = arith.constant 1 : i32
    %817 = vector.broadcast %c1_i32_300 : i32 to vector<256x128xi32>
    %818 = arith.cmpi eq, %814, %817 : vector<256x128xi32>
    %c16_i32_301 = arith.constant 16 : i32
    %819 = vector.broadcast %c16_i32_301 : i32 to vector<256x128xi32>
    %820 = arith.cmpi eq, %814, %819 : vector<256x128xi32>
    %c17_i32_302 = arith.constant 17 : i32
    %821 = vector.broadcast %c17_i32_302 : i32 to vector<256x128xi32>
    %822 = arith.cmpi eq, %814, %821 : vector<256x128xi32>
    %cst_303 = arith.constant 0.000000e+00 : f32
    %823 = vector.shape_cast %809 : vector<1x128xf32> to vector<1x128xf32>
    %824 = vector.broadcast %823 : vector<1x128xf32> to vector<256x128xf32>
    %825 = vector.broadcast %cst_303 : f32 to vector<256x128xf32>
    %826 = arith.select %822, %824, %825 : vector<256x128xi1>, vector<256x128xf32>
    %827 = vector.shape_cast %804 : vector<1x128xf32> to vector<1x128xf32>
    %828 = vector.broadcast %827 : vector<1x128xf32> to vector<256x128xf32>
    %829 = arith.select %820, %828, %826 : vector<256x128xi1>, vector<256x128xf32>
    %830 = vector.shape_cast %799 : vector<1x128xf32> to vector<1x128xf32>
    %831 = vector.broadcast %830 : vector<1x128xf32> to vector<256x128xf32>
    %832 = arith.select %818, %831, %829 : vector<256x128xi1>, vector<256x128xf32>
    %833 = vector.shape_cast %794 : vector<1x128xf32> to vector<1x128xf32>
    %834 = vector.broadcast %833 : vector<1x128xf32> to vector<256x128xf32>
    %835 = arith.select %816, %834, %832 : vector<256x128xi1>, vector<256x128xf32>
    %836 = arith.addf %736, %835 : vector<256x128xf32>
    %c0_304 = arith.constant 0 : index
    %c16_305 = arith.constant 16 : index
    %c0_306 = arith.constant 0 : index
    %837 = vector.load %arg4[%c0_304, %c16_305, %c0_306] : memref<1x32x256xbf16, #tpu.memory_space<vmem>>, vector<1x16x256xbf16>
    %838 = vector.shape_cast %837 : vector<1x16x256xbf16> to vector<16x256xbf16>
    %839 = arith.truncf %836 : vector<256x128xf32> to vector<256x128xbf16>
    %cst_307 = arith.constant dense<0.000000e+00> : vector<16x128xf32>
    %840 = tpu.matmul %838, %839, %cst_307 {dimension_numbers = #tpu.dot_dimension_numbers<[1], [0], [0], [1], [0, 0, 1, 1], [], []>} : vector<16x256xbf16>, vector<256x128xbf16>, vector<16x128xf32> -> vector<16x128xf32>
    %841 = arith.addf %434, %840 : vector<16x128xf32>
    %842 = arith.truncf %841 : vector<16x128xf32> to vector<16x128xbf16>
    %c0_308 = arith.constant 0 : index
    %c16_309 = arith.constant 16 : index
    %c0_310 = arith.constant 0 : index
    %843 = vector.load %arg5[%c0_308, %c16_309, %c0_310] : memref<1x32x128xbf16, #tpu.memory_space<vmem>>, vector<1x16x128xbf16>
    %844 = vector.shape_cast %843 : vector<1x16x128xbf16> to vector<16x128xbf16>
    %845 = vector.shape_cast %842 : vector<16x128xbf16> to vector<1x16x128xbf16>
    tpu.vector_store %arg5[%c0_308, %c16_309, %c0_310], %845 {strides = array<i32>} : memref<1x32x128xbf16, #tpu.memory_space<vmem>>, vector<1x16x128xbf16>,
    return
  }
  func.func @transform_0(%arg0: i32, %arg1: i32) -> (i32, i32, i32) {
    %c0_i32 = arith.constant 0 : i32
    %c0_i32_0 = arith.constant 0 : i32
    return %arg0, %c0_i32, %arg1 : i32, i32, i32
  }
  func.func @transform_1(%arg0: i32, %arg1: i32) -> (i32, i32, i32) {
    %c0_i32 = arith.constant 0 : i32
    %c0_i32_0 = arith.constant 0 : i32
    return %arg0, %c0_i32, %arg1 : i32, i32, i32
  }
  func.func @transform_2(%arg0: i32, %arg1: i32) -> (i32, i32, i32) {
    %c0_i32 = arith.constant 0 : i32
    %c0_i32_0 = arith.constant 0 : i32
    %c0_i32_1 = arith.constant 0 : i32
    return %arg0, %c0_i32, %c0_i32_0 : i32, i32, i32
  }
  func.func @transform_3(%arg0: i32, %arg1: i32) -> (i32, i32, i32) {
    %c0_i32 = arith.constant 0 : i32
    %c0_i32_0 = arith.constant 0 : i32
    return %arg0, %c0_i32, %arg1 : i32, i32, i32
  }
}

module attributes {stable_mosaic.version = 11 : i64} {
  func.func @linear_from_t_kernel(%arg0: i32, %arg1: i32, %arg2: memref<1x32x256xbf16, #tpu.memory_space<vmem>>, %arg3: memref<32x32xbf16, #tpu.memory_space<vmem>>, %arg4: memref<1x32xf32, #tpu.memory_space<vmem>>, %arg5: memref<1x256x32xf32, #tpu.memory_space<vmem>>) attributes {dimension_semantics = [#tpu.dimension_semantics<parallel>, #tpu.dimension_semantics<parallel>], iteration_bounds = array<i64: 2, 1>, scalar_prefetch = 0 : i64, scratch_operands = 0 : i64, tpu.core_type = #tpu.core_type<tc>, window_params = [{transform_indices = @transform_0, window_bounds = array<i64: 1, 32, 256>}, {pipeline_mode = #tpu.pipeline_mode<synchronous>, transform_indices = @transform_1, window_bounds = array<i64: 32, 32>}, {pipeline_mode = #tpu.pipeline_mode<synchronous>, transform_indices = @transform_2, window_bounds = array<i64: 1, 32>}, {transform_indices = @transform_3, window_bounds = array<i64: 1, 256, 32>}]} {
    %c0 = arith.constant 0 : index
    %c0_0 = arith.constant 0 : index
    %c0_1 = arith.constant 0 : index
    %0 = vector.load %arg2[%c0, %c0_0, %c0_1] : memref<1x32x256xbf16, #tpu.memory_space<vmem>>, vector<1x32x256xbf16>
    %1 = vector.shape_cast %0 : vector<1x32x256xbf16> to vector<32x256xbf16>
    %c0_2 = arith.constant 0 : index
    %c0_3 = arith.constant 0 : index
    %2 = vector.load %arg3[%c0_2, %c0_3] : memref<32x32xbf16, #tpu.memory_space<vmem>>, vector<32x32xbf16>
    %cst = arith.constant dense<0.000000e+00> : vector<256x32xf32>
    %3 = tpu.matmul %1, %2, %cst {dimension_numbers = #tpu.dot_dimension_numbers<[0], [0], [1], [1], [0, 1, 1, 1], [], []>} : vector<32x256xbf16>, vector<32x32xbf16>, vector<256x32xf32> -> vector<256x32xf32>
    %c0_4 = arith.constant 0 : index
    %c0_5 = arith.constant 0 : index
    %4 = vector.load %arg4[%c0_4, %c0_5] : memref<1x32xf32, #tpu.memory_space<vmem>>, vector<1x32xf32>
    %5 = vector.broadcast %4 : vector<1x32xf32> to vector<256x32xf32>
    %6 = arith.addf %3, %5 : vector<256x32xf32>
    %c0_6 = arith.constant 0 : index
    %c0_7 = arith.constant 0 : index
    %c0_8 = arith.constant 0 : index
    %7 = vector.load %arg5[%c0_6, %c0_7, %c0_8] : memref<1x256x32xf32, #tpu.memory_space<vmem>>, vector<1x256x32xf32>
    %8 = vector.shape_cast %7 : vector<1x256x32xf32> to vector<256x32xf32>
    %9 = vector.shape_cast %6 : vector<256x32xf32> to vector<1x256x32xf32>
    tpu.vector_store %arg5[%c0_6, %c0_7, %c0_8], %9 {strides = array<i32>} : memref<1x256x32xf32, #tpu.memory_space<vmem>>, vector<1x256x32xf32>,
    return
  }
  func.func @transform_0(%arg0: i32, %arg1: i32) -> (i32, i32, i32) {
    %c0_i32 = arith.constant 0 : i32
    %c0_i32_0 = arith.constant 0 : i32
    return %arg0, %c0_i32, %arg1 : i32, i32, i32
  }
  func.func @transform_1(%arg0: i32, %arg1: i32) -> (i32, i32) {
    %c0_i32 = arith.constant 0 : i32
    %c0_i32_0 = arith.constant 0 : i32
    %c0_i32_1 = arith.constant 0 : i32
    return %c0_i32, %c0_i32_0 : i32, i32
  }
  func.func @transform_2(%arg0: i32, %arg1: i32) -> (i32, i32) {
    %c0_i32 = arith.constant 0 : i32
    %c0_i32_0 = arith.constant 0 : i32
    %c0_i32_1 = arith.constant 0 : i32
    return %c0_i32, %c0_i32_0 : i32, i32
  }
  func.func @transform_3(%arg0: i32, %arg1: i32) -> (i32, i32, i32) {
    %c0_i32 = arith.constant 0 : i32
    %c0_i32_0 = arith.constant 0 : i32
    return %arg0, %arg1, %c0_i32 : i32, i32, i32
  }
}

</mosaic_0001>

<bundles_post_ra>
// kernel: pano_self_attention.5
= control target key start
LH: loop header
LB: loop body
LE: loop exit
PB: predicated region body
PF: predicated region fallthrough
CT: control target
= control target key end

     0   :  { %s767_s12 = smov 0   ;;  %s769_s13 = smov 0   ;;  %s876_s0 = inlined_call_operand.vmem [shape: bf16[2,256,32], index: 0, kind: input, shape index: {}]   ;;  %s877_s1 = inlined_call_operand.vmem [shape: bf16[32,32], index: 1, kind: input, shape index: {}]   ;;  %s878_s2 = inlined_call_operand.vmem [shape: f32[32,1], index: 2, kind: input, shape index: {}]   ;;  %s879_s3 = inlined_call_operand.vmem [shape: bf16[2,32,256], index: 3, kind: output, shape index: {}]  }
   0x1   :  { %s771_s14 = smov 0  }
   0x2 LB: > { %s25_s15 = sadd.s32 1, %s740_s13  ;;  %p588_p0 = scmp.ge.s32.totalorder %s744_s14, 1  ;;  %s744_s14 = sphi %s771_s14, %s13_s14   ;;  %s740_s13 = sphi %s769_s13, %s881_s13   ;;  %s736_s12 = sphi %s767_s12, %s880_s12  }
   0x3   : > { %p27_p1 = scmp.ge.s32.totalorder %s25_s15, 2  ;;  %p158_p2 = scmp.lt.s32.totalorder %s744_s14, 3 }
   0x5   : > { %s883_s15 = smov (%p27_p1, %s25_s15), 0  ;;  %p159_p3 = pnand %p588_p0, %p158_p2 }
   0x6   : > { %p191_p4 = scmp.lt.s32.totalorder (!%p159_p3), %s736_s12, 1 }
   0x7   : > { %162 = sbr.rel (%p159_p3) target bundleno = 286 (0x11e), region = 32 }
   0xc   : > { %v788_v0 = vld [vmem:[%s877_s1] sm:$0xff]   ;;  %s885_s12 = smov (!%p191_p4, %s736_s12), 1  ;;  %vm361_vm0 = vcmask 261120   ;;  %v795_v1 = vld [vmem:[%s877_s1 + $0x8] sm:$0xff]   ;;  %v746_v2 = vmov 0   ;;  %v249_v3 = vld [vmem:[%s878_s2 + $0x10] sm:$0xff] }
   0xd   : > { %703 = vset.pattern.permute.xlu1 %v746_v2  ;;  %702 = vset.pattern.permute.xlu0 %v746_v2  ;;  %v247_v4 = vld [vmem:[%s878_s2] sm:$0xff]  ;;  %s619_s24 = sshll.u32 %s885_s12, 7  ;;  %v250_v5 = vld [vmem:[%s878_s2 + $0x18] sm:$0xff]  ;;  %v248_v6 = vld [vmem:[%s878_s2 + $0x8] sm:$0xff]  ;;  %s620_s5 = sshll.u32 %s885_s12, 5 }
   0xe   : > { %641 = vmatprep.mubr.msk.bf16.mxu0 %vm361_vm0, %v788_v0  ;;  %263 = vperm.xlu1 %703, %v249_v3   ;;  %s814_s29 = scalar_lea.vmem %s876_s0, %s619_s24  ;;  %s208_s8 = scalar_lea.vmem %s879_s3, %s620_s5 }
   0xf   : > { %643 = vmatprep.mubr.msk.bf16.mxu1 %vm361_vm0, %v795_v1  ;;  %253 = vperm.xlu0 %702, %v247_v4   ;;  %v704_v7 = vld [vmem:[%s814_s29 + $0x78] sm:$0xff]   ;;  %v706_v9 = vld [vmem:[%s814_s29 + $0x70] sm:$0xff]   ;;  %v708_v13 = vld [vmem:[%s814_s29 + $0x68] sm:$0xff]  }
  0x10   : > { %v705_v8 = vld [vmem:[%s814_s29 + $0x38] sm:$0xff]   ;;  %661 = vmatprep.subr.msk.bf16.mxu0 %vm361_vm0, %v704_v7  ;;  %662 = vmatprep.subr.msk.bf16.mxu1 %vm361_vm0, %v704_v7  ;;  %v707_v11 = vld [vmem:[%s814_s29 + $0x30] sm:$0xff]   ;;  %v709_v14 = vld [vmem:[%s814_s29 + $0x28] sm:$0xff]  }
  0x11   : > { %v390_v10 = vsel %vm361_vm0, %v705_v8, 0  ;;  %v387_v12 = vsel %vm361_vm0, %v707_v11, 0  ;;  %v384_v15 = vsel %vm361_vm0, %v709_v14, 0  ;;  %v710_v16 = vld [vmem:[%s814_s29 + $0x60] sm:$0xff]   ;;  %v712_v19 = vld [vmem:[%s814_s29 + $0x58] sm:$0xff]   ;;  %v714_v22 = vld [vmem:[%s814_s29 + $0x50] sm:$0xff]  }
  0x12   : > { %268 = vperm.xlu1 %703, %v250_v5   ;;  %626 = vmatpush3.bf16.xpose.msra.mxu0 %v390_v10  ;;  %v711_v17 = vld [vmem:[%s814_s29 + $0x20] sm:$0xff]   ;;  %v713_v20 = vld [vmem:[%s814_s29 + $0x18] sm:$0xff]   ;;  %v715_v23 = vld [vmem:[%s814_s29 + $0x10] sm:$0xff]  }
  0x13   : > { %258 = vperm.xlu0 %702, %v248_v6   ;;  %653 = vmatpush3.bf16.xpose.msra.mxu1 %v390_v10  ;;  %v381_v18 = vsel %vm361_vm0, %v711_v17, 0  ;;  %v378_v21 = vsel %vm361_vm0, %v713_v20, 0  ;;  %v375_v24 = vsel %vm361_vm0, %v715_v23, 0  ;;  %v716_v25 = vld [vmem:[%s814_s29 + $0x48] sm:$0xff]   ;;  %v718_v28 = vld [vmem:[%s814_s29 + $0x40] sm:$0xff]  }
  0x14   : > { %663 = vmatprep.subr.msk.bf16.mxu0 %vm361_vm0, %v706_v9  ;;  %664 = vmatprep.subr.msk.bf16.mxu1 %vm361_vm0, %v706_v9  ;;  %v717_v26 = vld [vmem:[%s814_s29 + $0x8] sm:$0xff]   ;;  %v719_v29 = vld [vmem:[%s814_s29] sm:$0xff]  }
  0x15   : > { %v372_v27 = vsel %vm361_vm0, %v717_v26, 0  ;;  %v369_v30 = vsel %vm361_vm0, %v719_v29, 0 }
  0x1a   : > { %628 = vmatpush3.bf16.xpose.msra.mxu0 %v387_v12 }
  0x1b   : > { %654 = vmatpush3.bf16.xpose.msra.mxu1 %v387_v12  ;;  %665 = vmatprep.subr.msk.bf16.mxu0 %vm361_vm0, %v708_v13 }
  0x1c   : > { %666 = vmatprep.subr.msk.bf16.mxu1 %vm361_vm0, %v708_v13 }
  0x22   : > { %630 = vmatpush3.bf16.xpose.msra.mxu0 %v384_v15 }
  0x23   : > { %655 = vmatpush3.bf16.xpose.msra.mxu1 %v384_v15  ;;  %667 = vmatprep.subr.msk.bf16.mxu0 %vm361_vm0, %v710_v16 }
  0x24   : > { %668 = vmatprep.subr.msk.bf16.mxu1 %vm361_vm0, %v710_v16 }
  0x2a   : > { %632 = vmatpush3.bf16.xpose.msra.mxu0 %v381_v18 }
  0x2b   : > { %656 = vmatpush3.bf16.xpose.msra.mxu1 %v381_v18  ;;  %669 = vmatprep.subr.msk.bf16.mxu0 %vm361_vm0, %v712_v19 }
  0x2c   : > { %670 = vmatprep.subr.msk.bf16.mxu1 %vm361_vm0, %v712_v19 }
  0x32   : > { %634 = vmatpush3.bf16.xpose.msra.mxu0 %v378_v21 }
  0x33   : > { %657 = vmatpush3.bf16.xpose.msra.mxu1 %v378_v21  ;;  %671 = vmatprep.subr.msk.bf16.mxu0 %vm361_vm0, %v714_v22 }
  0x34   : > { %672 = vmatprep.subr.msk.bf16.mxu1 %vm361_vm0, %v714_v22 }
  0x3a   : > { %636 = vmatpush3.bf16.xpose.msra.mxu0 %v375_v24 }
  0x3b   : > { %658 = vmatpush3.bf16.xpose.msra.mxu1 %v375_v24  ;;  %673 = vmatprep.subr.msk.bf16.mxu0 %vm361_vm0, %v716_v25 }
  0x3c   : > { %674 = vmatprep.subr.msk.bf16.mxu1 %vm361_vm0, %v716_v25 }
  0x42   : > { %638 = vmatpush3.bf16.xpose.msra.mxu0 %v372_v27 }
  0x43   : > { %659 = vmatpush3.bf16.xpose.msra.mxu1 %v372_v27  ;;  %675 = vmatprep.subr.msk.bf16.mxu0 %vm361_vm0, %v718_v28 }
  0x44   : > { %676 = vmatprep.subr.msk.bf16.mxu1 %vm361_vm0, %v718_v28 }
  0x4a   : > { %640 = vmatpush3.bf16.xpose.msra.mxu0 %v369_v30 }
  0x4b   : > { %660 = vmatpush3.bf16.xpose.msra.mxu1 %v369_v30 }
  0x51   : > { %642 = vmatmul.mubr.msk.bf16.vlgmr.msra.gmra.mxu0 %vm361_vm0, %v788_v0 }
  0x52   : > { %644 = vmatmul.mubr.msk.bf16.vlgmr.msra.gmra.mxu1 %vm361_vm0, %v795_v1 }
  0x89   : > { %v264_v31 = vpop.permute.xlu1 %263 }
  0x8a   : > { %v254_v32 = vpop.permute.xlu0 %253 }
  0x8d   : > { %v269_v43 = vpop.permute.xlu1 %268 }
  0x8e   : > { %v259_v44 = vpop.permute.xlu0 %258 }
 0x111   : > { %v450_v33 = vpop.f32.mrf.mxu0 }
 0x112   : > { %v460_v34 = vpop.f32.mrf.mxu1  ;;  %v451_v37 = vadd.f32 %v450_v33, %v254_v32 }
 0x113   : > { %v452_v35 = vpop.f32.mrf.mxu0  ;;  %v461_v38 = vadd.f32 %v460_v34, %v264_v31 }
 0x114   : > { %v462_v36 = vpop.f32.mrf.mxu1  ;;  %v453_v39 = vadd.f32 %v452_v35, %v254_v32 }
 0x115   : > { %v463_v40 = vadd.f32 %v462_v36, %v264_v31  ;;  %v454_v41 = vpop.f32.mrf.mxu0 }
 0x116   : > { %v464_v42 = vpop.f32.mrf.mxu1  ;;  %v621_v45 = vpack.c.bf16 %v453_v39, %v451_v37  ;;  %v455_v49 = vadd.f32 %v454_v41, %v259_v44 }
 0x117   : > { %v623_v46 = vpack.c.bf16 %v463_v40, %v461_v38  ;;  %v456_v47 = vpop.f32.mrf.mxu0  ;;  %v465_v50 = vadd.f32 %v464_v42, %v269_v43 }
 0x118   : > { %v466_v48 = vpop.f32.mrf.mxu1  ;;  %493 = vst [vmem:[%s208_s8] sm:$0xff] %v621_v45  ;;  %v457_v51 = vadd.f32 %v456_v47, %v259_v44 }
 0x119   : > { %495 = vst [vmem:[%s208_s8 + $0x10] sm:$0xff] %v623_v46  ;;  %v467_v52 = vadd.f32 %v466_v48, %v269_v43 }
 0x11a   : > { %v622_v53 = vpack.c.bf16 %v457_v51, %v455_v49 }
 0x11b   : > { %v624_v54 = vpack.c.bf16 %v467_v52, %v465_v50 }
 0x11c   : > { %494 = vst [vmem:[%s208_s8 + $0x8] sm:$0xff] %v622_v53 }
 0x11d   : > { %496 = vst [vmem:[%s208_s8 + $0x18] sm:$0xff] %v624_v54 }
 0x11e PF: > { %s13_s14 = sadd.s32 1, %s744_s14   ;;  %s880_s12 = smov %s740_s13 }
 0x11f   : > { %p10_p5 = scmp.ge.s32.totalorder %s13_s14, 4   ;;  %s881_s13 = smov %s883_s15 }
 0x121   :  { %12 = sbr.rel (!%p10_p5) target bundleno = 2 (0x2), region = 62 }

// kernel: pano_self_attention.4
= control target key start
LH: loop header
LB: loop body
LE: loop exit
PB: predicated region body
PF: predicated region fallthrough
CT: control target
= control target key end

     0   :  { %s725_s12 = smov 0   ;;  %s727_s13 = smov 0   ;;  %s831_s0 = inlined_call_operand.vmem [shape: bf16[2,256,32], index: 0, kind: input, shape index: {}]   ;;  %s832_s1 = inlined_call_operand.vmem [shape: bf16[24,32], index: 1, kind: input, shape index: {}]   ;;  %s833_s2 = inlined_call_operand.vmem [shape: f32[24,1], index: 2, kind: input, shape index: {}]   ;;  %s834_s3 = inlined_call_operand.vmem [shape: f32[2,24,256], index: 3, kind: output, shape index: {}]  }
   0x1   :  { %s729_s14 = smov 0  }
   0x2 LB: > { %s25_s15 = sadd.s32 1, %s698_s13  ;;  %p555_p0 = scmp.ge.s32.totalorder %s702_s14, 1  ;;  %s702_s14 = sphi %s729_s14, %s13_s14   ;;  %s698_s13 = sphi %s727_s13, %s836_s13   ;;  %s694_s12 = sphi %s725_s12, %s835_s12  }
   0x3   : > { %p27_p1 = scmp.ge.s32.totalorder %s25_s15, 2  ;;  %p158_p2 = scmp.lt.s32.totalorder %s702_s14, 3 }
   0x5   : > { %s838_s15 = smov (%p27_p1, %s25_s15), 0  ;;  %p159_p3 = pnand %p555_p0, %p158_p2 }
   0x6   : > { %p191_p4 = scmp.lt.s32.totalorder (!%p159_p3), %s694_s12, 1 }
   0x7   : > { %162 = sbr.rel (%p159_p3) target bundleno = 283 (0x11b), region = 32 }
   0xc   : > { %v746_v0 = vld [vmem:[%s832_s1] sm:$0xff]   ;;  %v751_v1 = vld [vmem:[%s832_s1 + $0x8] ss:$0 sps:$4 sm:$0xff]   ;;  %s840_s12 = smov (!%p191_p4, %s694_s12), 1  ;;  %vm352_vm0 = vcmask 261120   ;;  %v704_v2 = vmov 0  }
   0xd   : > { %660 = vset.pattern.permute.xlu0 %v704_v2  ;;  %v246_v3 = vld [vmem:[%s833_s2] sm:$0xff]  ;;  %661 = vset.pattern.permute.xlu1 %v704_v2  ;;  %v248_v4 = vld [vmem:[%s833_s2 + $0x10] sm:$0xff]  ;;  %s581_s24 = sshll.u32 %s840_s12, 7  ;;  %v247_v5 = vld [vmem:[%s833_s2 + $0x8] sm:$0xff]  ;;  %s634_s30 = smul.u32 48, %s840_s12 }
   0xe   : > { %598 = vmatprep.mubr.msk.bf16.mxu0 %vm352_vm0, %v746_v0  ;;  %600 = vmatprep.mubr.msk.bf16.mxu1 %vm352_vm0, %v751_v1  ;;  %s769_s27 = scalar_lea.vmem %s831_s0, %s581_s24 }
   0xf   : > { %251 = vperm.xlu0 %660, %v246_v3   ;;  %261 = vperm.xlu1 %661, %v248_v4   ;;  %v662_v6 = vld [vmem:[%s769_s27 + $0x78] sm:$0xff]   ;;  %v664_v8 = vld [vmem:[%s769_s27 + $0x70] sm:$0xff]   ;;  %v666_v12 = vld [vmem:[%s769_s27 + $0x68] sm:$0xff]   ;;  %s208_s6 = scalar_lea.vmem %s834_s3, %s634_s30 }
  0x10   : > { %v663_v7 = vld [vmem:[%s769_s27 + $0x38] sm:$0xff]   ;;  %618 = vmatprep.subr.msk.bf16.mxu0 %vm352_vm0, %v662_v6  ;;  %619 = vmatprep.subr.msk.bf16.mxu1 %vm352_vm0, %v662_v6  ;;  %v665_v10 = vld [vmem:[%s769_s27 + $0x30] sm:$0xff]   ;;  %v667_v13 = vld [vmem:[%s769_s27 + $0x28] sm:$0xff]  }
  0x11   : > { %v381_v9 = vsel %vm352_vm0, %v663_v7, 0  ;;  %v378_v11 = vsel %vm352_vm0, %v665_v10, 0  ;;  %v375_v14 = vsel %vm352_vm0, %v667_v13, 0  ;;  %v668_v15 = vld [vmem:[%s769_s27 + $0x60] sm:$0xff]   ;;  %v670_v18 = vld [vmem:[%s769_s27 + $0x58] sm:$0xff]   ;;  %v672_v21 = vld [vmem:[%s769_s27 + $0x50] sm:$0xff]  }
  0x12   : > { %583 = vmatpush3.bf16.xpose.msra.mxu0 %v381_v9  ;;  %610 = vmatpush3.bf16.xpose.msra.mxu1 %v381_v9  ;;  %v669_v16 = vld [vmem:[%s769_s27 + $0x20] sm:$0xff]   ;;  %v671_v19 = vld [vmem:[%s769_s27 + $0x18] sm:$0xff]   ;;  %v673_v22 = vld [vmem:[%s769_s27 + $0x10] sm:$0xff]  }
  0x13   : > { %256 = vperm.xlu0 %660, %v247_v5   ;;  %620 = vmatprep.subr.msk.bf16.mxu0 %vm352_vm0, %v664_v8  ;;  %v372_v17 = vsel %vm352_vm0, %v669_v16, 0  ;;  %v369_v20 = vsel %vm352_vm0, %v671_v19, 0  ;;  %v366_v23 = vsel %vm352_vm0, %v673_v22, 0  ;;  %v674_v24 = vld [vmem:[%s769_s27 + $0x48] sm:$0xff]   ;;  %v676_v27 = vld [vmem:[%s769_s27 + $0x40] sm:$0xff]  }
  0x14   : > { %621 = vmatprep.subr.msk.bf16.mxu1 %vm352_vm0, %v664_v8  ;;  %v675_v25 = vld [vmem:[%s769_s27 + $0x8] sm:$0xff]   ;;  %v677_v28 = vld [vmem:[%s769_s27] sm:$0xff]  }
  0x15   : > { %v363_v26 = vsel %vm352_vm0, %v675_v25, 0  ;;  %v360_v29 = vsel %vm352_vm0, %v677_v28, 0 }
  0x1a   : > { %585 = vmatpush3.bf16.xpose.msra.mxu0 %v378_v11  ;;  %611 = vmatpush3.bf16.xpose.msra.mxu1 %v378_v11 }
  0x1b   : > { %622 = vmatprep.subr.msk.bf16.mxu0 %vm352_vm0, %v666_v12  ;;  %623 = vmatprep.subr.msk.bf16.mxu1 %vm352_vm0, %v666_v12 }
  0x22   : > { %587 = vmatpush3.bf16.xpose.msra.mxu0 %v375_v14  ;;  %612 = vmatpush3.bf16.xpose.msra.mxu1 %v375_v14 }
  0x23   : > { %624 = vmatprep.subr.msk.bf16.mxu0 %vm352_vm0, %v668_v15  ;;  %625 = vmatprep.subr.msk.bf16.mxu1 %vm352_vm0, %v668_v15 }
  0x2a   : > { %589 = vmatpush3.bf16.xpose.msra.mxu0 %v372_v17  ;;  %613 = vmatpush3.bf16.xpose.msra.mxu1 %v372_v17 }
  0x2b   : > { %626 = vmatprep.subr.msk.bf16.mxu0 %vm352_vm0, %v670_v18  ;;  %627 = vmatprep.subr.msk.bf16.mxu1 %vm352_vm0, %v670_v18 }
  0x32   : > { %591 = vmatpush3.bf16.xpose.msra.mxu0 %v369_v20  ;;  %614 = vmatpush3.bf16.xpose.msra.mxu1 %v369_v20 }
  0x33   : > { %628 = vmatprep.subr.msk.bf16.mxu0 %vm352_vm0, %v672_v21  ;;  %629 = vmatprep.subr.msk.bf16.mxu1 %vm352_vm0, %v672_v21 }
  0x3a   : > { %593 = vmatpush3.bf16.xpose.msra.mxu0 %v366_v23  ;;  %615 = vmatpush3.bf16.xpose.msra.mxu1 %v366_v23 }
  0x3b   : > { %630 = vmatprep.subr.msk.bf16.mxu0 %vm352_vm0, %v674_v24  ;;  %631 = vmatprep.subr.msk.bf16.mxu1 %vm352_vm0, %v674_v24 }
  0x42   : > { %595 = vmatpush3.bf16.xpose.msra.mxu0 %v363_v26  ;;  %616 = vmatpush3.bf16.xpose.msra.mxu1 %v363_v26 }
  0x43   : > { %632 = vmatprep.subr.msk.bf16.mxu0 %vm352_vm0, %v676_v27  ;;  %633 = vmatprep.subr.msk.bf16.mxu1 %vm352_vm0, %v676_v27 }
  0x4a   : > { %597 = vmatpush3.bf16.xpose.msra.mxu0 %v360_v29  ;;  %617 = vmatpush3.bf16.xpose.msra.mxu1 %v360_v29 }
  0x51   : > { %599 = vmatmul.mubr.msk.bf16.vlgmr.msra.gmra.mxu0 %vm352_vm0, %v746_v0  ;;  %601 = vmatmul.mubr.msk.bf16.vlgmr.msra.gmra.mxu1 %vm352_vm0, %v751_v1 }
  0x8a   : > { %v252_v30 = vpop.permute.xlu0 %251  ;;  %v262_v31 = vpop.permute.xlu1 %261 }
  0x8e   : > { %v257_v38 = vpop.permute.xlu0 %256 }
 0x111   : > { %v441_v32 = vpop.f32.mrf.mxu0  ;;  %v451_v33 = vpop.f32.mrf.mxu1 }
 0x112   : > { %v442_v34 = vadd.f32 %v441_v32, %v252_v30  ;;  %v452_v35 = vadd.f32 %v451_v33, %v262_v31 }
 0x113   : > { %v443_v36 = vpop.f32.mrf.mxu0  ;;  %v453_v37 = vpop.f32.mrf.mxu1 }
 0x114   : > { %458 = vst [vmem:[%s208_s6] sm:$0xff] %v442_v34  ;;  %v444_v39 = vadd.f32 %v443_v36, %v252_v30  ;;  %v454_v40 = vadd.f32 %v453_v37, %v262_v31  ;;  %462 = vst [vmem:[%s208_s6 + $0x20] sm:$0xff] %v452_v35 }
 0x115   : > { %v445_v41 = vpop.f32.mrf.mxu0  ;;  %v455_v42 = vpop.f32.mrf.mxu1 }
 0x116   : > { %459 = vst [vmem:[%s208_s6 + $0x8] sm:$0xff] %v444_v39  ;;  %463 = vst [vmem:[%s208_s6 + $0x28] sm:$0xff] %v454_v40  ;;  %v446_v43 = vadd.f32 %v445_v41, %v257_v38 }
 0x117   : > { %v447_v44 = vpop.f32.mrf.mxu0  ;;  %v456_v45 = vpop.f32.mrf.mxu1 }
 0x118   : > { %460 = vst [vmem:[%s208_s6 + $0x10] sm:$0xff] %v446_v43  ;;  %v448_v46 = vadd.f32 %v447_v44, %v257_v38 }
 0x11a   : > { %461 = vst [vmem:[%s208_s6 + $0x18] sm:$0xff] %v448_v46 }
 0x11b PF: > { %s13_s14 = sadd.s32 1, %s702_s14   ;;  %s835_s12 = smov %s698_s13 }
 0x11c   : > { %p10_p5 = scmp.ge.s32.totalorder %s13_s14, 4   ;;  %s836_s13 = smov %s838_s15 }
 0x11e   :  { %12 = sbr.rel (!%p10_p5) target bundleno = 2 (0x2), region = 62 }

// kernel: pano_self_attention.7
= control target key start
LH: loop header
LB: loop body
LE: loop exit
PB: predicated region body
PF: predicated region fallthrough
CT: control target
= control target key end

     0   :  { %8 = vsyncpa [#allocation3], 0  ;;  %s1124_s0 = inlined_call_operand.vmem [shape: bf16[2,32,256], index: 0, kind: input, shape index: {}]   ;;  %s1125_s1 = inlined_call_operand.vmem [shape: bf16[32,32], index: 1, kind: input, shape index: {}]   ;;  %s1126_s2 = inlined_call_operand.vmem [shape: f32[1,32], index: 2, kind: input, shape index: {}]   ;;  %s1127_s3 = inlined_call_operand.hbm [shape: f32[2,256,32], index: 3, kind: output, shape index: {}]  }
   0x1   :  { %10 = vsyncpa [#allocation3 + $0x1], 0  ;;  %s880_s12 = smov 0   ;;  %s882_s13 = smov 0  }
   0x2   :  { %s884_s14 = smov 0   ;;  %s886_s15 = smov 0  }
   0x3   :  { %s888_s16 = smov 0   ;;  %s890_s17 = smov 0  }
   0x4 LB: > { %s617_s18 = sadd.s32 4294967295, %s855_s17   ;;  %s618_s19 = sadd.s32 4294967294, %s855_s17   ;;  %s855_s17 = sphi %s890_s17, %s16_s17   ;;  %s851_s16 = sphi %s888_s16, %s1134_s16   ;;  %s847_s15 = sphi %s886_s15, %s1133_s15   ;;  %s843_s14 = sphi %s884_s14, %s1132_s14   ;;  %s839_s13 = sphi %s882_s13, %s1131_s13   ;;  %s835_s12 = sphi %s880_s12, %s1130_s12  }
   0x5   : > { %s28_s20 = sadd.s32 1, %s851_s16  ;;  %s107_s21 = sadd.s32 1, %s843_s14 }
   0x6   : > { %p30_p0 = scmp.ge.s32.totalorder %s28_s20, 2  ;;  %p117_p1 = scmp.ne.s32.totalorder %s843_s14, %s839_s13 }
   0x7   : > { %p118_p2 = scmp.eq.s32.totalorder %s617_s18, 1  ;;  %p123_p3 = scmp.ne.s32.totalorder %s839_s13, %s835_s12 }
   0x8   : > { %s1136_s20 = smov (%p30_p0, %s28_s20), 0  ;;  %p124_p5 = scmp.eq.s32.totalorder %s618_s19, 1 }
   0x9   : > { %p920_p4 = por %p118_p2, %p117_p1  ;;  %s102_s23 = ssub.s32 %s851_s16, %s1136_s20 }
   0xa   : > { %p621_p6 = scmp.ge.s32.totalorder %s855_s17, 1  ;;  %p105_p7 = scmp.eq.s32.totalorder %s102_s23, 0 }
   0xb   : > { %p927_p8 = por %p124_p5, %p123_p3  ;;  %p161_p9 = scmp.lt.s32.totalorder %s855_s17, 3 }
   0xc   : > { %s933_s25 = scalar_select %p105_p7, %s843_s14, %s107_s21  }
   0xd   : > { %p162_p10 = pnand %p621_p6, %p161_p9 }
   0xe   : > { %p190_p11 = scmp.lt.s32.totalorder (!%p162_p10), %s847_s15, 1  ;;  %s186_s8 = sand.u32 (!%p162_p10), 1, %s839_s13  }
   0xf   : > { %165 = sbr.rel (%p162_p10) target bundleno = 367 (0x16f), region = 32  ;;  %s622_s9 = sshll.u32 (!%p162_p10), %s186_s8, 8 }
  0x10   : > { %s972_s18 = scalar_lea.vmem (!%p162_p10), [#allocation2], %s622_s9  ;;  %s654_s19 = sshll.u32 (!%p162_p10), %s847_s15, 12 }
  0x11   : > { %s538_s21 = sshll.u32 (!%p162_p10), %s972_s18, 4  ;;  %s1066_s26 = scalar_lea.hbm (!%p162_p10), %s1127_s3, %s654_s19  ;;  %s1068_s21 = int_to_ptr.vmem [resolvable:$true] %s538_s21 }
  0x12   : > { %s1079_s27 = scalar_lea.sflag (!%p162_p10), [#allocation3], %s186_s8  ;;  %s857_s29 = smov (!%p162_p10), [#allocation2]  }
  0x13   : > { %s783_s30 = sshll.u32 (!%p162_p10), %s857_s29, 4  ;;  %s784_s30 = int_to_ptr.vmem [resolvable:$false] %s783_s30 }
  0x14   : > { %v777_v0 = vld [vmem:[%s1125_s1 + $0x8] sm:$0xff]   ;;  %s191_s28 = scalar_select %p190_p11, %s847_s15, 1  ;;  %v778_v1 = vld [vmem:[%s1125_s1] sm:$0xff]   ;;  %vm280_vm0 = vcmask 261120  }
  0x15   : > { %673 = vmatprep.subr.bf16.mxu0 %v777_v0  ;;  %709 = vmatprep.subr.bf16.mxu1 %v777_v0  ;;  %v968_v22 = vld [vmem:[%s1126_s2] ss:$0 sm:$0xff]  ;;  %p786_p1 = scmp.lt.s32.totalorder %s1068_s21, %s784_s30 }
  0x16   : > { %s653_s4 = sshll.u32 %s191_s28, 5  ;;  %674 = vmatpush3.bf16.msra.mxu0 %v777_v0  ;;  %711 = vmatpush3.bf16.msra.mxu1 %v777_v0  ;;  %s779_s28 = scalar_lea.vmem %s1068_s21, 4096 }
  0x17   : > { %s197_s7 = scalar_lea.vmem %s1124_s0, %s653_s4  ;;  %675 = vmatprep.subr.bf16.mxu0 %v778_v1  ;;  %710 = vmatprep.subr.bf16.mxu1 %v778_v1  ;;  %p780_p12 = scmp.ne.s32.totalorder %s1068_s21, %s779_s28 }
  0x18   : > { %v771_v2 = vld [vmem:[%s197_s7 + $0x4] ss:$8 sps:$4 sm:$0xff]   ;;  %v773_v3 = vld [vmem:[%s197_s7] ss:$8 sps:$4 sm:$0xff]   ;;  %v774_v4 = vld [vmem:[%s197_s7 + $0x14] ss:$8 sps:$4 sm:$0xff]  }
  0x19   : > { %252 = vxpose.xlu1.c.b16.start [1/2] (short) %v771_v2, 128  ;;  %236 = vxpose.xlu0.c.b16.start [1/2] (short) %v773_v3, 128  ;;  %v776_v5 = vld [vmem:[%s197_s7 + $0x10] ss:$8 sps:$4 sm:$0xff]   ;;  %p781_p13 = pnand %p780_p12, %p920_p4  ;;  %s785_s4 = scalar_lea.vmem %s784_s30, 8192 }
  0x1a   : > { %676 = vmatpush3.bf16.msra.mxu0 %v778_v1  ;;  %712 = vmatpush3.bf16.msra.mxu1 %v778_v1  ;;  %p787_p2 = scmp.lt.s32.totalorder %s785_s4, %s779_s28 }
  0x1b   : > { %p782_p0 = pneg %p781_p13 }
  0x1c   : > { %p788_p3 = por %p787_p2, %p786_p1 }
  0x1d   : > { %253 = vxpose.xlu1.c.b16.end [2/2] (short) %v774_v4, 128  ;;  %237 = vxpose.xlu0.c.b16.end [2/2] (short) %v776_v5, 128 }
  0x1e   : > { %p789_p5 = pnand %p788_p3, %p782_p0 }
  0x7b   : > { %v260_v6 = vpop.trf.xlu1  ;;  %v244_v7 = vpop.trf.xlu0 }
  0x7c   : > { %693 = vmatprep.mubr.msk.bf16.mxu1 %vm280_vm0, %v260_v6  ;;  %677 = vmatprep.mubr.msk.bf16.mxu0 %vm280_vm0, %v244_v7 }
  0x7f   : > { %v261_v8 = vpop.trf.xlu1  ;;  %v245_v9 = vpop.trf.xlu0 }
  0x80   : > { %694 = vmatmul.mubr.msk.bf16.vlgmr.msra.gmra.mxu1 %vm280_vm0, %v261_v8  ;;  %678 = vmatmul.mubr.msk.bf16.vlgmr.msra.gmra.mxu0 %vm280_vm0, %v245_v9 }
  0x83   : > { %v262_v10 = vpop.trf.xlu1  ;;  %v246_v11 = vpop.trf.xlu0 }
  0x84   : > { %697 = vmatprep.mubr.msk.bf16.mxu1 %vm280_vm0, %v262_v10  ;;  %681 = vmatprep.mubr.msk.bf16.mxu0 %vm280_vm0, %v246_v11 }
  0x87   : > { %v263_v12 = vpop.trf.xlu1  ;;  %v247_v13 = vpop.trf.xlu0 }
  0x88   : > { %698 = vmatmul.mubr.msk.bf16.gmra.mxu1 %vm280_vm0, %v263_v12  ;;  %682 = vmatmul.mubr.msk.bf16.gmra.mxu0 %vm280_vm0, %v247_v13 }
  0x8b   : > { %v264_v14 = vpop.trf.xlu1  ;;  %v248_v15 = vpop.trf.xlu0 }
  0x8c   : > { %701 = vmatprep.mubr.msk.bf16.mxu1 %vm280_vm0, %v264_v14  ;;  %685 = vmatprep.mubr.msk.bf16.mxu0 %vm280_vm0, %v248_v15 }
  0x8f   : > { %v265_v16 = vpop.trf.xlu1  ;;  %v249_v17 = vpop.trf.xlu0 }
  0x90   : > { %702 = vmatmul.mubr.msk.bf16.gmra.mxu1 %vm280_vm0, %v265_v16  ;;  %686 = vmatmul.mubr.msk.bf16.gmra.mxu0 %vm280_vm0, %v249_v17 }
  0x93   : > { %v266_v18 = vpop.trf.xlu1  ;;  %v250_v19 = vpop.trf.xlu0 }
  0x94   : > { %705 = vmatprep.mubr.msk.bf16.mxu1 %vm280_vm0, %v266_v18  ;;  %689 = vmatprep.mubr.msk.bf16.mxu0 %vm280_vm0, %v250_v19 }
  0x97   : > { %v267_v20 = vpop.trf.xlu1  ;;  %v251_v21 = vpop.trf.xlu0 }
  0x98   : > { %706 = vmatmul.mubr.msk.bf16.gmra.mxu1 %vm280_vm0, %v267_v20  ;;  %690 = vmatmul.mubr.msk.bf16.gmra.mxu0 %vm280_vm0, %v251_v21 }
 0x140   : > { %v695_v23 = vpop.f32.mrf.mxu1  ;;  %v679_v24 = vpop.f32.mrf.mxu0 }
 0x141   : > { %v436_v25 = vadd.f32 %v695_v23, %v968_v22  ;;  %v372_v26 = vadd.f32 %v679_v24, %v968_v22 }
 0x142   : > { %v427_v27 = vpop.f32.mrf.mxu1  ;;  %v363_v28 = vpop.f32.mrf.mxu0 }
 0x143   : > { %508 = vst.msk [vmem:[%s972_s18 + $0x90] sm:$0xff] %vm280_vm0, %v436_v25  ;;  %v428_v29 = vadd.f32 %v968_v22, %v427_v27  ;;  %492 = vst.msk [vmem:[%s972_s18 + $0x10] sm:$0xff] %vm280_vm0, %v372_v26  ;;  %v364_v30 = vadd.f32 %v968_v22, %v363_v28 }
 0x144   : > { %v696_v31 = vpop.f32.mrf.mxu1  ;;  %v680_v32 = vpop.f32.mrf.mxu0 }
 0x145   : > { %506 = vst.msk [vmem:[%s972_s18 + $0x80] sm:$0xff] %vm280_vm0, %v428_v29  ;;  %v439_v33 = vadd.f32 %v696_v31, %v968_v22  ;;  %490 = vst.msk [vmem:[%s972_s18] sm:$0xff] %vm280_vm0, %v364_v30  ;;  %v375_v34 = vadd.f32 %v680_v32, %v968_v22 }
 0x146   : > { %v430_v35 = vpop.f32.mrf.mxu1  ;;  %v366_v36 = vpop.f32.mrf.mxu0 }
 0x147   : > { %509 = vst.msk [vmem:[%s972_s18 + $0x98] sm:$0xff] %vm280_vm0, %v439_v33  ;;  %v431_v37 = vadd.f32 %v968_v22, %v430_v35  ;;  %493 = vst.msk [vmem:[%s972_s18 + $0x18] sm:$0xff] %vm280_vm0, %v375_v34  ;;  %v367_v38 = vadd.f32 %v968_v22, %v366_v36 }
 0x148   : > { %v699_v39 = vpop.f32.mrf.mxu1  ;;  %v683_v40 = vpop.f32.mrf.mxu0 }
 0x149   : > { %507 = vst.msk [vmem:[%s972_s18 + $0x88] sm:$0xff] %vm280_vm0, %v431_v37  ;;  %v452_v41 = vadd.f32 %v699_v39, %v968_v22  ;;  %491 = vst.msk [vmem:[%s972_s18 + $0x8] sm:$0xff] %vm280_vm0, %v367_v38  ;;  %v388_v42 = vadd.f32 %v683_v40, %v968_v22 }
 0x14a   : > { %v443_v43 = vpop.f32.mrf.mxu1  ;;  %v379_v44 = vpop.f32.mrf.mxu0 }
 0x14b   : > { %512 = vst.msk [vmem:[%s972_s18 + $0xb0] sm:$0xff] %vm280_vm0, %v452_v41  ;;  %v444_v45 = vadd.f32 %v968_v22, %v443_v43  ;;  %496 = vst.msk [vmem:[%s972_s18 + $0x30] sm:$0xff] %vm280_vm0, %v388_v42  ;;  %v380_v46 = vadd.f32 %v968_v22, %v379_v44 }
 0x14c   : > { %v700_v47 = vpop.f32.mrf.mxu1  ;;  %v684_v48 = vpop.f32.mrf.mxu0 }
 0x14d   : > { %510 = vst.msk [vmem:[%s972_s18 + $0xa0] sm:$0xff] %vm280_vm0, %v444_v45  ;;  %v455_v49 = vadd.f32 %v700_v47, %v968_v22  ;;  %494 = vst.msk [vmem:[%s972_s18 + $0x20] sm:$0xff] %vm280_vm0, %v380_v46  ;;  %v391_v50 = vadd.f32 %v684_v48, %v968_v22 }
 0x14e   : > { %v446_v51 = vpop.f32.mrf.mxu1  ;;  %v382_v52 = vpop.f32.mrf.mxu0 }
 0x14f   : > { %513 = vst.msk [vmem:[%s972_s18 + $0xb8] sm:$0xff] %vm280_vm0, %v455_v49  ;;  %v447_v53 = vadd.f32 %v968_v22, %v446_v51  ;;  %497 = vst.msk [vmem:[%s972_s18 + $0x38] sm:$0xff] %vm280_vm0, %v391_v50  ;;  %v383_v54 = vadd.f32 %v968_v22, %v382_v52 }
 0x150   : > { %v703_v55 = vpop.f32.mrf.mxu1  ;;  %v687_v56 = vpop.f32.mrf.mxu0 }
 0x151   : > { %511 = vst.msk [vmem:[%s972_s18 + $0xa8] sm:$0xff] %vm280_vm0, %v447_v53  ;;  %v468_v57 = vadd.f32 %v703_v55, %v968_v22  ;;  %495 = vst.msk [vmem:[%s972_s18 + $0x28] sm:$0xff] %vm280_vm0, %v383_v54  ;;  %v404_v58 = vadd.f32 %v687_v56, %v968_v22 }
 0x152   : > { %v459_v59 = vpop.f32.mrf.mxu1  ;;  %v395_v60 = vpop.f32.mrf.mxu0 }
 0x153   : > { %516 = vst.msk [vmem:[%s972_s18 + $0xd0] sm:$0xff] %vm280_vm0, %v468_v57  ;;  %v460_v61 = vadd.f32 %v968_v22, %v459_v59  ;;  %500 = vst.msk [vmem:[%s972_s18 + $0x50] sm:$0xff] %vm280_vm0, %v404_v58  ;;  %v396_v62 = vadd.f32 %v968_v22, %v395_v60 }
 0x154   : > { %v704_v63 = vpop.f32.mrf.mxu1  ;;  %v688_v0 = vpop.f32.mrf.mxu0 }
 0x155   : > { %514 = vst.msk [vmem:[%s972_s18 + $0xc0] sm:$0xff] %vm280_vm0, %v460_v61  ;;  %v471_v1 = vadd.f32 %v704_v63, %v968_v22  ;;  %498 = vst.msk [vmem:[%s972_s18 + $0x40] sm:$0xff] %vm280_vm0, %v396_v62  ;;  %v407_v2 = vadd.f32 %v688_v0, %v968_v22 }
 0x156   : > { %v462_v3 = vpop.f32.mrf.mxu1  ;;  %v398_v4 = vpop.f32.mrf.mxu0 }
 0x157   : > { %517 = vst.msk [vmem:[%s972_s18 + $0xd8] sm:$0xff] %vm280_vm0, %v471_v1  ;;  %v463_v5 = vadd.f32 %v968_v22, %v462_v3  ;;  %501 = vst.msk [vmem:[%s972_s18 + $0x58] sm:$0xff] %vm280_vm0, %v407_v2  ;;  %v399_v6 = vadd.f32 %v968_v22, %v398_v4 }
 0x158   : > { %v707_v7 = vpop.f32.mrf.mxu1  ;;  %v691_v8 = vpop.f32.mrf.mxu0 }
 0x159   : > { %515 = vst.msk [vmem:[%s972_s18 + $0xc8] sm:$0xff] %vm280_vm0, %v463_v5  ;;  %v484_v9 = vadd.f32 %v707_v7, %v968_v22  ;;  %499 = vst.msk [vmem:[%s972_s18 + $0x48] sm:$0xff] %vm280_vm0, %v399_v6  ;;  %v420_v10 = vadd.f32 %v691_v8, %v968_v22 }
 0x15a   : > { %v475_v11 = vpop.f32.mrf.mxu1  ;;  %v411_v12 = vpop.f32.mrf.mxu0 }
 0x15b   : > { %520 = vst.msk [vmem:[%s972_s18 + $0xf0] sm:$0xff] %vm280_vm0, %v484_v9  ;;  %v476_v13 = vadd.f32 %v968_v22, %v475_v11  ;;  %504 = vst.msk [vmem:[%s972_s18 + $0x70] sm:$0xff] %vm280_vm0, %v420_v10  ;;  %v412_v14 = vadd.f32 %v968_v22, %v411_v12 }
 0x15c   : > { %v708_v15 = vpop.f32.mrf.mxu1  ;;  %v692_v16 = vpop.f32.mrf.mxu0 }
 0x15d   : > { %518 = vst.msk [vmem:[%s972_s18 + $0xe0] sm:$0xff] %vm280_vm0, %v476_v13  ;;  %v487_v17 = vadd.f32 %v708_v15, %v968_v22  ;;  %502 = vst.msk [vmem:[%s972_s18 + $0x60] sm:$0xff] %vm280_vm0, %v412_v14  ;;  %v423_v18 = vadd.f32 %v692_v16, %v968_v22 }
 0x15e   : > { %v478_v19 = vpop.f32.mrf.mxu1  ;;  %v414_v20 = vpop.f32.mrf.mxu0 }
 0x15f   : > { %521 = vst.msk [vmem:[%s972_s18 + $0xf8] sm:$0xff] %vm280_vm0, %v487_v17  ;;  %v479_v21 = vadd.f32 %v968_v22, %v478_v19  ;;  %505 = vst.msk [vmem:[%s972_s18 + $0x78] sm:$0xff] %vm280_vm0, %v423_v18  ;;  %v415_v23 = vadd.f32 %v968_v22, %v414_v20 }
 0x161   : > { %519 = vst.msk [vmem:[%s972_s18 + $0xe8] sm:$0xff] %vm280_vm0, %v479_v21  ;;  %503 = vst.msk [vmem:[%s972_s18 + $0x68] sm:$0xff] %vm280_vm0, %v415_v23 }
 0x162   : > { %792 = shalt.err (!%p789_p5)
}
 0x163   : > { %s793_s5 = scalar_lea.hbm %s1066_s26, 4096  ;;  %s797_s8 = scalar_lea.hbm %s1127_s3, 8192 }
 0x164   : > { %p794_p6 = scmp.ne.s32.totalorder %s1066_s26, %s793_s5  ;;  %p798_p10 = scmp.lt.s32.totalorder %s1066_s26, %s1127_s3 }
 0x165   : > { %p799_p11 = scmp.lt.s32.totalorder %s797_s8, %s793_s5 }
 0x166   : > { %p795_p7 = pnand %p794_p6, %p920_p4 }
 0x167   : > { %p800_p12 = por %p799_p11, %p798_p10 }
 0x168   : > { %p796_p9 = pneg %p795_p7 }
 0x16a   : > { %p801_p13 = pnand %p800_p12, %p796_p9 }
 0x16c   : > { %804 = shalt.err (!%p801_p13)
}
 0x16d   : > { %s858_s11 = smov 128   ;;  %s859_s18 = smov 8  }
 0x16e   : > { %713 = dma.vmem_to_hbm [thread:$0]  (%p920_p4), %s1068_s21, 4096, %s1066_s26, %s1079_s27, %s858_s11, %s858_s11, %s859_s18  }
 0x16f PF: > { %p719_p0 = scmp.ge.s32.totalorder %s855_s17, 2  ;;  %s553_s19 = sand.u32 1, %s835_s12  }
 0x170   : > { %s554_s15 = scalar_lea.sflag [#allocation3], %s553_s19 }
 0x171   : > { %p716_p1 = pnand %p719_p0, %p927_p8 }
 0x173   : > { %p717_p2 = pneg %p716_p1 }
 0x175   : > { %830 = dma.done.wait (%p717_p2), %s554_s15, 4096  }
 0x176   : > { %832 = vsyncadd (%p717_p2), %s554_s15, 4294963200  ;;  %s16_s17 = sadd.s32 1, %s855_s17   ;;  %s1130_s12 = smov %s839_s13 }
 0x177   : > { %p13_p3 = scmp.ge.s32.totalorder %s16_s17, 4   ;;  %s1131_s13 = smov %s843_s14 }
 0x178   : > { %s1132_s14 = smov %s933_s25  ;;  %s1133_s15 = smov %s851_s16 }
 0x179   : > { %s1134_s16 = smov %s1136_s20  ;;  %15 = sbr.rel (!%p13_p3) target bundleno = 4 (0x4), region = 67 }
 0x17e   :  { %559 = vsyncpa [#allocation3], 1 }
 0x17f   :  { %561 = vsyncpa [#allocation3 + $0x1], 1 }

// kernel: pano_self_attention.6
= control target key start
LH: loop header
LB: loop body
LE: loop exit
PB: predicated region body
PF: predicated region fallthrough
CT: control target
= control target key end

     0   :  { %s4153_s12 = smov 0   ;;  %s4155_s13 = smov 0   ;;  %s11765_s0 = inlined_call_operand.vmem [shape: f32[2,16,256], index: 0, kind: input, shape index: {}]   ;;  %s11766_s1 = inlined_call_operand.vmem [shape: f32[2,24,256], index: 1, kind: input, shape index: {}]   ;;  %s11767_s2 = inlined_call_operand.vmem [shape: bf16[2,32,256], index: 2, kind: input, shape index: {}]   ;;  %s11768_s3 = inlined_call_operand.vmem [shape: bf16[2,32,256], index: 3, kind: output, shape index: {}]  }
   0x1   :  { %s4157_s14 = smov 0   ;;  %s4159_s15 = smov 0  }
   0x2   :  { %s4161_s16 = smov 0   ;;  %s4163_s17 = smov 0  }
   0x3   :  { %s4165_s18 = smov 0  }
   0x4 LB: > { %s22_s19 = sadd.s32 1, %s4123_s16  ;;  %s25_s20 = sadd.s32 1, %s4127_s17  ;;  %s4131_s18 = sphi %s4165_s18, %s13_s18   ;;  %s4127_s17 = sphi %s4163_s17, %s13838_s17   ;;  %s4123_s16 = sphi %s4161_s16, %s13837_s16   ;;  %s4119_s15 = sphi %s4159_s15, %s13836_s15   ;;  %s4115_s14 = sphi %s4157_s14, %s13835_s14   ;;  %s4111_s13 = sphi %s4155_s13, %s13834_s13   ;;  %s4107_s12 = sphi %s4153_s12, %s13833_s12  }
   0x5   : > { %p23_p0 = scmp.ge.s32.totalorder %s22_s19, 2  ;;  %s3854_s21 = sadd.s32 4294967295, %s4131_s18  }
   0x6   : > { %p41_p1 = scmp.ne.s32.totalorder %s4111_s13, %s4107_s12  ;;  %p42_p2 = scmp.eq.s32.totalorder %s4131_s18, 0 }
   0x7   : > { %s13840_s19 = smov (%p23_p0, %s22_s19), 0  ;;  %s13842_s20 = smov (!%p23_p0, %s25_s20), %s4127_s17 }
   0x8   : > { %p27_p3 = scmp.ge.s32.totalorder %s13842_s20, 2  ;;  %p127_p4 = scmp.eq.s32.totalorder %s3854_s21, 3 }
   0x9   : > { %s30_s22 = ssub.s32 %s4123_s16, %s13840_s19  ;;  %p4199_p5 = por %p42_p2, %p41_p1 }
   0xa   : > { %s13844_s20 = smov (%p27_p3, %s13842_s20), 0  ;;  %p4205_p6 = por %p127_p4, %p41_p1 }
   0xb   : > { %s29_s25 = ssub.s32 %s4127_s17, %s13844_s20  ;;  %s34_s27 = sadd.s32 1, %s4111_s13 }
   0xc   : > { %s31_s26 = sor.u32 %s30_s22, %s29_s25  ;;  %p3857_p8 = scmp.ge.s32.totalorder %s4131_s18, 4 }
   0xd   : > { %p32_p7 = scmp.eq.s32.totalorder %s31_s26, 0 }
   0xe   : > { %149 = sbr.rel (%p3857_p8) target bundleno = 35 (0x23), region = 16 }
   0xf   : > { %s4213_s28 = scalar_select %p32_p7, %s4111_s13, %s34_s27  }
  0x13   : > { %152 = sbr.rel (!%p4199_p5) target bundleno = 26 (0x1a), region = 20  ;;  %s154_s29 = sand.u32 (%p4199_p5), 1, %s4111_s13  }
  0x14   : > { %s3859_s30 = sshll.u32 (%p4199_p5), %s4127_s17, 2  ;;  %s3858_s4 = sshll.u32 (%p4199_p5), %s154_s29, 4 }
  0x15   : > { %s158_s5 = sadd.s32 (%p4199_p5), %s4123_s16, %s3859_s30  ;;  %s156_s10 = scalar_lea.vmem (%p4199_p5), [#allocation2], %s3858_s4 }
  0x16   : > { %s3860_s6 = sshll.u32 (%p4199_p5), %s158_s5, 3 }
  0x17   : > { %s160_s9 = scalar_lea.vmem (%p4199_p5), %s11765_s0, %s3860_s6 }
  0x18   : > { %v191_v0 = vld [vmem:[%s160_s9] sm:$0xff]  ;;  %v193_v1 = vld [vmem:[%s160_s9 + $0x10] sm:$0xff] }
  0x19   : > { %192 = vst [vmem:[%s156_s10] sm:$0xff] %v191_v0  ;;  %194 = vst [vmem:[%s156_s10 + $0x8] sm:$0xff] %v193_v1 }
  0x1a PF: > { %200 = sbr.rel (!%p4199_p5) target bundleno = 35 (0x23), region = 58  ;;  %s202_s11 = sand.u32 (%p4199_p5), 1, %s4111_s13  }
  0x1b   : > { %s3957_s21 = smul.u32 (%p4199_p5), 6, %s4127_s17 }
  0x1c   : > { %s3956_s22 = smul.u32 (%p4199_p5), 24, %s202_s11 }
  0x1d   : > { %s206_s25 = sadd.s32 (%p4199_p5), %s4123_s16, %s3957_s21 }
  0x1e   : > { %s3861_s26 = sshll.u32 (%p4199_p5), %s206_s25, 3  ;;  %s204_s4 = scalar_lea.vmem (%p4199_p5), [#allocation3], %s3956_s22 }
  0x1f   : > { %s208_s30 = scalar_lea.vmem %s11766_s1, %s3861_s26 }
  0x20   : > { %v241_v2 = vld [vmem:[%s208_s30] sm:$0xff]  ;;  %v243_v3 = vld [vmem:[%s208_s30 + $0x10] sm:$0xff] }
  0x21   : > { %v245_v4 = vld [vmem:[%s208_s30 + $0x20] sm:$0xff]  ;;  %242 = vst [vmem:[%s204_s4] sm:$0xff] %v241_v2  ;;  %244 = vst [vmem:[%s204_s4 + $0x8] sm:$0xff] %v243_v3 }
  0x22   : > { %246 = vst [vmem:[%s204_s4 + $0x10] sm:$0xff] %v245_v4 }
  0x23 PF: > { %p3862_p9 = scmp.ge.s32.totalorder %s4131_s18, 1  ;;  %p259_p10 = scmp.lt.s32.totalorder %s4131_s18, 5 }
  0x25   : > { %p260_p11 = pnand %p3862_p9, %p259_p10 }
  0x27   : > { %263 = sbr.rel (%p260_p11) target bundleno = 1082 (0x43a), region = 100 }
  0x2c   : > { %p304_p12 = scmp.lt.s32.totalorder %s4119_s15, 1  ;;  %s266_s9 = sand.u32 1, %s4107_s12   ;;  %vm11812_vm0 = vcmask 1043456   ;;  %v331_v33 = vlaneseq }
  0x2d   : > { %s3958_s10 = smul.u32 24, %s266_s9  ;;  %s4249_s12 = sshll.u32 %s266_s9, 4 }
  0x2e   : > { %s305_s23 = scalar_select %p304_p12, %s4119_s15, 1  ;;  %v4265_v41 = vshrl.u32 %v331_v33, 7 }
  0x2f   : > { %s4242_s11 = scalar_lea.vmem [#allocation3], %s3958_s10  ;;  %s4253_s21 = scalar_lea.vmem [#allocation2], %s4249_s12 }
  0x30   : > { %s3896_s5 = sshll.u32 %s305_s23, 5  ;;  %v310_v5 = vld [vmem:[%s4242_s11 + $0x10] sm:$0xf]  ;;  %v364_v18 = vld [vmem:[%s4253_s21] sm:$0x1]  ;;  %11994 = vst [vmem:[#allocation6_spill] sm:$0xff] %v4265_v41 }
  0x31   : > { %s4239_s8 = scalar_lea.vmem %s11767_s2, %s3896_s5  ;;  %v312_v6 = vsel %vm11812_vm0, %v310_v5, -inf  ;;  %v365_v19 = vld [vmem:[%s4242_s11] sm:$0x1]  ;;  %v367_v22 = vld [vmem:[%s4253_s21 + $0x1] sm:$0x1]  ;;  %v4268_v44 = vadd.s32 8, %v4265_v41 }
  0x32   : > { %v313_v7 = vrot.slane %v312_v6, 4  ;;  %v366_v21 = vadd.f32 %v365_v19, %v364_v18  ;;  %v368_v23 = vld [vmem:[%s4242_s11 + $0x1] sm:$0x1]  ;;  %v760_v27 = vld [vmem:[%s4253_s21 + $0x3] sm:$0x1]  ;;  %v4271_v45 = vadd.s32 16, %v4265_v41 }
  0x33   : > { %v369_v25 = vadd.f32 %v368_v23, %v367_v22  ;;  %v761_v28 = vld [vmem:[%s4242_s11 + $0x3] sm:$0x1]  ;;  %v370_v30 = vld [vmem:[%s4242_s11 + $0x10] sm:$0x1]  ;;  %v757_v36 = vld [vmem:[%s4253_s21 + $0x2] sm:$0x1] }
  0x34   : > { %v314_v8 = vmax.f32 %v312_v6, %v313_v7  ;;  %v377_v26 = vmul.f32 1.0666667, %v366_v21  ;;  %v762_v34 = vadd.f32 %v761_v28, %v760_v27  ;;  %v758_v37 = vld [vmem:[%s4242_s11 + $0x2] sm:$0x1]  ;;  %11995 = vst [vmem:[#allocation7_spill] sm:$0xff] %v4268_v44  ;;  %11996 = vst [vmem:[#allocation8_spill] sm:$0xff] %v4271_v45 }
  0x35   : > { %v375_v31 = vmul.f32 1.0666667, %v369_v25  ;;  %v759_v42 = vadd.f32 %v758_v37, %v757_v36  ;;  %v4274_v48 = vadd.s32 24, %v4265_v41  ;;  %v4277_v51 = vadd.s32 32, %v4265_v41  ;;  %v763_v56 = vld [vmem:[%s4242_s11 + $0x11] sm:$0x1] }
  0x36   : > { %v315_v9 = vrot.slane %v314_v8, 2  ;;  %v3868_v32 = vadd.f32 -0.5, %v377_v26  ;;  %v768_v43 = vmul.f32 1.0666667, %v762_v34  ;;  %v4280_v52 = vadd.s32 40, %v4265_v41  ;;  %s303_s22 = scalar_lea.vmem [#allocation4], %s4249_s12 }
  0x37   : > { %v3867_v39 = vadd.f32 -0.5, %v375_v31  ;;  %11997 = vst [vmem:[#allocation9_spill] sm:$0xff] %v4274_v48  ;;  %11998 = vst [vmem:[#allocation10_spill] sm:$0xff] %v4277_v51  ;;  %v4283_v53 = vadd.s32 48, %v4265_v41  ;;  %v4286_v54 = vadd.s32 56, %v4265_v41  ;;  %v4289_v55 = vadd.s32 64, %v4265_v41 }
  0x38   : > { %v316_v10 = vmax.f32 %v314_v8, %v315_v9  ;;  %v380_v40 = vfloor.f32 %v3868_v32  ;;  %11999 = vst [vmem:[#allocation11_spill] sm:$0xff] %v4280_v52  ;;  %v3869_v57 = vadd.f32 -0.5, %v768_v43  ;;  %v770_v58 = vmul.f32 1.0666667, %v759_v42  ;;  %s3892_s25 = sshll.u32 (%p4205_p6), %s4119_s15, 3 }
  0x39   : > { %v379_v49 = vfloor.f32 %v3867_v39  ;;  %12000 = vst [vmem:[#allocation12_spill] sm:$0xff] %v4283_v53  ;;  %12001 = vst [vmem:[#allocation13_spill] sm:$0xff] %v4286_v54  ;;  %v4293_v59 = vadd.s32 72, %v4265_v41  ;;  %v4296_v60 = vadd.s32 80, %v4265_v41  ;;  %v4299_v61 = vadd.s32 88, %v4265_v41  ;;  %s3694_s26 = sadd.s32 (%p4205_p6), %s4115_s14, %s3892_s25 }
  0x3a   : > { %v317_v11 = vrot.slane %v316_v10, 1  ;;  %v3961_v50 = vtrunc.f32 %v380_v40  ;;  %12002 = vst [vmem:[#allocation14_spill] sm:$0xff] %v4289_v55  ;;  %v4302_v62 = vadd.s32 96, %v4265_v41  ;;  %v4307_v1 = vadd.s32 104, %v4265_v41  ;;  %s3893_s27 = sshll.u32 (%p4205_p6), %s3694_s26, 2 }
  0x3b   : > { %12003 = vst [vmem:[#allocation15_spill] sm:$0xff] %v4293_v59  ;;  %12004 = vst [vmem:[#allocation16_spill] sm:$0xff] %v4296_v60  ;;  %v3959_v63 = vtrunc.f32 %v379_v49  ;;  %v4310_v2 = vadd.s32 112, %v4265_v41  ;;  %v4313_v3 = vadd.s32 120, %v4265_v41  ;;  %v4320_v6 = vadd.s32 136, %v4265_v41  ;;  %s3696_s4 = scalar_lea.vmem (%p4205_p6), %s11768_s3, %s3893_s27 }
  0x3c   : > { %v4246_v12 = vmax.f32 %v316_v10, %v317_v11  ;;  %12005 = vst [vmem:[#allocation17_spill] sm:$0xff] %v4299_v61  ;;  %12006 = vst [vmem:[#allocation18_spill] sm:$0xff] %v4302_v62  ;;  %v4304_v0 = vcvt.f32.s32 %v3961_v50  ;;  %v3870_v7 = vadd.f32 -0.5, %v770_v58  ;;  %v772_v8 = vfloor.f32 %v3869_v57 }
  0x3d   : > { %12007 = vst [vmem:[#allocation19_spill] sm:$0xff] %v4307_v1  ;;  %12008 = vst [vmem:[#allocation20_spill] sm:$0xff] %v4310_v2  ;;  %v4323_v9 = vadd.s32 144, %v4265_v41  ;;  %v4326_v10 = vadd.s32 152, %v4265_v41  ;;  %v4329_v11 = vadd.s32 160, %v4265_v41  ;;  %v4342_v18 = vadd.s32 192, %v4265_v41 }
  0x3e   : > { %11993 = vst [vmem:[#allocation5_spill] sm:$0xff] %v4246_v12  ;;  %v319_v13 = vsub.f32 %v310_v5, %v4246_v12  ;;  %v371_v35 = vsub.f32 %v370_v30, %v4246_v12  ;;  %12009 = vst [vmem:[#allocation21_spill] sm:$0xff] %v4313_v3  ;;  %v764_v4 = vsub.f32 %v763_v56, %v4246_v12  ;;  %v4317_v5 = vadd.s32 128, %v4265_v41 }
  0x3f   : > { %12011 = vst [vmem:[#allocation23_spill] sm:$0xff] %v4320_v6  ;;  %12012 = vst [vmem:[#allocation24_spill] sm:$0xff] %v4323_v9  ;;  %v381_v19 = vsub.f32 %v3867_v39, %v379_v49  ;;  %v4345_v22 = vadd.s32 200, %v4265_v41  ;;  %v4348_v23 = vadd.s32 208, %v4265_v41  ;;  %v4350_v25 = vsub.f32 %v3869_v57, %v772_v8 }
  0x40   : > { %v320_v14 = vmul.f32 1.442695, %v319_v13  ;;  %v372_v46 = vmul.f32 1.442695, %v371_v35  ;;  %12010 = vst [vmem:[#allocation22_spill] sm:$0xff] %v4317_v5  ;;  %12013 = vst [vmem:[#allocation25_spill] sm:$0xff] %v4326_v10  ;;  %v3963_v33 = vtrunc.f32 %v772_v8 }
  0x41   : > { %12014 = vst [vmem:[#allocation26_spill] sm:$0xff] %v4329_v11  ;;  %v4332_v13 = vadd.s32 168, %v4265_v41  ;;  %12018 = vst [vmem:[#allocation30_spill] sm:$0xff] %v4342_v18  ;;  %v765_v21 = vmul.f32 1.442695, %v764_v4  ;;  %v4353_v26 = vadd.s32 216, %v4265_v41 }
  0x42   : > { %4053 = vpow2.f32 %v320_v14  ;;  %v4335_v14 = vadd.s32 176, %v4265_v41  ;;  %12019 = vst [vmem:[#allocation31_spill] sm:$0xff] %v4345_v22  ;;  %12020 = vst [vmem:[#allocation32_spill] sm:$0xff] %v4348_v23  ;;  %v4356_v27 = vadd.s32 224, %v4265_v41  ;;  %v4359_v28 = vadd.s32 232, %v4265_v41 }
  0x43   : > { %4055 = vpow2.f32 %v372_v46  ;;  %12015 = vst [vmem:[#allocation27_spill] sm:$0xff] %v4332_v13  ;;  %12021 = vst [vmem:[#allocation33_spill] sm:$0xff] %v4350_v25  ;;  %v4365_v30 = vadd.s32 248, %v4265_v41  ;;  %v382_v34 = vsub.f32 1.0, %v381_v19  ;;  %v11769_v37 = vsub.f32 1.0, %v4350_v25 }
  0x44   : > { %12016 = vst [vmem:[#allocation28_spill] sm:$0xff] %v4335_v14  ;;  %12022 = vst [vmem:[#allocation34_spill] sm:$0xff] %v4353_v26  ;;  %vm393_vm5 = vcmp.ge.s32.totalorder %v4304_v0, 0  ;;  %vm394_vm6 = vcmp.lt.s32.totalorder %v4304_v0, 16  ;;  %vm396_vm7 = vcmp.ge.s32.totalorder %v4304_v0, 4294967295  ;;  %vm397_vm8 = vcmp.lt.s32.totalorder %v4304_v0, 15 }
  0x45   : > { %12023 = vst [vmem:[#allocation35_spill] sm:$0xff] %v4356_v27  ;;  %12024 = vst [vmem:[#allocation36_spill] sm:$0xff] %v4359_v28  ;;  %v4380_v50 = vcvt.f32.s32 %v3963_v33 }
  0x46   : > { %12026 = vst [vmem:[#allocation38_spill] sm:$0xff] %v4365_v30  ;;  %vm4400_vm10 = vmand %vm393_vm5, %vm394_vm6 }
  0x47   : > { %12030 = vst [vmem:[#allocation42_spill] sm:$0xff] %v4380_v50  ;;  %vm4436_vm12 = vmand %vm396_vm7, %vm397_vm8 }
  0x4f   : > { %v4054_v15 = vpop.eup %4053 }
  0x50   : > { %v322_v16 = vsel %vm11812_vm0, %v4054_v15, 0.0  ;;  %v4338_v15 = vadd.s32 184, %v4265_v41 }
  0x51   : > { %v323_v17 = vrot.slane %v322_v16, 4 }
  0x52   : > { %12017 = vst [vmem:[#allocation29_spill] sm:$0xff] %v4338_v15 }
  0x53   : > { %v324_v20 = vadd.f32 %v323_v17, %v322_v16  ;;  %v3960_v16 = vcvt.f32.s32 %v3959_v63  ;;  %v415_v17 = vmul.u32 16, %v4304_v0 }
  0x55   : > { %v325_v24 = vrot.slane %v324_v20, 2  ;;  %v416_v31 = vadd.s32 %v3960_v16, %v415_v17  ;;  %vm387_vm1 = vcmp.ge.s32.totalorder %v3960_v16, 0  ;;  %vm388_vm2 = vcmp.lt.s32.totalorder %v3960_v16, 16 }
  0x56   : > { %vm390_vm3 = vcmp.ge.s32.totalorder %v3960_v16, 4294967295  ;;  %vm391_vm4 = vcmp.lt.s32.totalorder %v3960_v16, 15  ;;  %vm4383_vm9 = vmand %vm387_vm1, %vm388_vm2 }
  0x57   : > { %v326_v29 = vadd.f32 %v325_v24, %v324_v20  ;;  %v383_v20 = vsub.f32 %v3868_v32, %v380_v40  ;;  %v773_v24 = vfloor.f32 %v3870_v7  ;;  %v4368_v32 = vsub.s32 0, %v4265_v41  ;;  %v4056_v40 = vpop.eup %4055  ;;  %vm4419_vm11 = vmand %vm390_vm3, %vm391_vm4 }
  0x58   : > { %vm399_vm13 = vmand %vm4383_vm9, %vm4400_vm10 }
  0x59   : > { %v327_v38 = vrot.slane %v326_v29, 1  ;;  %12027 = vst [vmem:[#allocation39_spill] sm:$0xff] %v4368_v32  ;;  %v384_v35 = vsub.f32 1.0, %v383_v20  ;;  %v412_v36 = vmul.f32 %v383_v20, %v381_v19  ;;  %v3965_v39 = vtrunc.f32 %v773_v24  ;;  %vm403_vm14 = vmand %vm4419_vm11, %vm4400_vm10 }
  0x5a   : > { %v420_v42 = vrot.slane %v416_v31, %v4368_v32  ;;  %v408_v49 = vmul.f32 %v383_v20, %v382_v34  ;;  %vm407_vm15 = vmand %vm4383_vm9, %vm4436_vm12 }
  0x5b   : > { %v328_v47 = vadd.f32 %v327_v38, %v326_v29  ;;  %v4362_v29 = vadd.s32 240, %v4265_v41  ;;  %v4371_v38 = vsub.f32 %v3870_v7, %v773_v24  ;;  %v400_v46 = vmul.f32 %v384_v35, %v382_v34  ;;  %vm411_vm1 = vmand %vm4419_vm11, %vm4436_vm12 }
  0x5c   : > { %v4388_v57 = vsub.s32 %v4265_v41, %v420_v42  ;;  %v4391_v63 = vcvt.f32.s32 %v3965_v39  ;;  %v4405_v8 = vsub.s32 %v4268_v44, %v420_v42  ;;  %v4408_v17 = vsub.s32 %v4271_v45, %v420_v42 }
  0x5d   : > { %4057 = vrcp.f32 %v328_v47  ;;  %12025 = vst [vmem:[#allocation37_spill] sm:$0xff] %v4362_v29  ;;  %12028 = vst [vmem:[#allocation40_spill] sm:$0xff] %v4371_v38  ;;  %v404_v47 = vmul.f32 %v384_v35, %v381_v19  ;;  %v4396_v4 = vmul.f32 %v4371_v38, %v11769_v37  ;;  %v4411_v19 = vsub.s32 %v4274_v48, %v420_v42 }
  0x5e   : > { %4059 = vpow2.f32 %v765_v21  ;;  %12033 = vst [vmem:[#allocation43_spill] sm:$0xff] %v4391_v63  ;;  %v4414_v20 = vsub.s32 %v4277_v51, %v420_v42  ;;  %v4424_v31 = vsub.s32 %v4280_v52, %v420_v42  ;;  %v4427_v33 = vsub.s32 %v4283_v53, %v420_v42 }
  0x5f   : > { %12034 = vst [vmem:[#allocation44_spill] sm:$0xff] %v4396_v4  ;;  %v4430_v34 = vsub.s32 %v4286_v54, %v420_v42  ;;  %v4441_v16 = vsub.s32 %v4289_v55, %v420_v42  ;;  %v4444_v39 = vsub.s32 %v4293_v59, %v420_v42  ;;  %v4450_v58 = vsub.s32 %v4299_v61, %v420_v42 }
  0x60   : > { %v4457_v0 = vsub.s32 %v4302_v62, %v420_v42  ;;  %v4460_v37 = vsub.s32 %v4307_v1, %v420_v42  ;;  %v4463_v59 = vsub.s32 %v4310_v2, %v420_v42  ;;  %v4473_v61 = vsub.s32 %v4317_v5, %v420_v42 }
  0x61   : > { %v4476_v62 = vsub.s32 %v4320_v6, %v420_v42  ;;  %v4479_v1 = vsub.s32 %v4323_v9, %v420_v42  ;;  %v4482_v2 = vsub.s32 %v4326_v10, %v420_v42  ;;  %v4493_v9 = vsub.s32 %v4329_v11, %v420_v42 }
  0x62   : > { %12041 = vst [vmem:[#allocation45_spill] sm:$0xff] %v4457_v0  ;;  %12042 = vst [vmem:[#allocation46_spill] sm:$0xff] %v4463_v59  ;;  %v4496_v10 = vsub.s32 %v4332_v13, %v420_v42  ;;  %v4516_v13 = vsub.s32 %v4353_v26, %v420_v42  ;;  %v4525_v11 = vsub.s32 %v4362_v29, %v420_v42  ;;  %vm549_vm2 = vcmp.eq.s32.totalorder %v4388_v57, 17 }
  0x63   : > { %12044 = vst [vmem:[#allocation48_spill] sm:$0xff] %v4473_v61  ;;  %vm550_vm3 = vcmp.eq.s32.totalorder %v4405_v8, 17  ;;  %vm551_vm4 = vcmp.eq.s32.totalorder %v4408_v17, 17  ;;  %vm552_vm5 = vcmp.eq.s32.totalorder %v4411_v19, 17  ;;  %vm553_vm6 = vcmp.eq.s32.totalorder %v4414_v20, 17 }
  0x64   : > { %12045 = vst [vmem:[#allocation49_spill] sm:$0xff] %v4496_v10  ;;  %12049 = vst [vmem:[#allocation53_spill] sm:$0xff] %v4516_v13  ;;  %vm554_vm7 = vcmp.eq.s32.totalorder %v4424_v31, 17  ;;  %vm579_vm0 = vcmp.eq.s32.totalorder %v4525_v11, 17  ;;  %vm525_vm12 = vcmp.eq.s32.totalorder %v4441_v16, 16  ;;  %vm530_vm11 = vcmp.eq.s32.totalorder %v4460_v37, 16 }
  0x65   : > { %vm534_vm9 = vcmp.eq.s32.totalorder %v4476_v62, 16  ;;  %vm12065_vm10 = vcmp.eq.s32.totalorder %v4457_v0, 17 }
  0x6a   : > { %v4378_v43 = vpop.eup %4057 }
  0x6b   : > { %12029 = vst [vmem:[#allocation41_spill] sm:$0xff] %v4378_v43  ;;  %v374_v21 = vmul.f32 %v4378_v43, %v4056_v40  ;;  %v4447_v40 = vsub.s32 %v4296_v60, %v420_v42  ;;  %v4466_v60 = vsub.s32 %v4313_v3, %v420_v42  ;;  %v4504_v6 = vpop.eup %4059 }
  0x6d   : > { %12043 = vst [vmem:[#allocation47_spill] sm:$0xff] %v4466_v60  ;;  %v401_v55 = vmul.f32 %v400_v46, %v374_v21  ;;  %v405_v3 = vmul.f32 %v404_v47, %v374_v21  ;;  %v409_v54 = vmul.f32 %v408_v49, %v374_v21  ;;  %v413_v53 = vmul.f32 %v412_v36, %v374_v21 }
  0x6e   : > { %v4499_v46 = vsub.s32 %v4335_v14, %v420_v42  ;;  %v4502_v47 = vsub.s32 %v4338_v15, %v420_v42  ;;  %v4507_v36 = vsub.s32 %v4342_v18, %v420_v42  ;;  %v4510_v49 = vsub.s32 %v4345_v22, %v420_v42 }
  0x6f   : > { %v4513_v21 = vsub.s32 %v4348_v23, %v420_v42  ;;  %v4519_v14 = vsub.s32 %v4356_v27, %v420_v42  ;;  %v4522_v15 = vsub.s32 %v4359_v28, %v420_v42  ;;  %v4528_v18 = vsub.s32 %v4365_v30, %v420_v42 }
  0x70   : > { %12046 = vst [vmem:[#allocation50_spill] sm:$0xff] %v4499_v46  ;;  %12047 = vst [vmem:[#allocation51_spill] sm:$0xff] %v4502_v47  ;;  %v402_v23 = vsel %vm399_vm13, %v401_v55, 0.0  ;;  %v406_v27 = vsel %vm403_vm14, %v405_v3, 0.0  ;;  %v410_v29 = vsel %vm407_vm15, %v409_v54, 0.0  ;;  %v414_v42 = vsel %vm411_vm1, %v413_v53, 0.0 }
  0x71   : > { %12048 = vst [vmem:[#allocation52_spill] sm:$0xff] %v4507_v36  ;;  %12050 = vst [vmem:[#allocation54_spill] sm:$0xff] %v4519_v14  ;;  %vm574_vm8 = vcmp.eq.s32.totalorder %v4510_v49, 17  ;;  %vm577_vm15 = vcmp.eq.s32.totalorder %v4519_v14, 17  ;;  %vm578_vm1 = vcmp.eq.s32.totalorder %v4522_v15, 17  ;;  %v4587_v53 = vrot.slane %v414_v42, %v4368_v32 }
  0x72   : > { %vm580_vm13 = vcmp.eq.s32.totalorder %v4528_v18, 17  ;;  %v4595_v54 = vrot.slane %v410_v29, %v4368_v32  ;;  %v4598_v55 = vrot.slane %v406_v27, %v4368_v32  ;;  %v4601_v3 = vrot.slane %v402_v23, %v4368_v32 }
  0x73   : > { %vm526_vm14 = vcmp.eq.s32.totalorder %v4444_v39, 16  ;;  %v4610_v56 = vsel %vm549_vm2, %v4587_v53, 0.0  ;;  %v4614_v27 = vmul.f32 %v4504_v6, %v4378_v43  ;;  %v12054_v23 = vsub.f32 1.0, %v4350_v25 }
  0x74   : > { %12051 = vst [vmem:[#allocation55_spill] sm:$0xff] %v4598_v55  ;;  %12052 = vst [vmem:[#allocation56_spill] sm:$0xff] %v4601_v3  ;;  %v12055_v29 = vsub.f32 1.0, %v4371_v38  ;;  %v4634_v6 = vsel %vm550_vm3, %v4587_v53, 0.0  ;;  %v4639_v42 = vsel %vm551_vm4, %v4587_v53, 0.0  ;;  %vm12059_vm4 = vcmp.eq.s32.totalorder %v4427_v33, 17 }
  0x75   : > { %12053 = vst [vmem:[#allocation57_spill] sm:$0xff] %v4614_v27  ;;  %v4663_v43 = vsel %vm12059_vm4, %v4587_v53, 0.0  ;;  %vm12062_vm4 = vcmp.eq.s32.totalorder %v4444_v39, 17  ;;  %v4697_v52 = vsel %vm12065_vm10, %v4587_v53, 0.0  ;;  %vm12068_vm10 = vcmp.eq.s32.totalorder %v4466_v60, 17 }
  0x76   : > { %v4620_v7 = vmul.f32 %v12055_v29, %v12054_v23  ;;  %v12057_v24 = vmov %v12055_v29  ;;  %v4644_v23 = vsel %vm552_vm5, %v4587_v53, 0.0  ;;  %v4649_v29 = vsel %vm553_vm6, %v4587_v53, 0.0 }
  0x77   : > { %v4625_v35 = vmul.f32 %v12057_v24, %v4350_v25  ;;  %v4658_v24 = vsel %vm554_vm7, %v4587_v53, 0.0  ;;  %vm12060_vm5 = vcmp.eq.s32.totalorder %v4430_v34, 17  ;;  %vm12061_vm6 = vcmp.eq.s32.totalorder %v4441_v16, 17 }
  0x78   : > { %12056 = vst [vmem:[#allocation58_spill] sm:$0xff] %v4620_v7  ;;  %v4668_v30 = vsel %vm12060_vm5, %v4587_v53, 0.0  ;;  %v4673_v28 = vsel %vm12061_vm6, %v4587_v53, 0.0  ;;  %v4682_v26 = vsel %vm12062_vm4, %v4587_v53, 0.0  ;;  %vm12063_vm5 = vcmp.eq.s32.totalorder %v4447_v40, 17 }
  0x79   : > { %12058 = vst [vmem:[#allocation59_spill] sm:$0xff] %v4625_v35  ;;  %v4687_v22 = vsel %vm12063_vm5, %v4587_v53, 0.0  ;;  %vm12064_vm6 = vcmp.eq.s32.totalorder %v4450_v58, 17  ;;  %vm12066_vm5 = vcmp.eq.s32.totalorder %v4460_v37, 17  ;;  %v4716_v45 = vsel %vm12068_vm10, %v4587_v53, 0.0 }
  0x7a   : > { %v4692_v5 = vsel %vm12064_vm6, %v4587_v53, 0.0  ;;  %v4706_v51 = vsel %vm12066_vm5, %v4587_v53, 0.0  ;;  %vm12067_vm6 = vcmp.eq.s32.totalorder %v4463_v59, 17  ;;  %vm12069_vm7 = vcmp.eq.s32.totalorder %v4473_v61, 17 }
  0x7b   : > { %v4711_v48 = vsel %vm12067_vm6, %v4587_v53, 0.0  ;;  %v4721_v44 = vsel %vm12069_vm7, %v4587_v53, 0.0  ;;  %vm12070_vm6 = vcmp.eq.s32.totalorder %v4476_v62, 17  ;;  %vm12071_vm10 = vcmp.eq.s32.totalorder %v4479_v1, 17 }
  0x7c   : > { %v4730_v41 = vsel %vm12070_vm6, %v4587_v53, 0.0  ;;  %v4735_v32 = vsel %vm12071_vm10, %v4587_v53, 0.0  ;;  %vm12072_vm7 = vcmp.eq.s32.totalorder %v4482_v2, 17  ;;  %vm12073_vm2 = vcmp.eq.s32.totalorder %v4493_v9, 17 }
  0x7d   : > { %v4740_v12 = vsel %vm12072_vm7, %v4587_v53, 0.0  ;;  %v4745_v4 = vsel %vm12073_vm2, %v4587_v53, 0.0  ;;  %vm12074_vm10 = vcmp.eq.s32.totalorder %v4496_v10, 17  ;;  %vm12075_vm7 = vcmp.eq.s32.totalorder %v4499_v46, 17 }
  0x7e   : > { %v4754_v35 = vsel %vm12074_vm10, %v4587_v53, 0.0  ;;  %v4759_v7 = vsel %vm12075_vm7, %v4587_v53, 0.0  ;;  %vm12076_vm2 = vcmp.eq.s32.totalorder %v4502_v47, 17  ;;  %vm12077_vm4 = vcmp.eq.s32.totalorder %v4507_v36, 17 }
  0x7f   : > { %v4764_v27 = vsel %vm12076_vm2, %v4587_v53, 0.0  ;;  %v4769_v38 = vsel %vm12077_vm4, %v4587_v53, 0.0  ;;  %vm490_vm5 = vcmp.eq.s32.totalorder %v4424_v31, 1  ;;  %vm491_vm10 = vcmp.eq.s32.totalorder %v4427_v33, 1 }
  0x80   : > { %v4778_v25 = vsel %vm574_vm8, %v4587_v53, 0.0  ;;  %vm12079_vm7 = vcmp.eq.s32.totalorder %v4513_v21, 17  ;;  %vm12081_vm4 = vcmp.eq.s32.totalorder %v4516_v13, 17  ;;  %v4793_v63 = vsel %vm577_vm15, %v4587_v53, 0.0 }
  0x81   : > { %12078 = vst [vmem:[#allocation60_spill] sm:$0xff] %v4778_v25  ;;  %v4783_v3 = vsel %vm12079_vm7, %v4587_v53, 0.0  ;;  %v4788_v55 = vsel %vm12081_vm4, %v4587_v53, 0.0  ;;  %12083 = vst [vmem:[#allocation63_spill] sm:$0xff] %v4793_v63  ;;  %vm494_vm2 = vcmp.eq.s32.totalorder %v4444_v39, 1  ;;  %vm495_vm8 = vcmp.eq.s32.totalorder %v4447_v40, 1 }
  0x82   : > { %12080 = vst [vmem:[#allocation61_spill] sm:$0xff] %v4783_v3  ;;  %12082 = vst [vmem:[#allocation62_spill] sm:$0xff] %v4788_v55  ;;  %vm496_vm3 = vcmp.eq.s32.totalorder %v4450_v58, 1  ;;  %v4802_v3 = vsel %vm578_vm1, %v4587_v53, 0.0  ;;  %v4807_v55 = vsel %vm579_vm0, %v4587_v53, 0.0  ;;  %v4812_v63 = vsel %vm580_vm13, %v4587_v53, 0.0 }
  0x83   : > { %12084 = vst [vmem:[#allocation64_spill] sm:$0xff] %v4812_v63  ;;  %vm12085_vm15 = vcmp.eq.s32.totalorder %v4388_v57, 16  ;;  %vm12087_vm6 = vcmp.eq.s32.totalorder %v4405_v8, 16  ;;  %vm12088_vm13 = vcmp.eq.s32.totalorder %v4408_v17, 16  ;;  %vm12090_vm0 = vcmp.eq.s32.totalorder %v4414_v20, 16 }
  0x84   : > { %v4818_v25 = vsel %vm12085_vm15, %v4595_v54, %v4610_v56  ;;  %v4828_v53 = vsel %vm12087_vm6, %v4595_v54, %v4634_v6  ;;  %v4834_v56 = vsel %vm12088_vm13, %v4595_v54, %v4639_v42  ;;  %vm12089_vm15 = vcmp.eq.s32.totalorder %v4411_v19, 16 }
  0x85   : > { %12086 = vst [vmem:[#allocation65_spill] sm:$0xff] %v4818_v25  ;;  %v4840_v25 = vsel %vm12089_vm15, %v4595_v54, %v4644_v23  ;;  %v4846_v63 = vsel %vm12090_vm0, %v4595_v54, %v4649_v29  ;;  %vm502_vm6 = vcmp.eq.s32.totalorder %v4476_v62, 1  ;;  %vm503_vm4 = vcmp.eq.s32.totalorder %v4479_v1, 1 }
  0x86   : > { %vm12091_vm7 = vcmp.eq.s32.totalorder %v4424_v31, 16  ;;  %vm12092_vm15 = vcmp.eq.s32.totalorder %v4427_v33, 16  ;;  %vm12093_vm0 = vcmp.eq.s32.totalorder %v4430_v34, 16  ;;  %v4874_v29 = vsel %vm525_vm12, %v4595_v54, %v4673_v28 }
  0x87   : > { %v4856_v6 = vsel %vm12091_vm7, %v4595_v54, %v4658_v24  ;;  %v4862_v42 = vsel %vm12092_vm15, %v4595_v54, %v4663_v43  ;;  %v4868_v23 = vsel %vm12093_vm0, %v4595_v54, %v4668_v30  ;;  %v4884_v30 = vsel %vm526_vm14, %v4595_v54, %v4682_v26 }
  0x88   : > { %vm12094_vm0 = vcmp.eq.s32.totalorder %v4447_v40, 16  ;;  %vm12095_vm12 = vcmp.eq.s32.totalorder %v4450_v58, 16  ;;  %vm12096_vm15 = vcmp.eq.s32.totalorder %v4457_v0, 16  ;;  %vm781_vm13 = vcmp.lt.s32.totalorder %v4380_v50, 16  ;;  %v12107_v50 = vld [vmem:[#allocation43_spill] sm:$0xff] }
  0x89   : > { %v4890_v28 = vsel %vm12094_vm0, %v4595_v54, %v4687_v22  ;;  %v4896_v43 = vsel %vm12095_vm12, %v4595_v54, %v4692_v5  ;;  %v4902_v24 = vsel %vm12096_vm15, %v4595_v54, %v4697_v52  ;;  %v4912_v5 = vsel %vm530_vm11, %v4595_v54, %v4706_v51 }
  0x8a   : > { %vm12097_vm12 = vcmp.eq.s32.totalorder %v4463_v59, 16  ;;  %vm12098_vm15 = vcmp.eq.s32.totalorder %v4466_v60, 16  ;;  %vm12099_vm0 = vcmp.eq.s32.totalorder %v4473_v61, 16  ;;  %vm12102_vm1 = vcmp.eq.s32.totalorder %v4493_v9, 16 }
  0x8b   : > { %v4918_v52 = vsel %vm12097_vm12, %v4595_v54, %v4711_v48  ;;  %v4924_v22 = vsel %vm12098_vm15, %v4595_v54, %v4716_v45  ;;  %v4930_v26 = vsel %vm12099_vm0, %v4595_v54, %v4721_v44  ;;  %v638_v45 = vsel %vm534_vm9, %v4595_v54, %v4730_v41 }
  0x8c   : > { %vm12100_vm0 = vcmp.eq.s32.totalorder %v4479_v1, 16  ;;  %vm12101_vm15 = vcmp.eq.s32.totalorder %v4482_v2, 16  ;;  %v641_v51 = vsel %vm12102_vm1, %v4595_v54, %v4745_v4  ;;  %vm12104_vm1 = vcmp.eq.s32.totalorder %v4499_v46, 16  ;;  %v12114_v46 = vld [vmem:[#allocation63_spill] sm:$0xff] }
  0x8d   : > { %v639_v44 = vsel %vm12100_vm0, %v4595_v54, %v4735_v32  ;;  %v640_v48 = vsel %vm12101_vm15, %v4595_v54, %v4740_v12  ;;  %vm12103_vm15 = vcmp.eq.s32.totalorder %v4496_v10, 16  ;;  %v643_v41 = vsel %vm12104_vm1, %v4595_v54, %v4759_v7  ;;  %v12108_v7 = vld [vmem:[#allocation60_spill] sm:$0xff] }
  0x8e   : > { %v642_v12 = vsel %vm12103_vm15, %v4595_v54, %v4754_v35  ;;  %vm12105_vm9 = vcmp.eq.s32.totalorder %v4502_v47, 16  ;;  %vm12106_vm0 = vcmp.eq.s32.totalorder %v4507_v36, 16  ;;  %vm12109_vm14 = vcmp.eq.s32.totalorder %v4510_v49, 16  ;;  %v12110_v35 = vld [vmem:[#allocation61_spill] sm:$0xff]  ;;  %v12112_v36 = vld [vmem:[#allocation62_spill] sm:$0xff] }
  0x8f   : > { %v644_v32 = vsel %vm12105_vm9, %v4595_v54, %v4764_v27  ;;  %v645_v4 = vsel %vm12106_vm0, %v4595_v54, %v4769_v38  ;;  %v646_v27 = vsel %vm12109_vm14, %v4595_v54, %v12108_v7  ;;  %vm12111_vm9 = vcmp.eq.s32.totalorder %v4513_v21, 16  ;;  %v12118_v7 = vld [vmem:[#allocation64_spill] sm:$0xff] }
  0x90   : > { %v647_v38 = vsel %vm12111_vm9, %v4595_v54, %v12110_v35  ;;  %vm12113_vm0 = vcmp.eq.s32.totalorder %v4516_v13, 16  ;;  %vm12115_vm7 = vcmp.eq.s32.totalorder %v4519_v14, 16  ;;  %vm789_vm1 = vcmp.ge.s32.totalorder %v12107_v50, 4294967295  ;;  %v12121_v14 = vld [vmem:[#allocation55_spill] sm:$0xff] }
  0x91   : > { %v648_v47 = vsel %vm12113_vm0, %v4595_v54, %v12112_v36  ;;  %v649_v10 = vsel %vm12115_vm7, %v4595_v54, %v12114_v46  ;;  %vm790_vm15 = vcmp.lt.s32.totalorder %v12107_v50, 15  ;;  %vm12116_vm0 = vcmp.eq.s32.totalorder %v4522_v15, 16  ;;  %v12120_v50 = vld [vmem:[#allocation65_spill] sm:$0xff] }
  0x92   : > { %v650_v36 = vsel %vm12116_vm0, %v4595_v54, %v4802_v3  ;;  %vm12117_vm7 = vcmp.eq.s32.totalorder %v4525_v11, 16  ;;  %vm12119_vm14 = vcmp.eq.s32.totalorder %v4528_v18, 16  ;;  %vm12122_vm9 = vcmp.eq.s32.totalorder %v4388_v57, 1 }
  0x93   : > { %v651_v46 = vsel %vm12117_vm7, %v4595_v54, %v4807_v55  ;;  %v652_v35 = vsel %vm12119_vm14, %v4595_v54, %v12118_v7  ;;  %v657_v13 = vsel %vm12122_vm9, %v12121_v14, %v12120_v50  ;;  %vm12123_vm7 = vcmp.eq.s32.totalorder %v4405_v8, 1  ;;  %v12134_v7 = vld [vmem:[#allocation49_spill] sm:$0xff] }
  0x94   : > { %v658_v55 = vsel %vm12123_vm7, %v12121_v14, %v4828_v53  ;;  %vm12124_vm14 = vcmp.eq.s32.totalorder %v4408_v17, 1  ;;  %vm12125_vm9 = vcmp.eq.s32.totalorder %v4411_v19, 1  ;;  %vm12126_vm11 = vcmp.eq.s32.totalorder %v4414_v20, 1 }
  0x95   : > { %v659_v54 = vsel %vm12124_vm14, %v12121_v14, %v4834_v56  ;;  %v660_v50 = vsel %vm12125_vm9, %v12121_v14, %v4840_v25  ;;  %v661_v3 = vsel %vm12126_vm11, %v12121_v14, %v4846_v63  ;;  %vm468_vm0 = vcmp.eq.s32.totalorder %v4466_v60, 0 }
  0x96   : > { %vm469_vm12 = vcmp.eq.s32.totalorder %v4473_v61, 0  ;;  %v662_v53 = vsel %vm490_vm5, %v12121_v14, %v4856_v6  ;;  %v663_v56 = vsel %vm491_vm10, %v12121_v14, %v4862_v42  ;;  %vm12127_vm7 = vcmp.eq.s32.totalorder %v4430_v34, 1 }
  0x97   : > { %v664_v25 = vsel %vm12127_vm7, %v12121_v14, %v4868_v23  ;;  %vm12128_vm11 = vcmp.eq.s32.totalorder %v4441_v16, 1  ;;  %v666_v6 = vsel %vm494_vm2, %v12121_v14, %v4884_v30  ;;  %v667_v42 = vsel %vm495_vm8, %v12121_v14, %v4890_v28 }
  0x98   : > { %v665_v63 = vsel %vm12128_vm11, %v12121_v14, %v4874_v29  ;;  %v668_v23 = vsel %vm496_vm3, %v12121_v14, %v4896_v43  ;;  %vm12129_vm5 = vcmp.eq.s32.totalorder %v4457_v0, 1  ;;  %vm470_vm10 = vcmp.eq.s32.totalorder %v4476_v62, 0  ;;  %v12135_v0 = vld [vmem:[#allocation50_spill] sm:$0xff] }
  0x99   : > { %v669_v29 = vsel %vm12129_vm5, %v12121_v14, %v4902_v24  ;;  %vm471_vm14 = vcmp.eq.s32.totalorder %v4479_v1, 0  ;;  %vm472_vm2 = vcmp.eq.s32.totalorder %v4482_v2, 0  ;;  %vm12130_vm8 = vcmp.eq.s32.totalorder %v4460_v37, 1  ;;  %v12220_v62 = vld [vmem:[#allocation50_spill] sm:$0xff] }
  0x9a   : > { %v670_v30 = vsel %vm12130_vm8, %v12121_v14, %v4912_v5  ;;  %vm12131_vm3 = vcmp.eq.s32.totalorder %v4463_v59, 1  ;;  %vm12132_vm7 = vcmp.eq.s32.totalorder %v4466_v60, 1  ;;  %vm12133_vm11 = vcmp.eq.s32.totalorder %v4473_v61, 1  ;;  %v12136_v5 = vld [vmem:[#allocation51_spill] sm:$0xff]  ;;  %v12139_v61 = vld [vmem:[#allocation52_spill] sm:$0xff] }
  0x9b   : > { %v671_v28 = vsel %vm12131_vm3, %v12121_v14, %v4918_v52  ;;  %v672_v43 = vsel %vm12132_vm7, %v12121_v14, %v4924_v22  ;;  %v673_v24 = vsel %vm12133_vm11, %v12121_v14, %v4930_v26  ;;  %v674_v52 = vsel %vm502_vm6, %v12121_v14, %v638_v45 }
  0x9c   : > { %v675_v60 = vsel %vm503_vm4, %v12121_v14, %v639_v44  ;;  %vm12137_vm3 = vcmp.eq.s32.totalorder %v4482_v2, 1  ;;  %vm12138_vm7 = vcmp.eq.s32.totalorder %v4493_v9, 1  ;;  %vm12140_vm8 = vcmp.eq.s32.totalorder %v12134_v7, 1 }
  0x9d   : > { %v676_v22 = vsel %vm12137_vm3, %v12121_v14, %v640_v48  ;;  %v677_v26 = vsel %vm12138_vm7, %v12121_v14, %v641_v51  ;;  %v678_v59 = vsel %vm12140_vm8, %v12121_v14, %v642_v12  ;;  %vm12141_vm6 = vcmp.eq.s32.totalorder %v12135_v0, 1 }
  0x9e   : > { %v679_v45 = vsel %vm12141_vm6, %v12121_v14, %v643_v41  ;;  %vm12142_vm4 = vcmp.eq.s32.totalorder %v12136_v5, 1  ;;  %vm12143_vm3 = vcmp.eq.s32.totalorder %v12139_v61, 1  ;;  %vm12144_vm7 = vcmp.eq.s32.totalorder %v4510_v49, 1  ;;  %v12146_v41 = vld [vmem:[#allocation53_spill] sm:$0xff] }
  0x9f   : > { %v680_v44 = vsel %vm12142_vm4, %v12121_v14, %v644_v32  ;;  %v681_v48 = vsel %vm12143_vm3, %v12121_v14, %v645_v4  ;;  %v5123_v51 = vsel %vm12144_vm7, %v12121_v14, %v646_v27  ;;  %vm12145_vm8 = vcmp.eq.s32.totalorder %v4513_v21, 1  ;;  %v12148_v32 = vld [vmem:[#allocation54_spill] sm:$0xff]  ;;  %v12232_v27 = vld [vmem:[#allocation53_spill] sm:$0xff] }
  0xa0   : > { %v5128_v12 = vsel %vm12145_vm8, %v12121_v14, %v647_v38  ;;  %vm12147_vm6 = vcmp.eq.s32.totalorder %v12146_v41, 1  ;;  %vm12149_vm4 = vcmp.eq.s32.totalorder %v12148_v32, 1  ;;  %v12151_v4 = vld [vmem:[#allocation42_spill] sm:$0xff]  ;;  %vm12156_vm5 = vcmp.eq.s32.totalorder %v4525_v11, 1 }
  0xa1   : > { %v5133_v0 = vsel %vm12147_vm6, %v12121_v14, %v648_v47  ;;  %v5138_v61 = vsel %vm12149_vm4, %v12121_v14, %v649_v10  ;;  %vm12152_vm3 = vcmp.ge.s32.totalorder %v12151_v4, 0  ;;  %vm12155_vm4 = vcmp.eq.s32.totalorder %v4522_v15, 1 }
  0xa2   : > { %12150 = vst [vmem:[#allocation60_spill] sm:$0xff] %v5138_v61  ;;  %vm5144_vm7 = vmand %vm12152_vm3, %vm781_vm13  ;;  %v5155_v10 = vsel %vm12155_vm4, %v12121_v14, %v650_v36  ;;  %v5160_v47 = vsel %vm12156_vm5, %v12121_v14, %v651_v46  ;;  %vm12157_vm13 = vcmp.eq.s32.totalorder %v4528_v18, 1  ;;  %v12158_v61 = vld [vmem:[#allocation56_spill] sm:$0xff]  ;;  %vm12159_vm3 = vcmp.eq.s32.totalorder %v4388_v57, 0 }
  0xa3   : > { %v5165_v38 = vsel %vm12157_vm13, %v12121_v14, %v652_v35  ;;  %v5170_v41 = vsel %vm12159_vm3, %v12158_v61, %v657_v13  ;;  %vm12161_vm9 = vcmp.lt.s32.totalorder %v12151_v4, 15  ;;  %vm12162_vm4 = vcmp.ge.s32.totalorder %v12151_v4, 4294967295 }
  0xa4   : > { %12160 = vst [vmem:[#allocation61_spill] sm:$0xff] %v5170_v41  ;;  %vm5176_vm6 = vmand %vm12162_vm4, %vm12161_vm9  ;;  %vm482_vm5 = vcmp.eq.s32.totalorder %v4522_v15, 0  ;;  %vm12165_vm8 = vcmp.eq.s32.totalorder %v4405_v8, 0  ;;  %vm12167_vm3 = vcmp.eq.s32.totalorder %v4408_v17, 0  ;;  %vm12169_vm9 = vcmp.eq.s32.totalorder %v4411_v19, 0  ;;  %v12173_v8 = vld [vmem:[#allocation43_spill] sm:$0xff] }
  0xa5   : > { %v5186_v13 = vsel %vm12165_vm8, %v12158_v61, %v658_v55  ;;  %v5191_v14 = vsel %vm12167_vm3, %v12158_v61, %v659_v54  ;;  %v5196_v57 = vsel %vm12169_vm9, %v12158_v61, %v660_v50  ;;  %vm12171_vm4 = vcmp.eq.s32.totalorder %v4414_v20, 0  ;;  %v12187_v54 = vld [vmem:[#allocation40_spill] sm:$0xff] }
  0xa6   : > { %12166 = vst [vmem:[#allocation62_spill] sm:$0xff] %v5186_v13  ;;  %12168 = vst [vmem:[#allocation63_spill] sm:$0xff] %v5191_v14  ;;  %v5201_v46 = vsel %vm12171_vm4, %v12158_v61, %v661_v3  ;;  %vm12174_vm13 = vcmp.lt.s32.totalorder %v12173_v8, 16  ;;  %vm12175_vm8 = vcmp.ge.s32.totalorder %v12173_v8, 0  ;;  %vm12178_vm3 = vcmp.eq.s32.totalorder %v4424_v31, 0  ;;  %v12186_v31 = vld [vmem:[#allocation33_spill] sm:$0xff] }
  0xa7   : > { %12170 = vst [vmem:[#allocation64_spill] sm:$0xff] %v5196_v57  ;;  %12172 = vst [vmem:[#allocation65_spill] sm:$0xff] %v5201_v46  ;;  %v5214_v17 = vsel %vm12178_vm3, %v12158_v61, %v662_v53  ;;  %vm12180_vm9 = vcmp.eq.s32.totalorder %v4427_v33, 0  ;;  %vm12182_vm4 = vcmp.eq.s32.totalorder %v4430_v34, 0  ;;  %v805_v50 = vmul.f32 %v12187_v54, %v12186_v31  ;;  %v12208_v31 = vld [vmem:[#allocation57_spill] sm:$0xff] }
  0xa8   : > { %vm5207_vm11 = vmand %vm12175_vm8, %vm12174_vm13  ;;  %12179 = vst [vmem:[#allocation55_spill] sm:$0xff] %v5214_v17  ;;  %v5219_v19 = vsel %vm12180_vm9, %v12158_v61, %v663_v56  ;;  %v5224_v20 = vsel %vm12182_vm4, %v12158_v61, %v664_v25  ;;  %vm12188_vm8 = vcmp.eq.s32.totalorder %v4441_v16, 0  ;;  %vm12190_vm3 = vcmp.eq.s32.totalorder %v4444_v39, 0  ;;  %v1153_v56 = vld [vmem:[%s4253_s21 + $0x5] sm:$0x1] }
  0xa9   : > { %12181 = vst [vmem:[#allocation49_spill] sm:$0xff] %v5219_v19  ;;  %12183 = vst [vmem:[#allocation51_spill] sm:$0xff] %v5224_v20  ;;  %v5239_v33 = vsel %vm12188_vm8, %v12158_v61, %v665_v63  ;;  %v5244_v34 = vsel %vm12190_vm3, %v12158_v61, %v666_v6  ;;  %vm12192_vm9 = vcmp.eq.s32.totalorder %v4447_v40, 0  ;;  %v1154_v16 = vld [vmem:[%s4242_s11 + $0x5] sm:$0x1]  ;;  %v12196_v63 = vld [vmem:[#allocation45_spill] sm:$0xff] }
  0xaa   : > { %vm5230_vm13 = vmand %vm789_vm1, %vm790_vm15  ;;  %12189 = vst [vmem:[#allocation54_spill] sm:$0xff] %v5239_v33  ;;  %v5249_v3 = vsel %vm12192_vm9, %v12158_v61, %v667_v42  ;;  %vm12194_vm15 = vcmp.eq.s32.totalorder %v4450_v58, 0  ;;  %v1156_v25 = vld [vmem:[%s4242_s11 + $0x12] sm:$0x1]  ;;  %vm12197_vm1 = vcmp.eq.s32.totalorder %v12196_v63, 0  ;;  %vm12199_vm4 = vcmp.eq.s32.totalorder %v4460_v37, 0 }
  0xab   : > { %12191 = vst [vmem:[#allocation42_spill] sm:$0xff] %v5244_v34  ;;  %12193 = vst [vmem:[#allocation56_spill] sm:$0xff] %v5249_v3  ;;  %v5254_v53 = vsel %vm12194_vm15, %v12158_v61, %v668_v23  ;;  %v5262_v39 = vsel %vm12197_vm1, %v12158_v61, %v669_v29  ;;  %v5267_v40 = vsel %vm12199_vm4, %v12158_v61, %v670_v30  ;;  %v12201_v6 = vld [vmem:[#allocation46_spill] sm:$0xff]  ;;  %v808_v42 = vmul.u32 16, %v12173_v8  ;;  %v12210_v8 = vld [vmem:[#allocation59_spill] sm:$0xff] }
  0xac   : > { %12195 = vst [vmem:[#allocation43_spill] sm:$0xff] %v5254_v53  ;;  %12198 = vst [vmem:[#allocation33_spill] sm:$0xff] %v5262_v39  ;;  %vm12202_vm8 = vcmp.eq.s32.totalorder %v12201_v6, 0  ;;  %v5282_v29 = vsel %vm468_vm0, %v12158_v61, %v672_v43  ;;  %v5287_v30 = vsel %vm469_vm12, %v12158_v61, %v673_v24  ;;  %v798_v63 = vmul.f32 %v12210_v8, %v12208_v31  ;;  %v12211_v43 = vld [vmem:[#allocation44_spill] sm:$0xff]  ;;  %v1150_v23 = vld [vmem:[%s4253_s21 + $0x4] sm:$0x1] }
  0xad   : > { %12200 = vst [vmem:[#allocation40_spill] sm:$0xff] %v5267_v40  ;;  %v5272_v58 = vsel %vm12202_vm8, %v12158_v61, %v671_v28  ;;  %vm792_vm3 = vmand %vm5144_vm7, %vm5207_vm11  ;;  %v12209_v28 = vld [vmem:[#allocation58_spill] sm:$0xff]  ;;  %v802_v24 = vmul.f32 %v12211_v43, %v12208_v31  ;;  %v806_v6 = vmul.f32 %v805_v50, %v12208_v31  ;;  %v5315_v8 = vsel %vm471_vm14, %v12158_v61, %v675_v60  ;;  %v12235_v55 = vld [vmem:[#allocation60_spill] sm:$0xff] }
  0xae   : > { %12203 = vst [vmem:[#allocation45_spill] sm:$0xff] %v5272_v58  ;;  %12205 = vst [vmem:[#allocation46_spill] sm:$0xff] %v5282_v29  ;;  %v794_v54 = vmul.f32 %v12209_v28, %v12208_v31  ;;  %v1151_v37 = vld [vmem:[%s4242_s11 + $0x4] sm:$0x1]  ;;  %v1155_v28 = vadd.f32 %v1154_v16, %v1153_v56  ;;  %v5310_v58 = vsel %vm470_vm10, %v12158_v61, %v674_v52  ;;  %vm12216_vm12 = vcmp.eq.s32.totalorder %v4493_v9, 0  ;;  %v12225_v52 = vld [vmem:[#allocation52_spill] sm:$0xff] }
  0xaf   : > { %12207 = vst [vmem:[#allocation47_spill] sm:$0xff] %v5287_v30  ;;  %vm796_vm9 = vmand %vm5176_vm6, %vm5207_vm11  ;;  %v12212_v30 = vld [vmem:[#allocation5_spill] sm:$0xff]  ;;  %v5320_v43 = vsel %vm472_vm2, %v12158_v61, %v676_v22  ;;  %v5325_v50 = vsel %vm12216_vm12, %v12158_v61, %v677_v26  ;;  %vm12218_vm15 = vcmp.eq.s32.totalorder %v12134_v7, 0  ;;  %vm12221_vm14 = vcmp.eq.s32.totalorder %v12220_v62, 0 }
  0xb0   : > { %vm800_vm0 = vmand %vm5144_vm7, %vm5230_vm13  ;;  %v1157_v29 = vsub.f32 %v1156_v25, %v12212_v30  ;;  %12213 = vst [vmem:[#allocation48_spill] sm:$0xff] %v5310_v58  ;;  %v5334_v60 = vsel %vm12218_vm15, %v12158_v61, %v678_v59  ;;  %v5339_v1 = vsel %vm12221_vm14, %v12158_v61, %v679_v45  ;;  %vm12223_vm2 = vcmp.eq.s32.totalorder %v12136_v5, 0  ;;  %v12251_v31 = vld [vmem:[#allocation9_spill] sm:$0xff] }
  0xb1   : > { %12214 = vst [vmem:[#allocation57_spill] sm:$0xff] %v5315_v8  ;;  %12215 = vst [vmem:[#allocation58_spill] sm:$0xff] %v5320_v43  ;;  %v5344_v2 = vsel %vm12223_vm2, %v12158_v61, %v680_v44  ;;  %v809_v9 = vadd.s32 %v12151_v4, %v808_v42  ;;  %vm12226_vm1 = vcmp.eq.s32.totalorder %v12225_v52, 0  ;;  %v795_v59 = vsel %vm792_vm3, %v794_v54, 0.0  ;;  %v12250_v42 = vld [vmem:[#allocation8_spill] sm:$0xff]  ;;  %v12255_v62 = vld [vmem:[#allocation13_spill] sm:$0xff] }
  0xb2   : > { %12217 = vst [vmem:[#allocation59_spill] sm:$0xff] %v5325_v50  ;;  %vm804_vm10 = vmand %vm5176_vm6, %vm5230_vm13  ;;  %v5350_v22 = vsel %vm12226_vm1, %v12158_v61, %v681_v48  ;;  %v799_v7 = vsel %vm796_vm9, %v798_v63, 0.0  ;;  %v1152_v5 = vadd.f32 %v1151_v37, %v1150_v23  ;;  %v803_v26 = vsel %vm800_vm0, %v802_v24, 0.0  ;;  %v12252_v63 = vld [vmem:[#allocation10_spill] sm:$0xff]  ;;  %v12254_v37 = vld [vmem:[#allocation12_spill] sm:$0xff] }
  0xb3   : > { %12219 = vst [vmem:[#allocation44_spill] sm:$0xff] %v5334_v60  ;;  %12222 = vst [vmem:[#allocation50_spill] sm:$0xff] %v5339_v1  ;;  %v807_v45 = vsel %vm804_vm10, %v806_v6, 0.0  ;;  %v1158_v44 = vmul.f32 1.442695, %v1157_v29  ;;  %vm12228_vm4 = vcmp.eq.s32.totalorder %v4510_v49, 0  ;;  %v5395_v49 = vsel %vm482_vm5, %v12158_v61, %v5155_v10 }
  0xb4   : > { %12224 = vst [vmem:[#allocation66_spill] sm:$0xff] %v5344_v2  ;;  %12227 = vst [vmem:[#allocation52_spill] sm:$0xff] %v5350_v22  ;;  %v1161_v48 = vmul.f32 1.0666667, %v1155_v28  ;;  %v5371_v4 = vsel %vm12228_vm4, %v12158_v61, %v5123_v51  ;;  %vm12230_vm11 = vcmp.eq.s32.totalorder %v4513_v21, 0  ;;  %vm12233_vm7 = vcmp.eq.s32.totalorder %v12232_v27, 0 }
  0xb5   : > { %12229 = vst [vmem:[#allocation67_spill] sm:$0xff] %v5371_v4  ;;  %v5377_v36 = vsel %vm12230_vm11, %v12158_v61, %v5128_v12  ;;  %v5383_v35 = vsel %vm12233_vm7, %v12158_v61, %v5133_v0  ;;  %vm12236_vm6 = vcmp.eq.s32.totalorder %v12148_v32, 0  ;;  %12238 = vst [vmem:[#allocation69_spill] sm:$0xff] %v5395_v49  ;;  %vm12239_vm13 = vcmp.eq.s32.totalorder %v4525_v11, 0  ;;  %v12243_v51 = vld [vmem:[#allocation39_spill] sm:$0xff]  ;;  %v12257_v52 = vld [vmem:[#allocation14_spill] sm:$0xff] }
  0xb6   : > { %12231 = vst [vmem:[#allocation68_spill] sm:$0xff] %v5377_v36  ;;  %12234 = vst [vmem:[#allocation53_spill] sm:$0xff] %v5383_v35  ;;  %v5389_v56 = vsel %vm12236_vm6, %v12158_v61, %v12235_v55  ;;  %v5401_v21 = vsel %vm12239_vm13, %v12158_v61, %v5160_v47  ;;  %vm12241_vm8 = vcmp.eq.s32.totalorder %v4528_v18, 0  ;;  %v813_v12 = vrot.slane %v809_v9, %v12243_v51  ;;  %v12246_v47 = vld [vmem:[#allocation6_spill] sm:$0xff]  ;;  %v12253_v6 = vld [vmem:[#allocation11_spill] sm:$0xff] }
  0xb7   : > { %12237 = vst [vmem:[#allocation60_spill] sm:$0xff] %v5389_v56  ;;  %12240 = vst [vmem:[#allocation70_spill] sm:$0xff] %v5401_v21  ;;  %v5407_v0 = vsel %vm12241_vm8, %v12158_v61, %v5165_v38  ;;  %v5411_v32 = vrot.slane %v807_v45, %v12243_v51  ;;  %v5414_v15 = vrot.slane %v803_v26, %v12243_v51  ;;  %4061 = vpow2.f32 %v1158_v44  ;;  %v12249_v38 = vld [vmem:[#allocation7_spill] sm:$0xff]  ;;  %v12260_v26 = vld [vmem:[#allocation16_spill] sm:$0xff] }
  0xb8   : > { %12242 = vst [vmem:[#allocation71_spill] sm:$0xff] %v5407_v0  ;;  %v5417_v10 = vrot.slane %v799_v7, %v12243_v51  ;;  %v5420_v11 = vrot.slane %v795_v59, %v12243_v51  ;;  %v5423_v16 = vsub.s32 %v12246_v47, %v813_v12  ;;  %v5425_v61 = vadd.f32 -0.5, %v1161_v48  ;;  %v12259_v7 = vld [vmem:[#allocation15_spill] sm:$0xff]  ;;  %v12262_v44 = vld [vmem:[#allocation17_spill] sm:$0xff]  ;;  %v12264_v27 = vld [vmem:[#allocation18_spill] sm:$0xff] }
  0xb9   : > { %v5427_v18 = vmul.f32 1.0666667, %v1152_v5  ;;  %v5430_v25 = vsub.s32 %v12249_v38, %v813_v12  ;;  %v5433_v29 = vsub.s32 %v12250_v42, %v813_v12  ;;  %v5436_v54 = vsub.s32 %v12251_v31, %v813_v12 }
  0xba   : > { %12244 = vst [vmem:[#allocation72_spill] sm:$0xff] %v5417_v10  ;;  %12245 = vst [vmem:[#allocation73_spill] sm:$0xff] %v5420_v11  ;;  %v5439_v24 = vsub.s32 %v12252_v63, %v813_v12  ;;  %v5442_v23 = vsub.s32 %v12253_v6, %v813_v12  ;;  %v5445_v28 = vsub.s32 %v12254_v37, %v813_v12  ;;  %v12266_v37 = vld [vmem:[#allocation19_spill] sm:$0xff]  ;;  %vm942_vm5 = vcmp.eq.s32.totalorder %v5423_v16, 17 }
  0xbb   : > { %12247 = vst [vmem:[#allocation74_spill] sm:$0xff] %v5425_v61  ;;  %12248 = vst [vmem:[#allocation75_spill] sm:$0xff] %v5427_v18  ;;  %v5448_v9 = vsub.s32 %v12255_v62, %v813_v12  ;;  %v5451_v59 = vsub.s32 %v12257_v52, %v813_v12  ;;  %v5454_v5 = vsub.s32 %v12259_v7, %v813_v12  ;;  %v12267_v62 = vld [vmem:[#allocation20_spill] sm:$0xff]  ;;  %v12268_v52 = vld [vmem:[#allocation21_spill] sm:$0xff]  ;;  %vm943_vm3 = vcmp.eq.s32.totalorder %v5430_v25, 17 }
  0xbc   : > { %v5457_v45 = vsub.s32 %v12260_v26, %v813_v12  ;;  %v5460_v48 = vsub.s32 %v12262_v44, %v813_v12  ;;  %v5463_v55 = vsub.s32 %v12264_v27, %v813_v12  ;;  %v5466_v6 = vsub.s32 %v12266_v37, %v813_v12  ;;  %v12269_v7 = vld [vmem:[#allocation22_spill] sm:$0xff]  ;;  %v12270_v26 = vld [vmem:[#allocation23_spill] sm:$0xff]  ;;  %v12271_v44 = vld [vmem:[#allocation24_spill] sm:$0xff] }
  0xbd   : > { %12256 = vst [vmem:[#allocation76_spill] sm:$0xff] %v5448_v9  ;;  %12258 = vst [vmem:[#allocation77_spill] sm:$0xff] %v5451_v59  ;;  %v5469_v63 = vsub.s32 %v12267_v62, %v813_v12  ;;  %v5472_v31 = vsub.s32 %v12268_v52, %v813_v12  ;;  %v5475_v42 = vsub.s32 %v12269_v7, %v813_v12  ;;  %v12272_v27 = vld [vmem:[#allocation25_spill] sm:$0xff]  ;;  %v12273_v37 = vld [vmem:[#allocation26_spill] sm:$0xff]  ;;  %vm944_vm9 = vcmp.eq.s32.totalorder %v5433_v29, 17 }
  0xbe   : > { %12261 = vst [vmem:[#allocation78_spill] sm:$0xff] %v5457_v45  ;;  %12263 = vst [vmem:[#allocation79_spill] sm:$0xff] %v5460_v48  ;;  %v5478_v38 = vsub.s32 %v12270_v26, %v813_v12  ;;  %v5481_v47 = vsub.s32 %v12271_v44, %v813_v12  ;;  %v5484_v51 = vsub.s32 %v12272_v27, %v813_v12  ;;  %v12275_v62 = vld [vmem:[#allocation27_spill] sm:$0xff]  ;;  %v12276_v52 = vld [vmem:[#allocation28_spill] sm:$0xff]  ;;  %vm945_vm0 = vcmp.eq.s32.totalorder %v5436_v54, 17 }
  0xbf   : > { %12265 = vst [vmem:[#allocation80_spill] sm:$0xff] %v5463_v55  ;;  %v5487_v0 = vsub.s32 %v12273_v37, %v813_v12  ;;  %v5490_v21 = vsub.s32 %v12275_v62, %v813_v12  ;;  %v5493_v49 = vsub.s32 %v12276_v52, %v813_v12  ;;  %v12278_v7 = vld [vmem:[#allocation29_spill] sm:$0xff]  ;;  %v12280_v26 = vld [vmem:[#allocation30_spill] sm:$0xff]  ;;  %v12282_v44 = vld [vmem:[#allocation31_spill] sm:$0xff]  ;;  %vm946_vm12 = vcmp.eq.s32.totalorder %v5439_v24, 17 }
  0xc0   : > { %v5496_v56 = vsub.s32 %v12278_v7, %v813_v12  ;;  %v5499_v35 = vsub.s32 %v12280_v26, %v813_v12  ;;  %v5502_v36 = vsub.s32 %v12282_v44, %v813_v12  ;;  %v12283_v27 = vld [vmem:[#allocation32_spill] sm:$0xff]  ;;  %v12285_v37 = vld [vmem:[#allocation34_spill] sm:$0xff]  ;;  %v12287_v62 = vld [vmem:[#allocation35_spill] sm:$0xff]  ;;  %vm947_vm10 = vcmp.eq.s32.totalorder %v5442_v23, 17 }
  0xc1   : > { %12274 = vst [vmem:[#allocation81_spill] sm:$0xff] %v5487_v0  ;;  %12277 = vst [vmem:[#allocation82_spill] sm:$0xff] %v5493_v49  ;;  %v5505_v4 = vsub.s32 %v12283_v27, %v813_v12  ;;  %v5508_v22 = vsub.s32 %v12285_v37, %v813_v12  ;;  %v5511_v2 = vsub.s32 %v12287_v62, %v813_v12  ;;  %v12289_v52 = vld [vmem:[#allocation36_spill] sm:$0xff]  ;;  %v12291_v7 = vld [vmem:[#allocation37_spill] sm:$0xff]  ;;  %vm922_vm7 = vcmp.eq.s32.totalorder %v5463_v55, 16 }
  0xc2   : > { %12279 = vst [vmem:[#allocation83_spill] sm:$0xff] %v5496_v56  ;;  %12281 = vst [vmem:[#allocation84_spill] sm:$0xff] %v5499_v35  ;;  %v5514_v1 = vsub.s32 %v12289_v52, %v813_v12  ;;  %v5517_v60 = vsub.s32 %v12291_v7, %v813_v12  ;;  %v12293_v26 = vld [vmem:[#allocation38_spill] sm:$0xff]  ;;  %vm923_vm2 = vcmp.eq.s32.totalorder %v5466_v6, 16  ;;  %vm924_vm1 = vcmp.eq.s32.totalorder %v5469_v63, 16 }
  0xc3   : > { %12284 = vst [vmem:[#allocation85_spill] sm:$0xff] %v5505_v4  ;;  %12286 = vst [vmem:[#allocation86_spill] sm:$0xff] %v5508_v22  ;;  %v5520_v50 = vsub.s32 %v12293_v26, %v813_v12  ;;  %vm968_vm15 = vcmp.eq.s32.totalorder %v5505_v4, 17  ;;  %vm969_vm14 = vcmp.eq.s32.totalorder %v5508_v22, 17  ;;  %v5572_v26 = vsel %vm942_vm5, %v5411_v32, 0.0 }
  0xc4   : > { %12288 = vst [vmem:[#allocation87_spill] sm:$0xff] %v5511_v2  ;;  %12290 = vst [vmem:[#allocation88_spill] sm:$0xff] %v5514_v1  ;;  %v5539_v12 = vpop.eup %4061  ;;  %vm971_vm6 = vcmp.eq.s32.totalorder %v5514_v1, 17  ;;  %vm972_vm13 = vcmp.eq.s32.totalorder %v5517_v60, 17  ;;  %v5581_v7 = vsel %vm943_vm3, %v5411_v32, 0.0  ;;  %v5586_v52 = vsel %vm944_vm9, %v5411_v32, 0.0 }
  0xc5   : > { %12292 = vst [vmem:[#allocation89_spill] sm:$0xff] %v5517_v60  ;;  %12294 = vst [vmem:[#allocation90_spill] sm:$0xff] %v5539_v12  ;;  %vm973_vm8 = vcmp.eq.s32.totalorder %v5520_v50, 17  ;;  %v5591_v62 = vsel %vm945_vm0, %v5411_v32, 0.0  ;;  %v5596_v37 = vsel %vm946_vm12, %v5411_v32, 0.0  ;;  %vm927_vm5 = vcmp.eq.s32.totalorder %v5478_v38, 16 }
  0xc6   : > { %v5605_v27 = vsel %vm947_vm10, %v5411_v32, 0.0  ;;  %vm12295_vm9 = vcmp.eq.s32.totalorder %v5445_v28, 17  ;;  %vm12296_vm0 = vcmp.eq.s32.totalorder %v5448_v9, 17  ;;  %vm12297_vm12 = vcmp.eq.s32.totalorder %v5451_v59, 17 }
  0xc7   : > { %v5610_v44 = vsel %vm12295_vm9, %v5411_v32, 0.0  ;;  %v5615_v43 = vsel %vm12296_vm0, %v5411_v32, 0.0  ;;  %v5620_v8 = vsel %vm12297_vm12, %v5411_v32, 0.0  ;;  %vm12298_vm9 = vcmp.eq.s32.totalorder %v5454_v5, 17 }
  0xc8   : > { %v5629_v30 = vsel %vm12298_vm9, %v5411_v32, 0.0  ;;  %vm12299_vm0 = vcmp.eq.s32.totalorder %v5457_v45, 17  ;;  %vm12300_vm12 = vcmp.eq.s32.totalorder %v5460_v48, 17  ;;  %vm12301_vm11 = vcmp.eq.s32.totalorder %v5463_v55, 17 }
  0xc9   : > { %v5634_v58 = vsel %vm12299_vm0, %v5411_v32, 0.0  ;;  %v5639_v40 = vsel %vm12300_vm12, %v5411_v32, 0.0  ;;  %v5644_v12 = vsel %vm12301_vm11, %v5411_v32, 0.0  ;;  %vm12302_vm0 = vcmp.eq.s32.totalorder %v5466_v6, 17 }
  0xca   : > { %v5653_v39 = vsel %vm12302_vm0, %v5411_v32, 0.0  ;;  %vm12303_vm12 = vcmp.eq.s32.totalorder %v5469_v63, 17  ;;  %vm12304_vm11 = vcmp.eq.s32.totalorder %v5472_v31, 17  ;;  %vm12305_vm10 = vcmp.eq.s32.totalorder %v5475_v42, 17 }
  0xcb   : > { %v5658_v53 = vsel %vm12303_vm12, %v5411_v32, 0.0  ;;  %v5663_v3 = vsel %vm12304_vm11, %v5411_v32, 0.0  ;;  %v5668_v34 = vsel %vm12305_vm10, %v5411_v32, 0.0  ;;  %vm12306_vm12 = vcmp.eq.s32.totalorder %v5478_v38, 17 }
  0xcc   : > { %v5677_v33 = vsel %vm12306_vm12, %v5411_v32, 0.0  ;;  %vm12307_vm11 = vcmp.eq.s32.totalorder %v5481_v47, 17  ;;  %vm12308_vm10 = vcmp.eq.s32.totalorder %v5484_v51, 17  ;;  %vm12309_vm4 = vcmp.eq.s32.totalorder %v5487_v0, 17 }
  0xcd   : > { %v5682_v20 = vsel %vm12307_vm11, %v5411_v32, 0.0  ;;  %v5687_v19 = vsel %vm12308_vm10, %v5411_v32, 0.0  ;;  %v5692_v17 = vsel %vm12309_vm4, %v5411_v32, 0.0  ;;  %vm12310_vm11 = vcmp.eq.s32.totalorder %v5490_v21, 17 }
  0xce   : > { %v5701_v46 = vsel %vm12310_vm11, %v5411_v32, 0.0  ;;  %vm12311_vm10 = vcmp.eq.s32.totalorder %v5493_v49, 17  ;;  %vm12312_vm4 = vcmp.eq.s32.totalorder %v5496_v56, 17  ;;  %vm12313_vm9 = vcmp.eq.s32.totalorder %v5499_v35, 17 }
  0xcf   : > { %v5706_v57 = vsel %vm12311_vm10, %v5411_v32, 0.0  ;;  %v5711_v14 = vsel %vm12312_vm4, %v5411_v32, 0.0  ;;  %v5716_v13 = vsel %vm12313_vm9, %v5411_v32, 0.0  ;;  %vm883_vm0 = vcmp.eq.s32.totalorder %v5442_v23, 1 }
  0xd0   : > { %vm884_vm11 = vcmp.eq.s32.totalorder %v5445_v28, 1  ;;  %vm12314_vm10 = vcmp.eq.s32.totalorder %v5502_v36, 17  ;;  %v5730_v61 = vsel %vm968_vm15, %v5411_v32, 0.0  ;;  %v5735_v18 = vsel %vm969_vm14, %v5411_v32, 0.0 }
  0xd1   : > { %v5725_v41 = vsel %vm12314_vm10, %v5411_v32, 0.0  ;;  %12315 = vst [vmem:[#allocation91_spill] sm:$0xff] %v5730_v61  ;;  %12316 = vst [vmem:[#allocation92_spill] sm:$0xff] %v5735_v18  ;;  %vm12317_vm9 = vcmp.eq.s32.totalorder %v5511_v2, 17  ;;  %vm887_vm4 = vcmp.eq.s32.totalorder %v5454_v5, 1  ;;  %vm888_vm10 = vcmp.eq.s32.totalorder %v5457_v45, 1 }
  0xd2   : > { %v5740_v11 = vsel %vm12317_vm9, %v5411_v32, 0.0  ;;  %vm889_vm3 = vcmp.eq.s32.totalorder %v5460_v48, 1  ;;  %v5749_v10 = vsel %vm971_vm6, %v5411_v32, 0.0  ;;  %v5754_v18 = vsel %vm972_vm13, %v5411_v32, 0.0 }
  0xd3   : > { %12318 = vst [vmem:[#allocation93_spill] sm:$0xff] %v5740_v11  ;;  %v5759_v11 = vsel %vm973_vm8, %v5411_v32, 0.0  ;;  %vm12320_vm15 = vcmp.eq.s32.totalorder %v5423_v16, 16  ;;  %vm12322_vm12 = vcmp.eq.s32.totalorder %v5430_v25, 16  ;;  %vm12323_vm8 = vcmp.eq.s32.totalorder %v5433_v29, 16 }
  0xd4   : > { %12319 = vst [vmem:[#allocation94_spill] sm:$0xff] %v5759_v11  ;;  %v5765_v61 = vsel %vm12320_vm15, %v5414_v15, %v5572_v26  ;;  %v5775_v32 = vsel %vm12322_vm12, %v5414_v15, %v5581_v7  ;;  %v5781_v26 = vsel %vm12323_vm8, %v5414_v15, %v5586_v52  ;;  %vm12324_vm15 = vcmp.eq.s32.totalorder %v5436_v54, 16 }
  0xd5   : > { %12321 = vst [vmem:[#allocation95_spill] sm:$0xff] %v5765_v61  ;;  %v5787_v61 = vsel %vm12324_vm15, %v5414_v15, %v5591_v62  ;;  %vm12325_vm13 = vcmp.eq.s32.totalorder %v5439_v24, 16  ;;  %vm12326_vm14 = vcmp.eq.s32.totalorder %v5442_v23, 16  ;;  %vm12327_vm15 = vcmp.eq.s32.totalorder %v5445_v28, 16 }
  0xd6   : > { %v5793_v11 = vsel %vm12325_vm13, %v5414_v15, %v5596_v37  ;;  %v1019_v62 = vsel %vm12326_vm14, %v5414_v15, %v5605_v27  ;;  %v1020_v52 = vsel %vm12327_vm15, %v5414_v15, %v5610_v44  ;;  %vm12328_vm13 = vcmp.eq.s32.totalorder %v5448_v9, 16 }
  0xd7   : > { %v1021_v37 = vsel %vm12328_vm13, %v5414_v15, %v5615_v43  ;;  %vm12329_vm6 = vcmp.eq.s32.totalorder %v5451_v59, 16  ;;  %vm899_vm8 = vcmp.eq.s32.totalorder %v5490_v21, 1  ;;  %vm12330_vm15 = vcmp.eq.s32.totalorder %v5454_v5, 16 }
  0xd8   : > { %v1022_v7 = vsel %vm12329_vm6, %v5414_v15, %v5620_v8  ;;  %v1023_v44 = vsel %vm12330_vm15, %v5414_v15, %v5629_v30  ;;  %vm12331_vm13 = vcmp.eq.s32.totalorder %v5457_v45, 16  ;;  %vm12332_vm6 = vcmp.eq.s32.totalorder %v5460_v48, 16  ;;  %v12371_v48 = vld [vmem:[#allocation86_spill] sm:$0xff]  ;;  %v12372_v45 = vld [vmem:[#allocation87_spill] sm:$0xff] }
  0xd9   : > { %v1024_v43 = vsel %vm12331_vm13, %v5414_v15, %v5634_v58  ;;  %v1025_v8 = vsel %vm12332_vm6, %v5414_v15, %v5639_v40  ;;  %v1026_v27 = vsel %vm922_vm7, %v5414_v15, %v5644_v12  ;;  %vm903_vm12 = vcmp.eq.s32.totalorder %v5502_v36, 1 }
  0xda   : > { %vm904_vm14 = vcmp.eq.s32.totalorder %v5505_v4, 1  ;;  %v1027_v58 = vsel %vm923_vm2, %v5414_v15, %v5653_v39  ;;  %v1028_v40 = vsel %vm924_vm1, %v5414_v15, %v5658_v53  ;;  %vm12333_vm7 = vcmp.eq.s32.totalorder %v5472_v31, 16 }
  0xdb   : > { %v1029_v30 = vsel %vm12333_vm7, %v5414_v15, %v5663_v3  ;;  %vm12334_vm13 = vcmp.eq.s32.totalorder %v5475_v42, 16  ;;  %vm907_vm9 = vcmp.eq.s32.totalorder %v5514_v1, 1  ;;  %v1031_v53 = vsel %vm927_vm5, %v5414_v15, %v5677_v33 }
  0xdc   : > { %v1030_v12 = vsel %vm12334_vm13, %v5414_v15, %v5668_v34  ;;  %vm12335_vm1 = vcmp.eq.s32.totalorder %v5481_v47, 16  ;;  %vm12336_vm7 = vcmp.eq.s32.totalorder %v5484_v51, 16  ;;  %vm12337_vm13 = vcmp.eq.s32.totalorder %v5487_v0, 16 }
  0xdd   : > { %v1032_v3 = vsel %vm12335_vm1, %v5414_v15, %v5682_v20  ;;  %v1033_v34 = vsel %vm12336_vm7, %v5414_v15, %v5687_v19  ;;  %v1034_v39 = vsel %vm12337_vm13, %v5414_v15, %v5692_v17  ;;  %vm12338_vm1 = vcmp.eq.s32.totalorder %v5490_v21, 16 }
  0xde   : > { %v1035_v20 = vsel %vm12338_vm1, %v5414_v15, %v5701_v46  ;;  %vm12339_vm7 = vcmp.eq.s32.totalorder %v5493_v49, 16  ;;  %vm12340_vm13 = vcmp.eq.s32.totalorder %v5496_v56, 16  ;;  %vm12341_vm15 = vcmp.eq.s32.totalorder %v5499_v35, 16  ;;  %v12343_v46 = vld [vmem:[#allocation91_spill] sm:$0xff]  ;;  %v12345_v35 = vld [vmem:[#allocation92_spill] sm:$0xff]  ;;  %v12347_v56 = vld [vmem:[#allocation93_spill] sm:$0xff] }
  0xdf   : > { %v1036_v19 = vsel %vm12339_vm7, %v5414_v15, %v5706_v57  ;;  %v1037_v17 = vsel %vm12340_vm13, %v5414_v15, %v5711_v14  ;;  %v1038_v33 = vsel %vm12341_vm15, %v5414_v15, %v5716_v13  ;;  %vm12342_vm7 = vcmp.eq.s32.totalorder %v5502_v36, 16 }
  0xe0   : > { %v1039_v57 = vsel %vm12342_vm7, %v5414_v15, %v5725_v41  ;;  %vm12344_vm13 = vcmp.eq.s32.totalorder %v5505_v4, 16  ;;  %vm12346_vm15 = vcmp.eq.s32.totalorder %v5508_v22, 16  ;;  %vm12348_vm1 = vcmp.eq.s32.totalorder %v5511_v2, 16  ;;  %v12353_v2 = vld [vmem:[#allocation95_spill] sm:$0xff]  ;;  %v12354_v22 = vld [vmem:[#allocation72_spill] sm:$0xff] }
  0xe1   : > { %v1040_v14 = vsel %vm12344_vm13, %v5414_v15, %v12343_v46  ;;  %v1041_v13 = vsel %vm12346_vm15, %v5414_v15, %v12345_v35  ;;  %v1042_v49 = vsel %vm12348_vm1, %v5414_v15, %v12347_v56  ;;  %vm854_vm2 = vcmp.eq.s32.totalorder %v5451_v59, 0  ;;  %v12351_v46 = vld [vmem:[#allocation94_spill] sm:$0xff] }
  0xe2   : > { %vm12349_vm13 = vcmp.eq.s32.totalorder %v5514_v1, 16  ;;  %vm12350_vm15 = vcmp.eq.s32.totalorder %v5517_v60, 16  ;;  %vm12352_vm1 = vcmp.eq.s32.totalorder %v5520_v50, 16  ;;  %vm12355_vm7 = vcmp.eq.s32.totalorder %v5423_v16, 1 }
  0xe3   : > { %v1043_v41 = vsel %vm12349_vm13, %v5414_v15, %v5749_v10  ;;  %v1044_v35 = vsel %vm12350_vm15, %v5414_v15, %v5754_v18  ;;  %v1045_v56 = vsel %vm12352_vm1, %v5414_v15, %v12351_v46  ;;  %v1050_v4 = vsel %vm12355_vm7, %v12354_v22, %v12353_v2  ;;  %v12363_v46 = vld [vmem:[#allocation82_spill] sm:$0xff] }
  0xe4   : > { %vm12356_vm15 = vcmp.eq.s32.totalorder %v5430_v25, 1  ;;  %vm12357_vm1 = vcmp.eq.s32.totalorder %v5433_v29, 1  ;;  %vm12358_vm7 = vcmp.eq.s32.totalorder %v5436_v54, 1  ;;  %vm12359_vm6 = vcmp.eq.s32.totalorder %v5439_v24, 1 }
  0xe5   : > { %v1051_v10 = vsel %vm12356_vm15, %v12354_v22, %v5775_v32  ;;  %v1052_v15 = vsel %vm12357_vm1, %v12354_v22, %v5781_v26  ;;  %v1053_v2 = vsel %vm12358_vm7, %v12354_v22, %v5787_v61  ;;  %v1054_v18 = vsel %vm12359_vm6, %v12354_v22, %v5793_v11 }
  0xe6   : > { %vm861_vm13 = vcmp.eq.s32.totalorder %v5472_v31, 0  ;;  %v1055_v32 = vsel %vm883_vm0, %v12354_v22, %v1019_v62  ;;  %v1056_v26 = vsel %vm884_vm11, %v12354_v22, %v1020_v52  ;;  %vm12360_vm1 = vcmp.eq.s32.totalorder %v5448_v9, 1  ;;  %v12365_v9 = vld [vmem:[#allocation84_spill] sm:$0xff] }
  0xe7   : > { %v1057_v61 = vsel %vm12360_vm1, %v12354_v22, %v1021_v37  ;;  %vm12361_vm6 = vcmp.eq.s32.totalorder %v5451_v59, 1  ;;  %vm864_vm7 = vcmp.eq.s32.totalorder %v5481_v47, 0  ;;  %vm865_vm15 = vcmp.eq.s32.totalorder %v5484_v51, 0  ;;  %v12364_v59 = vld [vmem:[#allocation83_spill] sm:$0xff] }
  0xe8   : > { %v1058_v11 = vsel %vm12361_vm6, %v12354_v22, %v1022_v7  ;;  %v1059_v62 = vsel %vm887_vm4, %v12354_v22, %v1023_v44  ;;  %v1060_v52 = vsel %vm888_vm10, %v12354_v22, %v1024_v43  ;;  %v1061_v37 = vsel %vm889_vm3, %v12354_v22, %v1025_v8 }
  0xe9   : > { %vm12362_vm11 = vcmp.eq.s32.totalorder %v5463_v55, 1  ;;  %vm868_vm1 = vcmp.eq.s32.totalorder %v12363_v46, 0  ;;  %vm12366_vm5 = vcmp.eq.s32.totalorder %v5466_v6, 1  ;;  %vm12367_vm10 = vcmp.eq.s32.totalorder %v5469_v63, 1  ;;  %v12370_v55 = vld [vmem:[#allocation85_spill] sm:$0xff] }
  0xea   : > { %v1062_v7 = vsel %vm12362_vm11, %v12354_v22, %v1026_v27  ;;  %v1063_v44 = vsel %vm12366_vm5, %v12354_v22, %v1027_v58  ;;  %v1064_v43 = vsel %vm12367_vm10, %v12354_v22, %v1028_v40  ;;  %vm12368_vm3 = vcmp.eq.s32.totalorder %v5472_v31, 1 }
  0xeb   : > { %v1065_v8 = vsel %vm12368_vm3, %v12354_v22, %v1029_v30  ;;  %vm12369_vm11 = vcmp.eq.s32.totalorder %v5475_v42, 1  ;;  %vm872_vm0 = vcmp.eq.s32.totalorder %v12370_v55, 0  ;;  %vm12373_vm5 = vcmp.eq.s32.totalorder %v5478_v38, 1  ;;  %v12384_v55 = vld [vmem:[#allocation73_spill] sm:$0xff] }
  0xec   : > { %v1066_v27 = vsel %vm12369_vm11, %v12354_v22, %v1030_v12  ;;  %v1067_v58 = vsel %vm12373_vm5, %v12354_v22, %v1031_v53  ;;  %vm12374_vm10 = vcmp.eq.s32.totalorder %v5481_v47, 1  ;;  %vm12375_vm3 = vcmp.eq.s32.totalorder %v5484_v51, 1  ;;  %v1547_v47 = vld [vmem:[%s4242_s11 + $0x7] sm:$0x1] }
  0xed   : > { %v1068_v40 = vsel %vm12374_vm10, %v12354_v22, %v1032_v3  ;;  %v1069_v30 = vsel %vm12375_vm3, %v12354_v22, %v1033_v34  ;;  %vm12376_vm11 = vcmp.eq.s32.totalorder %v5487_v0, 1  ;;  %vm875_vm4 = vcmp.eq.s32.totalorder %v5514_v1, 0 }
  0xee   : > { %v1070_v12 = vsel %vm12376_vm11, %v12354_v22, %v1034_v39  ;;  %vm876_vm6 = vcmp.eq.s32.totalorder %v5517_v60, 0  ;;  %v1071_v53 = vsel %vm899_vm8, %v12354_v22, %v1035_v20  ;;  %vm12377_vm5 = vcmp.eq.s32.totalorder %v12363_v46, 1 }
  0xef   : > { %v1072_v3 = vsel %vm12377_vm5, %v12354_v22, %v1036_v19  ;;  %vm12378_vm10 = vcmp.eq.s32.totalorder %v12364_v59, 1  ;;  %vm12379_vm3 = vcmp.eq.s32.totalorder %v12365_v9, 1  ;;  %vm877_vm11 = vcmp.eq.s32.totalorder %v5520_v50, 0 }
  0xf0   : > { %v1073_v34 = vsel %vm12378_vm10, %v12354_v22, %v1037_v17  ;;  %v1074_v39 = vsel %vm12379_vm3, %v12354_v22, %v1038_v33  ;;  %v1075_v0 = vsel %vm903_vm12, %v12354_v22, %v1039_v57  ;;  %v1076_v20 = vsel %vm904_vm14, %v12354_v22, %v1040_v14 }
  0xf1   : > { %vm12380_vm8 = vcmp.eq.s32.totalorder %v12371_v48, 1  ;;  %vm12381_vm5 = vcmp.eq.s32.totalorder %v12372_v45, 1  ;;  %v1079_v33 = vsel %vm907_vm9, %v12354_v22, %v1043_v41  ;;  %vm12382_vm10 = vcmp.eq.s32.totalorder %v5517_v60, 1  ;;  %v12389_v60 = vld [vmem:[#allocation75_spill] sm:$0xff] }
  0xf2   : > { %v1077_v19 = vsel %vm12380_vm8, %v12354_v22, %v1041_v13  ;;  %v1078_v17 = vsel %vm12381_vm5, %v12354_v22, %v1042_v49  ;;  %v1080_v57 = vsel %vm12382_vm10, %v12354_v22, %v1044_v35  ;;  %vm12383_vm12 = vcmp.eq.s32.totalorder %v5520_v50, 1  ;;  %v12429_v50 = vld [vmem:[#allocation55_spill] sm:$0xff] }
  0xf3   : > { %v1081_v14 = vsel %vm12383_vm12, %v12354_v22, %v1045_v56  ;;  %vm12385_vm14 = vcmp.eq.s32.totalorder %v5423_v16, 0  ;;  %vm12386_vm3 = vcmp.eq.s32.totalorder %v5430_v25, 0  ;;  %vm12387_vm8 = vcmp.eq.s32.totalorder %v5433_v29, 0  ;;  %v12393_v25 = vld [vmem:[#allocation76_spill] sm:$0xff] }
  0xf4   : > { %v1086_v13 = vsel %vm12385_vm14, %v12384_v55, %v1050_v4  ;;  %v1087_v49 = vsel %vm12386_vm3, %v12384_v55, %v1051_v10  ;;  %v1088_v41 = vsel %vm12387_vm8, %v12384_v55, %v1052_v15  ;;  %vm12388_vm9 = vcmp.eq.s32.totalorder %v5436_v54, 0  ;;  %v12401_v15 = vld [vmem:[#allocation80_spill] sm:$0xff] }
  0xf5   : > { %v1089_v35 = vsel %vm12388_vm9, %v12384_v55, %v1053_v2  ;;  %v3872_v1 = vadd.f32 -0.5, %v12389_v60  ;;  %vm12390_vm5 = vcmp.eq.s32.totalorder %v5439_v24, 0  ;;  %vm12391_vm10 = vcmp.eq.s32.totalorder %v5442_v23, 0  ;;  %v12397_v23 = vld [vmem:[#allocation78_spill] sm:$0xff] }
  0xf6   : > { %v1090_v22 = vsel %vm12390_vm5, %v12384_v55, %v1054_v18  ;;  %v1091_v4 = vsel %vm12391_vm10, %v12384_v55, %v1055_v32  ;;  %vm12392_vm12 = vcmp.eq.s32.totalorder %v5445_v28, 0  ;;  %vm12394_vm14 = vcmp.eq.s32.totalorder %v12393_v25, 0  ;;  %v12399_v28 = vld [vmem:[#allocation79_spill] sm:$0xff]  ;;  %v12405_v32 = vld [vmem:[#allocation74_spill] sm:$0xff]  ;;  %v12425_v25 = vld [vmem:[#allocation64_spill] sm:$0xff] }
  0xf7   : > { %v1092_v16 = vsel %vm12392_vm12, %v12384_v55, %v1056_v26  ;;  %v1093_v29 = vsel %vm12394_vm14, %v12384_v55, %v1057_v61  ;;  %v1094_v60 = vsel %vm854_vm2, %v12384_v55, %v1058_v11  ;;  %vm12396_vm3 = vcmp.eq.s32.totalorder %v5454_v5, 0 }
  0xf8   : > { %v1095_v24 = vsel %vm12396_vm3, %v12384_v55, %v1059_v62  ;;  %vm12398_vm8 = vcmp.eq.s32.totalorder %v12397_v23, 0  ;;  %vm12400_vm9 = vcmp.eq.s32.totalorder %v12399_v28, 0  ;;  %vm12402_vm5 = vcmp.eq.s32.totalorder %v12401_v15, 0  ;;  %v12427_v23 = vld [vmem:[#allocation65_spill] sm:$0xff] }
  0xf9   : > { %v1096_v56 = vsel %vm12398_vm8, %v12384_v55, %v1060_v52  ;;  %v1097_v10 = vsel %vm12400_vm9, %v12384_v55, %v1061_v37  ;;  %v1098_v2 = vsel %vm12402_vm5, %v12384_v55, %v1062_v7  ;;  %vm12403_vm2 = vcmp.eq.s32.totalorder %v5466_v6, 0  ;;  %v1546_v37 = vld [vmem:[%s4253_s21 + $0x7] sm:$0x1] }
  0xfa   : > { %v6094_v5 = vsel %vm12403_vm2, %v12384_v55, %v1063_v44  ;;  %vm12404_vm10 = vcmp.eq.s32.totalorder %v5469_v63, 0  ;;  %v1165_v26 = vfloor.f32 %v12405_v32  ;;  %v6105_v61 = vsel %vm861_vm13, %v12384_v55, %v1065_v8  ;;  %v4049_v7 = vld [vmem:[%s4239_s8 + $0x4] ss:$8 sps:$4 sm:$0xff]   ;;  %v12443_v8 = vld [vmem:[#allocation33_spill] sm:$0xff] }
  0xfb   : > { %v6099_v18 = vsel %vm12404_vm10, %v12384_v55, %v1064_v43  ;;  %vm12406_vm12 = vcmp.eq.s32.totalorder %v5475_v42, 0  ;;  %vm12407_vm14 = vcmp.eq.s32.totalorder %v5478_v38, 0  ;;  %v1166_v63 = vfloor.f32 %v3872_v1  ;;  %v12408_v42 = vld [vmem:[#allocation81_spill] sm:$0xff]  ;;  %1996 = vmatprep.mubr.bf16.mxu0 %v4049_v7 }
  0xfc   : > { %v6110_v11 = vsel %vm12406_vm12, %v12384_v55, %v1066_v27  ;;  %v6115_v6 = vsel %vm12407_vm14, %v12384_v55, %v1067_v58  ;;  %v6120_v62 = vsel %vm864_vm7, %v12384_v55, %v1068_v40  ;;  %v6125_v31 = vsel %vm865_vm15, %v12384_v55, %v1069_v30  ;;  %v1543_v30 = vld [vmem:[%s4253_s21 + $0x6] sm:$0x1] }
  0xfd   : > { %vm12409_vm13 = vcmp.eq.s32.totalorder %v12408_v42, 0  ;;  %vm12410_vm3 = vcmp.eq.s32.totalorder %v5490_v21, 0  ;;  %v6143_v51 = vsel %vm868_vm1, %v12384_v55, %v1072_v3  ;;  %vm12411_vm15 = vcmp.eq.s32.totalorder %v12364_v59, 0  ;;  %v12419_v3 = vld [vmem:[#allocation61_spill] sm:$0xff] }
  0xfe   : > { %v6130_v52 = vsel %vm12409_vm13, %v12384_v55, %v1070_v12  ;;  %v6135_v38 = vsel %vm12410_vm3, %v12384_v55, %v1071_v53  ;;  %v6148_v44 = vsel %vm12411_vm15, %v12384_v55, %v1073_v34  ;;  %vm12412_vm7 = vcmp.eq.s32.totalorder %v12365_v9, 0  ;;  %v1544_v12 = vld [vmem:[%s4242_s11 + $0x6] sm:$0x1]  ;;  %v12447_v58 = vld [vmem:[#allocation41_spill] sm:$0xff] }
  0xff   : > { %v6153_v21 = vsel %vm12412_vm7, %v12384_v55, %v1074_v39  ;;  %vm12413_vm8 = vcmp.eq.s32.totalorder %v5502_v36, 0  ;;  %v6163_v46 = vsel %vm872_vm0, %v12384_v55, %v1076_v20  ;;  %vm12415_vm1 = vcmp.eq.s32.totalorder %v12371_v48, 0 }
 0x100   : > { %v6158_v43 = vsel %vm12413_vm8, %v12384_v55, %v1075_v0  ;;  %v6168_v59 = vsel %vm12415_vm1, %v12384_v55, %v1077_v19  ;;  %vm12416_vm9 = vcmp.eq.s32.totalorder %v12372_v45, 0  ;;  %v3967_v27 = vtrunc.f32 %v1165_v26  ;;  %v12421_v19 = vld [vmem:[#allocation62_spill] sm:$0xff] }
 0x101   : > { %v6173_v9 = vsel %vm12416_vm9, %v12384_v55, %v1078_v17  ;;  %v6178_v0 = vsel %vm875_vm4, %v12384_v55, %v1079_v33  ;;  %v6183_v40 = vsel %vm876_vm6, %v12384_v55, %v1080_v57  ;;  %v3969_v48 = vtrunc.f32 %v1166_v63  ;;  %v12423_v33 = vld [vmem:[#allocation63_spill] sm:$0xff] }
 0x102   : > { %v1548_v53 = vadd.f32 %v1547_v47, %v1546_v37  ;;  %v6190_v45 = vsel %vm877_vm11, %v12384_v55, %v1081_v14  ;;  %v6193_v34 = vadd.f32 %v1086_v13, %v12419_v3  ;;  %v1167_v39 = vsub.f32 %v12405_v32, %v1165_v26  ;;  %v12431_v14 = vld [vmem:[#allocation49_spill] sm:$0xff]  ;;  %v12433_v32 = vld [vmem:[#allocation51_spill] sm:$0xff]  ;;  %v12435_v26 = vld [vmem:[#allocation54_spill] sm:$0xff] }
 0x103   : > { %v1169_v20 = vsub.f32 %v3872_v1, %v1166_v63  ;;  %v6197_v17 = vadd.f32 %v1087_v49, %v12421_v19  ;;  %v6200_v57 = vadd.f32 %v1088_v41, %v12423_v33  ;;  %v6203_v54 = vadd.f32 %v1089_v35, %v12425_v25  ;;  %v12453_v33 = vld [vmem:[#allocation45_spill] sm:$0xff] }
 0x104   : > { %12420 = vst [vmem:[#allocation91_spill] sm:$0xff] %v6193_v34  ;;  %v6206_v28 = vadd.f32 %v1090_v22, %v12427_v23  ;;  %v6209_v55 = vadd.f32 %v1091_v4, %v12429_v50  ;;  %v6212_v13 = vadd.f32 %v1092_v16, %v12431_v14  ;;  %v3968_v15 = vcvt.f32.s32 %v3967_v27  ;;  %v12437_v4 = vld [vmem:[#allocation42_spill] sm:$0xff]  ;;  %v12439_v16 = vld [vmem:[#allocation56_spill] sm:$0xff]  ;;  %v12457_v14 = vld [vmem:[#allocation47_spill] sm:$0xff] }
 0x105   : > { %12422 = vst [vmem:[#allocation92_spill] sm:$0xff] %v6197_v17  ;;  %12424 = vst [vmem:[#allocation93_spill] sm:$0xff] %v6200_v57  ;;  %v1545_v1 = vadd.f32 %v1544_v12, %v1543_v30  ;;  %v6215_v49 = vadd.f32 %v1093_v29, %v12433_v32  ;;  %v6218_v41 = vadd.f32 %v1094_v60, %v12435_v26  ;;  %v3970_v63 = vcvt.f32.s32 %v3969_v48  ;;  %v12441_v29 = vld [vmem:[#allocation43_spill] sm:$0xff]  ;;  %v12448_v48 = vld [vmem:[#allocation90_spill] sm:$0xff] }
 0x106   : > { %12426 = vst [vmem:[#allocation94_spill] sm:$0xff] %v6203_v54  ;;  %12428 = vst [vmem:[#allocation95_spill] sm:$0xff] %v6206_v28  ;;  %v1554_v35 = vmul.f32 1.0666667, %v1548_v53  ;;  %v1168_v42 = vsub.f32 1.0, %v1167_v39  ;;  %v1170_v22 = vsub.f32 1.0, %v1169_v20  ;;  %v6221_v37 = vadd.f32 %v1095_v24, %v12437_v4 }
 0x107   : > { %12430 = vst [vmem:[#allocation72_spill] sm:$0xff] %v6209_v55  ;;  %12432 = vst [vmem:[#allocation82_spill] sm:$0xff] %v6212_v13  ;;  %vm1173_vm0 = vcmp.ge.s32.totalorder %v3968_v15, 0  ;;  %vm1174_vm6 = vcmp.lt.s32.totalorder %v3968_v15, 16  ;;  %v6224_v47 = vadd.f32 %v1096_v56, %v12439_v16  ;;  %vm1179_vm4 = vcmp.ge.s32.totalorder %v3970_v63, 0  ;;  %v12455_v23 = vld [vmem:[#allocation46_spill] sm:$0xff] }
 0x108   : > { %12434 = vst [vmem:[#allocation83_spill] sm:$0xff] %v6215_v49  ;;  %12436 = vst [vmem:[#allocation84_spill] sm:$0xff] %v6218_v41  ;;  %vm1180_vm11 = vcmp.lt.s32.totalorder %v3970_v63, 16  ;;  %v6227_v7 = vadd.f32 %v1097_v10, %v12441_v29  ;;  %vm1176_vm5 = vcmp.ge.s32.totalorder %v3968_v15, 4294967295  ;;  %vm1177_vm2 = vcmp.lt.s32.totalorder %v3968_v15, 15  ;;  %v12468_v16 = vld [vmem:[#allocation58_spill] sm:$0xff] }
 0x109   : > { %12438 = vst [vmem:[#allocation86_spill] sm:$0xff] %v6221_v37  ;;  %12440 = vst [vmem:[#allocation87_spill] sm:$0xff] %v6224_v47  ;;  %v1556_v60 = vmul.f32 1.0666667, %v1545_v1  ;;  %v6230_v27 = vadd.f32 %v1098_v2, %v12443_v8  ;;  %vm1182_vm12 = vcmp.ge.s32.totalorder %v3970_v63, 4294967295  ;;  %vm1183_vm14 = vcmp.lt.s32.totalorder %v3970_v63, 15 }
 0x10a   : > { %12442 = vst [vmem:[#allocation73_spill] sm:$0xff] %v6227_v7  ;;  %vm6232_vm10 = vmand %vm1173_vm0, %vm1174_vm6  ;;  %v1549_v24 = vld [vmem:[%s4242_s11 + $0x13] sm:$0x1]  ;;  %v3873_v56 = vadd.f32 -0.5, %v1554_v35  ;;  %v1160_v30 = vmul.f32 %v12448_v48, %v12447_v58  ;;  %v1186_v12 = vmul.f32 %v1170_v22, %v1168_v42  ;;  %v1190_v53 = vmul.f32 %v1170_v22, %v1167_v39  ;;  %v12470_v48 = vld [vmem:[#allocation59_spill] sm:$0xff] }
 0x10b   : > { %12444 = vst [vmem:[#allocation75_spill] sm:$0xff] %v6230_v27  ;;  %vm6239_vm13 = vmand %vm1179_vm4, %vm1180_vm11  ;;  %v1194_v3 = vmul.f32 %v1169_v20, %v1168_v42  ;;  %v12451_v2 = vld [vmem:[#allocation40_spill] sm:$0xff]  ;;  %v6249_v25 = vadd.f32 %v6099_v18, %v12453_v33  ;;  %v6253_v50 = vadd.f32 %v6105_v61, %v12455_v23  ;;  %v6257_v1 = vadd.f32 %v6110_v11, %v12457_v14  ;;  %v12465_v35 = vld [vmem:[#allocation5_spill] sm:$0xff] }
 0x10c   : > { %v6245_v19 = vadd.f32 %v6094_v5, %v12451_v2  ;;  %vm6261_vm3 = vmand %vm1176_vm5, %vm1177_vm2  ;;  %v12461_v5 = vld [vmem:[#allocation48_spill] sm:$0xff]  ;;  %v1201_v61 = vmul.u32 16, %v3970_v63  ;;  %v1550_v42 = vsub.f32 %v1549_v24, %v12465_v35  ;;  %v3874_v11 = vadd.f32 -0.5, %v1556_v60  ;;  %v12466_v22 = vld [vmem:[#allocation57_spill] sm:$0xff] }
 0x10d   : > { %12454 = vst [vmem:[#allocation77_spill] sm:$0xff] %v6249_v25  ;;  %12456 = vst [vmem:[#allocation78_spill] sm:$0xff] %v6253_v50  ;;  %v6267_v26 = vadd.f32 %v6115_v6, %v12461_v5  ;;  %v6277_v4 = vadd.f32 %v6120_v62, %v12466_v22  ;;  %v6281_v29 = vadd.f32 %v6125_v31, %v12468_v16  ;;  %v1558_v8 = vfloor.f32 %v3873_v56  ;;  %v12472_v24 = vld [vmem:[#allocation44_spill] sm:$0xff]  ;;  %v12474_v33 = vld [vmem:[#allocation50_spill] sm:$0xff] }
 0x10e   : > { %12452 = vst [vmem:[#allocation76_spill] sm:$0xff] %v6245_v19  ;;  %12458 = vst [vmem:[#allocation79_spill] sm:$0xff] %v6257_v1  ;;  %v1198_v6 = vmul.f32 %v1169_v20, %v1167_v39  ;;  %v6289_v63 = vadd.f32 %v6130_v52, %v12470_v48  ;;  %v1187_v60 = vmul.f32 %v1186_v12, %v1160_v30  ;;  %v12476_v20 = vld [vmem:[#allocation66_spill] sm:$0xff]  ;;  %v12478_v12 = vld [vmem:[#allocation52_spill] sm:$0xff]  ;;  %v1559_v14 = vfloor.f32 %v3874_v11 }
 0x10f   : > { %12462 = vst [vmem:[#allocation80_spill] sm:$0xff] %v6267_v26  ;;  %vm6270_vm15 = vmand %vm1182_vm12, %vm1183_vm14  ;;  %v1191_v62 = vmul.f32 %v1190_v53, %v1160_v30  ;;  %v1195_v31 = vmul.f32 %v1194_v3, %v1160_v30  ;;  %v6297_v2 = vadd.f32 %v6135_v38, %v12472_v24  ;;  %v6301_v39 = vadd.f32 %v6143_v51, %v12474_v33  ;;  %v12480_v53 = vld [vmem:[#allocation67_spill] sm:$0xff]  ;;  %v12482_v5 = vld [vmem:[#allocation68_spill] sm:$0xff] }
 0x110   : > { %12467 = vst [vmem:[#allocation74_spill] sm:$0xff] %v6277_v4  ;;  %12469 = vst [vmem:[#allocation81_spill] sm:$0xff] %v6281_v29  ;;  %v6305_v52 = vadd.f32 %v6148_v44, %v12476_v20  ;;  %v6309_v23 = vadd.f32 %v6153_v21, %v12478_v12  ;;  %v6317_v38 = vadd.f32 %v6158_v43, %v12480_v53  ;;  %v1551_v51 = vmul.f32 1.442695, %v1550_v42  ;;  %v12484_v35 = vld [vmem:[#allocation53_spill] sm:$0xff]  ;;  %v12490_v42 = vld [vmem:[#allocation70_spill] sm:$0xff] }
 0x111   : > { %vm1185_vm7 = vmand %vm6232_vm10, %vm6239_vm13  ;;  %12471 = vst [vmem:[#allocation85_spill] sm:$0xff] %v6289_v63  ;;  %v1202_v3 = vadd.s32 %v3968_v15, %v1201_v61  ;;  %v6321_v44 = vadd.f32 %v6163_v46, %v12482_v5  ;;  %v6325_v21 = vadd.f32 %v6168_v59, %v12484_v35  ;;  %v1199_v22 = vmul.f32 %v1198_v6, %v1160_v30  ;;  %v12488_v30 = vld [vmem:[#allocation69_spill] sm:$0xff]  ;;  %v12492_v6 = vld [vmem:[#allocation71_spill] sm:$0xff] }
 0x112   : > { %vm1189_vm8 = vmand %vm6261_vm3, %vm6239_vm13  ;;  %12473 = vst [vmem:[#allocation88_spill] sm:$0xff] %v6297_v2  ;;  %v6327_v16 = vsub.f32 %v3873_v56, %v1558_v8  ;;  %v1188_v43 = vsel %vm1185_vm7, %v1187_v60, 0.0  ;;  %v6343_v59 = vsub.f32 %v3874_v11, %v1559_v14  ;;  %v12486_v56 = vld [vmem:[#allocation60_spill] sm:$0xff]  ;;  %v6351_v61 = vadd.f32 %v6178_v0, %v12488_v30  ;;  %v12494_v32 = vld [vmem:[#allocation39_spill] sm:$0xff] }
 0x113   : > { %12475 = vst [vmem:[#allocation89_spill] sm:$0xff] %v6301_v39  ;;  %12477 = vst [vmem:[#allocation61_spill] sm:$0xff] %v6305_v52  ;;  %v1192_v46 = vsel %vm1189_vm8, %v1191_v62, 0.0  ;;  %v6347_v36 = vadd.f32 %v6173_v9, %v12486_v56  ;;  %v6355_v10 = vadd.f32 %v6183_v40, %v12490_v42  ;;  %v6359_v18 = vadd.f32 %v6190_v45, %v12492_v6  ;;  %v12497_v45 = vld [vmem:[#allocation6_spill] sm:$0xff]  ;;  %v12498_v24 = vld [vmem:[#allocation7_spill] sm:$0xff] }
 0x114   : > { %12479 = vst [vmem:[#allocation62_spill] sm:$0xff] %v6309_v23  ;;  %vm1193_vm1 = vmand %vm6232_vm10, %vm6270_vm15  ;;  %v1206_v48 = vrot.slane %v1202_v3, %v12494_v32  ;;  %4063 = vpow2.f32 %v1551_v51  ;;  %v6362_v11 = vtrunc.f32 %v1558_v8  ;;  %v6364_v60 = vtrunc.f32 %v1559_v14  ;;  %v12499_v12 = vld [vmem:[#allocation8_spill] sm:$0xff]  ;;  %v12500_v3 = vld [vmem:[#allocation9_spill] sm:$0xff] }
 0x115   : > { %12481 = vst [vmem:[#allocation63_spill] sm:$0xff] %v6317_v38  ;;  %12483 = vst [vmem:[#allocation64_spill] sm:$0xff] %v6321_v44  ;;  %v1196_v15 = vsel %vm1193_vm1, %v1195_v31, 0.0  ;;  %v6372_v62 = vrot.slane %v1192_v46, %v12494_v32  ;;  %v6375_v40 = vrot.slane %v1188_v43, %v12494_v32  ;;  %v12501_v14 = vld [vmem:[#allocation10_spill] sm:$0xff]  ;;  %v12502_v35 = vld [vmem:[#allocation11_spill] sm:$0xff] }
 0x116   : > { %12485 = vst [vmem:[#allocation65_spill] sm:$0xff] %v6325_v21  ;;  %vm1197_vm9 = vmand %vm6261_vm3, %vm6270_vm15  ;;  %v6369_v0 = vrot.slane %v1196_v15, %v12494_v32  ;;  %v6378_v31 = vsub.s32 %v12497_v45, %v1206_v48  ;;  %v6381_v33 = vsub.s32 %v12498_v24, %v1206_v48  ;;  %v6386_v53 = vsub.s32 %v12499_v12, %v1206_v48  ;;  %v12503_v43 = vld [vmem:[#allocation12_spill] sm:$0xff]  ;;  %v12504_v15 = vld [vmem:[#allocation13_spill] sm:$0xff] }
 0x117   : > { %12487 = vst [vmem:[#allocation55_spill] sm:$0xff] %v6347_v36  ;;  %12489 = vst [vmem:[#allocation49_spill] sm:$0xff] %v6351_v61  ;;  %v6366_v9 = vsel %vm1197_vm9, %v1199_v22, 0.0  ;;  %v6389_v51 = vsub.s32 %v12500_v3, %v1206_v48  ;;  %v6392_v5 = vsub.s32 %v12501_v14, %v1206_v48  ;;  %v6395_v22 = vsub.s32 %v12502_v35, %v1206_v48  ;;  %v12506_v30 = vld [vmem:[#allocation14_spill] sm:$0xff]  ;;  %v12508_v6 = vld [vmem:[#allocation15_spill] sm:$0xff] }
 0x118   : > { %12491 = vst [vmem:[#allocation51_spill] sm:$0xff] %v6355_v10  ;;  %12493 = vst [vmem:[#allocation54_spill] sm:$0xff] %v6359_v18  ;;  %v6398_v46 = vsub.s32 %v12503_v43, %v1206_v48  ;;  %v6401_v56 = vsub.s32 %v12504_v15, %v1206_v48  ;;  %v6404_v42 = vsub.s32 %v12506_v30, %v1206_v48  ;;  %v12510_v8 = vld [vmem:[#allocation16_spill] sm:$0xff]  ;;  %v12511_v34 = vld [vmem:[#allocation17_spill] sm:$0xff]  ;;  %vm1335_vm0 = vcmp.eq.s32.totalorder %v6378_v31, 17 }
 0x119   : > { %12495 = vst [vmem:[#allocation42_spill] sm:$0xff] %v6372_v62  ;;  %12496 = vst [vmem:[#allocation56_spill] sm:$0xff] %v6375_v40  ;;  %v6407_v20 = vsub.s32 %v12508_v6, %v1206_v48  ;;  %v6410_v17 = vsub.s32 %v12510_v8, %v1206_v48  ;;  %v6413_v14 = vsub.s32 %v12511_v34, %v1206_v48  ;;  %v12512_v35 = vld [vmem:[#allocation18_spill] sm:$0xff]  ;;  %v12513_v43 = vld [vmem:[#allocation19_spill] sm:$0xff]  ;;  %vm1336_vm6 = vcmp.eq.s32.totalorder %v6381_v33, 17 }
 0x11a   : > { %12505 = vst [vmem:[#allocation43_spill] sm:$0xff] %v6401_v56  ;;  %12507 = vst [vmem:[#allocation33_spill] sm:$0xff] %v6404_v42  ;;  %v6416_v3 = vsub.s32 %v12512_v35, %v1206_v48  ;;  %v6419_v12 = vsub.s32 %v12513_v43, %v1206_v48  ;;  %v12514_v15 = vld [vmem:[#allocation20_spill] sm:$0xff]  ;;  %v12515_v30 = vld [vmem:[#allocation21_spill] sm:$0xff]  ;;  %vm1337_vm4 = vcmp.eq.s32.totalorder %v6386_v53, 17  ;;  %vm1338_vm11 = vcmp.eq.s32.totalorder %v6389_v51, 17 }
 0x11b   : > { %12509 = vst [vmem:[#allocation41_spill] sm:$0xff] %v6407_v20  ;;  %v6422_v24 = vsub.s32 %v12514_v15, %v1206_v48  ;;  %v6425_v45 = vsub.s32 %v12515_v30, %v1206_v48  ;;  %v12516_v6 = vld [vmem:[#allocation22_spill] sm:$0xff]  ;;  %v12518_v8 = vld [vmem:[#allocation23_spill] sm:$0xff]  ;;  %v12520_v34 = vld [vmem:[#allocation24_spill] sm:$0xff]  ;;  %vm1339_vm5 = vcmp.eq.s32.totalorder %v6392_v5, 17  ;;  %vm1340_vm2 = vcmp.eq.s32.totalorder %v6395_v22, 17 }
 0x11c   : > { %v6428_v18 = vsub.s32 %v12516_v6, %v1206_v48  ;;  %v6431_v10 = vsub.s32 %v12518_v8, %v1206_v48  ;;  %v6434_v61 = vsub.s32 %v12520_v34, %v1206_v48  ;;  %v12521_v35 = vld [vmem:[#allocation25_spill] sm:$0xff]  ;;  %v12522_v43 = vld [vmem:[#allocation26_spill] sm:$0xff]  ;;  %v12523_v15 = vld [vmem:[#allocation27_spill] sm:$0xff]  ;;  %vm1308_vm9 = vcmp.eq.s32.totalorder %v6395_v22, 16 }
 0x11d   : > { %v6437_v36 = vsub.s32 %v12521_v35, %v1206_v48  ;;  %v6440_v21 = vsub.s32 %v12522_v43, %v1206_v48  ;;  %v6443_v44 = vsub.s32 %v12523_v15, %v1206_v48  ;;  %v12524_v30 = vld [vmem:[#allocation28_spill] sm:$0xff]  ;;  %v12525_v6 = vld [vmem:[#allocation29_spill] sm:$0xff]  ;;  %v12526_v8 = vld [vmem:[#allocation30_spill] sm:$0xff]  ;;  %vm1313_vm8 = vcmp.eq.s32.totalorder %v6410_v17, 16 }
 0x11e   : > { %12517 = vst [vmem:[#allocation90_spill] sm:$0xff] %v6428_v18  ;;  %12519 = vst [vmem:[#allocation40_spill] sm:$0xff] %v6431_v10  ;;  %v6446_v38 = vsub.s32 %v12524_v30, %v1206_v48  ;;  %v6449_v23 = vsub.s32 %v12525_v6, %v1206_v48  ;;  %v6452_v52 = vsub.s32 %v12526_v8, %v1206_v48  ;;  %v12528_v34 = vld [vmem:[#allocation31_spill] sm:$0xff]  ;;  %v12530_v35 = vld [vmem:[#allocation32_spill] sm:$0xff]  ;;  %vm1317_vm15 = vcmp.eq.s32.totalorder %v6422_v24, 16 }
 0x11f   : > { %v6455_v39 = vsub.s32 %v12528_v34, %v1206_v48  ;;  %v6458_v2 = vsub.s32 %v12530_v35, %v1206_v48  ;;  %v12532_v43 = vld [vmem:[#allocation34_spill] sm:$0xff]  ;;  %v12533_v15 = vld [vmem:[#allocation35_spill] sm:$0xff]  ;;  %v12535_v30 = vld [vmem:[#allocation36_spill] sm:$0xff]  ;;  %vm1318_vm7 = vcmp.eq.s32.totalorder %v6425_v45, 16  ;;  %vm12553_vm1 = vcmp.eq.s32.totalorder %v6407_v20, 17 }
 0x120   : > { %12527 = vst [vmem:[#allocation45_spill] sm:$0xff] %v6452_v52  ;;  %v6461_v63 = vsub.s32 %v12532_v43, %v1206_v48  ;;  %v6464_v29 = vsub.s32 %v12533_v15, %v1206_v48  ;;  %v6467_v4 = vsub.s32 %v12535_v30, %v1206_v48  ;;  %v12537_v6 = vld [vmem:[#allocation37_spill] sm:$0xff]  ;;  %v12538_v8 = vld [vmem:[#allocation38_spill] sm:$0xff]  ;;  %v6525_v30 = vcvt.f32.s32 %v6362_v11 }
 0x121   : > { %12529 = vst [vmem:[#allocation46_spill] sm:$0xff] %v6455_v39  ;;  %12531 = vst [vmem:[#allocation47_spill] sm:$0xff] %v6458_v2  ;;  %v6470_v26 = vsub.s32 %v12537_v6, %v1206_v48  ;;  %v6473_v1 = vsub.s32 %v12538_v8, %v1206_v48  ;;  %v4064_v48 = vpop.eup %4063  ;;  %vm1361_vm14 = vcmp.eq.s32.totalorder %v6458_v2, 17  ;;  %v6515_v8 = vrot.slane %v6366_v9, %v12494_v32 }
 0x122   : > { %12534 = vst [vmem:[#allocation48_spill] sm:$0xff] %v6464_v29  ;;  %12536 = vst [vmem:[#allocation5_spill] sm:$0xff] %v6467_v4  ;;  %vm1362_vm13 = vcmp.eq.s32.totalorder %v6461_v63, 17  ;;  %vm1363_vm3 = vcmp.eq.s32.totalorder %v6464_v29, 17  ;;  %v6518_v6 = vmul.f32 %v4064_v48, %v12447_v58  ;;  %v6528_v15 = vcvt.f32.s32 %v6364_v60 }
 0x123   : > { %vm1365_vm10 = vcmp.eq.s32.totalorder %v6470_v26, 17  ;;  %vm1366_vm12 = vcmp.eq.s32.totalorder %v6473_v1, 17  ;;  %12540 = vst [vmem:[#allocation58_spill] sm:$0xff] %v6525_v30  ;;  %v12542_v9 = vsub.f32 1.0, %v6327_v16  ;;  %v12543_v43 = vsub.f32 1.0, %v6343_v59 }
 0x124   : > { %12539 = vst [vmem:[#allocation57_spill] sm:$0xff] %v6518_v6  ;;  %12541 = vst [vmem:[#allocation59_spill] sm:$0xff] %v6528_v15  ;;  %v6548_v11 = vsel %vm1335_vm0, %v6515_v8, 0.0  ;;  %v6553_v60 = vsel %vm1336_vm6, %v6515_v8, 0.0  ;;  %v6571_v34 = vsel %vm1337_vm4, %v6515_v8, 0.0  ;;  %v6610_v50 = vsel %vm12553_vm1, %v6515_v8, 0.0 }
 0x125   : > { %v6534_v58 = vmul.f32 %v12543_v43, %v12542_v9  ;;  %v12545_v48 = vmov %v12543_v43  ;;  %v12547_v43 = vmov %v12542_v9  ;;  %vm12556_vm1 = vcmp.eq.s32.totalorder %v6416_v3, 17 }
 0x126   : > { %v6539_v35 = vmul.f32 %v12545_v48, %v6327_v16  ;;  %v6558_v9 = vmul.f32 %v6343_v59, %v12547_v43  ;;  %v6562_v48 = vmul.f32 %v6343_v59, %v6327_v16  ;;  %v6576_v43 = vsel %vm1338_vm11, %v6515_v8, 0.0 }
 0x127   : > { %12544 = vst [vmem:[#allocation44_spill] sm:$0xff] %v6534_v58  ;;  %v6581_v16 = vsel %vm1339_vm5, %v6515_v8, 0.0  ;;  %v6586_v59 = vsel %vm1340_vm2, %v6515_v8, 0.0  ;;  %vm12550_vm11 = vcmp.eq.s32.totalorder %v6398_v46, 17  ;;  %vm12551_vm5 = vcmp.eq.s32.totalorder %v6401_v56, 17 }
 0x128   : > { %12546 = vst [vmem:[#allocation50_spill] sm:$0xff] %v6539_v35  ;;  %12548 = vst [vmem:[#allocation66_spill] sm:$0xff] %v6558_v9  ;;  %v6595_v32 = vsel %vm12550_vm11, %v6515_v8, 0.0  ;;  %vm12552_vm2 = vcmp.eq.s32.totalorder %v6404_v42, 17  ;;  %v6629_v35 = vsel %vm12556_vm1, %v6515_v8, 0.0  ;;  %vm12557_vm4 = vcmp.eq.s32.totalorder %v6419_v12, 17 }
 0x129   : > { %12549 = vst [vmem:[#allocation52_spill] sm:$0xff] %v6562_v48  ;;  %v6600_v48 = vsel %vm12551_vm5, %v6515_v8, 0.0  ;;  %v6605_v9 = vsel %vm12552_vm2, %v6515_v8, 0.0  ;;  %vm12554_vm5 = vcmp.eq.s32.totalorder %v6410_v17, 17  ;;  %vm12555_vm2 = vcmp.eq.s32.totalorder %v6413_v14, 17 }
 0x12a   : > { %v6619_v25 = vsel %vm12554_vm5, %v6515_v8, 0.0  ;;  %v6624_v19 = vsel %vm12555_vm2, %v6515_v8, 0.0  ;;  %v6634_v58 = vsel %vm12557_vm4, %v6515_v8, 0.0  ;;  %vm12558_vm2 = vcmp.eq.s32.totalorder %v6422_v24, 17 }
 0x12b   : > { %v6643_v6 = vsel %vm12558_vm2, %v6515_v8, 0.0  ;;  %vm12559_vm1 = vcmp.eq.s32.totalorder %v6425_v45, 17  ;;  %vm12560_vm4 = vcmp.eq.s32.totalorder %v6428_v18, 17  ;;  %vm12561_vm11 = vcmp.eq.s32.totalorder %v6431_v10, 17 }
 0x12c   : > { %v6648_v27 = vsel %vm12559_vm1, %v6515_v8, 0.0  ;;  %v6653_v7 = vsel %vm12560_vm4, %v6515_v8, 0.0  ;;  %v6658_v47 = vsel %vm12561_vm11, %v6515_v8, 0.0  ;;  %vm12562_vm1 = vcmp.eq.s32.totalorder %v6434_v61, 17 }
 0x12d   : > { %v6667_v37 = vsel %vm12562_vm1, %v6515_v8, 0.0  ;;  %vm12563_vm4 = vcmp.eq.s32.totalorder %v6437_v36, 17  ;;  %vm12564_vm11 = vcmp.eq.s32.totalorder %v6440_v21, 17  ;;  %vm12565_vm2 = vcmp.eq.s32.totalorder %v6443_v44, 17 }
 0x12e   : > { %v6672_v41 = vsel %vm12563_vm4, %v6515_v8, 0.0  ;;  %v6677_v49 = vsel %vm12564_vm11, %v6515_v8, 0.0  ;;  %v6682_v13 = vsel %vm12565_vm2, %v6515_v8, 0.0  ;;  %vm12566_vm4 = vcmp.eq.s32.totalorder %v6446_v38, 17 }
 0x12f   : > { %v6691_v55 = vsel %vm12566_vm4, %v6515_v8, 0.0  ;;  %vm12567_vm11 = vcmp.eq.s32.totalorder %v6449_v23, 17  ;;  %vm12568_vm2 = vcmp.eq.s32.totalorder %v6452_v52, 17  ;;  %vm12569_vm6 = vcmp.eq.s32.totalorder %v6455_v39, 17 }
 0x130   : > { %v6696_v28 = vsel %vm12567_vm11, %v6515_v8, 0.0  ;;  %v6701_v54 = vsel %vm12568_vm2, %v6515_v8, 0.0  ;;  %v6706_v57 = vsel %vm12569_vm6, %v6515_v8, 0.0  ;;  %vm1277_vm5 = vcmp.eq.s32.totalorder %v6398_v46, 1 }
 0x131   : > { %vm1278_vm4 = vcmp.eq.s32.totalorder %v6401_v56, 1  ;;  %vm1279_vm1 = vcmp.eq.s32.totalorder %v6404_v42, 1  ;;  %v6715_v15 = vsel %vm1361_vm14, %v6515_v8, 0.0  ;;  %v6720_v30 = vsel %vm1362_vm13, %v6515_v8, 0.0 }
 0x132   : > { %12570 = vst [vmem:[#allocation67_spill] sm:$0xff] %v6715_v15  ;;  %12571 = vst [vmem:[#allocation68_spill] sm:$0xff] %v6720_v30  ;;  %v6725_v40 = vsel %vm1363_vm3, %v6515_v8, 0.0  ;;  %vm12573_vm6 = vcmp.eq.s32.totalorder %v6467_v4, 17  ;;  %vm1281_vm11 = vcmp.eq.s32.totalorder %v6410_v17, 1  ;;  %vm1282_vm14 = vcmp.eq.s32.totalorder %v6413_v14, 1 }
 0x133   : > { %12572 = vst [vmem:[#allocation53_spill] sm:$0xff] %v6725_v40  ;;  %v6730_v62 = vsel %vm12573_vm6, %v6515_v8, 0.0  ;;  %v6739_v30 = vsel %vm1365_vm10, %v6515_v8, 0.0  ;;  %v6744_v40 = vsel %vm1366_vm12, %v6515_v8, 0.0  ;;  %vm12575_vm13 = vcmp.eq.s32.totalorder %v6378_v31, 16 }
 0x134   : > { %12574 = vst [vmem:[#allocation60_spill] sm:$0xff] %v6730_v62  ;;  %v6750_v62 = vsel %vm12575_vm13, %v6369_v0, %v6548_v11  ;;  %vm12576_vm3 = vcmp.eq.s32.totalorder %v6381_v33, 16  ;;  %vm1285_vm10 = vcmp.eq.s32.totalorder %v6422_v24, 1  ;;  %vm12578_vm2 = vcmp.eq.s32.totalorder %v6386_v53, 16 }
 0x135   : > { %v6756_v15 = vsel %vm12576_vm3, %v6369_v0, %v6553_v60  ;;  %v6766_v8 = vsel %vm12578_vm2, %v6369_v0, %v6571_v34  ;;  %vm12579_vm13 = vcmp.eq.s32.totalorder %v6389_v51, 16  ;;  %vm12580_vm3 = vcmp.eq.s32.totalorder %v6392_v5, 16 }
 0x136   : > { %12577 = vst [vmem:[#allocation69_spill] sm:$0xff] %v6756_v15  ;;  %v6772_v11 = vsel %vm12579_vm13, %v6369_v0, %v6576_v43  ;;  %v6778_v60 = vsel %vm12580_vm3, %v6369_v0, %v6581_v16  ;;  %v6784_v15 = vsel %vm1308_vm9, %v6369_v0, %v6586_v59  ;;  %vm1289_vm2 = vcmp.eq.s32.totalorder %v6434_v61, 1 }
 0x137   : > { %vm12581_vm6 = vcmp.eq.s32.totalorder %v6398_v46, 16  ;;  %vm12582_vm3 = vcmp.eq.s32.totalorder %v6401_v56, 16  ;;  %vm12583_vm9 = vcmp.eq.s32.totalorder %v6404_v42, 16  ;;  %vm12584_vm13 = vcmp.eq.s32.totalorder %v6407_v20, 16  ;;  %v12623_v42 = vld [vmem:[#allocation45_spill] sm:$0xff]  ;;  %v12624_v56 = vld [vmem:[#allocation46_spill] sm:$0xff] }
 0x138   : > { %v6794_v34 = vsel %vm12581_vm6, %v6369_v0, %v6595_v32  ;;  %v6800_v43 = vsel %vm12582_vm3, %v6369_v0, %v6600_v48  ;;  %v6806_v16 = vsel %vm12583_vm9, %v6369_v0, %v6605_v9  ;;  %v6812_v59 = vsel %vm12584_vm13, %v6369_v0, %v6610_v50 }
 0x139   : > { %vm1293_vm6 = vcmp.eq.s32.totalorder %v6446_v38, 1  ;;  %v6822_v32 = vsel %vm1313_vm8, %v6369_v0, %v6619_v25  ;;  %vm12585_vm9 = vcmp.eq.s32.totalorder %v6413_v14, 16  ;;  %vm12586_vm13 = vcmp.eq.s32.totalorder %v6416_v3, 16 }
 0x13a   : > { %v6828_v50 = vsel %vm12585_vm9, %v6369_v0, %v6624_v19  ;;  %v6834_v9 = vsel %vm12586_vm13, %v6369_v0, %v6629_v35  ;;  %vm12588_vm3 = vcmp.eq.s32.totalorder %v6419_v12, 16  ;;  %vm1297_vm8 = vcmp.eq.s32.totalorder %v6458_v2, 1 }
 0x13b   : > { %12587 = vst [vmem:[#allocation70_spill] sm:$0xff] %v6834_v9  ;;  %v6840_v48 = vsel %vm12588_vm3, %v6369_v0, %v6634_v58  ;;  %v1421_v19 = vsel %vm1317_vm15, %v6369_v0, %v6643_v6  ;;  %v1422_v25 = vsel %vm1318_vm7, %v6369_v0, %v6648_v27  ;;  %vm12590_vm3 = vcmp.eq.s32.totalorder %v6428_v18, 16 }
 0x13c   : > { %12589 = vst [vmem:[#allocation71_spill] sm:$0xff] %v6840_v48  ;;  %v1423_v35 = vsel %vm12590_vm3, %v6369_v0, %v6653_v7  ;;  %vm12591_vm13 = vcmp.eq.s32.totalorder %v6431_v10, 16  ;;  %vm12592_vm7 = vcmp.eq.s32.totalorder %v6434_v61, 16  ;;  %vm12593_vm3 = vcmp.eq.s32.totalorder %v6437_v36, 16  ;;  %v12606_v48 = vld [vmem:[#allocation60_spill] sm:$0xff] }
 0x13d   : > { %v1424_v58 = vsel %vm12591_vm13, %v6369_v0, %v6658_v47  ;;  %v1425_v27 = vsel %vm12592_vm7, %v6369_v0, %v6667_v37  ;;  %v1426_v7 = vsel %vm12593_vm3, %v6369_v0, %v6672_v41  ;;  %vm12594_vm13 = vcmp.eq.s32.totalorder %v6440_v21, 16 }
 0x13e   : > { %v1427_v47 = vsel %vm12594_vm13, %v6369_v0, %v6677_v49  ;;  %vm12595_vm0 = vcmp.eq.s32.totalorder %v6443_v44, 16  ;;  %vm12596_vm3 = vcmp.eq.s32.totalorder %v6446_v38, 16  ;;  %vm12597_vm13 = vcmp.eq.s32.totalorder %v6449_v23, 16 }
 0x13f   : > { %v1428_v6 = vsel %vm12595_vm0, %v6369_v0, %v6682_v13  ;;  %v1429_v41 = vsel %vm12596_vm3, %v6369_v0, %v6691_v55  ;;  %v1430_v49 = vsel %vm12597_vm13, %v6369_v0, %v6696_v28  ;;  %vm12598_vm0 = vcmp.eq.s32.totalorder %v6452_v52, 16  ;;  %v12600_v55 = vld [vmem:[#allocation67_spill] sm:$0xff]  ;;  %v12602_v52 = vld [vmem:[#allocation68_spill] sm:$0xff] }
 0x140   : > { %v1431_v13 = vsel %vm12598_vm0, %v6369_v0, %v6701_v54  ;;  %vm12599_vm7 = vcmp.eq.s32.totalorder %v6455_v39, 16  ;;  %vm12601_vm13 = vcmp.eq.s32.totalorder %v6458_v2, 16  ;;  %vm12603_vm0 = vcmp.eq.s32.totalorder %v6461_v63, 16  ;;  %v12604_v39 = vld [vmem:[#allocation53_spill] sm:$0xff] }
 0x141   : > { %v1432_v37 = vsel %vm12599_vm7, %v6369_v0, %v6706_v57  ;;  %v1433_v28 = vsel %vm12601_vm13, %v6369_v0, %v12600_v55  ;;  %v1434_v54 = vsel %vm12603_vm0, %v6369_v0, %v12602_v52  ;;  %vm12605_vm7 = vcmp.eq.s32.totalorder %v6464_v29, 16 }
 0x142   : > { %v1435_v57 = vsel %vm12605_vm7, %v6369_v0, %v12604_v39  ;;  %vm12607_vm3 = vcmp.eq.s32.totalorder %v6467_v4, 16  ;;  %vm12608_vm0 = vcmp.eq.s32.totalorder %v6470_v26, 16  ;;  %vm12609_vm7 = vcmp.eq.s32.totalorder %v6473_v1, 16  ;;  %v12612_v4 = vld [vmem:[#allocation69_spill] sm:$0xff] }
 0x143   : > { %v1436_v9 = vsel %vm12607_vm3, %v6369_v0, %v12606_v48  ;;  %v1437_v52 = vsel %vm12608_vm0, %v6369_v0, %v6739_v30  ;;  %v1438_v39 = vsel %vm12609_vm7, %v6369_v0, %v6744_v40  ;;  %v12610_v48 = vld [vmem:[#allocation42_spill] sm:$0xff]  ;;  %vm12611_vm3 = vcmp.eq.s32.totalorder %v6378_v31, 1 }
 0x144   : > { %v1443_v55 = vsel %vm12611_vm3, %v12610_v48, %v6750_v62  ;;  %vm12613_vm13 = vcmp.eq.s32.totalorder %v6381_v33, 1  ;;  %vm12614_vm7 = vcmp.eq.s32.totalorder %v6386_v53, 1  ;;  %vm12615_vm3 = vcmp.eq.s32.totalorder %v6389_v51, 1 }
 0x145   : > { %v1444_v29 = vsel %vm12613_vm13, %v12610_v48, %v12612_v4  ;;  %v1445_v0 = vsel %vm12614_vm7, %v12610_v48, %v6766_v8  ;;  %v1446_v62 = vsel %vm12615_vm3, %v12610_v48, %v6772_v11  ;;  %vm12616_vm13 = vcmp.eq.s32.totalorder %v6392_v5, 1 }
 0x146   : > { %v1447_v4 = vsel %vm12616_vm13, %v12610_v48, %v6778_v60  ;;  %vm12617_vm0 = vcmp.eq.s32.totalorder %v6395_v22, 1  ;;  %vm1257_vm9 = vcmp.eq.s32.totalorder %v6434_v61, 0  ;;  %vm1258_vm12 = vcmp.eq.s32.totalorder %v6437_v36, 0 }
 0x147   : > { %v1448_v40 = vsel %vm12617_vm0, %v12610_v48, %v6784_v15  ;;  %vm1259_vm7 = vcmp.eq.s32.totalorder %v6440_v21, 0  ;;  %vm1260_vm15 = vcmp.eq.s32.totalorder %v6443_v44, 0  ;;  %v1449_v30 = vsel %vm1277_vm5, %v12610_v48, %v6794_v34 }
 0x148   : > { %v1450_v8 = vsel %vm1278_vm4, %v12610_v48, %v6800_v43  ;;  %v1451_v15 = vsel %vm1279_vm1, %v12610_v48, %v6806_v16  ;;  %vm12618_vm0 = vcmp.eq.s32.totalorder %v6407_v20, 1  ;;  %vm1261_vm3 = vcmp.eq.s32.totalorder %v6446_v38, 0  ;;  %v12619_v43 = vld [vmem:[#allocation70_spill] sm:$0xff] }
 0x149   : > { %v1452_v11 = vsel %vm12618_vm0, %v12610_v48, %v6812_v59  ;;  %vm1262_vm13 = vcmp.eq.s32.totalorder %v6449_v23, 0  ;;  %v1453_v60 = vsel %vm1281_vm11, %v12610_v48, %v6822_v32  ;;  %v1454_v34 = vsel %vm1282_vm14, %v12610_v48, %v6828_v50  ;;  %v12621_v59 = vld [vmem:[#allocation71_spill] sm:$0xff] }
 0x14a   : > { %vm12620_vm5 = vcmp.eq.s32.totalorder %v6416_v3, 1  ;;  %vm12622_vm1 = vcmp.eq.s32.totalorder %v6419_v12, 1  ;;  %vm1263_vm4 = vcmp.eq.s32.totalorder %v12623_v42, 0  ;;  %v1457_v32 = vsel %vm1285_vm10, %v12610_v48, %v1421_v19 }
 0x14b   : > { %v1455_v16 = vsel %vm12620_vm5, %v12610_v48, %v12619_v43  ;;  %v1456_v20 = vsel %vm12622_vm1, %v12610_v48, %v12621_v59  ;;  %vm12625_vm11 = vcmp.eq.s32.totalorder %v6425_v45, 1  ;;  %vm12626_vm14 = vcmp.eq.s32.totalorder %v6428_v18, 1  ;;  %v12632_v18 = vld [vmem:[#allocation5_spill] sm:$0xff] }
 0x14c   : > { %v1458_v50 = vsel %vm12625_vm11, %v12610_v48, %v1422_v25  ;;  %v1459_v43 = vsel %vm12626_vm14, %v12610_v48, %v1423_v35  ;;  %vm12627_vm5 = vcmp.eq.s32.totalorder %v6431_v10, 1  ;;  %vm1265_vm1 = vcmp.eq.s32.totalorder %v6458_v2, 0  ;;  %v12631_v10 = vld [vmem:[#allocation48_spill] sm:$0xff] }
 0x14d   : > { %v1460_v59 = vsel %vm12627_vm5, %v12610_v48, %v1424_v58  ;;  %v1461_v19 = vsel %vm1289_vm2, %v12610_v48, %v1425_v27  ;;  %vm12628_vm10 = vcmp.eq.s32.totalorder %v6437_v36, 1  ;;  %vm12629_vm11 = vcmp.eq.s32.totalorder %v6440_v21, 1  ;;  %v12641_v2 = vld [vmem:[#allocation56_spill] sm:$0xff]  ;;  %v12668_v36 = vld [vmem:[#allocation46_spill] sm:$0xff] }
 0x14e   : > { %v1462_v25 = vsel %vm12628_vm10, %v12610_v48, %v1426_v7  ;;  %v1463_v35 = vsel %vm12629_vm11, %v12610_v48, %v1427_v47  ;;  %vm12630_vm14 = vcmp.eq.s32.totalorder %v6443_v44, 1  ;;  %vm1267_vm5 = vcmp.eq.s32.totalorder %v12631_v10, 0 }
 0x14f   : > { %v1464_v58 = vsel %vm12630_vm14, %v12610_v48, %v1428_v6  ;;  %v1465_v27 = vsel %vm1293_vm6, %v12610_v48, %v1429_v41  ;;  %vm12633_vm2 = vcmp.eq.s32.totalorder %v6449_v23, 1  ;;  %vm12634_vm10 = vcmp.eq.s32.totalorder %v12623_v42, 1 }
 0x150   : > { %v1466_v7 = vsel %vm12633_vm2, %v12610_v48, %v1430_v49  ;;  %v1467_v47 = vsel %vm12634_vm10, %v12610_v48, %v1431_v13  ;;  %vm12635_vm11 = vcmp.eq.s32.totalorder %v12624_v56, 1  ;;  %vm1269_vm14 = vcmp.eq.s32.totalorder %v6470_v26, 0 }
 0x151   : > { %v1468_v6 = vsel %vm12635_vm11, %v12610_v48, %v1432_v37  ;;  %v1469_v41 = vsel %vm1297_vm8, %v12610_v48, %v1433_v28  ;;  %vm12636_vm6 = vcmp.eq.s32.totalorder %v6461_v63, 1  ;;  %vm12637_vm2 = vcmp.eq.s32.totalorder %v12631_v10, 1 }
 0x152   : > { %v1470_v49 = vsel %vm12636_vm6, %v12610_v48, %v1434_v54  ;;  %v1471_v13 = vsel %vm12637_vm2, %v12610_v48, %v1435_v57  ;;  %vm12638_vm10 = vcmp.eq.s32.totalorder %v12632_v18, 1  ;;  %vm12639_vm11 = vcmp.eq.s32.totalorder %v6470_v26, 1  ;;  %v12685_v26 = vld [vmem:[#allocation72_spill] sm:$0xff] }
 0x153   : > { %v1472_v37 = vsel %vm12638_vm10, %v12610_v48, %v1436_v9  ;;  %v1473_v56 = vsel %vm12639_vm11, %v12610_v48, %v1437_v52  ;;  %vm12640_vm0 = vcmp.eq.s32.totalorder %v6473_v1, 1  ;;  %vm12642_vm8 = vcmp.eq.s32.totalorder %v6378_v31, 0 }
 0x154   : > { %v1474_v28 = vsel %vm12640_vm0, %v12610_v48, %v1438_v39  ;;  %v7065_v54 = vsel %vm12642_vm8, %v12641_v2, %v1443_v55  ;;  %vm12644_vm6 = vcmp.eq.s32.totalorder %v6381_v33, 0  ;;  %vm12646_vm2 = vcmp.eq.s32.totalorder %v6386_v53, 0  ;;  %v12651_v33 = vld [vmem:[#allocation43_spill] sm:$0xff]  ;;  %v12653_v48 = vld [vmem:[#allocation33_spill] sm:$0xff] }
 0x155   : > { %12643 = vst [vmem:[#allocation67_spill] sm:$0xff] %v7065_v54  ;;  %v7070_v57 = vsel %vm12644_vm6, %v12641_v2, %v1444_v29  ;;  %v1481_v9 = vsel %vm12646_vm2, %v12641_v2, %v1445_v0  ;;  %vm12647_vm10 = vcmp.eq.s32.totalorder %v6389_v51, 0  ;;  %vm12648_vm0 = vcmp.eq.s32.totalorder %v6392_v5, 0  ;;  %v12655_v55 = vld [vmem:[#allocation41_spill] sm:$0xff] }
 0x156   : > { %12645 = vst [vmem:[#allocation68_spill] sm:$0xff] %v7070_v57  ;;  %v1482_v52 = vsel %vm12647_vm10, %v12641_v2, %v1446_v62  ;;  %v1483_v39 = vsel %vm12648_vm0, %v12641_v2, %v1447_v4  ;;  %vm12649_vm11 = vcmp.eq.s32.totalorder %v6395_v22, 0  ;;  %vm12650_vm8 = vcmp.eq.s32.totalorder %v6398_v46, 0 }
 0x157   : > { %v1484_v31 = vsel %vm12649_vm11, %v12641_v2, %v1448_v40  ;;  %v1485_v29 = vsel %vm12650_vm8, %v12641_v2, %v1449_v30  ;;  %vm12652_vm6 = vcmp.eq.s32.totalorder %v12651_v33, 0  ;;  %vm12654_vm2 = vcmp.eq.s32.totalorder %v12653_v48, 0  ;;  %v12663_v40 = vld [vmem:[#allocation90_spill] sm:$0xff]  ;;  %v12665_v30 = vld [vmem:[#allocation40_spill] sm:$0xff] }
 0x158   : > { %v1486_v53 = vsel %vm12652_vm6, %v12641_v2, %v1450_v8  ;;  %v1487_v51 = vsel %vm12654_vm2, %v12641_v2, %v1451_v15  ;;  %vm12656_vm10 = vcmp.eq.s32.totalorder %v12655_v55, 0  ;;  %vm12657_vm0 = vcmp.eq.s32.totalorder %v6410_v17, 0  ;;  %v12667_v15 = vld [vmem:[#allocation58_spill] sm:$0xff]  ;;  %v12706_v33 = vld [vmem:[#allocation44_spill] sm:$0xff] }
 0x159   : > { %v1488_v5 = vsel %vm12656_vm10, %v12641_v2, %v1452_v11  ;;  %v1489_v22 = vsel %vm12657_vm0, %v12641_v2, %v1453_v60  ;;  %vm12658_vm11 = vcmp.eq.s32.totalorder %v6413_v14, 0  ;;  %vm12659_vm8 = vcmp.eq.s32.totalorder %v6416_v3, 0  ;;  %v12670_v11 = vld [vmem:[#allocation59_spill] sm:$0xff]  ;;  %v12707_v48 = vld [vmem:[#allocation50_spill] sm:$0xff]  ;;  %v12708_v55 = vld [vmem:[#allocation76_spill] sm:$0xff] }
 0x15a   : > { %v1490_v46 = vsel %vm12658_vm11, %v12641_v2, %v1454_v34  ;;  %v1491_v0 = vsel %vm12659_vm8, %v12641_v2, %v1455_v16  ;;  %vm12660_vm6 = vcmp.eq.s32.totalorder %v6419_v12, 0  ;;  %vm12661_vm2 = vcmp.eq.s32.totalorder %v6422_v24, 0  ;;  %v12738_v16 = vld [vmem:[#allocation55_spill] sm:$0xff] }
 0x15b   : > { %v1492_v62 = vsel %vm12660_vm6, %v12641_v2, %v1456_v20  ;;  %v1493_v4 = vsel %vm12661_vm2, %v12641_v2, %v1457_v32  ;;  %vm12662_vm10 = vcmp.eq.s32.totalorder %v6425_v45, 0  ;;  %vm12664_vm0 = vcmp.eq.s32.totalorder %v12663_v40, 0  ;;  %v12677_v32 = vld [vmem:[#allocation93_spill] sm:$0xff]  ;;  %v12711_v40 = vld [vmem:[#allocation78_spill] sm:$0xff] }
 0x15c   : > { %v1494_v17 = vsel %vm12662_vm10, %v12641_v2, %v1458_v50  ;;  %v1495_v14 = vsel %vm12664_vm0, %v12641_v2, %v1459_v43  ;;  %vm12666_vm11 = vcmp.eq.s32.totalorder %v12665_v30, 0  ;;  %v1497_v20 = vsel %vm1257_vm9, %v12641_v2, %v1461_v19  ;;  %v12683_v19 = vld [vmem:[#allocation95_spill] sm:$0xff] }
 0x15d   : > { %v1496_v3 = vsel %vm12666_vm11, %v12641_v2, %v1460_v59  ;;  %v1498_v24 = vsel %vm1258_vm12, %v12641_v2, %v1462_v25  ;;  %v1499_v45 = vsel %vm1259_vm7, %v12641_v2, %v1463_v35  ;;  %v1500_v12 = vsel %vm1260_vm15, %v12641_v2, %v1464_v58  ;;  %v12712_v30 = vld [vmem:[#allocation79_spill] sm:$0xff]  ;;  %v12736_v59 = vld [vmem:[#allocation65_spill] sm:$0xff] }
 0x15e   : > { %v1501_v8 = vsel %vm1261_vm3, %v12641_v2, %v1465_v27  ;;  %v1502_v61 = vsel %vm1262_vm13, %v12641_v2, %v1466_v7  ;;  %vm1566_vm9 = vcmp.ge.s32.totalorder %v12667_v15, 0  ;;  %vm1567_vm12 = vcmp.lt.s32.totalorder %v12667_v15, 16  ;;  %v12691_v27 = vld [vmem:[#allocation83_spill] sm:$0xff] }
 0x15f   : > { %v1503_v21 = vsel %vm1263_vm4, %v12641_v2, %v1467_v47  ;;  %vm12669_vm7 = vcmp.eq.s32.totalorder %v12668_v36, 0  ;;  %vm1572_vm15 = vcmp.ge.s32.totalorder %v12670_v11, 0  ;;  %vm1573_vm3 = vcmp.lt.s32.totalorder %v12670_v11, 16  ;;  %vm7162_vm2 = vmand %vm1566_vm9, %vm1567_vm12  ;;  %v12693_v47 = vld [vmem:[#allocation84_spill] sm:$0xff] }
 0x160   : > { %v1504_v44 = vsel %vm12669_vm7, %v12641_v2, %v1468_v6  ;;  %v1505_v23 = vsel %vm1265_vm1, %v12641_v2, %v1469_v41  ;;  %vm12672_vm13 = vcmp.eq.s32.totalorder %v6461_v63, 0  ;;  %vm1569_vm8 = vcmp.ge.s32.totalorder %v12667_v15, 4294967295  ;;  %v12695_v41 = vld [vmem:[#allocation86_spill] sm:$0xff] }
 0x161   : > { %v1506_v60 = vsel %vm12672_vm13, %v12641_v2, %v1470_v49  ;;  %vm1570_vm4 = vcmp.lt.s32.totalorder %v12667_v15, 15  ;;  %v1507_v42 = vsel %vm1267_vm5, %v12641_v2, %v1471_v13  ;;  %vm12673_vm6 = vcmp.eq.s32.totalorder %v12632_v18, 0  ;;  %v12679_v18 = vld [vmem:[#allocation94_spill] sm:$0xff]  ;;  %vm7182_vm5 = vmand %vm1572_vm15, %vm1573_vm3  ;;  %v12697_v13 = vld [vmem:[#allocation87_spill] sm:$0xff] }
 0x162   : > { %v1508_v34 = vsel %vm12673_vm6, %v12641_v2, %v1472_v37  ;;  %vm1575_vm1 = vcmp.ge.s32.totalorder %v12670_v11, 4294967295  ;;  %vm1576_vm10 = vcmp.lt.s32.totalorder %v12670_v11, 15  ;;  %v1509_v63 = vsel %vm1269_vm14, %v12641_v2, %v1473_v56  ;;  %vm7197_vm14 = vmand %vm1569_vm8, %vm1570_vm4 }
 0x163   : > { %vm12676_vm0 = vcmp.eq.s32.totalorder %v6473_v1, 0  ;;  %v7175_v50 = vadd.f32 %v1481_v9, %v12677_v32  ;;  %v7178_v43 = vadd.f32 %v1482_v52, %v12679_v18  ;;  %v7187_v25 = vadd.f32 %v1483_v39, %v12683_v19  ;;  %v12687_v1 = vld [vmem:[#allocation82_spill] sm:$0xff]  ;;  %vm7218_vm11 = vmand %vm1575_vm1, %vm1576_vm10  ;;  %v12701_v9 = vld [vmem:[#allocation73_spill] sm:$0xff] }
 0x164   : > { %v1510_v10 = vsel %vm12676_vm0, %v12641_v2, %v1474_v28  ;;  %v7190_v56 = vadd.f32 %v1484_v31, %v12685_v26  ;;  %v7193_v2 = vadd.f32 %v1485_v29, %v12687_v1  ;;  %v1594_v58 = vmul.u32 16, %v12670_v11  ;;  %v12703_v39 = vld [vmem:[#allocation75_spill] sm:$0xff]  ;;  %vm1578_vm9 = vmand %vm7162_vm2, %vm7182_vm5  ;;  %v12705_v29 = vld [vmem:[#allocation57_spill] sm:$0xff] }
 0x165   : > { %12678 = vst [vmem:[#allocation53_spill] sm:$0xff] %v7175_v50  ;;  %12680 = vst [vmem:[#allocation60_spill] sm:$0xff] %v7178_v43  ;;  %v7203_v7 = vadd.f32 %v1486_v53, %v12691_v27  ;;  %v7206_v6 = vadd.f32 %v1487_v51, %v12693_v47  ;;  %v7209_v49 = vadd.f32 %v1488_v5, %v12695_v41  ;;  %v12714_v11 = vld [vmem:[#allocation80_spill] sm:$0xff]  ;;  %v12716_v32 = vld [vmem:[#allocation74_spill] sm:$0xff] }
 0x166   : > { %12684 = vst [vmem:[#allocation42_spill] sm:$0xff] %v7187_v25  ;;  %12686 = vst [vmem:[#allocation69_spill] sm:$0xff] %v7190_v56  ;;  %v7212_v37 = vadd.f32 %v1489_v22, %v12697_v13  ;;  %v7223_v52 = vadd.f32 %v1490_v46, %v12701_v9  ;;  %v7226_v31 = vadd.f32 %v1491_v0, %v12703_v39  ;;  %v12710_v22 = vld [vmem:[#allocation77_spill] sm:$0xff]  ;;  %v12734_v39 = vld [vmem:[#allocation64_spill] sm:$0xff] }
 0x167   : > { %12688 = vst [vmem:[#allocation70_spill] sm:$0xff] %v7193_v2  ;;  %12692 = vst [vmem:[#allocation71_spill] sm:$0xff] %v7203_v7  ;;  %v1580_v53 = vmul.f32 %v12706_v33, %v12705_v29  ;;  %v1584_v51 = vmul.f32 %v12707_v48, %v12705_v29  ;;  %v7237_v5 = vadd.f32 %v1492_v62, %v12708_v55  ;;  %v12718_v18 = vld [vmem:[#allocation81_spill] sm:$0xff]  ;;  %v12741_v55 = vld [vmem:[#allocation39_spill] sm:$0xff] }
 0x168   : > { %12694 = vst [vmem:[#allocation45_spill] sm:$0xff] %v7206_v6  ;;  %12696 = vst [vmem:[#allocation48_spill] sm:$0xff] %v7209_v49  ;;  %v7240_v46 = vadd.f32 %v1493_v4, %v12710_v22  ;;  %v7243_v0 = vadd.f32 %v1494_v17, %v12711_v40  ;;  %v7246_v36 = vadd.f32 %v1495_v14, %v12712_v30  ;;  %v12720_v19 = vld [vmem:[#allocation85_spill] sm:$0xff]  ;;  %v12722_v14 = vld [vmem:[#allocation88_spill] sm:$0xff] }
 0x169   : > { %12698 = vst [vmem:[#allocation5_spill] sm:$0xff] %v7212_v37  ;;  %12702 = vst [vmem:[#allocation56_spill] sm:$0xff] %v7223_v52  ;;  %v7253_v38 = vadd.f32 %v1496_v3, %v12714_v11  ;;  %v7256_v62 = vadd.f32 %v1497_v20, %v12716_v32  ;;  %v7259_v4 = vadd.f32 %v1498_v24, %v12718_v18  ;;  %v12724_v27 = vld [vmem:[#allocation89_spill] sm:$0xff]  ;;  %v12726_v3 = vld [vmem:[#allocation66_spill] sm:$0xff]  ;;  %v1581_v24 = vsel %vm1578_vm9, %v1580_v53, 0.0 }
 0x16a   : > { %12704 = vst [vmem:[#allocation43_spill] sm:$0xff] %v7226_v31  ;;  %12709 = vst [vmem:[#allocation33_spill] sm:$0xff] %v7237_v5  ;;  %v1595_v17 = vadd.s32 %v12667_v15, %v1594_v58  ;;  %v7263_v26 = vadd.f32 %v1499_v45, %v12720_v19  ;;  %v7266_v1 = vadd.f32 %v1500_v12, %v12722_v14  ;;  %v12727_v13 = vld [vmem:[#allocation61_spill] sm:$0xff]  ;;  %v12729_v12 = vld [vmem:[#allocation52_spill] sm:$0xff] }
 0x16b   : > { %12713 = vst [vmem:[#allocation41_spill] sm:$0xff] %v7246_v36  ;;  %vm1582_vm12 = vmand %vm7197_vm14, %vm7182_vm5  ;;  %v7269_v47 = vadd.f32 %v1501_v8, %v12724_v27  ;;  %v1588_v41 = vmul.f32 %v12726_v3, %v12705_v29  ;;  %v7274_v20 = vadd.f32 %v1502_v61, %v12727_v13  ;;  %v1592_v8 = vmul.f32 %v12729_v12, %v12705_v29  ;;  %v12730_v15 = vld [vmem:[#allocation62_spill] sm:$0xff]  ;;  %v12732_v61 = vld [vmem:[#allocation63_spill] sm:$0xff] }
 0x16c   : > { %12715 = vst [vmem:[#allocation90_spill] sm:$0xff] %v7253_v38  ;;  %12717 = vst [vmem:[#allocation40_spill] sm:$0xff] %v7256_v62  ;;  %v1585_v45 = vsel %vm1582_vm12, %v1584_v51, 0.0  ;;  %v7288_v58 = vadd.f32 %v1503_v21, %v12730_v15  ;;  %v7291_v9 = vadd.f32 %v1504_v44, %v12732_v61  ;;  %v7294_v33 = vadd.f32 %v1505_v23, %v12734_v39  ;;  %v12739_v29 = vld [vmem:[#allocation49_spill] sm:$0xff]  ;;  %v12740_v51 = vld [vmem:[#allocation51_spill] sm:$0xff] }
 0x16d   : > { %12719 = vst [vmem:[#allocation58_spill] sm:$0xff] %v7259_v4  ;;  %12721 = vst [vmem:[#allocation46_spill] sm:$0xff] %v7263_v26  ;;  %v7297_v53 = vadd.f32 %v1506_v60, %v12736_v59  ;;  %v7304_v48 = vadd.f32 %v1507_v42, %v12738_v16  ;;  %v7307_v21 = vadd.f32 %v1508_v34, %v12739_v29  ;;  %v12742_v22 = vld [vmem:[#allocation54_spill] sm:$0xff]  ;;  %v12747_v32 = vld [vmem:[#allocation8_spill] sm:$0xff] }
 0x16e   : > { %12723 = vst [vmem:[#allocation59_spill] sm:$0xff] %v7266_v1  ;;  %12725 = vst [vmem:[#allocation47_spill] sm:$0xff] %v7269_v47  ;;  %v7310_v44 = vadd.f32 %v1509_v63, %v12740_v51  ;;  %v1599_v23 = vrot.slane %v1595_v17, %v12741_v55  ;;  %v7314_v40 = vadd.f32 %v1510_v10, %v12742_v22  ;;  %v12744_v34 = vld [vmem:[#allocation6_spill] sm:$0xff]  ;;  %v12745_v63 = vld [vmem:[#allocation7_spill] sm:$0xff] }
 0x16f   : > { %12728 = vst [vmem:[#allocation93_spill] sm:$0xff] %v7274_v20  ;;  %vm1586_vm7 = vmand %vm7162_vm2, %vm7218_vm11  ;;  %v7319_v28 = vrot.slane %v1585_v45, %v12741_v55  ;;  %v7322_v35 = vrot.slane %v1581_v24, %v12741_v55  ;;  %v12748_v10 = vld [vmem:[#allocation9_spill] sm:$0xff]  ;;  %v12749_v19 = vld [vmem:[#allocation10_spill] sm:$0xff] }
 0x170   : > { %12731 = vst [vmem:[#allocation94_spill] sm:$0xff] %v7288_v58  ;;  %12733 = vst [vmem:[#allocation95_spill] sm:$0xff] %v7291_v9  ;;  %v7316_v60 = vsel %vm1586_vm7, %v1588_v41, 0.0  ;;  %v7327_v30 = vsub.s32 %v12744_v34, %v1599_v23  ;;  %v7330_v11 = vsub.s32 %v12745_v63, %v1599_v23  ;;  %v7333_v18 = vsub.s32 %v12747_v32, %v1599_v23  ;;  %v12750_v27 = vld [vmem:[#allocation11_spill] sm:$0xff]  ;;  %v12751_v41 = vld [vmem:[#allocation12_spill] sm:$0xff] }
 0x171   : > { %12735 = vst [vmem:[#allocation72_spill] sm:$0xff] %v7294_v33  ;;  %12737 = vst [vmem:[#allocation82_spill] sm:$0xff] %v7297_v53  ;;  %v7336_v17 = vsub.s32 %v12748_v10, %v1599_v23  ;;  %v7339_v14 = vsub.s32 %v12749_v19, %v1599_v23  ;;  %v7342_v3 = vsub.s32 %v12750_v27, %v1599_v23  ;;  %v12752_v24 = vld [vmem:[#allocation13_spill] sm:$0xff]  ;;  %v12753_v12 = vld [vmem:[#allocation14_spill] sm:$0xff] }
 0x172   : > { %vm1590_vm15 = vmand %vm7197_vm14, %vm7218_vm11  ;;  %12743 = vst [vmem:[#allocation83_spill] sm:$0xff] %v7314_v40  ;;  %v7345_v13 = vsub.s32 %v12751_v41, %v1599_v23  ;;  %v7348_v45 = vsub.s32 %v12752_v24, %v1599_v23  ;;  %v12754_v15 = vld [vmem:[#allocation15_spill] sm:$0xff]  ;;  %v12755_v39 = vld [vmem:[#allocation16_spill] sm:$0xff]  ;;  %vm1728_vm3 = vcmp.eq.s32.totalorder %v7327_v30, 17  ;;  %vm1729_vm13 = vcmp.eq.s32.totalorder %v7330_v11, 17 }
 0x173   : > { %v7324_v42 = vsel %vm1590_vm15, %v1592_v8, 0.0  ;;  %12746 = vst [vmem:[#allocation84_spill] sm:$0xff] %v7330_v11  ;;  %v7351_v8 = vsub.s32 %v12753_v12, %v1599_v23  ;;  %v7354_v61 = vsub.s32 %v12754_v15, %v1599_v23  ;;  %v7357_v59 = vsub.s32 %v12755_v39, %v1599_v23  ;;  %v12756_v16 = vld [vmem:[#allocation17_spill] sm:$0xff]  ;;  %v12757_v51 = vld [vmem:[#allocation18_spill] sm:$0xff]  ;;  %v12758_v41 = vld [vmem:[#allocation19_spill] sm:$0xff] }
 0x174   : > { %v7360_v29 = vsub.s32 %v12756_v16, %v1599_v23  ;;  %v7363_v22 = vsub.s32 %v12757_v51, %v1599_v23  ;;  %v7366_v27 = vsub.s32 %v12758_v41, %v1599_v23  ;;  %v12759_v24 = vld [vmem:[#allocation20_spill] sm:$0xff]  ;;  %v12760_v12 = vld [vmem:[#allocation21_spill] sm:$0xff]  ;;  %v12761_v15 = vld [vmem:[#allocation22_spill] sm:$0xff]  ;;  %vm1730_vm8 = vcmp.eq.s32.totalorder %v7333_v18, 17 }
 0x175   : > { %v7369_v19 = vsub.s32 %v12759_v24, %v1599_v23  ;;  %v7372_v10 = vsub.s32 %v12760_v12, %v1599_v23  ;;  %v7375_v32 = vsub.s32 %v12761_v15, %v1599_v23  ;;  %v12763_v39 = vld [vmem:[#allocation23_spill] sm:$0xff]  ;;  %v12765_v16 = vld [vmem:[#allocation24_spill] sm:$0xff]  ;;  %v12766_v51 = vld [vmem:[#allocation25_spill] sm:$0xff]  ;;  %vm1731_vm4 = vcmp.eq.s32.totalorder %v7336_v17, 17 }
 0x176   : > { %v7378_v63 = vsub.s32 %v12763_v39, %v1599_v23  ;;  %v7381_v34 = vsub.s32 %v12765_v16, %v1599_v23  ;;  %v7384_v38 = vsub.s32 %v12766_v51, %v1599_v23  ;;  %v12767_v41 = vld [vmem:[#allocation26_spill] sm:$0xff]  ;;  %v12768_v24 = vld [vmem:[#allocation27_spill] sm:$0xff]  ;;  %v12769_v12 = vld [vmem:[#allocation28_spill] sm:$0xff]  ;;  %vm1732_vm6 = vcmp.eq.s32.totalorder %v7339_v14, 17 }
 0x177   : > { %12762 = vst [vmem:[#allocation86_spill] sm:$0xff] %v7375_v32  ;;  %v7387_v36 = vsub.s32 %v12767_v41, %v1599_v23  ;;  %v7390_v43 = vsub.s32 %v12768_v24, %v1599_v23  ;;  %v7393_v50 = vsub.s32 %v12769_v12, %v1599_v23  ;;  %v12770_v15 = vld [vmem:[#allocation29_spill] sm:$0xff]  ;;  %v12771_v39 = vld [vmem:[#allocation30_spill] sm:$0xff]  ;;  %v12772_v16 = vld [vmem:[#allocation31_spill] sm:$0xff]  ;;  %vm1733_vm2 = vcmp.eq.s32.totalorder %v7342_v3, 17 }
 0x178   : > { %12764 = vst [vmem:[#allocation87_spill] sm:$0xff] %v7378_v63  ;;  %v7396_v57 = vsub.s32 %v12770_v15, %v1599_v23  ;;  %v7399_v54 = vsub.s32 %v12771_v39, %v1599_v23  ;;  %v7402_v4 = vsub.s32 %v12772_v16, %v1599_v23  ;;  %v12773_v51 = vld [vmem:[#allocation32_spill] sm:$0xff]  ;;  %v12774_v41 = vld [vmem:[#allocation34_spill] sm:$0xff]  ;;  %v12775_v24 = vld [vmem:[#allocation35_spill] sm:$0xff]  ;;  %vm1704_vm9 = vcmp.eq.s32.totalorder %v7351_v8, 16 }
 0x179   : > { %v7405_v62 = vsub.s32 %v12773_v51, %v1599_v23  ;;  %v7408_v56 = vsub.s32 %v12774_v41, %v1599_v23  ;;  %v7411_v25 = vsub.s32 %v12775_v24, %v1599_v23  ;;  %v12776_v12 = vld [vmem:[#allocation36_spill] sm:$0xff]  ;;  %v12777_v15 = vld [vmem:[#allocation37_spill] sm:$0xff]  ;;  %v12778_v39 = vld [vmem:[#allocation38_spill] sm:$0xff]  ;;  %vm1705_vm11 = vcmp.eq.s32.totalorder %v7354_v61, 16 }
 0x17a   : > { %v7414_v1 = vsub.s32 %v12776_v12, %v1599_v23  ;;  %v7417_v26 = vsub.s32 %v12777_v15, %v1599_v23  ;;  %v7420_v7 = vsub.s32 %v12778_v39, %v1599_v23  ;;  %v7455_v23 = vrot.slane %v7324_v42, %v12741_v55 }
 0x17b   : > { %vm1754_vm10 = vcmp.eq.s32.totalorder %v7405_v62, 17  ;;  %vm1755_vm0 = vcmp.eq.s32.totalorder %v7408_v56, 17  ;;  %vm1756_vm5 = vcmp.eq.s32.totalorder %v7411_v25, 17  ;;  %v7478_v39 = vrot.slane %v7316_v60, %v12741_v55 }
 0x17c   : > { %vm1757_vm14 = vcmp.eq.s32.totalorder %v7414_v1, 17  ;;  %vm1758_vm15 = vcmp.eq.s32.totalorder %v7417_v26, 17  ;;  %vm1759_vm1 = vcmp.eq.s32.totalorder %v7420_v7, 17  ;;  %v7474_v42 = vsel %vm1728_vm3, %v7455_v23, 0.0 }
 0x17d   : > { %v7487_v15 = vsel %vm1729_vm13, %v7455_v23, 0.0  ;;  %v1766_v12 = vsel %vm1730_vm8, %v7455_v23, 0.0  ;;  %v1767_v60 = vsel %vm1731_vm4, %v7455_v23, 0.0  ;;  %v1768_v24 = vsel %vm1732_vm6, %v7455_v23, 0.0 }
 0x17e   : > { %12779 = vst [vmem:[#allocation73_spill] sm:$0xff] %v7487_v15  ;;  %vm1708_vm12 = vcmp.eq.s32.totalorder %v7363_v22, 16  ;;  %v1769_v41 = vsel %vm1733_vm2, %v7455_v23, 0.0  ;;  %vm12780_vm8 = vcmp.eq.s32.totalorder %v7345_v13, 17  ;;  %vm12781_vm4 = vcmp.eq.s32.totalorder %v7348_v45, 17 }
 0x17f   : > { %v1770_v51 = vsel %vm12780_vm8, %v7455_v23, 0.0  ;;  %v1771_v16 = vsel %vm12781_vm4, %v7455_v23, 0.0  ;;  %vm12782_vm6 = vcmp.eq.s32.totalorder %v7351_v8, 17  ;;  %vm12783_vm8 = vcmp.eq.s32.totalorder %v7354_v61, 17 }
 0x180   : > { %v7514_v55 = vsel %vm12782_vm6, %v7455_v23, 0.0  ;;  %v7523_v15 = vsel %vm12783_vm8, %v7455_v23, 0.0  ;;  %vm12784_vm4 = vcmp.eq.s32.totalorder %v7357_v59, 17  ;;  %vm12785_vm6 = vcmp.eq.s32.totalorder %v7360_v29, 17 }
 0x181   : > { %v7528_v2 = vsel %vm12784_vm4, %v7455_v23, 0.0  ;;  %v7533_v20 = vsel %vm12785_vm6, %v7455_v23, 0.0  ;;  %vm12786_vm13 = vcmp.eq.s32.totalorder %v7363_v22, 17  ;;  %vm12787_vm4 = vcmp.eq.s32.totalorder %v7366_v27, 17 }
 0x182   : > { %v7538_v47 = vsel %vm12786_vm13, %v7455_v23, 0.0  ;;  %v1777_v49 = vsel %vm12787_vm4, %v7455_v23, 0.0  ;;  %vm12788_vm6 = vcmp.eq.s32.totalorder %v7369_v19, 17  ;;  %vm12789_vm13 = vcmp.eq.s32.totalorder %v7372_v10, 17 }
 0x183   : > { %v1778_v6 = vsel %vm12788_vm6, %v7455_v23, 0.0  ;;  %v1779_v9 = vsel %vm12789_vm13, %v7455_v23, 0.0  ;;  %vm12790_vm2 = vcmp.eq.s32.totalorder %v7375_v32, 17  ;;  %vm12792_vm6 = vcmp.eq.s32.totalorder %v7378_v63, 17 }
 0x184   : > { %v7556_v58 = vsel %vm12790_vm2, %v7455_v23, 0.0  ;;  %v7565_v52 = vsel %vm12792_vm6, %v7455_v23, 0.0  ;;  %vm12794_vm13 = vcmp.eq.s32.totalorder %v7381_v34, 17  ;;  %vm12796_vm2 = vcmp.eq.s32.totalorder %v7384_v38, 17 }
 0x185   : > { %12791 = vst [vmem:[#allocation75_spill] sm:$0xff] %v7556_v58  ;;  %12793 = vst [vmem:[#allocation57_spill] sm:$0xff] %v7565_v52  ;;  %v7570_v37 = vsel %vm12794_vm13, %v7455_v23, 0.0  ;;  %v7575_v58 = vsel %vm12796_vm2, %v7455_v23, 0.0  ;;  %vm12798_vm7 = vcmp.eq.s32.totalorder %v7387_v36, 17  ;;  %vm12800_vm13 = vcmp.eq.s32.totalorder %v7390_v43, 17 }
 0x186   : > { %12795 = vst [vmem:[#allocation44_spill] sm:$0xff] %v7570_v37  ;;  %12797 = vst [vmem:[#allocation50_spill] sm:$0xff] %v7575_v58  ;;  %v7580_v11 = vsel %vm12798_vm7, %v7455_v23, 0.0  ;;  %v7589_v52 = vsel %vm12800_vm13, %v7455_v23, 0.0  ;;  %vm12802_vm2 = vcmp.eq.s32.totalorder %v7393_v50, 17  ;;  %vm12804_vm7 = vcmp.eq.s32.totalorder %v7396_v57, 17 }
 0x187   : > { %12799 = vst [vmem:[#allocation76_spill] sm:$0xff] %v7580_v11  ;;  %12801 = vst [vmem:[#allocation77_spill] sm:$0xff] %v7589_v52  ;;  %v7594_v58 = vsel %vm12802_vm2, %v7455_v23, 0.0  ;;  %v7599_v37 = vsel %vm12804_vm7, %v7455_v23, 0.0  ;;  %vm12806_vm4 = vcmp.eq.s32.totalorder %v7399_v54, 17  ;;  %vm1674_vm8 = vcmp.eq.s32.totalorder %v7357_v59, 1 }
 0x188   : > { %12803 = vst [vmem:[#allocation78_spill] sm:$0xff] %v7594_v58  ;;  %12805 = vst [vmem:[#allocation79_spill] sm:$0xff] %v7599_v37  ;;  %v1788_v11 = vsel %vm12806_vm4, %v7455_v23, 0.0  ;;  %vm1675_vm6 = vcmp.eq.s32.totalorder %v7360_v29, 1  ;;  %vm1690_vm13 = vcmp.eq.s32.totalorder %v7405_v62, 1  ;;  %vm1691_vm3 = vcmp.eq.s32.totalorder %v7408_v56, 1 }
 0x189   : > { %vm12807_vm2 = vcmp.eq.s32.totalorder %v7402_v4, 17  ;;  %v1790_v53 = vsel %vm1754_vm10, %v7455_v23, 0.0  ;;  %v1791_v33 = vsel %vm1755_vm0, %v7455_v23, 0.0  ;;  %v1792_v5 = vsel %vm1756_vm5, %v7455_v23, 0.0 }
 0x18a   : > { %v1789_v52 = vsel %vm12807_vm2, %v7455_v23, 0.0  ;;  %vm1644_vm4 = vcmp.eq.s32.totalorder %v7363_v22, 0  ;;  %v1793_v31 = vsel %vm1757_vm14, %v7455_v23, 0.0  ;;  %v1794_v63 = vsel %vm1758_vm15, %v7455_v23, 0.0 }
 0x18b   : > { %v1795_v32 = vsel %vm1759_vm1, %v7455_v23, 0.0  ;;  %vm12808_vm10 = vcmp.eq.s32.totalorder %v7327_v30, 16  ;;  %vm12810_vm0 = vcmp.eq.s32.totalorder %v7333_v18, 16  ;;  %vm12811_vm5 = vcmp.eq.s32.totalorder %v7336_v17, 16 }
 0x18c   : > { %v7635_v37 = vsel %vm12808_vm10, %v7478_v39, %v7474_v42  ;;  %v7640_v58 = vsel %vm12810_vm0, %v7478_v39, %v1766_v12  ;;  %v7645_v40 = vsel %vm12811_vm5, %v7478_v39, %v1767_v60  ;;  %vm12812_vm14 = vcmp.eq.s32.totalorder %v7339_v14, 16 }
 0x18d   : > { %12809 = vst [vmem:[#allocation80_spill] sm:$0xff] %v7635_v37  ;;  %v7650_v23 = vsel %vm12812_vm14, %v7478_v39, %v1768_v24  ;;  %vm12813_vm1 = vcmp.eq.s32.totalorder %v7342_v3, 16  ;;  %vm12814_vm5 = vcmp.eq.s32.totalorder %v7345_v13, 16  ;;  %vm12815_vm14 = vcmp.eq.s32.totalorder %v7348_v45, 16 }
 0x18e   : > { %v7655_v42 = vsel %vm12813_vm1, %v7478_v39, %v1769_v41  ;;  %v7664_v12 = vsel %vm12814_vm5, %v7478_v39, %v1770_v51  ;;  %v7669_v24 = vsel %vm12815_vm14, %v7478_v39, %v1771_v16  ;;  %vm12816_vm1 = vcmp.eq.s32.totalorder %v7369_v19, 16 }
 0x18f   : > { %v1814_v41 = vsel %vm12816_vm1, %v7478_v39, %v1778_v6  ;;  %vm12817_vm2 = vcmp.eq.s32.totalorder %v7372_v10, 16  ;;  %vm1672_vm0 = vcmp.eq.s32.totalorder %v7351_v8, 1  ;;  %vm1688_vm5 = vcmp.eq.s32.totalorder %v7399_v54, 1 }
 0x190   : > { %v1815_v60 = vsel %vm12817_vm2, %v7478_v39, %v1779_v9  ;;  %vm1689_vm10 = vcmp.eq.s32.totalorder %v7402_v4, 1  ;;  %vm12818_vm14 = vcmp.eq.s32.totalorder %v7411_v25, 16  ;;  %vm12819_vm7 = vcmp.eq.s32.totalorder %v7414_v1, 16 }
 0x191   : > { %v1828_v16 = vsel %vm12818_vm14, %v7478_v39, %v1792_v5  ;;  %v1829_v6 = vsel %vm12819_vm7, %v7478_v39, %v1793_v31  ;;  %vm12820_vm1 = vcmp.eq.s32.totalorder %v7417_v26, 16  ;;  %vm12821_vm2 = vcmp.eq.s32.totalorder %v7420_v7, 16 }
 0x192   : > { %v1830_v9 = vsel %vm12820_vm1, %v7478_v39, %v1794_v63  ;;  %v1831_v51 = vsel %vm12821_vm2, %v7478_v39, %v1795_v32  ;;  %v7698_v37 = vsel %vm1704_vm9, %v7478_v39, %v7514_v55  ;;  %v7704_v31 = vsel %vm1705_vm11, %v7478_v39, %v7523_v15 }
 0x193   : > { %vm12822_vm7 = vcmp.eq.s32.totalorder %v7357_v59, 16  ;;  %vm12823_vm14 = vcmp.eq.s32.totalorder %v7360_v29, 16  ;;  %v1812_v55 = vsel %vm1708_vm12, %v7478_v39, %v7538_v47  ;;  %vm12824_vm9 = vcmp.eq.s32.totalorder %v7366_v27, 16 }
 0x194   : > { %v1810_v5 = vsel %vm12822_vm7, %v7478_v39, %v7528_v2  ;;  %v1811_v63 = vsel %vm12823_vm14, %v7478_v39, %v7533_v20  ;;  %v1813_v32 = vsel %vm12824_vm9, %v7478_v39, %v1777_v49  ;;  %vm12825_vm11 = vcmp.eq.s32.totalorder %v7369_v19, 1 }
 0x195   : > { %v1850_v15 = vsel %vm12825_vm11, %v7319_v28, %v1814_v41  ;;  %vm12826_vm1 = vcmp.eq.s32.totalorder %v7372_v10, 1  ;;  %vm12827_vm15 = vcmp.eq.s32.totalorder %v7411_v25, 1  ;;  %vm12828_vm9 = vcmp.eq.s32.totalorder %v7414_v1, 1 }
 0x196   : > { %v1851_v2 = vsel %vm12826_vm1, %v7319_v28, %v1815_v60  ;;  %v1864_v49 = vsel %vm12827_vm15, %v7319_v28, %v1828_v16  ;;  %v1865_v47 = vsel %vm12828_vm9, %v7319_v28, %v1829_v6  ;;  %vm12829_vm11 = vcmp.eq.s32.totalorder %v7417_v26, 1 }
 0x197   : > { %v1866_v20 = vsel %vm12829_vm11, %v7319_v28, %v1830_v9  ;;  %vm12830_vm1 = vcmp.eq.s32.totalorder %v7420_v7, 1  ;;  %vm1717_vm15 = vcmp.eq.s32.totalorder %v7390_v43, 16  ;;  %vm12831_vm12 = vcmp.eq.s32.totalorder %v7399_v54, 16 }
 0x198   : > { %v1867_v41 = vsel %vm12830_vm1, %v7319_v28, %v1831_v51  ;;  %v1824_v60 = vsel %vm12831_vm12, %v7478_v39, %v1788_v11  ;;  %vm12832_vm9 = vcmp.eq.s32.totalorder %v7402_v4, 16  ;;  %vm12833_vm11 = vcmp.eq.s32.totalorder %v7405_v62, 16 }
 0x199   : > { %v1825_v16 = vsel %vm12832_vm9, %v7478_v39, %v1789_v52  ;;  %v1826_v6 = vsel %vm12833_vm11, %v7478_v39, %v1790_v53  ;;  %vm12834_vm1 = vcmp.eq.s32.totalorder %v7408_v56, 16  ;;  %vm12835_vm2 = vcmp.eq.s32.totalorder %v7363_v22, 1  ;;  %v12845_v22 = vld [vmem:[#allocation78_spill] sm:$0xff] }
 0x19a   : > { %v1827_v9 = vsel %vm12834_vm1, %v7478_v39, %v1791_v33  ;;  %v1848_v51 = vsel %vm12835_vm2, %v7319_v28, %v1812_v55  ;;  %vm12836_vm12 = vcmp.eq.s32.totalorder %v7366_v27, 1  ;;  %vm12837_vm9 = vcmp.eq.s32.totalorder %v7369_v19, 0 }
 0x19b   : > { %v1849_v11 = vsel %vm12836_vm12, %v7319_v28, %v1813_v32  ;;  %v1886_v52 = vsel %vm12837_vm9, %v7322_v35, %v1850_v15  ;;  %vm12838_vm11 = vcmp.eq.s32.totalorder %v7372_v10, 0  ;;  %vm12839_vm14 = vcmp.eq.s32.totalorder %v7411_v25, 0 }
 0x19c   : > { %v1887_v53 = vsel %vm12838_vm11, %v7322_v35, %v1851_v2  ;;  %v1900_v33 = vsel %vm12839_vm14, %v7322_v35, %v1864_v49  ;;  %vm12840_vm2 = vcmp.eq.s32.totalorder %v7414_v1, 0  ;;  %vm12841_vm12 = vcmp.eq.s32.totalorder %v7417_v26, 0 }
 0x19d   : > { %v1901_v55 = vsel %vm12840_vm2, %v7322_v35, %v1865_v47  ;;  %v1902_v32 = vsel %vm12841_vm12, %v7322_v35, %v1866_v20  ;;  %vm12842_vm9 = vcmp.eq.s32.totalorder %v7420_v7, 0  ;;  %vm1654_vm11 = vcmp.eq.s32.totalorder %v7393_v50, 0  ;;  %v12844_v20 = vld [vmem:[#allocation83_spill] sm:$0xff] }
 0x19e   : > { %v1903_v19 = vsel %vm12842_vm9, %v7322_v35, %v1867_v41  ;;  %vm1655_vm1 = vcmp.eq.s32.totalorder %v7396_v57, 0  ;;  %vm1671_vm7 = vcmp.eq.s32.totalorder %v7348_v45, 1  ;;  %vm1714_vm14 = vcmp.eq.s32.totalorder %v7381_v34, 16 }
 0x19f   : > { %v1846_v25 = vsel %vm1674_vm8, %v7319_v28, %v1810_v5  ;;  %v1847_v26 = vsel %vm1675_vm6, %v7319_v28, %v1811_v63  ;;  %v1862_v7 = vsel %vm1690_vm13, %v7319_v28, %v1826_v6  ;;  %v1863_v1 = vsel %vm1691_vm3, %v7319_v28, %v1827_v9 }
 0x1a0   : > { %vm1715_vm8 = vcmp.eq.s32.totalorder %v7384_v38, 16  ;;  %v1884_v10 = vsel %vm1644_vm4, %v7322_v35, %v1848_v51  ;;  %vm12843_vm6 = vcmp.eq.s32.totalorder %v7366_v27, 0  ;;  %v1918_v63 = vadd.f32 %v1886_v52, %v7240_v46  ;;  %v12847_v46 = vld [vmem:[#allocation79_spill] sm:$0xff]  ;;  %v12856_v52 = vld [vmem:[#allocation33_spill] sm:$0xff] }
 0x1a1   : > { %v1885_v5 = vsel %vm12843_vm6, %v7322_v35, %v1849_v11  ;;  %v1919_v15 = vadd.f32 %v1887_v53, %v7243_v0  ;;  %v1932_v2 = vadd.f32 %v1900_v33, %v7304_v48  ;;  %v1933_v49 = vadd.f32 %v1901_v55, %v7307_v21  ;;  %v12853_v51 = vld [vmem:[#allocation87_spill] sm:$0xff]  ;;  %v12858_v55 = vld [vmem:[#allocation82_spill] sm:$0xff] }
 0x1a2   : > { %v1934_v47 = vadd.f32 %v1902_v32, %v7310_v44  ;;  %v1935_v41 = vadd.f32 %v1903_v19, %v12844_v20  ;;  %vm12846_vm4 = vcmp.eq.s32.totalorder %v7393_v50, 16  ;;  %vm12848_vm6 = vcmp.eq.s32.totalorder %v7396_v57, 16  ;;  %v12851_v44 = vld [vmem:[#allocation86_spill] sm:$0xff] }
 0x1a3   : > { %v1822_v27 = vsel %vm12846_vm4, %v7478_v39, %v12845_v22  ;;  %v1823_v0 = vsel %vm12848_vm6, %v7478_v39, %v12847_v46  ;;  %vm12849_vm3 = vcmp.eq.s32.totalorder %v7405_v62, 0  ;;  %vm12850_vm9 = vcmp.eq.s32.totalorder %v7408_v56, 0 }
 0x1a4   : > { %v1898_v48 = vsel %vm12849_vm3, %v7322_v35, %v1862_v7  ;;  %v1899_v21 = vsel %vm12850_vm9, %v7322_v35, %v1863_v1  ;;  %vm1669_vm2 = vcmp.eq.s32.totalorder %v7342_v3, 1  ;;  %vm1712_vm4 = vcmp.eq.s32.totalorder %v12851_v44, 16  ;;  %v12859_v7 = vld [vmem:[#allocation76_spill] sm:$0xff] }
 0x1a5   : > { %v1844_v6 = vsel %vm1672_vm0, %v7319_v28, %v7698_v37  ;;  %v1860_v62 = vsel %vm1688_vm5, %v7319_v28, %v1824_v60  ;;  %v1861_v56 = vsel %vm1689_vm10, %v7319_v28, %v1825_v16  ;;  %vm12852_vm9 = vcmp.eq.s32.totalorder %v7357_v59, 0  ;;  %v12855_v60 = vld [vmem:[#allocation43_spill] sm:$0xff]  ;;  %v12857_v59 = vld [vmem:[#allocation72_spill] sm:$0xff] }
 0x1a6   : > { %v1882_v9 = vsel %vm12852_vm9, %v7322_v35, %v1846_v25  ;;  %vm1713_vm0 = vcmp.eq.s32.totalorder %v12853_v51, 16  ;;  %vm12854_vm13 = vcmp.eq.s32.totalorder %v7360_v29, 0  ;;  %v1916_v11 = vadd.f32 %v1884_v10, %v12855_v60 }
 0x1a7   : > { %v1883_v37 = vsel %vm12854_vm13, %v7322_v35, %v1847_v26  ;;  %v1917_v16 = vadd.f32 %v1885_v5, %v12856_v52  ;;  %v1945_v53 = vpack.c.bf16 %v1919_v15, %v1918_v63  ;;  %v1930_v33 = vadd.f32 %v1898_v48, %v12857_v59  ;;  %v12864_v5 = vld [vmem:[#allocation77_spill] sm:$0xff]  ;;  %v12868_v15 = vld [vmem:[#allocation84_spill] sm:$0xff] }
 0x1a8   : > { %v1931_v32 = vadd.f32 %v1899_v21, %v12858_v55  ;;  %v1952_v19 = vpack.c.bf16 %v1933_v49, %v1932_v2  ;;  %v1953_v25 = vpack.c.bf16 %v1935_v41, %v1934_v47  ;;  %vm12860_vm9 = vcmp.eq.s32.totalorder %v7387_v36, 16  ;;  %v12870_v2 = vld [vmem:[#allocation5_spill] sm:$0xff]  ;;  %v12871_v47 = vld [vmem:[#allocation56_spill] sm:$0xff] }
 0x1a9   : > { %v1820_v29 = vsel %vm12860_vm9, %v7478_v39, %v12859_v7  ;;  %vm12861_vm13 = vcmp.eq.s32.totalorder %v7354_v61, 1  ;;  %vm12862_vm10 = vcmp.eq.s32.totalorder %v7399_v54, 0  ;;  %vm12863_vm12 = vcmp.eq.s32.totalorder %v7402_v4, 0 }
 0x1aa   : > { %v1845_v26 = vsel %vm12861_vm13, %v7319_v28, %v7704_v31  ;;  %v1896_v1 = vsel %vm12862_vm10, %v7322_v35, %v1860_v62  ;;  %v1897_v10 = vsel %vm12863_vm12, %v7322_v35, %v1861_v56  ;;  %vm1667_vm3 = vcmp.eq.s32.totalorder %v7336_v17, 1  ;;  %3912 = vmatprep.subr.bf16.mxu0 %v1953_v25 }
 0x1ab   : > { %v1821_v63 = vsel %vm1717_vm15, %v7478_v39, %v12864_v5  ;;  %vm12865_vm9 = vcmp.eq.s32.totalorder %v7345_v13, 1  ;;  %vm12866_vm10 = vcmp.eq.s32.totalorder %v7393_v50, 1  ;;  %vm12867_vm12 = vcmp.eq.s32.totalorder %v7396_v57, 1  ;;  %3913 = vmatpush3.bf16.msra.mxu0 %v1945_v53 }
 0x1ac   : > { %v1842_v54 = vsel %vm12865_vm9, %v7319_v28, %v7664_v12  ;;  %v1858_v4 = vsel %vm12866_vm10, %v7319_v28, %v1822_v27  ;;  %v1859_v31 = vsel %vm12867_vm12, %v7319_v28, %v1823_v0  ;;  %vm1664_vm13 = vcmp.eq.s32.totalorder %v7327_v30, 1  ;;  %v12873_v27 = vld [vmem:[#allocation94_spill] sm:$0xff]  ;;  %v12874_v0 = vld [vmem:[#allocation95_spill] sm:$0xff]  ;;  %3914 = vmatprep.subr.bf16.mxu0 %v1952_v19 }
 0x1ad   : > { %vm1680_vm6 = vcmp.eq.s32.totalorder %v12851_v44, 1  ;;  %vm1681_vm15 = vcmp.eq.s32.totalorder %v12853_v51, 1  ;;  %vm1697_vm5 = vcmp.eq.s32.totalorder %v12868_v15, 16  ;;  %vm12869_vm9 = vcmp.eq.s32.totalorder %v7351_v8, 0  ;;  %v12875_v8 = vld [vmem:[#allocation44_spill] sm:$0xff] }
 0x1ae   : > { %v1880_v12 = vsel %vm12869_vm9, %v7322_v35, %v1844_v6  ;;  %v1914_v49 = vadd.f32 %v1882_v9, %v12870_v2  ;;  %v1915_v20 = vadd.f32 %v1883_v37, %v12871_v47  ;;  %v1944_v41 = vpack.c.bf16 %v1917_v16, %v1916_v11  ;;  %v12876_v9 = vld [vmem:[#allocation50_spill] sm:$0xff]  ;;  %v12881_v11 = vld [vmem:[#allocation45_spill] sm:$0xff]  ;;  %v12882_v16 = vld [vmem:[#allocation48_spill] sm:$0xff] }
 0x1af   : > { %vm1634_vm10 = vcmp.eq.s32.totalorder %v7333_v18, 0  ;;  %vm12872_vm12 = vcmp.eq.s32.totalorder %v7354_v61, 0  ;;  %v1928_v46 = vadd.f32 %v1896_v1, %v12873_v27  ;;  %v1929_v48 = vadd.f32 %v1897_v10, %v12874_v0  ;;  %v12889_v1 = vld [vmem:[#allocation57_spill] sm:$0xff]  ;;  %v12897_v2 = vld [vmem:[#allocation46_spill] sm:$0xff]  ;;  %v12898_v47 = vld [vmem:[#allocation59_spill] sm:$0xff] }
 0x1b0   : > { %v1881_v22 = vsel %vm12872_vm12, %v7322_v35, %v1845_v26  ;;  %v1951_v21 = vpack.c.bf16 %v1931_v32, %v1930_v33  ;;  %v1818_v6 = vsel %vm1714_vm14, %v7478_v39, %v12875_v8  ;;  %v1843_v62 = vsel %vm1671_vm7, %v7319_v28, %v7669_v24  ;;  %3915 = vmatpush3.bf16.msra.mxu0 %v1944_v41  ;;  %v12884_v33 = vld [vmem:[#allocation47_spill] sm:$0xff]  ;;  %v12885_v32 = vld [vmem:[#allocation93_spill] sm:$0xff]  ;;  %v12902_v0 = vld [vmem:[#allocation80_spill] sm:$0xff] }
 0x1b1   : > { %v1894_v61 = vsel %vm1654_vm11, %v7322_v35, %v1858_v4  ;;  %v1895_v56 = vsel %vm1655_vm1, %v7322_v35, %v1859_v31  ;;  %vm1648_vm12 = vcmp.eq.s32.totalorder %v12851_v44, 0  ;;  %vm1649_vm9 = vcmp.eq.s32.totalorder %v12853_v51, 0  ;;  %v12895_v4 = vld [vmem:[#allocation71_spill] sm:$0xff]  ;;  %v12901_v27 = vld [vmem:[#allocation73_spill] sm:$0xff] }
 0x1b2   : > { %v1819_v37 = vsel %vm1715_vm8, %v7478_v39, %v12876_v9  ;;  %vm12877_vm7 = vcmp.eq.s32.totalorder %v7339_v14, 1  ;;  %vm12878_vm11 = vcmp.eq.s32.totalorder %v7387_v36, 1  ;;  %vm12879_vm1 = vcmp.eq.s32.totalorder %v7390_v43, 1  ;;  %3916 = vmatprep.subr.bf16.mxu0 %v1951_v21  ;;  %v12903_v21 = vld [vmem:[#allocation42_spill] sm:$0xff] }
 0x1b3   : > { %v1840_v24 = vsel %vm12877_vm7, %v7319_v28, %v7650_v23  ;;  %v1856_v50 = vsel %vm12878_vm11, %v7319_v28, %v1820_v29  ;;  %v1857_v57 = vsel %vm12879_vm1, %v7319_v28, %v1821_v63  ;;  %vm12880_vm14 = vcmp.eq.s32.totalorder %v7345_v13, 0  ;;  %v12886_v13 = vld [vmem:[#allocation75_spill] sm:$0xff]  ;;  %v12894_v63 = vld [vmem:[#allocation70_spill] sm:$0xff] }
 0x1b4   : > { %v1878_v60 = vsel %vm12880_vm14, %v7322_v35, %v1842_v54  ;;  %v1912_v52 = vadd.f32 %v1880_v12, %v12881_v11  ;;  %v1913_v53 = vadd.f32 %v1881_v22, %v12882_v16  ;;  %v1943_v59 = vpack.c.bf16 %v1915_v20, %v1914_v49  ;;  %v12909_v11 = vld [vmem:[#allocation67_spill] sm:$0xff]  ;;  %v12910_v16 = vld [vmem:[#allocation92_spill] sm:$0xff] }
 0x1b5   : > { %vm1632_vm8 = vcmp.eq.s32.totalorder %v7327_v30, 0  ;;  %vm12883_vm7 = vcmp.eq.s32.totalorder %v7348_v45, 0  ;;  %v1926_v55 = vadd.f32 %v1894_v61, %v12884_v33  ;;  %v1927_v19 = vadd.f32 %v1895_v56, %v12885_v32  ;;  %v12906_v56 = vld [vmem:[#allocation40_spill] sm:$0xff]  ;;  %v12914_v32 = vld [vmem:[#allocation41_spill] sm:$0xff] }
 0x1b6   : > { %v1879_v23 = vsel %vm12883_vm7, %v7322_v35, %v1843_v62  ;;  %v1950_v25 = vpack.c.bf16 %v1929_v48, %v1928_v46  ;;  %v1816_v7 = vsel %vm1712_vm4, %v7478_v39, %v12886_v13  ;;  %v1841_v29 = vsel %vm1669_vm2, %v7319_v28, %v7655_v42  ;;  %3917 = vmatpush3.bf16.msra.mxu0 %v1943_v59  ;;  %v12913_v33 = vld [vmem:[#allocation60_spill] sm:$0xff] }
 0x1b7   : > { %vm12887_vm11 = vcmp.eq.s32.totalorder %v7387_v36, 0  ;;  %vm12888_vm1 = vcmp.eq.s32.totalorder %v7390_v43, 0  ;;  %v1817_v10 = vsel %vm1713_vm0, %v7478_v39, %v12889_v1  ;;  %vm12890_vm4 = vcmp.eq.s32.totalorder %v7333_v18, 1 }
 0x1b8   : > { %v1892_v45 = vsel %vm12887_vm11, %v7322_v35, %v1856_v50  ;;  %v1893_v26 = vsel %vm12888_vm1, %v7322_v35, %v1857_v57  ;;  %v1838_v5 = vsel %vm12890_vm4, %v7319_v28, %v7640_v58  ;;  %vm12891_vm2 = vcmp.eq.s32.totalorder %v7381_v34, 1  ;;  %3918 = vmatprep.subr.bf16.mxu0 %v1950_v25  ;;  %v12915_v25 = vld [vmem:[#allocation90_spill] sm:$0xff] }
 0x1b9   : > { %v1854_v42 = vsel %vm12891_vm2, %v7319_v28, %v1818_v6  ;;  %vm12892_vm14 = vcmp.eq.s32.totalorder %v7384_v38, 1  ;;  %vm12893_vm7 = vcmp.eq.s32.totalorder %v7339_v14, 0  ;;  %v1910_v54 = vadd.f32 %v1878_v60, %v12894_v63  ;;  %v12908_v60 = vld [vmem:[#allocation91_spill] sm:$0xff] }
 0x1ba   : > { %v1855_v36 = vsel %vm12892_vm14, %v7319_v28, %v1819_v37  ;;  %v1876_v43 = vsel %vm12893_vm7, %v7322_v35, %v1840_v24  ;;  %v1911_v31 = vadd.f32 %v1879_v23, %v12895_v4  ;;  %v1942_v12 = vpack.c.bf16 %v1913_v53, %v1912_v52  ;;  %v12907_v37 = vld [vmem:[#allocation58_spill] sm:$0xff]  ;;  %v12911_v53 = vld [vmem:[#allocation68_spill] sm:$0xff] }
 0x1bb   : > { %vm12896_vm0 = vcmp.eq.s32.totalorder %v7342_v3, 0  ;;  %v1924_v49 = vadd.f32 %v1892_v45, %v12897_v2  ;;  %v1925_v20 = vadd.f32 %v1893_v26, %v12898_v47  ;;  %v1949_v41 = vpack.c.bf16 %v1927_v19, %v1926_v55  ;;  %v2035_v47 = vld [vmem:[%s4253_s21 + $0x8] sm:$0x1] }
 0x1bc   : > { %v1877_v58 = vsel %vm12896_vm0, %v7322_v35, %v1841_v29  ;;  %vm1665_vm11 = vcmp.eq.s32.totalorder %v12868_v15, 1  ;;  %v1839_v14 = vsel %vm1667_vm3, %v7319_v28, %v7645_v40  ;;  %vm12899_vm1 = vcmp.eq.s32.totalorder %v7381_v34, 0  ;;  %3919 = vmatpush3.bf16.msra.mxu0 %v1942_v12 }
 0x1bd   : > { %v1890_v22 = vsel %vm12899_vm1, %v7322_v35, %v1854_v42  ;;  %vm12900_vm4 = vcmp.eq.s32.totalorder %v7384_v38, 0  ;;  %v1801_v46 = vsel %vm1697_vm5, %v7478_v39, %v12901_v27  ;;  %v1836_v48 = vsel %vm1664_vm13, %v7319_v28, %v12902_v0  ;;  %v12904_v39 = vld [vmem:[#allocation69_spill] sm:$0xff]  ;;  %3920 = vmatprep.subr.bf16.mxu0 %v1949_v41 }
 0x1be   : > { %v1891_v3 = vsel %vm12900_vm4, %v7322_v35, %v1855_v36  ;;  %v1852_v40 = vsel %vm1680_vm6, %v7319_v28, %v1816_v7  ;;  %v1853_v34 = vsel %vm1681_vm15, %v7319_v28, %v1817_v10  ;;  %v1874_v38 = vsel %vm1634_vm10, %v7322_v35, %v1838_v5  ;;  %v4047_v10 = vld [vmem:[%s4239_s8] ss:$8 sps:$4 sm:$0xff]  }
 0x1bf   : > { %v1908_v8 = vadd.f32 %v1876_v43, %v12903_v21  ;;  %v1909_v6 = vadd.f32 %v1877_v58, %v12904_v39  ;;  %v1941_v62 = vpack.c.bf16 %v1911_v31, %v1910_v54  ;;  %vm12905_vm3 = vcmp.eq.s32.totalorder %v7336_v17, 0  ;;  %v2429_v39 = vld [vmem:[%s4242_s11 + $0xa] sm:$0x1] }
 0x1c0   : > { %v1875_v61 = vsel %vm12905_vm3, %v7322_v35, %v1839_v14  ;;  %v1922_v9 = vadd.f32 %v1890_v22, %v12906_v56  ;;  %v1923_v24 = vadd.f32 %v1891_v3, %v12907_v37  ;;  %v1948_v50 = vpack.c.bf16 %v1925_v20, %v1924_v49  ;;  %v2036_v20 = vld [vmem:[%s4242_s11 + $0x8] sm:$0x1]  ;;  %v2038_v22 = vld [vmem:[%s4253_s21 + $0x9] sm:$0x1]  ;;  %v2432_v37 = vld [vmem:[%s4242_s11 + $0xb] sm:$0x1] }
 0x1c1   : > { %vm1633_vm6 = vcmp.eq.s32.totalorder %v12868_v15, 0  ;;  %v1837_v18 = vsel %vm1665_vm11, %v7319_v28, %v1801_v46  ;;  %v1888_v57 = vsel %vm1648_vm12, %v7322_v35, %v1852_v40  ;;  %v1889_v17 = vsel %vm1649_vm9, %v7322_v35, %v1853_v34  ;;  %v12912_v15 = vld [vmem:[#allocation53_spill] sm:$0xff]  ;;  %3921 = vmatpush3.bf16.msra.mxu0 %v1941_v62  ;;  %v2039_v3 = vld [vmem:[%s4242_s11 + $0x9] sm:$0x1] }
 0x1c2   : > { %v1511_v52 = vadd.f32 %v12909_v11, %v12908_v60  ;;  %v1512_v59 = vadd.f32 %v12911_v53, %v12910_v16  ;;  %v1872_v23 = vsel %vm1632_vm8, %v7322_v35, %v1836_v48  ;;  %v1906_v28 = vadd.f32 %v1874_v38, %v12912_v15  ;;  %3922 = vmatprep.subr.bf16.mxu0 %v1948_v50  ;;  %v2041_v40 = vld [vmem:[%s4242_s11 + $0x14] sm:$0x1]  ;;  %v2434_v53 = vld [vmem:[%s4242_s11 + $0x15] sm:$0x1] }
 0x1c3   : > { %v1907_v55 = vadd.f32 %v1875_v61, %v12913_v33  ;;  %v1940_v44 = vpack.c.bf16 %v1909_v6, %v1908_v8  ;;  %v1873_v51 = vsel %vm1633_vm6, %v7322_v35, %v1837_v18  ;;  %v1920_v19 = vadd.f32 %v1888_v57, %v12914_v32  ;;  %v2015_v35 = vld [vmem:[%s4242_s11 + $0x14] sm:$0xf]  ;;  %v2428_v8 = vld [vmem:[%s4253_s21 + $0xa] sm:$0x1] }
 0x1c4   : > { %v1921_v13 = vadd.f32 %v1889_v17, %v12915_v25  ;;  %v1947_v7 = vpack.c.bf16 %v1923_v24, %v1922_v9  ;;  %v1904_v29 = vadd.f32 %v1872_v23, %v1511_v52  ;;  %v1905_v45 = vadd.f32 %v1873_v51, %v1512_v59  ;;  %v2431_v9 = vld [vmem:[%s4253_s21 + $0xb] sm:$0x1] }
 0x1c5   : > { %v1939_v30 = vpack.c.bf16 %v1907_v55, %v1906_v28  ;;  %3923 = vmatpush3.bf16.msra.mxu0 %v1940_v44  ;;  %vm12916_vm5 = vcmask 1043456   ;;  %v2037_v14 = vadd.f32 %v2036_v20, %v2035_v47  ;;  %v2040_v46 = vadd.f32 %v2039_v3, %v2038_v22  ;;  %v12929_v47 = vld [vmem:[#allocation7_spill] sm:$0xff]  ;;  %v12931_v22 = vld [vmem:[#allocation9_spill] sm:$0xff] }
 0x1c6   : > { %v1946_v26 = vpack.c.bf16 %v1921_v13, %v1920_v19  ;;  %3924 = vmatprep.subr.bf16.mxu0 %v1947_v7  ;;  %v1938_v1 = vpack.c.bf16 %v1905_v45, %v1904_v29  ;;  %v2016_v5 = vsel %vm12916_vm5, %v2015_v35, -inf  ;;  %vm12918_vm13 = vmmov %vm12916_vm5  ;;  %v2430_v56 = vadd.f32 %v2429_v39, %v2428_v8  ;;  %v12937_v8 = vld [vmem:[#allocation13_spill] sm:$0xff] }
 0x1c7   : > { %v2017_v42 = vrot.slane %v2016_v5, 4  ;;  %v2048_v0 = vmul.f32 1.0666667, %v2037_v14  ;;  %v2046_v34 = vmul.f32 1.0666667, %v2040_v46  ;;  %v2433_v17 = vadd.f32 %v2432_v37, %v2431_v9  ;;  %v12942_v37 = vld [vmem:[#allocation16_spill] sm:$0xff] }
 0x1c8   : > { %v2441_v60 = vmul.f32 1.0666667, %v2430_v56  ;;  %v12941_v56 = vld [vmem:[#allocation15_spill] sm:$0xff] }
 0x1c9   : > { %3925 = vmatpush3.bf16.msra.mxu0 %v1939_v30  ;;  %v2018_v36 = vmax.f32 %v2016_v5, %v2017_v42  ;;  %v3880_v38 = vadd.f32 -0.5, %v2048_v0  ;;  %v3879_v62 = vadd.f32 -0.5, %v2046_v34  ;;  %v2439_v16 = vmul.f32 1.0666667, %v2433_v17 }
 0x1ca   : > { %3926 = vmatprep.subr.bf16.mxu0 %v1946_v26  ;;  %v3882_v59 = vadd.f32 -0.5, %v2441_v60  ;;  %v12945_v60 = vld [vmem:[#allocation19_spill] sm:$0xff] }
 0x1cb   : > { %v2019_v43 = vrot.slane %v2018_v36, 2  ;;  %v2051_v61 = vfloor.f32 %v3880_v38  ;;  %v2050_v18 = vfloor.f32 %v3879_v62  ;;  %v3881_v44 = vadd.f32 -0.5, %v2439_v16 }
 0x1cc   : > { %v2444_v51 = vfloor.f32 %v3882_v59 }
 0x1cd   : > { %3927 = vmatpush3.bf16.msra.mxu0 %v1938_v1  ;;  %v2020_v63 = vmax.f32 %v2018_v36, %v2019_v43  ;;  %v3977_v57 = vtrunc.f32 %v2051_v61  ;;  %v3975_v11 = vtrunc.f32 %v2050_v18  ;;  %v2052_v23 = vsub.f32 %v3879_v62, %v2050_v18  ;;  %v12940_v62 = vld [vmem:[#allocation14_spill] sm:$0xff] }
 0x1ce   : > { %v2054_v33 = vsub.f32 %v3880_v38, %v2051_v61  ;;  %v2443_v7 = vfloor.f32 %v3881_v44  ;;  %v8065_v29 = vsub.f32 %v3882_v59, %v2444_v51  ;;  %v3981_v45 = vtrunc.f32 %v2444_v51  ;;  %v12936_v38 = vld [vmem:[#allocation12_spill] sm:$0xff]  ;;  %v12951_v51 = vld [vmem:[#allocation25_spill] sm:$0xff] }
 0x1cf   : > { %v2021_v54 = vrot.slane %v2020_v63, 1  ;;  %v3978_v52 = vcvt.f32.s32 %v3977_v57  ;;  %v3976_v15 = vcvt.f32.s32 %v3975_v11  ;;  %v2053_v32 = vsub.f32 1.0, %v2052_v23  ;;  %v12944_v57 = vld [vmem:[#allocation18_spill] sm:$0xff] }
 0x1d0   : > { %1997 = vmatmul.mubr.bf16.vlgmr.msra.gmra.mxu0 %v4047_v10  ;;  %v2055_v25 = vsub.f32 1.0, %v2054_v33  ;;  %12919 = vst [vmem:[#allocation81_spill] sm:$0xff] %v8065_v29  ;;  %v2083_v26 = vmul.f32 %v2054_v33, %v2052_v23  ;;  %v12920_v10 = vld [vmem:[#allocation39_spill] sm:$0xff]  ;;  %v8070_v43 = vsub.f32 %v3881_v44, %v2443_v7 }
 0x1d1   : > { %v8049_v4 = vmax.f32 %v2020_v63, %v2021_v54  ;;  %v2086_v28 = vmul.u32 16, %v3978_v52  ;;  %vm2058_vm15 = vcmp.ge.s32.totalorder %v3976_v15, 0  ;;  %vm2059_vm10 = vcmp.lt.s32.totalorder %v3976_v15, 16  ;;  %v12925_v54 = vld [vmem:[#allocation6_spill] sm:$0xff] }
 0x1d2   : > { %vm2061_vm9 = vcmp.ge.s32.totalorder %v3976_v15, 4294967295  ;;  %vm2062_vm12 = vcmp.lt.s32.totalorder %v3976_v15, 15  ;;  %vm2064_vm8 = vcmp.ge.s32.totalorder %v3978_v52, 0  ;;  %v2079_v30 = vmul.f32 %v2054_v33, %v2053_v32  ;;  %12922 = vst [vmem:[#allocation88_spill] sm:$0xff] %v8070_v43  ;;  %vm8074_vm0 = vmand %vm2058_vm15, %vm2059_vm10 }
 0x1d3   : > { %12917 = vst [vmem:[#allocation74_spill] sm:$0xff] %v8049_v4  ;;  %v2023_v31 = vsub.f32 %v2015_v35, %v8049_v4  ;;  %v2042_v21 = vsub.f32 %v2041_v40, %v8049_v4  ;;  %v2435_v55 = vsub.f32 %v2434_v53, %v8049_v4  ;;  %v2087_v19 = vadd.s32 %v3976_v15, %v2086_v28  ;;  %vm8106_vm1 = vmand %vm2061_vm9, %vm2062_vm12  ;;  %v12935_v40 = vld [vmem:[#allocation11_spill] sm:$0xff]  ;;  %v12947_v53 = vld [vmem:[#allocation21_spill] sm:$0xff] }
 0x1d4   : > { %vm2065_vm2 = vcmp.lt.s32.totalorder %v3978_v52, 16  ;;  %vm2067_vm14 = vcmp.ge.s32.totalorder %v3978_v52, 4294967295  ;;  %vm2068_vm7 = vcmp.lt.s32.totalorder %v3978_v52, 15  ;;  %v2071_v42 = vmul.f32 %v2055_v25, %v2053_v32  ;;  %v12946_v52 = vld [vmem:[#allocation20_spill] sm:$0xff]  ;;  %v12949_v28 = vld [vmem:[#allocation23_spill] sm:$0xff] }
 0x1d5   : > { %v2024_v12 = vmul.f32 1.442695, %v2023_v31  ;;  %v2043_v24 = vmul.f32 1.442695, %v2042_v21  ;;  %v2436_v13 = vmul.f32 1.442695, %v2435_v55  ;;  %v2091_v35 = vrot.slane %v2087_v19, %v12920_v10  ;;  %vm8087_vm11 = vmand %vm2064_vm8, %vm2065_vm2 }
 0x1d6   : > { %v2075_v36 = vmul.f32 %v2055_v25, %v2052_v23  ;;  %vm8121_vm4 = vmand %vm2067_vm14, %vm2068_vm7  ;;  %v12948_v23 = vld [vmem:[#allocation22_spill] sm:$0xff]  ;;  %v12950_v55 = vld [vmem:[#allocation24_spill] sm:$0xff] }
 0x1d7   : > { %4065 = vpow2.f32 %v2024_v12  ;;  %v8079_v31 = vsub.s32 %v12925_v54, %v2091_v35  ;;  %v8092_v20 = vsub.s32 %v12929_v47, %v2091_v35  ;;  %v8098_v3 = vsub.s32 %v12931_v22, %v2091_v35  ;;  %vm2070_vm3 = vmand %vm8074_vm0, %vm8087_vm11  ;;  %v12954_v12 = vld [vmem:[#allocation27_spill] sm:$0xff] }
 0x1d8   : > { %4067 = vpow2.f32 %v2043_v24  ;;  %v8111_v34 = vsub.s32 %v12935_v40, %v2091_v35  ;;  %v8114_v21 = vsub.s32 %v12936_v38, %v2091_v35  ;;  %v8117_v39 = vsub.s32 %v12937_v8, %v2091_v35  ;;  %vm2074_vm6 = vmand %vm8106_vm1, %vm8087_vm11 }
 0x1d9   : > { %v8126_v61 = vsub.s32 %v12940_v62, %v2091_v35  ;;  %v8129_v9 = vsub.s32 %v12941_v56, %v2091_v35  ;;  %v8132_v24 = vsub.s32 %v12942_v37, %v2091_v35  ;;  %v8142_v17 = vsub.s32 %v12944_v57, %v2091_v35  ;;  %vm2078_vm5 = vmand %vm8074_vm0, %vm8121_vm4 }
 0x1da   : > { %v8145_v11 = vsub.s32 %v12945_v60, %v2091_v35  ;;  %v8148_v16 = vsub.s32 %v12946_v52, %v2091_v35  ;;  %v8151_v59 = vsub.s32 %v12947_v53, %v2091_v35  ;;  %v8158_v15 = vsub.s32 %v12948_v23, %v2091_v35  ;;  %v12960_v23 = vld [vmem:[#allocation30_spill] sm:$0xff]  ;;  %v12963_v53 = vld [vmem:[#allocation32_spill] sm:$0xff] }
 0x1db   : > { %v8161_v33 = vsub.s32 %v12949_v28, %v2091_v35  ;;  %v8164_v44 = vsub.s32 %v12950_v55, %v2091_v35  ;;  %v8167_v32 = vsub.s32 %v12951_v51, %v2091_v35  ;;  %v8181_v51 = vsub.s32 %v12954_v12, %v2091_v35  ;;  %v12958_v55 = vld [vmem:[#allocation29_spill] sm:$0xff]  ;;  %v12966_v12 = vld [vmem:[#allocation35_spill] sm:$0xff] }
 0x1dc   : > { %v8187_v28 = vsub.s32 %v12958_v55, %v2091_v35  ;;  %v8196_v52 = vsub.s32 %v12963_v53, %v2091_v35  ;;  %v8202_v57 = vsub.s32 %v12966_v12, %v2091_v35  ;;  %v12969_v55 = vld [vmem:[#allocation37_spill] sm:$0xff]  ;;  %vm2220_vm15 = vcmp.eq.s32.totalorder %v8079_v31, 17 }
 0x1dd   : > { %12955 = vst [vmem:[#allocation61_spill] sm:$0xff] %v8181_v51  ;;  %v8208_v37 = vsub.s32 %v12969_v55, %v2091_v35  ;;  %vm2221_vm10 = vcmp.eq.s32.totalorder %v8092_v20, 17  ;;  %vm2223_vm12 = vcmp.eq.s32.totalorder %v8098_v3, 17  ;;  %vm2225_vm2 = vcmp.eq.s32.totalorder %v8111_v34, 17 }
 0x1de   : > { %12959 = vst [vmem:[#allocation62_spill] sm:$0xff] %v8187_v28  ;;  %12967 = vst [vmem:[#allocation65_spill] sm:$0xff] %v8202_v57  ;;  %vm2202_vm7 = vcmp.eq.s32.totalorder %v8148_v16, 16  ;;  %vm12981_vm11 = vcmp.eq.s32.totalorder %v8142_v17, 17 }
 0x1e4   : > { %v4066_v58 = vpop.eup %4065 }
 0x1e5   : > { %v2026_v2 = vsel %vm12918_vm13, %v4066_v58, 0.0  ;;  %v4068_v1 = vpop.eup %4067  ;;  %v8082_v58 = vtrunc.f32 %v2443_v7  ;;  %vm2082_vm13 = vmand %vm8106_vm1, %vm8121_vm4  ;;  %vm2196_vm1 = vcmp.eq.s32.totalorder %v8126_v61, 16 }
 0x1e6   : > { %v2027_v49 = vrot.slane %v2026_v2, 4 }
 0x1e8   : > { %v2028_v41 = vadd.f32 %v2027_v49, %v2026_v2  ;;  %v8084_v2 = vcvt.f32.s32 %v3981_v45  ;;  %v12952_v45 = vld [vmem:[#allocation26_spill] sm:$0xff] }
 0x1ea   : > { %v2029_v27 = vrot.slane %v2028_v41, 2  ;;  %12926 = vst [vmem:[#allocation89_spill] sm:$0xff] %v8084_v2 }
 0x1ec   : > { %v2030_v48 = vadd.f32 %v2029_v27, %v2028_v41  ;;  %v12930_v41 = vld [vmem:[#allocation8_spill] sm:$0xff]  ;;  %v12932_v27 = vld [vmem:[#allocation10_spill] sm:$0xff] }
 0x1ed   : > { %v8095_v14 = vsub.s32 %v12930_v41, %v2091_v35  ;;  %v8101_v46 = vsub.s32 %v12932_v27, %v2091_v35 }
 0x1ee   : > { %v2031_v6 = vrot.slane %v2030_v48, 1 }
 0x1ef   : > { %vm2222_vm9 = vcmp.eq.s32.totalorder %v8095_v14, 17  ;;  %vm2224_vm8 = vcmp.eq.s32.totalorder %v8101_v46, 17 }
 0x1f0   : > { %v2032_v50 = vadd.f32 %v2031_v6, %v2030_v48 }
 0x1f2   : > { %4069 = vrcp.f32 %v2032_v50  ;;  %v12943_v50 = vld [vmem:[#allocation17_spill] sm:$0xff] }
 0x1f3   : > { %4071 = vpow2.f32 %v2436_v13  ;;  %v8135_v18 = vsub.s32 %v12943_v50, %v2091_v35 }
 0x1ff   : > { %v8068_v5 = vpop.eup %4069 }
 0x200   : > { %12921 = vst [vmem:[#allocation85_spill] sm:$0xff] %v8068_v5  ;;  %v2045_v0 = vmul.f32 %v8068_v5, %v4068_v1  ;;  %v8178_v1 = vsub.s32 %v12952_v45, %v2091_v35  ;;  %v12964_v45 = vld [vmem:[#allocation34_spill] sm:$0xff]  ;;  %v4072_v49 = vpop.eup %4071 }
 0x201   : > { %v8199_v60 = vsub.s32 %v12964_v45, %v2091_v35 }
 0x202   : > { %v2072_v19 = vmul.f32 %v2071_v42, %v2045_v0  ;;  %v2076_v25 = vmul.f32 %v2075_v36, %v2045_v0  ;;  %v2080_v13 = vmul.f32 %v2079_v30, %v2045_v0  ;;  %v2084_v7 = vmul.f32 %v2083_v26, %v2045_v0  ;;  %12953 = vst [vmem:[#allocation66_spill] sm:$0xff] %v8178_v1  ;;  %v12956_v42 = vld [vmem:[#allocation28_spill] sm:$0xff]  ;;  %v12962_v26 = vld [vmem:[#allocation31_spill] sm:$0xff] }
 0x203   : > { %v8184_v36 = vsub.s32 %v12956_v42, %v2091_v35  ;;  %v8190_v30 = vsub.s32 %v12960_v23, %v2091_v35  ;;  %v8193_v0 = vsub.s32 %v12962_v26, %v2091_v35  ;;  %12965 = vst [vmem:[#allocation64_spill] sm:$0xff] %v8199_v60  ;;  %v12968_v42 = vld [vmem:[#allocation36_spill] sm:$0xff]  ;;  %v12970_v23 = vld [vmem:[#allocation38_spill] sm:$0xff]  ;;  %vm12989_vm0 = vcmp.eq.s32.totalorder %v8178_v1, 17 }
 0x204   : > { %v8205_v50 = vsub.s32 %v12968_v42, %v2091_v35  ;;  %v8211_v56 = vsub.s32 %v12970_v23, %v2091_v35  ;;  %v2073_v53 = vsel %vm2070_vm3, %v2072_v19, 0.0  ;;  %v2077_v12 = vsel %vm2074_vm6, %v2076_v25, 0.0 }
 0x205   : > { %12957 = vst [vmem:[#allocation52_spill] sm:$0xff] %v8184_v36  ;;  %12961 = vst [vmem:[#allocation63_spill] sm:$0xff] %v8190_v30  ;;  %v2081_v55 = vsel %vm2078_vm5, %v2080_v13, 0.0  ;;  %v2085_v35 = vsel %vm2082_vm13, %v2084_v7, 0.0  ;;  %vm2245_vm14 = vcmp.eq.s32.totalorder %v8193_v0, 17  ;;  %vm2248_vm6 = vcmp.eq.s32.totalorder %v8202_v57, 17 }
 0x206   : > { %vm2249_vm5 = vcmp.eq.s32.totalorder %v8205_v50, 17  ;;  %vm2250_vm13 = vcmp.eq.s32.totalorder %v8208_v37, 17  ;;  %v8270_v63 = vrot.slane %v2085_v35, %v12920_v10  ;;  %vm2251_vm4 = vcmp.eq.s32.totalorder %v8211_v56, 17 }
 0x207   : > { %v8278_v48 = vrot.slane %v2081_v55, %v12920_v10  ;;  %v8281_v6 = vrot.slane %v2077_v12, %v12920_v10  ;;  %v8284_v19 = vrot.slane %v2073_v53, %v12920_v10  ;;  %v8296_v55 = vmul.f32 %v4072_v49, %v8068_v5 }
 0x208   : > { %v8293_v25 = vsel %vm2220_vm15, %v8270_v63, 0.0  ;;  %v8300_v53 = vcvt.f32.s32 %v8082_v58  ;;  %vm2201_vm3 = vcmp.eq.s32.totalorder %v8145_v11, 16  ;;  %v8309_v13 = vsel %vm2221_vm10, %v8270_v63, 0.0 }
 0x209   : > { %12971 = vst [vmem:[#allocation55_spill] sm:$0xff] %v8281_v6  ;;  %12972 = vst [vmem:[#allocation49_spill] sm:$0xff] %v8284_v19  ;;  %v8314_v7 = vsel %vm2222_vm9, %v8270_v63, 0.0  ;;  %v8319_v58 = vsel %vm2223_vm12, %v8270_v63, 0.0  ;;  %v8324_v35 = vsel %vm2224_vm8, %v8270_v63, 0.0  ;;  %vm2205_vm15 = vcmp.eq.s32.totalorder %v8161_v33, 16 }
 0x20a   : > { %12973 = vst [vmem:[#allocation51_spill] sm:$0xff] %v8296_v55  ;;  %12974 = vst [vmem:[#allocation54_spill] sm:$0xff] %v8300_v53  ;;  %v8333_v49 = vsel %vm2225_vm2, %v8270_v63, 0.0  ;;  %vm12975_vm9 = vcmp.eq.s32.totalorder %v8114_v21, 17  ;;  %vm12976_vm12 = vcmp.eq.s32.totalorder %v8117_v39, 17  ;;  %vm12977_vm8 = vcmp.eq.s32.totalorder %v8126_v61, 17 }
 0x20b   : > { %v8338_v12 = vsel %vm12975_vm9, %v8270_v63, 0.0  ;;  %v8343_v5 = vsel %vm12976_vm12, %v8270_v63, 0.0  ;;  %v8348_v23 = vsel %vm12977_vm8, %v8270_v63, 0.0  ;;  %vm12978_vm9 = vcmp.eq.s32.totalorder %v8129_v9, 17 }
 0x20c   : > { %v8357_v42 = vsel %vm12978_vm9, %v8270_v63, 0.0  ;;  %vm12979_vm12 = vcmp.eq.s32.totalorder %v8132_v24, 17  ;;  %vm12980_vm8 = vcmp.eq.s32.totalorder %v8135_v18, 17  ;;  %v8372_v62 = vsel %vm12981_vm11, %v8270_v63, 0.0 }
 0x20d   : > { %v8362_v45 = vsel %vm12979_vm12, %v8270_v63, 0.0  ;;  %v8367_v26 = vsel %vm12980_vm8, %v8270_v63, 0.0  ;;  %vm12982_vm12 = vcmp.eq.s32.totalorder %v8145_v11, 17  ;;  %vm12983_vm8 = vcmp.eq.s32.totalorder %v8148_v16, 17 }
 0x20e   : > { %v8381_v8 = vsel %vm12982_vm12, %v8270_v63, 0.0  ;;  %v8386_v38 = vsel %vm12983_vm8, %v8270_v63, 0.0  ;;  %vm12984_vm11 = vcmp.eq.s32.totalorder %v8151_v59, 17  ;;  %vm12985_vm2 = vcmp.eq.s32.totalorder %v8158_v15, 17 }
 0x20f   : > { %v8391_v40 = vsel %vm12984_vm11, %v8270_v63, 0.0  ;;  %v8396_v27 = vsel %vm12985_vm2, %v8270_v63, 0.0  ;;  %vm12986_vm8 = vcmp.eq.s32.totalorder %v8161_v33, 17  ;;  %vm12987_vm11 = vcmp.eq.s32.totalorder %v8164_v44, 17 }
 0x210   : > { %v8405_v22 = vsel %vm12986_vm8, %v8270_v63, 0.0  ;;  %v8410_v41 = vsel %vm12987_vm11, %v8270_v63, 0.0  ;;  %vm12988_vm2 = vcmp.eq.s32.totalorder %v8167_v32, 17  ;;  %v8420_v54 = vsel %vm12989_vm0, %v8270_v63, 0.0 }
 0x211   : > { %v8415_v47 = vsel %vm12988_vm2, %v8270_v63, 0.0  ;;  %vm12990_vm11 = vcmp.eq.s32.totalorder %v8181_v51, 17  ;;  %vm12991_vm2 = vcmp.eq.s32.totalorder %v8184_v36, 17  ;;  %vm12992_vm0 = vcmp.eq.s32.totalorder %v8187_v28, 17 }
 0x212   : > { %v8429_v10 = vsel %vm12990_vm11, %v8270_v63, 0.0  ;;  %v8434_v55 = vsel %vm12991_vm2, %v8270_v63, 0.0  ;;  %v8439_v4 = vsel %vm12992_vm0, %v8270_v63, 0.0  ;;  %vm12993_vm9 = vcmp.eq.s32.totalorder %v8190_v30, 17 }
 0x213   : > { %v8444_v29 = vsel %vm12993_vm9, %v8270_v63, 0.0  ;;  %vm2161_vm12 = vcmp.eq.s32.totalorder %v8111_v34, 1  ;;  %vm2162_vm11 = vcmp.eq.s32.totalorder %v8114_v21, 1  ;;  %v8453_v43 = vsel %vm2245_vm14, %v8270_v63, 0.0 }
 0x214   : > { %12994 = vst [vmem:[#allocation83_spill] sm:$0xff] %v8444_v29  ;;  %12995 = vst [vmem:[#allocation78_spill] sm:$0xff] %v8453_v43  ;;  %vm12996_vm2 = vcmp.eq.s32.totalorder %v8196_v52, 17  ;;  %vm12998_vm9 = vcmp.eq.s32.totalorder %v8199_v60, 17  ;;  %v8468_v19 = vsel %vm2248_vm6, %v8270_v63, 0.0  ;;  %vm2165_vm0 = vcmp.eq.s32.totalorder %v8129_v9, 1 }
 0x215   : > { %v8458_v2 = vsel %vm12996_vm2, %v8270_v63, 0.0  ;;  %v8463_v53 = vsel %vm12998_vm9, %v8270_v63, 0.0  ;;  %13000 = vst [vmem:[#allocation87_spill] sm:$0xff] %v8468_v19  ;;  %vm2166_vm14 = vcmp.eq.s32.totalorder %v8132_v24, 1  ;;  %vm2167_vm10 = vcmp.eq.s32.totalorder %v8135_v18, 1 }
 0x216   : > { %12997 = vst [vmem:[#allocation79_spill] sm:$0xff] %v8458_v2  ;;  %12999 = vst [vmem:[#allocation86_spill] sm:$0xff] %v8463_v53  ;;  %v2285_v6 = vsel %vm2249_vm5, %v8270_v63, 0.0  ;;  %v2286_v53 = vsel %vm2250_vm13, %v8270_v63, 0.0  ;;  %v2287_v19 = vsel %vm2251_vm4, %v8270_v63, 0.0  ;;  %vm13001_vm6 = vcmp.eq.s32.totalorder %v8079_v31, 16 }
 0x217   : > { %v2292_v2 = vsel %vm13001_vm6, %v8278_v48, %v8293_v25  ;;  %vm13002_vm13 = vcmp.eq.s32.totalorder %v8092_v20, 16  ;;  %vm13003_vm4 = vcmp.eq.s32.totalorder %v8095_v14, 16  ;;  %vm13004_vm6 = vcmp.eq.s32.totalorder %v8098_v3, 16 }
 0x218   : > { %v2293_v43 = vsel %vm13002_vm13, %v8278_v48, %v8309_v13  ;;  %v2294_v63 = vsel %vm13003_vm4, %v8278_v48, %v8314_v7  ;;  %v2295_v25 = vsel %vm13004_vm6, %v8278_v48, %v8319_v58  ;;  %vm13005_vm8 = vcmp.eq.s32.totalorder %v8101_v46, 16 }
 0x219   : > { %v2296_v29 = vsel %vm13005_vm8, %v8278_v48, %v8324_v35  ;;  %vm2173_vm5 = vcmp.eq.s32.totalorder %v8161_v33, 1  ;;  %vm13006_vm4 = vcmp.eq.s32.totalorder %v8111_v34, 16  ;;  %vm13007_vm6 = vcmp.eq.s32.totalorder %v8114_v21, 16 }
 0x21a   : > { %v2297_v13 = vsel %vm13006_vm4, %v8278_v48, %v8333_v49  ;;  %v2298_v7 = vsel %vm13007_vm6, %v8278_v48, %v8338_v12  ;;  %vm13008_vm8 = vcmp.eq.s32.totalorder %v8117_v39, 16  ;;  %v2300_v35 = vsel %vm2196_vm1, %v8278_v48, %v8348_v23 }
 0x21b   : > { %v2299_v58 = vsel %vm13008_vm8, %v8278_v48, %v8343_v5  ;;  %vm13009_vm6 = vcmp.eq.s32.totalorder %v8129_v9, 16  ;;  %vm13010_vm8 = vcmp.eq.s32.totalorder %v8132_v24, 16  ;;  %vm13011_vm1 = vcmp.eq.s32.totalorder %v8135_v18, 16 }
 0x21c   : > { %v2301_v12 = vsel %vm13009_vm6, %v8278_v48, %v8357_v42  ;;  %v2302_v5 = vsel %vm13010_vm8, %v8278_v48, %v8362_v45  ;;  %v2303_v23 = vsel %vm13011_vm1, %v8278_v48, %v8367_v26  ;;  %vm13012_vm4 = vcmp.eq.s32.totalorder %v8142_v17, 16 }
 0x21d   : > { %v2304_v49 = vsel %vm13012_vm4, %v8278_v48, %v8372_v62  ;;  %vm2181_vm9 = vcmp.eq.s32.totalorder %v8193_v0, 1  ;;  %vm2182_vm13 = vcmp.eq.s32.totalorder %v8196_v52, 1  ;;  %v2305_v45 = vsel %vm2201_vm3, %v8278_v48, %v8381_v8 }
 0x21e   : > { %v2306_v42 = vsel %vm2202_vm7, %v8278_v48, %v8386_v38  ;;  %vm13013_vm4 = vcmp.eq.s32.totalorder %v8151_v59, 16  ;;  %vm13014_vm8 = vcmp.eq.s32.totalorder %v8158_v15, 16  ;;  %vm2185_vm2 = vcmp.eq.s32.totalorder %v8205_v50, 1 }
 0x21f   : > { %v2307_v62 = vsel %vm13013_vm4, %v8278_v48, %v8391_v40  ;;  %v2308_v26 = vsel %vm13014_vm8, %v8278_v48, %v8396_v27  ;;  %v2309_v38 = vsel %vm2205_vm15, %v8278_v48, %v8405_v22  ;;  %vm13015_vm7 = vcmp.eq.s32.totalorder %v8164_v44, 16  ;;  %v13021_v22 = vld [vmem:[#allocation83_spill] sm:$0xff] }
 0x220   : > { %v2310_v40 = vsel %vm13015_vm7, %v8278_v48, %v8410_v41  ;;  %vm13016_vm4 = vcmp.eq.s32.totalorder %v8167_v32, 16  ;;  %vm13017_vm8 = vcmp.eq.s32.totalorder %v8178_v1, 16  ;;  %vm13018_vm7 = vcmp.eq.s32.totalorder %v8181_v51, 16 }
 0x221   : > { %v2311_v27 = vsel %vm13016_vm4, %v8278_v48, %v8415_v47  ;;  %v2312_v8 = vsel %vm13017_vm8, %v8278_v48, %v8420_v54  ;;  %v2313_v41 = vsel %vm13018_vm7, %v8278_v48, %v8429_v10  ;;  %vm13019_vm4 = vcmp.eq.s32.totalorder %v8184_v36, 16  ;;  %v13023_v10 = vld [vmem:[#allocation78_spill] sm:$0xff] }
 0x222   : > { %v2314_v47 = vsel %vm13019_vm4, %v8278_v48, %v8434_v55  ;;  %vm13020_vm8 = vcmp.eq.s32.totalorder %v8187_v28, 16  ;;  %vm13022_vm15 = vcmp.eq.s32.totalorder %v8190_v30, 16  ;;  %vm13024_vm7 = vcmp.eq.s32.totalorder %v8193_v0, 16  ;;  %v13025_v55 = vld [vmem:[#allocation79_spill] sm:$0xff] }
 0x223   : > { %v2315_v54 = vsel %vm13020_vm8, %v8278_v48, %v8439_v4  ;;  %v2316_v1 = vsel %vm13022_vm15, %v8278_v48, %v13021_v22  ;;  %v2317_v36 = vsel %vm13024_vm7, %v8278_v48, %v13023_v10  ;;  %vm13026_vm4 = vcmp.eq.s32.totalorder %v8196_v52, 16  ;;  %v13027_v4 = vld [vmem:[#allocation86_spill] sm:$0xff]  ;;  %v13029_v22 = vld [vmem:[#allocation87_spill] sm:$0xff] }
 0x224   : > { %v2318_v28 = vsel %vm13026_vm4, %v8278_v48, %v13025_v55  ;;  %vm13028_vm8 = vcmp.eq.s32.totalorder %v8199_v60, 16  ;;  %vm13030_vm15 = vcmp.eq.s32.totalorder %v8202_v57, 16  ;;  %vm2131_vm6 = vcmp.eq.s32.totalorder %v8117_v39, 0  ;;  %v13034_v60 = vld [vmem:[#allocation55_spill] sm:$0xff] }
 0x225   : > { %v2319_v30 = vsel %vm13028_vm8, %v8278_v48, %v13027_v4  ;;  %v2320_v51 = vsel %vm13030_vm15, %v8278_v48, %v13029_v22  ;;  %vm13031_vm7 = vcmp.eq.s32.totalorder %v8205_v50, 16  ;;  %vm13032_vm4 = vcmp.eq.s32.totalorder %v8208_v37, 16 }
 0x226   : > { %v2321_v10 = vsel %vm13031_vm7, %v8278_v48, %v2285_v6  ;;  %v2322_v55 = vsel %vm13032_vm4, %v8278_v48, %v2286_v53  ;;  %vm13033_vm8 = vcmp.eq.s32.totalorder %v8211_v56, 16  ;;  %vm13035_vm1 = vcmp.eq.s32.totalorder %v8079_v31, 1 }
 0x227   : > { %v2323_v4 = vsel %vm13033_vm8, %v8278_v48, %v2287_v19  ;;  %v2328_v22 = vsel %vm13035_vm1, %v13034_v60, %v2292_v2  ;;  %vm2133_vm15 = vcmp.eq.s32.totalorder %v8129_v9, 0  ;;  %vm13036_vm3 = vcmp.eq.s32.totalorder %v8092_v20, 1 }
 0x228   : > { %v2329_v57 = vsel %vm13036_vm3, %v13034_v60, %v2293_v43  ;;  %vm13037_vm7 = vcmp.eq.s32.totalorder %v8095_v14, 1  ;;  %vm13038_vm4 = vcmp.eq.s32.totalorder %v8098_v3, 1  ;;  %vm13039_vm8 = vcmp.eq.s32.totalorder %v8101_v46, 1 }
 0x229   : > { %v2330_v6 = vsel %vm13037_vm7, %v13034_v60, %v2294_v63  ;;  %v2331_v53 = vsel %vm13038_vm4, %v13034_v60, %v2295_v25  ;;  %v2332_v48 = vsel %vm13039_vm8, %v13034_v60, %v2296_v29  ;;  %v2333_v2 = vsel %vm2161_vm12, %v13034_v60, %v2297_v13 }
 0x22a   : > { %v2334_v43 = vsel %vm2162_vm11, %v13034_v60, %v2298_v7  ;;  %vm13040_vm3 = vcmp.eq.s32.totalorder %v8117_v39, 1  ;;  %vm13041_vm7 = vcmp.eq.s32.totalorder %v8126_v61, 1  ;;  %vm2135_vm4 = vcmp.eq.s32.totalorder %v8135_v18, 0 }
 0x22b   : > { %v2335_v19 = vsel %vm13040_vm3, %v13034_v60, %v2299_v58  ;;  %v2336_v63 = vsel %vm13041_vm7, %v13034_v60, %v2300_v35  ;;  %vm2136_vm8 = vcmp.eq.s32.totalorder %v8142_v17, 0  ;;  %vm2137_vm1 = vcmp.eq.s32.totalorder %v8145_v11, 0 }
 0x22c   : > { %vm2138_vm12 = vcmp.eq.s32.totalorder %v8148_v16, 0  ;;  %v2337_v29 = vsel %vm2165_vm0, %v13034_v60, %v2301_v12  ;;  %v2338_v25 = vsel %vm2166_vm14, %v13034_v60, %v2302_v5  ;;  %v8678_v13 = vsel %vm2167_vm10, %v13034_v60, %v2303_v23 }
 0x22d   : > { %vm13042_vm11 = vcmp.eq.s32.totalorder %v8142_v17, 1  ;;  %vm13043_vm0 = vcmp.eq.s32.totalorder %v8145_v11, 1  ;;  %vm13044_vm14 = vcmp.eq.s32.totalorder %v8148_v16, 1  ;;  %vm13045_vm10 = vcmp.eq.s32.totalorder %v8151_v59, 1 }
 0x22e   : > { %v8683_v7 = vsel %vm13042_vm11, %v13034_v60, %v2304_v49  ;;  %v8690_v58 = vsel %vm13043_vm0, %v13034_v60, %v2305_v45  ;;  %v8695_v35 = vsel %vm13044_vm14, %v13034_v60, %v2306_v42  ;;  %v8700_v12 = vsel %vm13045_vm10, %v13034_v60, %v2307_v62  ;;  %v13051_v42 = vld [vmem:[#allocation66_spill] sm:$0xff] }
 0x22f   : > { %vm13046_vm11 = vcmp.eq.s32.totalorder %v8158_v15, 1  ;;  %v8710_v23 = vsel %vm2173_vm5, %v13034_v60, %v2309_v38  ;;  %vm13047_vm0 = vcmp.eq.s32.totalorder %v8164_v44, 1  ;;  %vm13049_vm14 = vcmp.eq.s32.totalorder %v8167_v32, 1 }
 0x230   : > { %v8705_v5 = vsel %vm13046_vm11, %v13034_v60, %v2308_v26  ;;  %v8715_v49 = vsel %vm13047_vm0, %v13034_v60, %v2310_v40  ;;  %v8720_v45 = vsel %vm13049_vm14, %v13034_v60, %v2311_v27  ;;  %vm13052_vm10 = vcmp.eq.s32.totalorder %v13051_v42, 1  ;;  %v13054_v26 = vld [vmem:[#allocation61_spill] sm:$0xff]  ;;  %v13056_v40 = vld [vmem:[#allocation52_spill] sm:$0xff]  ;;  %v13058_v27 = vld [vmem:[#allocation62_spill] sm:$0xff] }
 0x231   : > { %13048 = vst [vmem:[#allocation43_spill] sm:$0xff] %v8715_v49  ;;  %13050 = vst [vmem:[#allocation33_spill] sm:$0xff] %v8720_v45  ;;  %v8725_v62 = vsel %vm13052_vm10, %v13034_v60, %v2312_v8  ;;  %vm13055_vm7 = vcmp.eq.s32.totalorder %v13054_v26, 1  ;;  %vm13057_vm0 = vcmp.eq.s32.totalorder %v13056_v40, 1  ;;  %vm13059_vm14 = vcmp.eq.s32.totalorder %v13058_v27, 1  ;;  %v13061_v8 = vld [vmem:[#allocation63_spill] sm:$0xff] }
 0x232   : > { %13053 = vst [vmem:[#allocation72_spill] sm:$0xff] %v8725_v62  ;;  %v8732_v38 = vsel %vm13055_vm7, %v13034_v60, %v2313_v41  ;;  %v8737_v49 = vsel %vm13057_vm0, %v13034_v60, %v2314_v47  ;;  %v8742_v45 = vsel %vm13059_vm14, %v13034_v60, %v2315_v54  ;;  %vm13062_vm10 = vcmp.eq.s32.totalorder %v13061_v8, 1 }
 0x233   : > { %13060 = vst [vmem:[#allocation82_spill] sm:$0xff] %v8742_v45  ;;  %v8747_v62 = vsel %vm13062_vm10, %v13034_v60, %v2316_v1  ;;  %vm2143_vm5 = vcmp.eq.s32.totalorder %v8167_v32, 0  ;;  %vm2144_vm7 = vcmp.eq.s32.totalorder %v13051_v42, 0  ;;  %v8756_v41 = vsel %vm2181_vm9, %v13034_v60, %v2317_v36  ;;  %v13064_v1 = vld [vmem:[#allocation64_spill] sm:$0xff] }
 0x234   : > { %13063 = vst [vmem:[#allocation76_spill] sm:$0xff] %v8747_v62  ;;  %v8761_v47 = vsel %vm2182_vm13, %v13034_v60, %v2318_v28  ;;  %vm13065_vm0 = vcmp.eq.s32.totalorder %v13064_v1, 1  ;;  %v13066_v62 = vld [vmem:[#allocation65_spill] sm:$0xff]  ;;  %v8778_v36 = vsel %vm2185_vm2, %v13034_v60, %v2321_v10  ;;  %vm13069_vm13 = vcmp.eq.s32.totalorder %v8208_v37, 1 }
 0x235   : > { %v8766_v54 = vsel %vm13065_vm0, %v13034_v60, %v2319_v30  ;;  %vm13067_vm14 = vcmp.eq.s32.totalorder %v13066_v62, 1  ;;  %v8783_v28 = vsel %vm13069_vm13, %v13034_v60, %v2322_v55  ;;  %vm13070_vm0 = vcmp.eq.s32.totalorder %v8211_v56, 1 }
 0x236   : > { %v8771_v45 = vsel %vm13067_vm14, %v13034_v60, %v2320_v51  ;;  %v8788_v30 = vsel %vm13070_vm0, %v13034_v60, %v2323_v4  ;;  %v13071_v51 = vld [vmem:[#allocation49_spill] sm:$0xff]  ;;  %vm13072_vm14 = vcmp.eq.s32.totalorder %v8079_v31, 0  ;;  %vm13074_vm9 = vcmp.eq.s32.totalorder %v8092_v20, 0 }
 0x237   : > { %13068 = vst [vmem:[#allocation77_spill] sm:$0xff] %v8771_v45  ;;  %v8793_v45 = vsel %vm13072_vm14, %v13071_v51, %v2328_v22  ;;  %v8798_v10 = vsel %vm13074_vm9, %v13071_v51, %v2329_v57  ;;  %vm13076_vm2 = vcmp.eq.s32.totalorder %v8095_v14, 0  ;;  %vm13078_vm13 = vcmp.eq.s32.totalorder %v8098_v3, 0  ;;  %v13086_v3 = vld [vmem:[#allocation54_spill] sm:$0xff]  ;;  %v2827_v57 = vld [vmem:[%s4242_s11 + $0x16] sm:$0x1] }
 0x238   : > { %13073 = vst [vmem:[#allocation84_spill] sm:$0xff] %v8793_v45  ;;  %13075 = vst [vmem:[#allocation5_spill] sm:$0xff] %v8798_v10  ;;  %v8803_v55 = vsel %vm13076_vm2, %v13071_v51, %v2330_v6  ;;  %v8808_v60 = vsel %vm13078_vm13, %v13071_v51, %v2331_v53  ;;  %vm13080_vm0 = vcmp.eq.s32.totalorder %v8101_v46, 0  ;;  %vm13082_vm10 = vcmp.eq.s32.totalorder %v8111_v34, 0  ;;  %v13094_v22 = vld [vmem:[#allocation81_spill] sm:$0xff] }
 0x239   : > { %13077 = vst [vmem:[#allocation56_spill] sm:$0xff] %v8803_v55  ;;  %13079 = vst [vmem:[#allocation94_spill] sm:$0xff] %v8808_v60  ;;  %v8813_v31 = vsel %vm13080_vm0, %v13071_v51, %v2332_v48  ;;  %v8820_v20 = vsel %vm13082_vm10, %v13071_v51, %v2333_v2  ;;  %vm13084_vm2 = vcmp.eq.s32.totalorder %v8114_v21, 0  ;;  %vm2451_vm13 = vcmp.ge.s32.totalorder %v13086_v3, 0  ;;  %v13090_v21 = vld [vmem:[#allocation89_spill] sm:$0xff] }
 0x23a   : > { %13081 = vst [vmem:[#allocation95_spill] sm:$0xff] %v8813_v31  ;;  %13083 = vst [vmem:[#allocation44_spill] sm:$0xff] %v8820_v20  ;;  %v8825_v14 = vsel %vm13084_vm2, %v13071_v51, %v2334_v43  ;;  %vm2452_vm0 = vcmp.lt.s32.totalorder %v13086_v3, 16  ;;  %v8836_v46 = vsel %vm2131_vm6, %v13071_v51, %v2335_v19  ;;  %vm13088_vm2 = vcmp.eq.s32.totalorder %v8126_v61, 0  ;;  %v13092_v61 = vld [vmem:[#allocation88_spill] sm:$0xff]  ;;  %v13131_v32 = vld [vmem:[#allocation82_spill] sm:$0xff] }
 0x23b   : > { %13085 = vst [vmem:[#allocation50_spill] sm:$0xff] %v8825_v14  ;;  %13087 = vst [vmem:[#allocation45_spill] sm:$0xff] %v8836_v46  ;;  %v8841_v34 = vsel %vm13088_vm2, %v13071_v51, %v2336_v63  ;;  %vm2457_vm11 = vcmp.ge.s32.totalorder %v13090_v21, 0  ;;  %vm2458_vm9 = vcmp.lt.s32.totalorder %v13090_v21, 16  ;;  %v8850_v39 = vsel %vm2133_vm15, %v13071_v51, %v2337_v29  ;;  %v2821_v48 = vld [vmem:[%s4253_s21 + $0xc] sm:$0x1] }
 0x23c   : > { %13089 = vst [vmem:[#allocation48_spill] sm:$0xff] %v8841_v34  ;;  %13091 = vst [vmem:[#allocation47_spill] sm:$0xff] %v8850_v39  ;;  %vm2454_vm6 = vcmp.ge.s32.totalorder %v13086_v3, 4294967295  ;;  %vm2455_vm10 = vcmp.lt.s32.totalorder %v13086_v3, 15  ;;  %v13093_v4 = vsub.f32 1.0, %v13092_v61  ;;  %v13095_v6 = vsub.f32 1.0, %v13094_v22 }
 0x23d   : > { %v2822_v2 = vld [vmem:[%s4242_s11 + $0xc] sm:$0x1]  ;;  %vm13096_vm2 = vcmp.eq.s32.totalorder %v8132_v24, 0  ;;  %vm8869_vm15 = vmand %vm2451_vm13, %vm2452_vm0  ;;  %vm2460_vm3 = vcmp.ge.s32.totalorder %v13090_v21, 4294967295  ;;  %vm2461_vm14 = vcmp.lt.s32.totalorder %v13090_v21, 15  ;;  %vm13127_vm13 = vcmp.eq.s32.totalorder %v13054_v26, 0 }
 0x23e   : > { %v2464_v53 = vmul.f32 %v13095_v6, %v13093_v4  ;;  %v8863_v43 = vsel %vm13096_vm2, %v13071_v51, %v2338_v25  ;;  %v13100_v19 = vmov %v13095_v6  ;;  %v2824_v29 = vld [vmem:[%s4253_s21 + $0xd] sm:$0x1]  ;;  %v8884_v25 = vsel %vm2135_vm4, %v13071_v51, %v8678_v13  ;;  %vm8908_vm4 = vmand %vm2457_vm11, %vm2458_vm9 }
 0x23f   : > { %13097 = vst [vmem:[#allocation93_spill] sm:$0xff] %v8863_v43  ;;  %v2468_v63 = vmul.f32 %v13100_v19, %v13092_v61  ;;  %v2825_v24 = vld [vmem:[%s4242_s11 + $0xd] sm:$0x1]  ;;  %13101 = vst [vmem:[#allocation75_spill] sm:$0xff] %v8884_v25  ;;  %v8890_v4 = vsel %vm2136_vm8, %v13071_v51, %v8683_v7  ;;  %v8896_v6 = vsel %vm2137_vm1, %v13071_v51, %v8690_v58  ;;  %vm13107_vm8 = vcmp.eq.s32.totalorder %v8151_v59, 0  ;;  %v13113_v7 = vld [vmem:[#allocation74_spill] sm:$0xff] }
 0x240   : > { %13102 = vst [vmem:[#allocation57_spill] sm:$0xff] %v8890_v4  ;;  %13103 = vst [vmem:[#allocation70_spill] sm:$0xff] %v8896_v6  ;;  %v8902_v19 = vsel %vm2138_vm12, %v13071_v51, %v8695_v35  ;;  %v8916_v17 = vsel %vm13107_vm8, %v13071_v51, %v8700_v12  ;;  %vm13109_vm1 = vcmp.eq.s32.totalorder %v8158_v15, 0  ;;  %v2479_v13 = vmul.u32 16, %v13090_v21  ;;  %v13116_v15 = vld [vmem:[#allocation51_spill] sm:$0xff]  ;;  %v13134_v26 = vld [vmem:[#allocation76_spill] sm:$0xff] }
 0x241   : > { %13104 = vst [vmem:[#allocation71_spill] sm:$0xff] %v8902_v19  ;;  %13108 = vst [vmem:[#allocation46_spill] sm:$0xff] %v8916_v17  ;;  %v8922_v11 = vsel %vm13109_vm1, %v13071_v51, %v8705_v5  ;;  %v2828_v59 = vsub.f32 %v2827_v57, %v13113_v7  ;;  %v2465_v35 = vmul.f32 %v2464_v53, %v13116_v15  ;;  %v13117_v12 = vsub.f32 1.0, %v13092_v61  ;;  %v13120_v57 = vld [vmem:[#allocation43_spill] sm:$0xff]  ;;  %v13160_v58 = vld [vmem:[#allocation9_spill] sm:$0xff] }
 0x242   : > { %13110 = vst [vmem:[#allocation59_spill] sm:$0xff] %v8922_v11  ;;  %vm8928_vm12 = vmand %vm2454_vm6, %vm2455_vm10  ;;  %v2823_v11 = vadd.f32 %v2822_v2, %v2821_v48  ;;  %v2826_v17 = vadd.f32 %v2825_v24, %v2824_v29  ;;  %vm13118_vm9 = vcmp.eq.s32.totalorder %v8161_v33, 0  ;;  %v2469_v53 = vmul.f32 %v2468_v63, %v13116_v15  ;;  %v13123_v2 = vld [vmem:[#allocation33_spill] sm:$0xff] }
 0x243   : > { %vm8936_vm11 = vmand %vm2460_vm3, %vm2461_vm14  ;;  %v2472_v5 = vmul.f32 %v13094_v22, %v13117_v12  ;;  %v8948_v19 = vsel %vm13118_vm9, %v13071_v51, %v8710_v23  ;;  %vm13121_vm3 = vcmp.eq.s32.totalorder %v8164_v44, 0  ;;  %v2476_v48 = vmul.f32 %v13094_v22, %v13092_v61  ;;  %v13125_v23 = vld [vmem:[#allocation72_spill] sm:$0xff] }
 0x244   : > { %13119 = vst [vmem:[#allocation73_spill] sm:$0xff] %v8948_v19  ;;  %v8954_v21 = vsel %vm13121_vm3, %v13071_v51, %v13120_v57  ;;  %vm2463_vm14 = vmand %vm8869_vm15, %vm8908_vm4  ;;  %v8967_v33 = vsel %vm2143_vm5, %v13071_v51, %v13123_v2  ;;  %v8973_v44 = vsel %vm2144_vm7, %v13071_v51, %v13125_v23  ;;  %v8979_v63 = vsel %vm13127_vm13, %v13071_v51, %v8732_v38  ;;  %v13162_v57 = vld [vmem:[#allocation11_spill] sm:$0xff]  ;;  %v13164_v23 = vld [vmem:[#allocation13_spill] sm:$0xff] }
 0x245   : > { %13122 = vst [vmem:[#allocation80_spill] sm:$0xff] %v8954_v21  ;;  %13124 = vst [vmem:[#allocation42_spill] sm:$0xff] %v8967_v33  ;;  %vm13129_vm0 = vcmp.eq.s32.totalorder %v13056_v40, 0  ;;  %vm13132_vm7 = vcmp.eq.s32.totalorder %v13058_v27, 0  ;;  %vm13135_vm10 = vcmp.eq.s32.totalorder %v13061_v8, 0  ;;  %v2466_v22 = vsel %vm2463_vm14, %v2465_v35, 0.0 }
 0x246   : > { %13126 = vst [vmem:[#allocation69_spill] sm:$0xff] %v8973_v44  ;;  %13128 = vst [vmem:[#allocation40_spill] sm:$0xff] %v8979_v63  ;;  %v8985_v61 = vsel %vm13129_vm0, %v13071_v51, %v8737_v49  ;;  %v8995_v42 = vsel %vm13132_vm7, %v13071_v51, %v13131_v32  ;;  %v9001_v38 = vsel %vm13135_vm10, %v13071_v51, %v13134_v26  ;;  %v2829_v40 = vmul.f32 1.442695, %v2828_v59  ;;  %v13161_v35 = vld [vmem:[#allocation10_spill] sm:$0xff] }
 0x247   : > { %13130 = vst [vmem:[#allocation58_spill] sm:$0xff] %v8985_v61  ;;  %vm2467_vm5 = vmand %vm8928_vm12, %vm8908_vm4  ;;  %v2480_v49 = vadd.s32 %v13086_v3, %v2479_v13  ;;  %v2473_v29 = vmul.f32 %v2472_v5, %v13116_v15  ;;  %v2832_v24 = vmul.f32 1.0666667, %v2826_v17  ;;  %v2834_v18 = vmul.f32 1.0666667, %v2823_v11  ;;  %v13159_v13 = vld [vmem:[#allocation8_spill] sm:$0xff] }
 0x248   : > { %13133 = vst [vmem:[#allocation91_spill] sm:$0xff] %v8995_v42  ;;  %13136 = vst [vmem:[#allocation67_spill] sm:$0xff] %v9001_v38  ;;  %vm13137_vm6 = vcmp.eq.s32.totalorder %v8193_v0, 0  ;;  %vm13139_vm2 = vcmp.eq.s32.totalorder %v8196_v52, 0  ;;  %v2470_v12 = vsel %vm2467_vm5, %v2469_v53, 0.0  ;;  %v2477_v3 = vmul.f32 %v2476_v48, %v13116_v15  ;;  %v13163_v48 = vld [vmem:[#allocation12_spill] sm:$0xff] }
 0x249   : > { %v9009_v27 = vsel %vm13137_vm6, %v13071_v51, %v8756_v41  ;;  %v9015_v8 = vsel %vm13139_vm2, %v13071_v51, %v8761_v47  ;;  %vm2471_vm4 = vmand %vm8869_vm15, %vm8936_vm11  ;;  %vm13141_vm8 = vcmp.eq.s32.totalorder %v13064_v1, 0  ;;  %v13143_v41 = vld [vmem:[#allocation77_spill] sm:$0xff]  ;;  %vm13144_vm1 = vcmp.eq.s32.totalorder %v13066_v62, 0  ;;  %v13165_v26 = vld [vmem:[#allocation14_spill] sm:$0xff] }
 0x24a   : > { %13138 = vst [vmem:[#allocation92_spill] sm:$0xff] %v9009_v27  ;;  %13140 = vst [vmem:[#allocation68_spill] sm:$0xff] %v9015_v8  ;;  %v9026_v0 = vsel %vm13141_vm8, %v13071_v51, %v8766_v54  ;;  %v9032_v52 = vsel %vm13144_vm1, %v13071_v51, %v13143_v41  ;;  %vm13146_vm9 = vcmp.eq.s32.totalorder %v8205_v50, 0  ;;  %vm13148_vm15 = vcmp.eq.s32.totalorder %v8208_v37, 0  ;;  %v13152_v50 = vld [vmem:[#allocation39_spill] sm:$0xff] }
 0x24b   : > { %13142 = vst [vmem:[#allocation53_spill] sm:$0xff] %v9026_v0  ;;  %13145 = vst [vmem:[#allocation60_spill] sm:$0xff] %v9032_v52  ;;  %v9038_v47 = vsel %vm13146_vm9, %v13071_v51, %v8778_v36  ;;  %v9044_v9 = vsel %vm13148_vm15, %v13071_v51, %v8783_v28  ;;  %vm13150_vm14 = vcmp.eq.s32.totalorder %v8211_v56, 0  ;;  %v2484_v1 = vrot.slane %v2480_v49, %v13152_v50  ;;  %v13157_v56 = vld [vmem:[#allocation6_spill] sm:$0xff] }
 0x24c   : > { %13147 = vst [vmem:[#allocation41_spill] sm:$0xff] %v9038_v47  ;;  %13149 = vst [vmem:[#allocation90_spill] sm:$0xff] %v9044_v9  ;;  %v9054_v62 = vsel %vm13150_vm14, %v13071_v51, %v8788_v30  ;;  %v9058_v54 = vrot.slane %v2466_v22, %v13152_v50  ;;  %4073 = vpow2.f32 %v2829_v40  ;;  %v9060_v37 = vsel %vm2471_vm4, %v2473_v29, 0.0  ;;  %v13158_v51 = vld [vmem:[#allocation7_spill] sm:$0xff]  ;;  %v13167_v29 = vld [vmem:[#allocation16_spill] sm:$0xff] }
 0x24d   : > { %vm2475_vm3 = vmand %vm8928_vm12, %vm8936_vm11  ;;  %13151 = vst [vmem:[#allocation83_spill] sm:$0xff] %v9054_v62  ;;  %v9063_v36 = vrot.slane %v2470_v12, %v13152_v50  ;;  %v9065_v28 = vadd.f32 -0.5, %v2832_v24  ;;  %v9067_v17 = vadd.f32 -0.5, %v2834_v18  ;;  %v9072_v30 = vsub.s32 %v13157_v56, %v2484_v1  ;;  %v13166_v40 = vld [vmem:[#allocation15_spill] sm:$0xff]  ;;  %v13168_v18 = vld [vmem:[#allocation17_spill] sm:$0xff] }
 0x24e   : > { %13153 = vst [vmem:[#allocation78_spill] sm:$0xff] %v9058_v54  ;;  %v9069_v11 = vsel %vm2475_vm3, %v2477_v3, 0.0  ;;  %v9075_v16 = vsub.s32 %v13158_v51, %v2484_v1  ;;  %v9078_v59 = vsub.s32 %v13159_v13, %v2484_v1  ;;  %v9081_v15 = vsub.s32 %v13160_v58, %v2484_v1  ;;  %v13170_v3 = vld [vmem:[#allocation18_spill] sm:$0xff] }
 0x24f   : > { %13154 = vst [vmem:[#allocation79_spill] sm:$0xff] %v9063_v36  ;;  %13155 = vst [vmem:[#allocation86_spill] sm:$0xff] %v9065_v28  ;;  %v9084_v5 = vsub.s32 %v13161_v35, %v2484_v1  ;;  %v9087_v53 = vsub.s32 %v13162_v57, %v2484_v1  ;;  %v9090_v2 = vsub.s32 %v13163_v48, %v2484_v1  ;;  %v13172_v48 = vld [vmem:[#allocation19_spill] sm:$0xff]  ;;  %vm2613_vm12 = vcmp.eq.s32.totalorder %v9072_v30, 17 }
 0x250   : > { %13156 = vst [vmem:[#allocation87_spill] sm:$0xff] %v9067_v17  ;;  %v9093_v32 = vsub.s32 %v13164_v23, %v2484_v1  ;;  %v9096_v49 = vsub.s32 %v13165_v26, %v2484_v1  ;;  %v9099_v22 = vsub.s32 %v13166_v40, %v2484_v1  ;;  %v9102_v24 = vsub.s32 %v13167_v29, %v2484_v1  ;;  %v13174_v23 = vld [vmem:[#allocation20_spill] sm:$0xff]  ;;  %v13176_v26 = vld [vmem:[#allocation21_spill] sm:$0xff]  ;;  %v13178_v40 = vld [vmem:[#allocation22_spill] sm:$0xff] }
 0x251   : > { %v9105_v12 = vsub.s32 %v13168_v18, %v2484_v1  ;;  %v9108_v41 = vsub.s32 %v13170_v3, %v2484_v1  ;;  %v9111_v57 = vsub.s32 %v13172_v48, %v2484_v1  ;;  %v9114_v35 = vsub.s32 %v13174_v23, %v2484_v1  ;;  %v13179_v29 = vld [vmem:[#allocation23_spill] sm:$0xff]  ;;  %v13180_v18 = vld [vmem:[#allocation24_spill] sm:$0xff]  ;;  %v13181_v3 = vld [vmem:[#allocation25_spill] sm:$0xff] }
 0x252   : > { %v9117_v58 = vsub.s32 %v13176_v26, %v2484_v1  ;;  %v9120_v13 = vsub.s32 %v13178_v40, %v2484_v1  ;;  %v9123_v51 = vsub.s32 %v13179_v29, %v2484_v1  ;;  %v9126_v56 = vsub.s32 %v13180_v18, %v2484_v1  ;;  %v13183_v48 = vld [vmem:[#allocation26_spill] sm:$0xff]  ;;  %v13184_v23 = vld [vmem:[#allocation27_spill] sm:$0xff]  ;;  %v13185_v26 = vld [vmem:[#allocation28_spill] sm:$0xff] }
 0x253   : > { %13169 = vst [vmem:[#allocation55_spill] sm:$0xff] %v9105_v12  ;;  %13171 = vst [vmem:[#allocation66_spill] sm:$0xff] %v9108_v41  ;;  %v9129_v62 = vsub.s32 %v13181_v3, %v2484_v1  ;;  %v9132_v9 = vsub.s32 %v13183_v48, %v2484_v1  ;;  %v9135_v47 = vsub.s32 %v13184_v23, %v2484_v1  ;;  %v13186_v40 = vld [vmem:[#allocation29_spill] sm:$0xff]  ;;  %v13187_v29 = vld [vmem:[#allocation30_spill] sm:$0xff]  ;;  %vm2614_vm11 = vcmp.eq.s32.totalorder %v9075_v16, 17 }
 0x254   : > { %13173 = vst [vmem:[#allocation61_spill] sm:$0xff] %v9111_v57  ;;  %13175 = vst [vmem:[#allocation52_spill] sm:$0xff] %v9114_v35  ;;  %v9138_v52 = vsub.s32 %v13185_v26, %v2484_v1  ;;  %v9141_v0 = vsub.s32 %v13186_v40, %v2484_v1  ;;  %v9144_v8 = vsub.s32 %v13187_v29, %v2484_v1  ;;  %v13188_v18 = vld [vmem:[#allocation31_spill] sm:$0xff]  ;;  %v13189_v3 = vld [vmem:[#allocation32_spill] sm:$0xff]  ;;  %vm2615_vm13 = vcmp.eq.s32.totalorder %v9078_v59, 17 }
 0x255   : > { %13177 = vst [vmem:[#allocation62_spill] sm:$0xff] %v9117_v58  ;;  %13182 = vst [vmem:[#allocation63_spill] sm:$0xff] %v9129_v62  ;;  %v9147_v27 = vsub.s32 %v13188_v18, %v2484_v1  ;;  %v9150_v38 = vsub.s32 %v13189_v3, %v2484_v1  ;;  %v13191_v48 = vld [vmem:[#allocation34_spill] sm:$0xff]  ;;  %v13192_v23 = vld [vmem:[#allocation35_spill] sm:$0xff]  ;;  %vm2616_vm0 = vcmp.eq.s32.totalorder %v9081_v15, 17  ;;  %vm2617_vm5 = vcmp.eq.s32.totalorder %v9084_v5, 17 }
 0x256   : > { %v9153_v42 = vsub.s32 %v13191_v48, %v2484_v1  ;;  %v9156_v61 = vsub.s32 %v13192_v23, %v2484_v1  ;;  %v13193_v26 = vld [vmem:[#allocation36_spill] sm:$0xff]  ;;  %v13194_v40 = vld [vmem:[#allocation37_spill] sm:$0xff]  ;;  %v13195_v29 = vld [vmem:[#allocation38_spill] sm:$0xff]  ;;  %vm2618_vm7 = vcmp.eq.s32.totalorder %v9087_v53, 17  ;;  %v9213_v48 = vrot.slane %v9069_v11, %v13152_v50 }
 0x257   : > { %13190 = vst [vmem:[#allocation64_spill] sm:$0xff] %v9150_v38  ;;  %v9159_v63 = vsub.s32 %v13193_v26, %v2484_v1  ;;  %v9162_v44 = vsub.s32 %v13194_v40, %v2484_v1  ;;  %v9165_v33 = vsub.s32 %v13195_v29, %v2484_v1  ;;  %v3214_v29 = vld [vmem:[%s4253_s21 + $0xe] sm:$0x1]  ;;  %v3217_v26 = vld [vmem:[%s4253_s21 + $0xf] sm:$0x1]  ;;  %v9217_v3 = vrot.slane %v9060_v37, %v13152_v50  ;;  %v13196_v18 = vld [vmem:[#allocation85_spill] sm:$0xff] }
 0x258   : > { %v3215_v40 = vld [vmem:[%s4242_s11 + $0xe] sm:$0x1]  ;;  %v3218_v23 = vld [vmem:[%s4242_s11 + $0xf] sm:$0x1]  ;;  %vm2640_vm15 = vcmp.eq.s32.totalorder %v9153_v42, 17  ;;  %vm2641_vm10 = vcmp.eq.s32.totalorder %v9156_v61, 17 }
 0x259   : > { %v4074_v1 = vpop.eup %4073  ;;  %vm2642_vm3 = vcmp.eq.s32.totalorder %v9159_v63, 17  ;;  %vm2643_vm14 = vcmp.eq.s32.totalorder %v9162_v44, 17  ;;  %vm2591_vm4 = vcmp.eq.s32.totalorder %v9102_v24, 16  ;;  %vm2592_vm8 = vcmp.eq.s32.totalorder %v9105_v12, 16 }
 0x25a   : > { %v9220_v21 = vmul.f32 %v4074_v1, %v13196_v18  ;;  %v9228_v7 = vadd.f32 %v3215_v40, %v3214_v29  ;;  %v9230_v6 = vadd.f32 %v3218_v23, %v3217_v26  ;;  %vm2593_vm9 = vcmp.eq.s32.totalorder %v9108_v41, 16 }
 0x25b   : > { %v9239_v37 = vsel %vm2613_vm12, %v9213_v48, 0.0  ;;  %v9244_v40 = vsel %vm2614_vm11, %v9213_v48, 0.0  ;;  %v9249_v23 = vsel %vm2615_vm13, %v9213_v48, 0.0  ;;  %v9254_v26 = vsel %vm2616_vm0, %v9213_v48, 0.0 }
 0x25c   : > { %13197 = vst [vmem:[#allocation65_spill] sm:$0xff] %v9220_v21  ;;  %13198 = vst [vmem:[#allocation49_spill] sm:$0xff] %v9228_v7  ;;  %vm2597_vm2 = vcmp.eq.s32.totalorder %v9120_v13, 16  ;;  %vm2598_vm12 = vcmp.eq.s32.totalorder %v9123_v51, 16  ;;  %v9263_v29 = vsel %vm2617_vm5, %v9213_v48, 0.0  ;;  %v9268_v1 = vsel %vm2618_vm7, %v9213_v48, 0.0 }
 0x25d   : > { %13199 = vst [vmem:[#allocation54_spill] sm:$0xff] %v9230_v6  ;;  %vm13200_vm11 = vcmp.eq.s32.totalorder %v9090_v2, 17  ;;  %vm13201_vm13 = vcmp.eq.s32.totalorder %v9093_v32, 17  ;;  %vm13202_vm7 = vcmp.eq.s32.totalorder %v9096_v49, 17  ;;  %vm13205_vm1 = vcmp.eq.s32.totalorder %v9105_v12, 17 }
 0x25e   : > { %v9273_v19 = vsel %vm13200_vm11, %v9213_v48, 0.0  ;;  %v9278_v11 = vsel %vm13201_vm13, %v9213_v48, 0.0  ;;  %v9287_v18 = vsel %vm13202_vm7, %v9213_v48, 0.0  ;;  %vm13203_vm11 = vcmp.eq.s32.totalorder %v9099_v22, 17 }
 0x25f   : > { %v9292_v50 = vsel %vm13203_vm11, %v9213_v48, 0.0  ;;  %vm13204_vm13 = vcmp.eq.s32.totalorder %v9102_v24, 17  ;;  %v9302_v4 = vsel %vm13205_vm1, %v9213_v48, 0.0  ;;  %vm13206_vm11 = vcmp.eq.s32.totalorder %v9108_v41, 17 }
 0x260   : > { %v9297_v21 = vsel %vm13204_vm13, %v9213_v48, 0.0  ;;  %v9311_v7 = vsel %vm13206_vm11, %v9213_v48, 0.0  ;;  %vm13207_vm13 = vcmp.eq.s32.totalorder %v9111_v57, 17  ;;  %vm13208_vm1 = vcmp.eq.s32.totalorder %v9114_v35, 17 }
 0x261   : > { %v9316_v25 = vsel %vm13207_vm13, %v9213_v48, 0.0  ;;  %v9321_v43 = vsel %vm13208_vm1, %v9213_v48, 0.0  ;;  %vm13209_vm5 = vcmp.eq.s32.totalorder %v9117_v58, 17  ;;  %vm13210_vm13 = vcmp.eq.s32.totalorder %v9120_v13, 17 }
 0x262   : > { %v9326_v39 = vsel %vm13209_vm5, %v9213_v48, 0.0  ;;  %v9335_v34 = vsel %vm13210_vm13, %v9213_v48, 0.0  ;;  %vm13211_vm1 = vcmp.eq.s32.totalorder %v9123_v51, 17  ;;  %vm13212_vm5 = vcmp.eq.s32.totalorder %v9126_v56, 17 }
 0x263   : > { %v9340_v46 = vsel %vm13211_vm1, %v9213_v48, 0.0  ;;  %v9345_v6 = vsel %vm13212_vm5, %v9213_v48, 0.0  ;;  %vm13213_vm7 = vcmp.eq.s32.totalorder %v9129_v62, 17  ;;  %vm13214_vm1 = vcmp.eq.s32.totalorder %v9132_v9, 17 }
 0x264   : > { %v9350_v14 = vsel %vm13213_vm7, %v9213_v48, 0.0  ;;  %v9359_v20 = vsel %vm13214_vm1, %v9213_v48, 0.0  ;;  %vm13215_vm5 = vcmp.eq.s32.totalorder %v9135_v47, 17  ;;  %vm13216_vm7 = vcmp.eq.s32.totalorder %v9138_v52, 17 }
 0x265   : > { %v9364_v31 = vsel %vm13215_vm5, %v9213_v48, 0.0  ;;  %v9369_v60 = vsel %vm13216_vm7, %v9213_v48, 0.0  ;;  %vm13217_vm11 = vcmp.eq.s32.totalorder %v9141_v0, 17  ;;  %vm2553_vm0 = vcmp.eq.s32.totalorder %v9084_v5, 1 }
 0x266   : > { %v9374_v55 = vsel %vm13217_vm11, %v9213_v48, 0.0  ;;  %vm13218_vm5 = vcmp.eq.s32.totalorder %v9144_v8, 17  ;;  %vm13219_vm7 = vcmp.eq.s32.totalorder %v9147_v27, 17  ;;  %vm13220_vm11 = vcmp.eq.s32.totalorder %v9150_v38, 17 }
 0x267   : > { %v9383_v10 = vsel %vm13218_vm5, %v9213_v48, 0.0  ;;  %v9388_v45 = vsel %vm13219_vm7, %v9213_v48, 0.0  ;;  %v9393_v28 = vsel %vm13220_vm11, %v9213_v48, 0.0  ;;  %v9398_v17 = vsel %vm2640_vm15, %v9213_v48, 0.0 }
 0x268   : > { %13221 = vst [vmem:[#allocation89_spill] sm:$0xff] %v9393_v28  ;;  %13222 = vst [vmem:[#allocation88_spill] sm:$0xff] %v9398_v17  ;;  %vm2557_vm6 = vcmp.eq.s32.totalorder %v9096_v49, 1  ;;  %vm2558_vm5 = vcmp.eq.s32.totalorder %v9099_v22, 1  ;;  %vm2559_vm13 = vcmp.eq.s32.totalorder %v9102_v24, 1  ;;  %v9407_v54 = vsel %vm2641_vm10, %v9213_v48, 0.0 }
 0x269   : > { %v9412_v36 = vsel %vm2642_vm3, %v9213_v48, 0.0  ;;  %v9417_v17 = vsel %vm2643_vm14, %v9213_v48, 0.0  ;;  %vm13225_vm15 = vcmp.eq.s32.totalorder %v9165_v33, 17  ;;  %vm13227_vm3 = vcmp.eq.s32.totalorder %v9072_v30, 16 }
 0x26a   : > { %13223 = vst [vmem:[#allocation81_spill] sm:$0xff] %v9412_v36  ;;  %13224 = vst [vmem:[#allocation51_spill] sm:$0xff] %v9417_v17  ;;  %v9422_v28 = vsel %vm13225_vm15, %v9213_v48, 0.0  ;;  %v9432_v36 = vsel %vm13227_vm3, %v9217_v3, %v9239_v37  ;;  %vm13228_vm14 = vcmp.eq.s32.totalorder %v9075_v16, 16  ;;  %vm13229_vm15 = vcmp.eq.s32.totalorder %v9078_v59, 16 }
 0x26b   : > { %13226 = vst [vmem:[#allocation43_spill] sm:$0xff] %v9422_v28  ;;  %v9438_v48 = vsel %vm13228_vm14, %v9217_v3, %v9244_v40  ;;  %v9444_v28 = vsel %vm13229_vm15, %v9217_v3, %v9249_v23  ;;  %vm13230_vm1 = vcmp.eq.s32.totalorder %v9081_v15, 16  ;;  %vm13231_vm7 = vcmp.eq.s32.totalorder %v9084_v5, 16 }
 0x26c   : > { %v9450_v17 = vsel %vm13230_vm1, %v9217_v3, %v9254_v26  ;;  %v9460_v37 = vsel %vm13231_vm7, %v9217_v3, %v9263_v29  ;;  %vm13232_vm15 = vcmp.eq.s32.totalorder %v9087_v53, 16  ;;  %vm13233_vm1 = vcmp.eq.s32.totalorder %v9090_v2, 16 }
 0x26d   : > { %v9466_v40 = vsel %vm13232_vm15, %v9217_v3, %v9268_v1  ;;  %v9472_v23 = vsel %vm13233_vm1, %v9217_v3, %v9273_v19  ;;  %vm13234_vm14 = vcmp.eq.s32.totalorder %v9093_v32, 16  ;;  %vm2569_vm7 = vcmp.eq.s32.totalorder %v9132_v9, 1 }
 0x26e   : > { %v9478_v26 = vsel %vm13234_vm14, %v9217_v3, %v9278_v11  ;;  %vm2570_vm10 = vcmp.eq.s32.totalorder %v9135_v47, 1  ;;  %vm2571_vm11 = vcmp.eq.s32.totalorder %v9138_v52, 1  ;;  %vm13235_vm3 = vcmp.eq.s32.totalorder %v9096_v49, 16 }
 0x26f   : > { %v9488_v19 = vsel %vm13235_vm3, %v9217_v3, %v9287_v18  ;;  %vm13236_vm1 = vcmp.eq.s32.totalorder %v9099_v22, 16  ;;  %v9500_v29 = vsel %vm2591_vm4, %v9217_v3, %v9297_v21  ;;  %v9506_v1 = vsel %vm2592_vm8, %v9217_v3, %v9302_v4 }
 0x270   : > { %v9494_v11 = vsel %vm13236_vm1, %v9217_v3, %v9292_v50  ;;  %vm2573_vm3 = vcmp.eq.s32.totalorder %v9144_v8, 1  ;;  %v9516_v21 = vsel %vm2593_vm9, %v9217_v3, %v9311_v7  ;;  %vm13237_vm4 = vcmp.eq.s32.totalorder %v9111_v57, 16 }
 0x271   : > { %v9522_v4 = vsel %vm13237_vm4, %v9217_v3, %v9316_v25  ;;  %vm13238_vm8 = vcmp.eq.s32.totalorder %v9114_v35, 16  ;;  %vm13239_vm1 = vcmp.eq.s32.totalorder %v9117_v58, 16  ;;  %vm2577_vm9 = vcmp.eq.s32.totalorder %v9156_v61, 1 }
 0x272   : > { %v9528_v50 = vsel %vm13238_vm8, %v9217_v3, %v9321_v43  ;;  %v9534_v18 = vsel %vm13239_vm1, %v9217_v3, %v9326_v39  ;;  %v9544_v43 = vsel %vm2597_vm2, %v9217_v3, %v9335_v34  ;;  %v9550_v39 = vsel %vm2598_vm12, %v9217_v3, %v9340_v46 }
 0x273   : > { %13240 = vst [vmem:[#allocation33_spill] sm:$0xff] %v9534_v18  ;;  %13241 = vst [vmem:[#allocation72_spill] sm:$0xff] %v9544_v43  ;;  %vm13243_vm1 = vcmp.eq.s32.totalorder %v9126_v56, 16  ;;  %vm13245_vm8 = vcmp.eq.s32.totalorder %v9129_v62, 16  ;;  %vm13247_vm15 = vcmp.eq.s32.totalorder %v9132_v9, 16  ;;  %vm13250_vm14 = vcmp.eq.s32.totalorder %v9141_v0, 16 }
 0x274   : > { %13242 = vst [vmem:[#allocation82_spill] sm:$0xff] %v9550_v39  ;;  %v9556_v25 = vsel %vm13243_vm1, %v9217_v3, %v9345_v6  ;;  %v9562_v7 = vsel %vm13245_vm8, %v9217_v3, %v9350_v14  ;;  %v2705_v46 = vsel %vm13247_vm15, %v9217_v3, %v9359_v20  ;;  %vm13248_vm1 = vcmp.eq.s32.totalorder %v9135_v47, 16  ;;  %v13253_v20 = vld [vmem:[#allocation89_spill] sm:$0xff]  ;;  %v13260_v39 = vld [vmem:[#allocation51_spill] sm:$0xff] }
 0x275   : > { %13244 = vst [vmem:[#allocation76_spill] sm:$0xff] %v9556_v25  ;;  %13246 = vst [vmem:[#allocation77_spill] sm:$0xff] %v9562_v7  ;;  %v2706_v34 = vsel %vm13248_vm1, %v9217_v3, %v9364_v31  ;;  %vm13249_vm8 = vcmp.eq.s32.totalorder %v9138_v52, 16  ;;  %v2708_v6 = vsel %vm13250_vm14, %v9217_v3, %v9374_v55  ;;  %vm13251_vm1 = vcmp.eq.s32.totalorder %v9144_v8, 16  ;;  %v13255_v7 = vld [vmem:[#allocation88_spill] sm:$0xff]  ;;  %v13262_v43 = vld [vmem:[#allocation43_spill] sm:$0xff] }
 0x276   : > { %v2707_v14 = vsel %vm13249_vm8, %v9217_v3, %v9369_v60  ;;  %v2709_v31 = vsel %vm13251_vm1, %v9217_v3, %v9383_v10  ;;  %vm13252_vm8 = vcmp.eq.s32.totalorder %v9147_v27, 16  ;;  %vm13254_vm14 = vcmp.eq.s32.totalorder %v9150_v38, 16  ;;  %v13258_v10 = vld [vmem:[#allocation81_spill] sm:$0xff] }
 0x277   : > { %v2710_v60 = vsel %vm13252_vm8, %v9217_v3, %v9388_v45  ;;  %v2711_v55 = vsel %vm13254_vm14, %v9217_v3, %v13253_v20  ;;  %vm13256_vm15 = vcmp.eq.s32.totalorder %v9153_v42, 16  ;;  %vm13257_vm8 = vcmp.eq.s32.totalorder %v9156_v61, 16 }
 0x278   : > { %v2712_v25 = vsel %vm13256_vm15, %v9217_v3, %v13255_v7  ;;  %v2713_v45 = vsel %vm13257_vm8, %v9217_v3, %v9407_v54  ;;  %vm13259_vm14 = vcmp.eq.s32.totalorder %v9159_v63, 16  ;;  %vm13261_vm15 = vcmp.eq.s32.totalorder %v9162_v44, 16  ;;  %v13264_v54 = vld [vmem:[#allocation79_spill] sm:$0xff] }
 0x279   : > { %v2714_v20 = vsel %vm13259_vm14, %v9217_v3, %v13258_v10  ;;  %v2715_v7 = vsel %vm13261_vm15, %v9217_v3, %v13260_v39  ;;  %vm13263_vm1 = vcmp.eq.s32.totalorder %v9165_v33, 16  ;;  %vm13265_vm14 = vcmp.eq.s32.totalorder %v9072_v30, 1 }
 0x27a   : > { %v2716_v18 = vsel %vm13263_vm1, %v9217_v3, %v13262_v43  ;;  %v2721_v10 = vsel %vm13265_vm14, %v13264_v54, %v9432_v36  ;;  %vm13266_vm15 = vcmp.eq.s32.totalorder %v9075_v16, 1  ;;  %vm13267_vm1 = vcmp.eq.s32.totalorder %v9078_v59, 1 }
 0x27b   : > { %v2722_v39 = vsel %vm13266_vm15, %v13264_v54, %v9438_v48  ;;  %v2723_v3 = vsel %vm13267_vm1, %v13264_v54, %v9444_v28  ;;  %vm13268_vm8 = vcmp.eq.s32.totalorder %v9081_v15, 1  ;;  %vm2533_vm2 = vcmp.eq.s32.totalorder %v9120_v13, 0 }
 0x27c   : > { %v2724_v43 = vsel %vm13268_vm8, %v13264_v54, %v9450_v17  ;;  %v2725_v36 = vsel %vm2553_vm0, %v13264_v54, %v9460_v37  ;;  %vm13269_vm15 = vcmp.eq.s32.totalorder %v9087_v53, 1  ;;  %vm13270_vm8 = vcmp.eq.s32.totalorder %v9090_v2, 1 }
 0x27d   : > { %v2726_v28 = vsel %vm13269_vm15, %v13264_v54, %v9466_v40  ;;  %v2727_v17 = vsel %vm13270_vm8, %v13264_v54, %v9472_v23  ;;  %vm13271_vm1 = vcmp.eq.s32.totalorder %v9093_v32, 1  ;;  %vm2537_vm12 = vcmp.eq.s32.totalorder %v9132_v9, 0 }
 0x27e   : > { %v2728_v48 = vsel %vm13271_vm1, %v13264_v54, %v9478_v26  ;;  %vm2538_vm14 = vcmp.eq.s32.totalorder %v9135_v47, 0  ;;  %vm2539_vm0 = vcmp.eq.s32.totalorder %v9138_v52, 0  ;;  %v2729_v37 = vsel %vm2557_vm6, %v13264_v54, %v9488_v19  ;;  %v13321_v52 = vld [vmem:[#allocation64_spill] sm:$0xff] }
 0x27f   : > { %v2730_v40 = vsel %vm2558_vm5, %v13264_v54, %v9494_v11  ;;  %v2731_v23 = vsel %vm2559_vm13, %v13264_v54, %v9500_v29  ;;  %vm13272_vm15 = vcmp.eq.s32.totalorder %v9105_v12, 1  ;;  %vm2541_vm8 = vcmp.eq.s32.totalorder %v9144_v8, 0 }
 0x280   : > { %v2732_v26 = vsel %vm13272_vm15, %v13264_v54, %v9506_v1  ;;  %vm13273_vm5 = vcmp.eq.s32.totalorder %v9108_v41, 1  ;;  %vm13274_vm13 = vcmp.eq.s32.totalorder %v9111_v57, 1  ;;  %vm13275_vm15 = vcmp.eq.s32.totalorder %v9114_v35, 1  ;;  %v13276_v1 = vld [vmem:[#allocation33_spill] sm:$0xff] }
 0x281   : > { %v2733_v19 = vsel %vm13273_vm5, %v13264_v54, %v9516_v21  ;;  %v2734_v11 = vsel %vm13274_vm13, %v13264_v54, %v9522_v4  ;;  %v2735_v29 = vsel %vm13275_vm15, %v13264_v54, %v9528_v50  ;;  %vm13277_vm6 = vcmp.eq.s32.totalorder %v9117_v58, 1  ;;  %v13278_v21 = vld [vmem:[#allocation72_spill] sm:$0xff]  ;;  %v13280_v4 = vld [vmem:[#allocation82_spill] sm:$0xff] }
 0x282   : > { %v2736_v12 = vsel %vm13277_vm6, %v13264_v54, %v13276_v1  ;;  %vm13279_vm5 = vcmp.eq.s32.totalorder %v9120_v13, 1  ;;  %vm13281_vm13 = vcmp.eq.s32.totalorder %v9123_v51, 1  ;;  %v13282_v50 = vld [vmem:[#allocation76_spill] sm:$0xff]  ;;  %vm13283_vm15 = vcmp.eq.s32.totalorder %v9126_v56, 1  ;;  %v13284_v1 = vld [vmem:[#allocation77_spill] sm:$0xff] }
 0x283   : > { %v2737_v57 = vsel %vm13279_vm5, %v13264_v54, %v13278_v21  ;;  %v2738_v35 = vsel %vm13281_vm13, %v13264_v54, %v13280_v4  ;;  %v2739_v58 = vsel %vm13283_vm15, %v13264_v54, %v13282_v50  ;;  %vm13285_vm6 = vcmp.eq.s32.totalorder %v9129_v62, 1 }
 0x284   : > { %v2740_v41 = vsel %vm13285_vm6, %v13264_v54, %v13284_v1  ;;  %vm2547_vm1 = vcmp.eq.s32.totalorder %v9162_v44, 0  ;;  %vm2548_vm4 = vcmp.eq.s32.totalorder %v9165_v33, 0  ;;  %v2741_v21 = vsel %vm2569_vm7, %v13264_v54, %v2705_v46 }
 0x285   : > { %v2742_v4 = vsel %vm2570_vm10, %v13264_v54, %v2706_v34  ;;  %v2743_v50 = vsel %vm2571_vm11, %v13264_v54, %v2707_v14  ;;  %vm13286_vm5 = vcmp.eq.s32.totalorder %v9141_v0, 1  ;;  %v2745_v62 = vsel %vm2573_vm3, %v13264_v54, %v2709_v31 }
 0x286   : > { %v2744_v1 = vsel %vm13286_vm5, %v13264_v54, %v2708_v6  ;;  %vm13287_vm13 = vcmp.eq.s32.totalorder %v9147_v27, 1  ;;  %vm13288_vm7 = vcmp.eq.s32.totalorder %v9150_v38, 1  ;;  %vm13289_vm10 = vcmp.eq.s32.totalorder %v9153_v42, 1  ;;  %v13293_v38 = vld [vmem:[#allocation78_spill] sm:$0xff] }
 0x287   : > { %v2746_v46 = vsel %vm13287_vm13, %v13264_v54, %v2710_v60  ;;  %v2747_v34 = vsel %vm13288_vm7, %v13264_v54, %v2711_v55  ;;  %v2748_v14 = vsel %vm13289_vm10, %v13264_v54, %v2712_v25  ;;  %v2749_v6 = vsel %vm2577_vm9, %v13264_v54, %v2713_v45 }
 0x288   : > { %vm13290_vm11 = vcmp.eq.s32.totalorder %v9159_v63, 1  ;;  %vm13291_vm3 = vcmp.eq.s32.totalorder %v9162_v44, 1  ;;  %vm13292_vm15 = vcmp.eq.s32.totalorder %v9165_v33, 1  ;;  %vm13294_vm6 = vcmp.eq.s32.totalorder %v9072_v30, 0  ;;  %v13337_v44 = vld [vmem:[#allocation94_spill] sm:$0xff] }
 0x289   : > { %v2750_v31 = vsel %vm13290_vm11, %v13264_v54, %v2714_v20  ;;  %v2751_v60 = vsel %vm13291_vm3, %v13264_v54, %v2715_v7  ;;  %v2752_v55 = vsel %vm13292_vm15, %v13264_v54, %v2716_v18  ;;  %v2757_v25 = vsel %vm13294_vm6, %v13293_v38, %v2721_v10  ;;  %v13305_v54 = vld [vmem:[#allocation55_spill] sm:$0xff]  ;;  %v13307_v10 = vld [vmem:[#allocation66_spill] sm:$0xff] }
 0x28a   : > { %vm13295_vm5 = vcmp.eq.s32.totalorder %v9075_v16, 0  ;;  %vm13296_vm9 = vcmp.eq.s32.totalorder %v9078_v59, 0  ;;  %vm13297_vm13 = vcmp.eq.s32.totalorder %v9081_v15, 0  ;;  %vm13298_vm7 = vcmp.eq.s32.totalorder %v9084_v5, 0 }
 0x28b   : > { %v2758_v45 = vsel %vm13295_vm5, %v13293_v38, %v2722_v39  ;;  %v2759_v20 = vsel %vm13296_vm9, %v13293_v38, %v2723_v3  ;;  %v2760_v7 = vsel %vm13297_vm13, %v13293_v38, %v2724_v43  ;;  %v2761_v18 = vsel %vm13298_vm7, %v13293_v38, %v2725_v36  ;;  %v13309_v39 = vld [vmem:[#allocation61_spill] sm:$0xff]  ;;  %v13311_v3 = vld [vmem:[#allocation52_spill] sm:$0xff]  ;;  %v13313_v43 = vld [vmem:[#allocation62_spill] sm:$0xff] }
 0x28c   : > { %vm13299_vm10 = vcmp.eq.s32.totalorder %v9087_v53, 0  ;;  %vm13300_vm11 = vcmp.eq.s32.totalorder %v9090_v2, 0  ;;  %vm13301_vm3 = vcmp.eq.s32.totalorder %v9093_v32, 0  ;;  %vm13302_vm15 = vcmp.eq.s32.totalorder %v9096_v49, 0  ;;  %v4052_v36 = vld [vmem:[%s4239_s8 + $0x14] ss:$8 sps:$4 sm:$0xff]  }
 0x28d   : > { %v2762_v30 = vsel %vm13299_vm10, %v13293_v38, %v2726_v28  ;;  %v2763_v16 = vsel %vm13300_vm11, %v13293_v38, %v2727_v17  ;;  %v2764_v59 = vsel %vm13301_vm3, %v13293_v38, %v2728_v48  ;;  %v2765_v15 = vsel %vm13302_vm15, %v13293_v38, %v2729_v37  ;;  %v13317_v37 = vld [vmem:[#allocation63_spill] sm:$0xff]  ;;  %3667 = vmatprep.mubr.bf16.mxu1 %v4052_v36  ;;  %v13353_v36 = vld [vmem:[#allocation93_spill] sm:$0xff] }
 0x28e   : > { %vm13303_vm6 = vcmp.eq.s32.totalorder %v9099_v22, 0  ;;  %vm13304_vm5 = vcmp.eq.s32.totalorder %v9102_v24, 0  ;;  %vm13306_vm9 = vcmp.eq.s32.totalorder %v13305_v54, 0  ;;  %vm13308_vm13 = vcmp.eq.s32.totalorder %v13307_v10, 0 }
 0x28f   : > { %v2766_v5 = vsel %vm13303_vm6, %v13293_v38, %v2730_v40  ;;  %v2767_v53 = vsel %vm13304_vm5, %v13293_v38, %v2731_v23  ;;  %v2768_v2 = vsel %vm13306_vm9, %v13293_v38, %v2732_v26  ;;  %v2769_v32 = vsel %vm13308_vm13, %v13293_v38, %v2733_v19 }
 0x290   : > { %vm13310_vm7 = vcmp.eq.s32.totalorder %v13309_v39, 0  ;;  %vm13312_vm10 = vcmp.eq.s32.totalorder %v13311_v3, 0  ;;  %vm13314_vm11 = vcmp.eq.s32.totalorder %v13313_v43, 0  ;;  %v2773_v28 = vsel %vm2533_vm2, %v13293_v38, %v2737_v57  ;;  %v13351_v43 = vld [vmem:[#allocation47_spill] sm:$0xff] }
 0x291   : > { %v2770_v49 = vsel %vm13310_vm7, %v13293_v38, %v2734_v11  ;;  %v2771_v22 = vsel %vm13312_vm10, %v13293_v38, %v2735_v29  ;;  %v2772_v24 = vsel %vm13314_vm11, %v13293_v38, %v2736_v12  ;;  %vm13315_vm3 = vcmp.eq.s32.totalorder %v9123_v51, 0 }
 0x292   : > { %v2774_v17 = vsel %vm13315_vm3, %v13293_v38, %v2738_v35  ;;  %vm13316_vm15 = vcmp.eq.s32.totalorder %v9126_v56, 0  ;;  %vm13318_vm6 = vcmp.eq.s32.totalorder %v13317_v37, 0  ;;  %v2777_v12 = vsel %vm2537_vm12, %v13293_v38, %v2741_v21  ;;  %v13333_v21 = vld [vmem:[#allocation5_spill] sm:$0xff]  ;;  %v13355_v37 = vld [vmem:[#allocation75_spill] sm:$0xff] }
 0x293   : > { %v2775_v48 = vsel %vm13316_vm15, %v13293_v38, %v2739_v58  ;;  %v2776_v40 = vsel %vm13318_vm6, %v13293_v38, %v2740_v41  ;;  %v9827_v13 = vsel %vm2538_vm14, %v13293_v38, %v2742_v4  ;;  %v9832_v51 = vsel %vm2539_vm0, %v13293_v38, %v2743_v50  ;;  %v13328_v41 = vld [vmem:[#allocation86_spill] sm:$0xff]  ;;  %v13335_v50 = vld [vmem:[#allocation56_spill] sm:$0xff] }
 0x294   : > { %vm13319_vm2 = vcmp.eq.s32.totalorder %v9141_v0, 0  ;;  %v9842_v9 = vsel %vm2541_vm8, %v13293_v38, %v2745_v62  ;;  %vm13320_vm12 = vcmp.eq.s32.totalorder %v9147_v27, 0  ;;  %vm13322_vm14 = vcmp.eq.s32.totalorder %v13321_v52, 0  ;;  %v13326_v62 = vld [vmem:[#allocation87_spill] sm:$0xff] }
 0x295   : > { %v9837_v56 = vsel %vm13319_vm2, %v13293_v38, %v2744_v1  ;;  %v9847_v47 = vsel %vm13320_vm12, %v13293_v38, %v2746_v46  ;;  %v9852_v58 = vsel %vm13322_vm14, %v13293_v38, %v2747_v34  ;;  %vm13323_vm0 = vcmp.eq.s32.totalorder %v9153_v42, 0 }
 0x296   : > { %v9857_v0 = vsel %vm13323_vm0, %v13293_v38, %v2748_v14  ;;  %vm13324_vm5 = vcmp.eq.s32.totalorder %v9156_v61, 0  ;;  %vm13325_vm8 = vcmp.eq.s32.totalorder %v9159_v63, 0  ;;  %v13327_v35 = vfloor.f32 %v13326_v62  ;;  %v13330_v63 = vld [vmem:[#allocation84_spill] sm:$0xff] }
 0x297   : > { %v9862_v8 = vsel %vm13324_vm5, %v13293_v38, %v2749_v6  ;;  %v9867_v27 = vsel %vm13325_vm8, %v13293_v38, %v2750_v31  ;;  %v13329_v23 = vfloor.f32 %v13328_v41  ;;  %v9877_v42 = vsel %vm2547_vm1, %v13293_v38, %v2751_v60  ;;  %v13342_v6 = vld [vmem:[#allocation44_spill] sm:$0xff]  ;;  %v13344_v60 = vld [vmem:[#allocation50_spill] sm:$0xff] }
 0x298   : > { %v2840_v57 = vsub.f32 %v13326_v62, %v13327_v35  ;;  %v9882_v61 = vsel %vm2548_vm4, %v13293_v38, %v2752_v55  ;;  %v9885_v19 = vadd.f32 %v2757_v25, %v13330_v63  ;;  %v13332_v11 = vmov %v13327_v35  ;;  %v13340_v38 = vld [vmem:[#allocation95_spill] sm:$0xff]  ;;  %v13346_v25 = vld [vmem:[#allocation54_spill] sm:$0xff] }
 0x299   : > { %v3983_v26 = vtrunc.f32 %v13329_v23  ;;  %v3985_v29 = vtrunc.f32 %v13332_v11  ;;  %v9890_v4 = vadd.f32 %v2758_v45, %v13333_v21  ;;  %v9893_v1 = vadd.f32 %v2759_v20, %v13335_v50  ;;  %v13347_v20 = vld [vmem:[#allocation45_spill] sm:$0xff]  ;;  %v13366_v21 = vld [vmem:[#allocation46_spill] sm:$0xff] }
 0x29a   : > { %13331 = vst [vmem:[#allocation89_spill] sm:$0xff] %v9885_v19  ;;  %v9896_v46 = vadd.f32 %v2760_v7, %v13337_v44  ;;  %v13339_v34 = vmov %v13329_v23  ;;  %v9902_v14 = vadd.f32 %v2761_v18, %v13340_v38  ;;  %v9905_v31 = vadd.f32 %v2762_v30, %v13342_v6  ;;  %v13349_v7 = vld [vmem:[#allocation48_spill] sm:$0xff]  ;;  %v13368_v44 = vld [vmem:[#allocation59_spill] sm:$0xff] }
 0x29b   : > { %13334 = vst [vmem:[#allocation88_spill] sm:$0xff] %v9890_v4  ;;  %13336 = vst [vmem:[#allocation81_spill] sm:$0xff] %v9893_v1  ;;  %v2838_v33 = vsub.f32 %v13328_v41, %v13339_v34  ;;  %v9908_v55 = vadd.f32 %v2763_v16, %v13344_v60  ;;  %v3225_v45 = vmul.f32 1.0666667, %v13346_v25  ;;  %v9912_v54 = vadd.f32 %v2764_v59, %v13347_v20  ;;  %v13357_v59 = vld [vmem:[#allocation49_spill] sm:$0xff] }
 0x29c   : > { %13338 = vst [vmem:[#allocation51_spill] sm:$0xff] %v9896_v46  ;;  %13341 = vst [vmem:[#allocation43_spill] sm:$0xff] %v9902_v14  ;;  %v9915_v10 = vadd.f32 %v2765_v15, %v13349_v7  ;;  %v2841_v39 = vsub.f32 1.0, %v2840_v57  ;;  %v3984_v3 = vcvt.f32.s32 %v3983_v26  ;;  %v9918_v18 = vadd.f32 %v2766_v5, %v13351_v43  ;;  %v13358_v41 = vld [vmem:[#allocation57_spill] sm:$0xff]  ;;  %v13360_v26 = vld [vmem:[#allocation70_spill] sm:$0xff] }
 0x29d   : > { %13343 = vst [vmem:[#allocation79_spill] sm:$0xff] %v9905_v31  ;;  %13345 = vst [vmem:[#allocation33_spill] sm:$0xff] %v9908_v55  ;;  %v9921_v30 = vadd.f32 %v2767_v53, %v13353_v36  ;;  %v9924_v16 = vadd.f32 %v2768_v2, %v13355_v37  ;;  %v3986_v52 = vcvt.f32.s32 %v3985_v29  ;;  %v2839_v62 = vsub.f32 1.0, %v2838_v33  ;;  %v3220_v23 = vld [vmem:[%s4242_s11 + $0x17] sm:$0x1]  ;;  %v13362_v2 = vld [vmem:[#allocation71_spill] sm:$0xff] }
 0x29e   : > { %13348 = vst [vmem:[#allocation72_spill] sm:$0xff] %v9912_v54  ;;  %13350 = vst [vmem:[#allocation82_spill] sm:$0xff] %v9915_v10  ;;  %vm2844_vm4 = vcmp.ge.s32.totalorder %v3984_v3, 0  ;;  %vm2845_vm1 = vcmp.lt.s32.totalorder %v3984_v3, 16  ;;  %v3227_v35 = vmul.f32 1.0666667, %v13357_v59  ;;  %v9928_v15 = vadd.f32 %v2769_v32, %v13358_v41 }
 0x29f   : > { %13352 = vst [vmem:[#allocation76_spill] sm:$0xff] %v9918_v18  ;;  %13354 = vst [vmem:[#allocation77_spill] sm:$0xff] %v9921_v30  ;;  %vm2850_vm9 = vcmp.ge.s32.totalorder %v3986_v52, 0  ;;  %vm2851_vm13 = vcmp.lt.s32.totalorder %v3986_v52, 16  ;;  %v3885_v5 = vadd.f32 -0.5, %v3225_v45  ;;  %v9932_v63 = vadd.f32 %v2770_v49, %v13360_v26  ;;  %v13373_v60 = vld [vmem:[#allocation73_spill] sm:$0xff] }
 0x2a0   : > { %13356 = vst [vmem:[#allocation78_spill] sm:$0xff] %v9924_v16  ;;  %13359 = vst [vmem:[#allocation55_spill] sm:$0xff] %v9928_v15  ;;  %vm2847_vm7 = vcmp.ge.s32.totalorder %v3984_v3, 4294967295  ;;  %vm2848_vm10 = vcmp.lt.s32.totalorder %v3984_v3, 15  ;;  %v2857_v53 = vmul.f32 %v2841_v39, %v2839_v62  ;;  %v9935_v11 = vadd.f32 %v2771_v22, %v13362_v2  ;;  %v13372_v22 = vld [vmem:[#allocation74_spill] sm:$0xff]  ;;  %v13375_v45 = vld [vmem:[#allocation80_spill] sm:$0xff] }
 0x2a1   : > { %13361 = vst [vmem:[#allocation66_spill] sm:$0xff] %v9932_v63  ;;  %vm9937_vm11 = vmand %vm2844_vm4, %vm2845_vm1  ;;  %vm2853_vm3 = vcmp.ge.s32.totalorder %v3986_v52, 4294967295  ;;  %vm2854_vm15 = vcmp.lt.s32.totalorder %v3986_v52, 15  ;;  %v2861_v32 = vmul.f32 %v2841_v39, %v2838_v33  ;;  %v9942_v50 = vadd.f32 %v2772_v24, %v13366_v21  ;;  %v13379_v39 = vld [vmem:[#allocation42_spill] sm:$0xff]  ;;  %v13381_v36 = vld [vmem:[#allocation69_spill] sm:$0xff] }
 0x2a2   : > { %13363 = vst [vmem:[#allocation61_spill] sm:$0xff] %v9935_v11  ;;  %v9945_v34 = vadd.f32 %v2773_v28, %v13368_v44  ;;  %vm9948_vm6 = vmand %vm2850_vm9, %vm2851_vm13  ;;  %v3221_v38 = vsub.f32 %v3220_v23, %v13372_v22  ;;  %v3886_v6 = vadd.f32 -0.5, %v3227_v35  ;;  %v9954_v25 = vadd.f32 %v2774_v17, %v13373_v60  ;;  %v13386_v41 = vld [vmem:[#allocation40_spill] sm:$0xff]  ;;  %v13388_v26 = vld [vmem:[#allocation58_spill] sm:$0xff] }
 0x2a3   : > { %13367 = vst [vmem:[#allocation52_spill] sm:$0xff] %v9942_v50  ;;  %v9957_v20 = vadd.f32 %v2775_v48, %v13375_v45  ;;  %vm9960_vm2 = vmand %vm2847_vm7, %vm2848_vm10  ;;  %v2872_v28 = vmul.u32 16, %v3986_v52  ;;  %v3229_v7 = vfloor.f32 %v3885_v5  ;;  %v9965_v43 = vadd.f32 %v2776_v40, %v13379_v39  ;;  %v13385_v48 = vld [vmem:[#allocation65_spill] sm:$0xff]  ;;  %v13390_v52 = vld [vmem:[#allocation91_spill] sm:$0xff] }
 0x2a4   : > { %13369 = vst [vmem:[#allocation62_spill] sm:$0xff] %v9945_v34  ;;  %13374 = vst [vmem:[#allocation63_spill] sm:$0xff] %v9954_v25  ;;  %v9968_v37 = vadd.f32 %v2777_v12, %v13381_v36  ;;  %v2858_v59 = vmul.f32 %v2857_v53, %v13385_v48  ;;  %v2865_v35 = vmul.f32 %v2840_v57, %v2839_v62  ;;  %v13392_v62 = vld [vmem:[#allocation67_spill] sm:$0xff]  ;;  %v3230_v21 = vfloor.f32 %v3886_v6  ;;  %v13394_v44 = vld [vmem:[#allocation92_spill] sm:$0xff] }
 0x2a5   : > { %13376 = vst [vmem:[#allocation64_spill] sm:$0xff] %v9957_v20  ;;  %13380 = vst [vmem:[#allocation87_spill] sm:$0xff] %v9965_v43  ;;  %v9978_v23 = vadd.f32 %v9827_v13, %v13386_v41  ;;  %v9982_v2 = vadd.f32 %v9832_v51, %v13388_v26  ;;  %v2862_v40 = vmul.f32 %v2861_v32, %v13385_v48  ;;  %v3222_v51 = vmul.f32 1.442695, %v3221_v38  ;;  %v13400_v39 = vld [vmem:[#allocation53_spill] sm:$0xff]  ;;  %v13402_v36 = vld [vmem:[#allocation60_spill] sm:$0xff] }
 0x2a6   : > { %13382 = vst [vmem:[#allocation86_spill] sm:$0xff] %v9968_v37  ;;  %vm9971_vm12 = vmand %vm2853_vm3, %vm2854_vm15  ;;  %v2869_v12 = vmul.f32 %v2840_v57, %v2838_v33  ;;  %v9991_v53 = vadd.f32 %v9837_v56, %v13390_v52  ;;  %v9995_v13 = vadd.f32 %v9842_v9, %v13392_v62  ;;  %v10003_v22 = vadd.f32 %v9847_v47, %v13394_v44  ;;  %v13396_v57 = vld [vmem:[#allocation68_spill] sm:$0xff]  ;;  %v13410_v29 = vld [vmem:[#allocation39_spill] sm:$0xff] }
 0x2a7   : > { %13387 = vst [vmem:[#allocation84_spill] sm:$0xff] %v9978_v23  ;;  %13389 = vst [vmem:[#allocation5_spill] sm:$0xff] %v9982_v2  ;;  %v10007_v33 = vadd.f32 %v9852_v58, %v13396_v57  ;;  %v2873_v56 = vadd.s32 %v3984_v3, %v2872_v28  ;;  %v10009_v32 = vsub.f32 %v3885_v5, %v3229_v7  ;;  %v3987_v45 = vtrunc.f32 %v3229_v7  ;;  %v13404_v3 = vld [vmem:[#allocation41_spill] sm:$0xff]  ;;  %v13408_v28 = vld [vmem:[#allocation83_spill] sm:$0xff] }
 0x2a8   : > { %vm2856_vm14 = vmand %vm9937_vm11, %vm9948_vm6  ;;  %13391 = vst [vmem:[#allocation56_spill] sm:$0xff] %v9991_v53  ;;  %v2866_v60 = vmul.f32 %v2865_v35, %v13385_v48  ;;  %v10012_v49 = vsub.f32 %v3886_v6, %v3230_v21  ;;  %v10016_v38 = vadd.f32 %v9857_v0, %v13400_v39  ;;  %v10020_v47 = vadd.f32 %v9862_v8, %v13402_v36  ;;  %v13406_v6 = vld [vmem:[#allocation90_spill] sm:$0xff]  ;;  %v13416_v62 = vld [vmem:[#allocation8_spill] sm:$0xff] }
 0x2a9   : > { %13393 = vst [vmem:[#allocation94_spill] sm:$0xff] %v9995_v13  ;;  %vm2860_vm0 = vmand %vm9960_vm2, %vm9948_vm6  ;;  %v2859_v9 = vsel %vm2856_vm14, %v2858_v59, 0.0  ;;  %v2870_v58 = vmul.f32 %v2869_v12, %v13385_v48  ;;  %v10029_v5 = vadd.f32 %v9867_v27, %v13404_v3  ;;  %v10033_v0 = vadd.f32 %v9877_v42, %v13406_v6  ;;  %v13414_v26 = vld [vmem:[#allocation6_spill] sm:$0xff]  ;;  %v13415_v12 = vld [vmem:[#allocation7_spill] sm:$0xff] }
 0x2aa   : > { %13395 = vst [vmem:[#allocation95_spill] sm:$0xff] %v10003_v22  ;;  %13397 = vst [vmem:[#allocation44_spill] sm:$0xff] %v10007_v33  ;;  %v2863_v41 = vsel %vm2860_vm0, %v2862_v40, 0.0  ;;  %v10037_v8 = vadd.f32 %v9882_v61, %v13408_v28  ;;  %4075 = vpow2.f32 %v3222_v51  ;;  %v2877_v7 = vrot.slane %v2873_v56, %v13410_v29  ;;  %v13418_v57 = vld [vmem:[#allocation10_spill] sm:$0xff]  ;;  %v13421_v36 = vld [vmem:[#allocation13_spill] sm:$0xff] }
 0x2ab   : > { %13398 = vst [vmem:[#allocation50_spill] sm:$0xff] %v10009_v32  ;;  %13399 = vst [vmem:[#allocation54_spill] sm:$0xff] %v10012_v49  ;;  %v10045_v48 = vrot.slane %v2859_v9, %v13410_v29  ;;  %v10048_v59 = vtrunc.f32 %v3230_v21  ;;  %v10053_v61 = vrot.slane %v2863_v41, %v13410_v29  ;;  %v10056_v35 = vcvt.f32.s32 %v3987_v45  ;;  %v13417_v21 = vld [vmem:[#allocation9_spill] sm:$0xff]  ;;  %v13419_v9 = vld [vmem:[#allocation11_spill] sm:$0xff] }
 0x2ac   : > { %13401 = vst [vmem:[#allocation45_spill] sm:$0xff] %v10016_v38  ;;  %13403 = vst [vmem:[#allocation48_spill] sm:$0xff] %v10020_v47  ;;  %v10061_v40 = vsub.s32 %v13414_v26, %v2877_v7  ;;  %v10064_v52 = vsub.s32 %v13415_v12, %v2877_v7  ;;  %v10067_v51 = vsub.s32 %v13416_v62, %v2877_v7  ;;  %v13420_v45 = vld [vmem:[#allocation12_spill] sm:$0xff]  ;;  %v13423_v6 = vld [vmem:[#allocation15_spill] sm:$0xff] }
 0x2ad   : > { %vm2864_vm5 = vmand %vm9937_vm11, %vm9971_vm12  ;;  %13405 = vst [vmem:[#allocation47_spill] sm:$0xff] %v10029_v5  ;;  %v10070_v44 = vsub.s32 %v13417_v21, %v2877_v7  ;;  %v10073_v56 = vsub.s32 %v13418_v57, %v2877_v7  ;;  %v10079_v39 = vsub.s32 %v13420_v45, %v2877_v7  ;;  %v10082_v41 = vsub.s32 %v13421_v36, %v2877_v7  ;;  %v13424_v17 = vld [vmem:[#allocation16_spill] sm:$0xff]  ;;  %v13426_v4 = vld [vmem:[#allocation17_spill] sm:$0xff] }
 0x2ae   : > { %13407 = vst [vmem:[#allocation93_spill] sm:$0xff] %v10033_v0  ;;  %13409 = vst [vmem:[#allocation75_spill] sm:$0xff] %v10037_v8  ;;  %v10050_v42 = vsel %vm2864_vm5, %v2866_v60, 0.0  ;;  %v10076_v60 = vsub.s32 %v13419_v9, %v2877_v7  ;;  %v10088_v28 = vsub.s32 %v13423_v6, %v2877_v7  ;;  %v10091_v27 = vsub.s32 %v13424_v17, %v2877_v7  ;;  %v13428_v9 = vld [vmem:[#allocation18_spill] sm:$0xff]  ;;  %v13430_v45 = vld [vmem:[#allocation19_spill] sm:$0xff] }
 0x2af   : > { %vm2868_vm8 = vmand %vm9960_vm2, %vm9971_vm12  ;;  %13411 = vst [vmem:[#allocation49_spill] sm:$0xff] %v10045_v48  ;;  %v10094_v19 = vsub.s32 %v13426_v4, %v2877_v7  ;;  %v10097_v57 = vsub.s32 %v13428_v9, %v2877_v7  ;;  %v10100_v21 = vsub.s32 %v13430_v45, %v2877_v7  ;;  %v13432_v36 = vld [vmem:[#allocation20_spill] sm:$0xff]  ;;  %v13435_v6 = vld [vmem:[#allocation22_spill] sm:$0xff]  ;;  %vm3006_vm4 = vcmp.eq.s32.totalorder %v10061_v40, 17 }
 0x2b0   : > { %13412 = vst [vmem:[#allocation57_spill] sm:$0xff] %v10053_v61  ;;  %13413 = vst [vmem:[#allocation70_spill] sm:$0xff] %v10056_v35  ;;  %v10058_v24 = vsel %vm2868_vm8, %v2870_v58, 0.0  ;;  %v13422_v58 = vld [vmem:[#allocation14_spill] sm:$0xff]  ;;  %v10103_v62 = vsub.s32 %v13432_v36, %v2877_v7  ;;  %v10109_v26 = vsub.s32 %v13435_v6, %v2877_v7  ;;  %v13436_v17 = vld [vmem:[#allocation23_spill] sm:$0xff]  ;;  %vm3007_vm1 = vcmp.eq.s32.totalorder %v10064_v52, 17 }
 0x2b1   : > { %v10085_v3 = vsub.s32 %v13422_v58, %v2877_v7  ;;  %13425 = vst [vmem:[#allocation71_spill] sm:$0xff] %v10091_v27  ;;  %13427 = vst [vmem:[#allocation46_spill] sm:$0xff] %v10094_v19  ;;  %v13434_v58 = vld [vmem:[#allocation21_spill] sm:$0xff]  ;;  %v10112_v8 = vsub.s32 %v13436_v17, %v2877_v7  ;;  %v13437_v4 = vld [vmem:[#allocation24_spill] sm:$0xff]  ;;  %vm3008_vm9 = vcmp.eq.s32.totalorder %v10067_v51, 17  ;;  %vm3009_vm13 = vcmp.eq.s32.totalorder %v10070_v44, 17 }
 0x2b2   : > { %13429 = vst [vmem:[#allocation59_spill] sm:$0xff] %v10097_v57  ;;  %13431 = vst [vmem:[#allocation74_spill] sm:$0xff] %v10100_v21  ;;  %v10106_v12 = vsub.s32 %v13434_v58, %v2877_v7  ;;  %v10115_v0 = vsub.s32 %v13437_v4, %v2877_v7  ;;  %v13439_v9 = vld [vmem:[#allocation25_spill] sm:$0xff]  ;;  %v13440_v45 = vld [vmem:[#allocation26_spill] sm:$0xff]  ;;  %vm3010_vm7 = vcmp.eq.s32.totalorder %v10073_v56, 17  ;;  %vm3011_vm10 = vcmp.eq.s32.totalorder %v10076_v60, 17 }
 0x2b3   : > { %13433 = vst [vmem:[#allocation73_spill] sm:$0xff] %v10103_v62  ;;  %v10118_v5 = vsub.s32 %v13439_v9, %v2877_v7  ;;  %v10121_v47 = vsub.s32 %v13440_v45, %v2877_v7  ;;  %v13441_v36 = vld [vmem:[#allocation27_spill] sm:$0xff]  ;;  %v13443_v58 = vld [vmem:[#allocation28_spill] sm:$0xff]  ;;  %v13444_v6 = vld [vmem:[#allocation29_spill] sm:$0xff]  ;;  %vm2984_vm14 = vcmp.eq.s32.totalorder %v10091_v27, 16  ;;  %vm2985_vm11 = vcmp.eq.s32.totalorder %v10094_v19, 16 }
 0x2b4   : > { %13438 = vst [vmem:[#allocation80_spill] sm:$0xff] %v10115_v0  ;;  %v10124_v38 = vsub.s32 %v13441_v36, %v2877_v7  ;;  %v10127_v33 = vsub.s32 %v13443_v58, %v2877_v7  ;;  %v10130_v22 = vsub.s32 %v13444_v6, %v2877_v7  ;;  %v13445_v17 = vld [vmem:[#allocation30_spill] sm:$0xff]  ;;  %v13446_v4 = vld [vmem:[#allocation31_spill] sm:$0xff]  ;;  %v13447_v9 = vld [vmem:[#allocation32_spill] sm:$0xff]  ;;  %vm2989_vm12 = vcmp.eq.s32.totalorder %v10106_v12, 16 }
 0x2b5   : > { %v10133_v13 = vsub.s32 %v13445_v17, %v2877_v7  ;;  %v10136_v53 = vsub.s32 %v13446_v4, %v2877_v7  ;;  %v10139_v2 = vsub.s32 %v13447_v9, %v2877_v7  ;;  %v13449_v45 = vld [vmem:[#allocation34_spill] sm:$0xff]  ;;  %v13450_v36 = vld [vmem:[#allocation35_spill] sm:$0xff]  ;;  %v13451_v58 = vld [vmem:[#allocation36_spill] sm:$0xff]  ;;  %vm2990_vm2 = vcmp.eq.s32.totalorder %v10109_v26, 16 }
 0x2b6   : > { %13442 = vst [vmem:[#allocation42_spill] sm:$0xff] %v10124_v38  ;;  %v10142_v23 = vsub.s32 %v13449_v45, %v2877_v7  ;;  %v10145_v37 = vsub.s32 %v13450_v36, %v2877_v7  ;;  %v10148_v43 = vsub.s32 %v13451_v58, %v2877_v7  ;;  %v13452_v6 = vld [vmem:[#allocation37_spill] sm:$0xff]  ;;  %v13454_v17 = vld [vmem:[#allocation38_spill] sm:$0xff]  ;;  %vm13462_vm6 = vcmp.eq.s32.totalorder %v10091_v27, 17 }
 0x2b7   : > { %13448 = vst [vmem:[#allocation69_spill] sm:$0xff] %v10139_v2  ;;  %v10151_v20 = vsub.s32 %v13452_v6, %v2877_v7  ;;  %v10154_v25 = vsub.s32 %v13454_v17, %v2877_v7  ;;  %v4076_v58 = vpop.eup %4075  ;;  %vm3030_vm3 = vcmp.eq.s32.totalorder %v10133_v13, 17  ;;  %vm3031_vm15 = vcmp.eq.s32.totalorder %v10136_v53, 17  ;;  %v13455_v6 = vld [vmem:[#allocation85_spill] sm:$0xff] }
 0x2b8   : > { %vm3034_vm8 = vcmp.eq.s32.totalorder %v10145_v37, 17  ;;  %v10195_v7 = vrot.slane %v10058_v24, %v13410_v29  ;;  %v10205_v17 = vrot.slane %v10050_v42, %v13410_v29  ;;  %v10208_v36 = vmul.f32 %v4076_v58, %v13455_v6 }
 0x2b9   : > { %13453 = vst [vmem:[#allocation65_spill] sm:$0xff] %v10151_v20  ;;  %vm3036_vm0 = vcmp.eq.s32.totalorder %v10151_v20, 17  ;;  %vm3037_vm5 = vcmp.eq.s32.totalorder %v10154_v25, 17  ;;  %v10230_v6 = vcvt.f32.s32 %v10048_v59 }
 0x2ba   : > { %13456 = vst [vmem:[#allocation40_spill] sm:$0xff] %v10208_v36  ;;  %v10217_v24 = vsel %vm3006_vm4, %v10195_v7, 0.0  ;;  %v10222_v42 = vsel %vm3007_vm1, %v10195_v7, 0.0  ;;  %v10227_v58 = vsel %vm3008_vm9, %v10195_v7, 0.0  ;;  %v10239_v45 = vsel %vm3009_vm13, %v10195_v7, 0.0 }
 0x2bb   : > { %13457 = vst [vmem:[#allocation58_spill] sm:$0xff] %v10230_v6  ;;  %v10244_v9 = vsel %vm3010_vm7, %v10195_v7, 0.0  ;;  %v10249_v59 = vsel %vm3011_vm10, %v10195_v7, 0.0  ;;  %vm13458_vm1 = vcmp.eq.s32.totalorder %v10079_v39, 17  ;;  %vm13459_vm7 = vcmp.eq.s32.totalorder %v10082_v41, 17 }
 0x2bc   : > { %v10254_v4 = vsel %vm13458_vm1, %v10195_v7, 0.0  ;;  %v10263_v29 = vsel %vm13459_vm7, %v10195_v7, 0.0  ;;  %vm13460_vm10 = vcmp.eq.s32.totalorder %v10085_v3, 17  ;;  %vm13461_vm1 = vcmp.eq.s32.totalorder %v10088_v28, 17 }
 0x2bd   : > { %v10268_v34 = vsel %vm13460_vm10, %v10195_v7, 0.0  ;;  %v10273_v50 = vsel %vm13461_vm1, %v10195_v7, 0.0  ;;  %v10278_v11 = vsel %vm13462_vm6, %v10195_v7, 0.0  ;;  %vm13463_vm10 = vcmp.eq.s32.totalorder %v10094_v19, 17 }
 0x2be   : > { %v10287_v63 = vsel %vm13463_vm10, %v10195_v7, 0.0  ;;  %vm13464_vm1 = vcmp.eq.s32.totalorder %v10097_v57, 17  ;;  %vm13465_vm6 = vcmp.eq.s32.totalorder %v10100_v21, 17  ;;  %vm13466_vm13 = vcmp.eq.s32.totalorder %v10103_v62, 17 }
 0x2bf   : > { %v10292_v36 = vsel %vm13464_vm1, %v10195_v7, 0.0  ;;  %v10297_v15 = vsel %vm13465_vm6, %v10195_v7, 0.0  ;;  %v10302_v16 = vsel %vm13466_vm13, %v10195_v7, 0.0  ;;  %vm13467_vm1 = vcmp.eq.s32.totalorder %v10106_v12, 17 }
 0x2c0   : > { %v10311_v30 = vsel %vm13467_vm1, %v10195_v7, 0.0  ;;  %vm13468_vm6 = vcmp.eq.s32.totalorder %v10109_v26, 17  ;;  %vm13469_vm13 = vcmp.eq.s32.totalorder %v10112_v8, 17  ;;  %vm13470_vm7 = vcmp.eq.s32.totalorder %v10115_v0, 17 }
 0x2c1   : > { %v10316_v18 = vsel %vm13468_vm6, %v10195_v7, 0.0  ;;  %v10321_v10 = vsel %vm13469_vm13, %v10195_v7, 0.0  ;;  %v10326_v54 = vsel %vm13470_vm7, %v10195_v7, 0.0  ;;  %vm13471_vm6 = vcmp.eq.s32.totalorder %v10118_v5, 17 }
 0x2c2   : > { %v10335_v55 = vsel %vm13471_vm6, %v10195_v7, 0.0  ;;  %vm13472_vm13 = vcmp.eq.s32.totalorder %v10121_v47, 17  ;;  %vm13473_vm7 = vcmp.eq.s32.totalorder %v10124_v38, 17  ;;  %vm13474_vm10 = vcmp.eq.s32.totalorder %v10127_v33, 17 }
 0x2c3   : > { %v10340_v31 = vsel %vm13472_vm13, %v10195_v7, 0.0  ;;  %v10345_v14 = vsel %vm13473_vm7, %v10195_v7, 0.0  ;;  %v10350_v46 = vsel %vm13474_vm10, %v10195_v7, 0.0  ;;  %vm2945_vm1 = vcmp.eq.s32.totalorder %v10070_v44, 1 }
 0x2c4   : > { %vm2946_vm6 = vcmp.eq.s32.totalorder %v10073_v56, 1  ;;  %vm13475_vm13 = vcmp.eq.s32.totalorder %v10130_v22, 17  ;;  %v10364_v49 = vsel %vm3030_vm3, %v10195_v7, 0.0  ;;  %v10369_v32 = vsel %vm3031_vm15, %v10195_v7, 0.0 }
 0x2c5   : > { %v10359_v1 = vsel %vm13475_vm13, %v10195_v7, 0.0  ;;  %vm13476_vm10 = vcmp.eq.s32.totalorder %v10139_v2, 17  ;;  %vm2949_vm7 = vcmp.eq.s32.totalorder %v10082_v41, 1  ;;  %vm2950_vm13 = vcmp.eq.s32.totalorder %v10085_v3, 1 }
 0x2c6   : > { %v10374_v6 = vsel %vm13476_vm10, %v10195_v7, 0.0  ;;  %vm13478_vm3 = vcmp.eq.s32.totalorder %v10142_v23, 17  ;;  %v10388_v35 = vsel %vm3034_vm8, %v10195_v7, 0.0  ;;  %vm13481_vm15 = vcmp.eq.s32.totalorder %v10148_v43, 17 }
 0x2c7   : > { %13477 = vst [vmem:[#allocation91_spill] sm:$0xff] %v10374_v6  ;;  %v10383_v48 = vsel %vm13478_vm3, %v10195_v7, 0.0  ;;  %13480 = vst [vmem:[#allocation92_spill] sm:$0xff] %v10388_v35  ;;  %v10393_v61 = vsel %vm13481_vm15, %v10195_v7, 0.0  ;;  %v10398_v6 = vsel %vm3036_vm0, %v10195_v7, 0.0  ;;  %vm2953_vm10 = vcmp.eq.s32.totalorder %v10094_v19, 1 }
 0x2c8   : > { %13479 = vst [vmem:[#allocation67_spill] sm:$0xff] %v10383_v48  ;;  %13482 = vst [vmem:[#allocation68_spill] sm:$0xff] %v10393_v61  ;;  %v10407_v35 = vsel %vm3037_vm5, %v10195_v7, 0.0  ;;  %vm13484_vm8 = vcmp.eq.s32.totalorder %v10061_v40, 16  ;;  %vm13485_vm0 = vcmp.eq.s32.totalorder %v10064_v52, 16  ;;  %vm13486_vm15 = vcmp.eq.s32.totalorder %v10067_v51, 16 }
 0x2c9   : > { %13483 = vst [vmem:[#allocation53_spill] sm:$0xff] %v10398_v6  ;;  %v10413_v61 = vsel %vm13484_vm8, %v10205_v17, %v10217_v24  ;;  %v10419_v6 = vsel %vm13485_vm0, %v10205_v17, %v10222_v42  ;;  %v10425_v48 = vsel %vm13486_vm15, %v10205_v17, %v10227_v58  ;;  %vm13487_vm3 = vcmp.eq.s32.totalorder %v10070_v44, 16 }
 0x2ca   : > { %v10435_v7 = vsel %vm13487_vm3, %v10205_v17, %v10239_v45  ;;  %vm13488_vm0 = vcmp.eq.s32.totalorder %v10073_v56, 16  ;;  %vm13489_vm15 = vcmp.eq.s32.totalorder %v10076_v60, 16  ;;  %vm13490_vm8 = vcmp.eq.s32.totalorder %v10079_v39, 16 }
 0x2cb   : > { %v10441_v24 = vsel %vm13488_vm0, %v10205_v17, %v10244_v9  ;;  %v10447_v42 = vsel %vm13489_vm15, %v10205_v17, %v10249_v59  ;;  %v10453_v58 = vsel %vm13490_vm8, %v10205_v17, %v10254_v4  ;;  %vm2961_vm3 = vcmp.eq.s32.totalorder %v10118_v5, 1 }
 0x2cc   : > { %vm2962_vm4 = vcmp.eq.s32.totalorder %v10121_v47, 1  ;;  %vm13491_vm5 = vcmp.eq.s32.totalorder %v10082_v41, 16  ;;  %vm13492_vm15 = vcmp.eq.s32.totalorder %v10085_v3, 16  ;;  %vm13493_vm8 = vcmp.eq.s32.totalorder %v10088_v28, 16 }
 0x2cd   : > { %v10463_v9 = vsel %vm13491_vm5, %v10205_v17, %v10263_v29  ;;  %v10469_v4 = vsel %vm13492_vm15, %v10205_v17, %v10268_v34  ;;  %v10475_v45 = vsel %vm13493_vm8, %v10205_v17, %v10273_v50  ;;  %v10481_v59 = vsel %vm2984_vm14, %v10205_v17, %v10278_v11 }
 0x2ce   : > { %vm2965_vm5 = vcmp.eq.s32.totalorder %v10130_v22, 1  ;;  %v10491_v50 = vsel %vm2985_vm11, %v10205_v17, %v10287_v63  ;;  %vm13494_vm8 = vcmp.eq.s32.totalorder %v10097_v57, 16  ;;  %vm13495_vm14 = vcmp.eq.s32.totalorder %v10100_v21, 16 }
 0x2cf   : > { %v10497_v11 = vsel %vm13494_vm8, %v10205_v17, %v10292_v36  ;;  %v10503_v34 = vsel %vm13495_vm14, %v10205_v17, %v10297_v15  ;;  %vm13496_vm15 = vcmp.eq.s32.totalorder %v10103_v62, 16  ;;  %vm2969_vm11 = vcmp.eq.s32.totalorder %v10142_v23, 1 }
 0x2d0   : > { %v10509_v29 = vsel %vm13496_vm15, %v10205_v17, %v10302_v16  ;;  %v10519_v15 = vsel %vm2989_vm12, %v10205_v17, %v10311_v30  ;;  %v10525_v16 = vsel %vm2990_vm2, %v10205_v17, %v10316_v18  ;;  %vm13500_vm15 = vcmp.eq.s32.totalorder %v10112_v8, 16 }
 0x2d1   : > { %13497 = vst [vmem:[#allocation60_spill] sm:$0xff] %v10509_v29  ;;  %13498 = vst [vmem:[#allocation41_spill] sm:$0xff] %v10519_v15  ;;  %v10531_v63 = vsel %vm13500_vm15, %v10205_v17, %v10321_v10  ;;  %vm13502_vm14 = vcmp.eq.s32.totalorder %v10115_v0, 16  ;;  %vm13504_vm9 = vcmp.eq.s32.totalorder %v10118_v5, 16  ;;  %vm13505_vm15 = vcmp.eq.s32.totalorder %v10121_v47, 16  ;;  %v13519_v15 = vld [vmem:[#allocation53_spill] sm:$0xff] }
 0x2d2   : > { %13499 = vst [vmem:[#allocation90_spill] sm:$0xff] %v10525_v16  ;;  %13501 = vst [vmem:[#allocation83_spill] sm:$0xff] %v10531_v63  ;;  %v10537_v36 = vsel %vm13502_vm14, %v10205_v17, %v10326_v54  ;;  %v3097_v10 = vsel %vm13504_vm9, %v10205_v17, %v10335_v55  ;;  %v3098_v18 = vsel %vm13505_vm15, %v10205_v17, %v10340_v31  ;;  %vm13506_vm14 = vcmp.eq.s32.totalorder %v10124_v38, 16  ;;  %v13511_v55 = vld [vmem:[#allocation91_spill] sm:$0xff]  ;;  %v13515_v63 = vld [vmem:[#allocation92_spill] sm:$0xff] }
 0x2d3   : > { %13503 = vst [vmem:[#allocation85_spill] sm:$0xff] %v10537_v36  ;;  %v3099_v54 = vsel %vm13506_vm14, %v10205_v17, %v10345_v14  ;;  %vm13507_vm0 = vcmp.eq.s32.totalorder %v10127_v33, 16  ;;  %vm13508_vm15 = vcmp.eq.s32.totalorder %v10130_v22, 16  ;;  %vm13509_vm14 = vcmp.eq.s32.totalorder %v10133_v13, 16  ;;  %v13517_v16 = vld [vmem:[#allocation68_spill] sm:$0xff] }
 0x2d4   : > { %v3100_v30 = vsel %vm13507_vm0, %v10205_v17, %v10350_v46  ;;  %v3101_v31 = vsel %vm13508_vm15, %v10205_v17, %v10359_v1  ;;  %v3102_v14 = vsel %vm13509_vm14, %v10205_v17, %v10364_v49  ;;  %vm13510_vm0 = vcmp.eq.s32.totalorder %v10136_v53, 16  ;;  %v13513_v1 = vld [vmem:[#allocation67_spill] sm:$0xff] }
 0x2d5   : > { %v3103_v46 = vsel %vm13510_vm0, %v10205_v17, %v10369_v32  ;;  %vm13512_vm9 = vcmp.eq.s32.totalorder %v10139_v2, 16  ;;  %vm13514_vm14 = vcmp.eq.s32.totalorder %v10142_v23, 16  ;;  %vm13516_vm0 = vcmp.eq.s32.totalorder %v10145_v37, 16 }
 0x2d6   : > { %v3104_v36 = vsel %vm13512_vm9, %v10205_v17, %v13511_v55  ;;  %v3105_v49 = vsel %vm13514_vm14, %v10205_v17, %v13513_v1  ;;  %v3106_v32 = vsel %vm13516_vm0, %v10205_v17, %v13515_v63  ;;  %vm13518_vm9 = vcmp.eq.s32.totalorder %v10148_v43, 16 }
 0x2d7   : > { %v3107_v55 = vsel %vm13518_vm9, %v10205_v17, %v13517_v16  ;;  %vm13520_vm15 = vcmp.eq.s32.totalorder %v10151_v20, 16  ;;  %vm13521_vm0 = vcmp.eq.s32.totalorder %v10154_v25, 16  ;;  %v13522_v16 = vld [vmem:[#allocation57_spill] sm:$0xff]  ;;  %vm13523_vm9 = vcmp.eq.s32.totalorder %v10061_v40, 1 }
 0x2d8   : > { %v3108_v29 = vsel %vm13520_vm15, %v10205_v17, %v13519_v15  ;;  %v3109_v63 = vsel %vm13521_vm0, %v10205_v17, %v10407_v35  ;;  %v3114_v1 = vsel %vm13523_vm9, %v13522_v16, %v10413_v61  ;;  %vm13524_vm15 = vcmp.eq.s32.totalorder %v10064_v52, 1 }
 0x2d9   : > { %v3115_v15 = vsel %vm13524_vm15, %v13522_v16, %v10419_v6  ;;  %vm13525_vm14 = vcmp.eq.s32.totalorder %v10067_v51, 1  ;;  %vm2925_vm2 = vcmp.eq.s32.totalorder %v10106_v12, 0  ;;  %vm2926_vm12 = vcmp.eq.s32.totalorder %v10109_v26, 0 }
 0x2da   : > { %v3116_v20 = vsel %vm13525_vm14, %v13522_v16, %v10425_v48  ;;  %v3117_v61 = vsel %vm2945_vm1, %v13522_v16, %v10435_v7  ;;  %v3118_v17 = vsel %vm2946_vm6, %v13522_v16, %v10441_v24  ;;  %vm13526_vm14 = vcmp.eq.s32.totalorder %v10076_v60, 1 }
 0x2db   : > { %v3119_v48 = vsel %vm13526_vm14, %v13522_v16, %v10447_v42  ;;  %vm13527_vm9 = vcmp.eq.s32.totalorder %v10079_v39, 1  ;;  %vm2929_vm15 = vcmp.eq.s32.totalorder %v10118_v5, 0  ;;  %vm2930_vm8 = vcmp.eq.s32.totalorder %v10121_v47, 0 }
 0x2dc   : > { %v3120_v35 = vsel %vm13527_vm9, %v13522_v16, %v10453_v58  ;;  %v3121_v6 = vsel %vm2949_vm7, %v13522_v16, %v10463_v9  ;;  %v3122_v7 = vsel %vm2950_vm13, %v13522_v16, %v10469_v4  ;;  %vm13528_vm6 = vcmp.eq.s32.totalorder %v10088_v28, 1 }
 0x2dd   : > { %v3123_v24 = vsel %vm13528_vm6, %v13522_v16, %v10475_v45  ;;  %vm13529_vm14 = vcmp.eq.s32.totalorder %v10091_v27, 1  ;;  %vm2933_vm9 = vcmp.eq.s32.totalorder %v10130_v22, 0  ;;  %vm2934_vm0 = vcmp.eq.s32.totalorder %v10133_v13, 0  ;;  %v13532_v45 = vld [vmem:[#allocation60_spill] sm:$0xff]  ;;  %v13542_v27 = vld [vmem:[#allocation65_spill] sm:$0xff] }
 0x2de   : > { %v3124_v42 = vsel %vm13529_vm14, %v13522_v16, %v10481_v59  ;;  %v3125_v58 = vsel %vm2953_vm10, %v13522_v16, %v10491_v50  ;;  %vm13530_vm13 = vcmp.eq.s32.totalorder %v10097_v57, 1  ;;  %vm13531_vm6 = vcmp.eq.s32.totalorder %v10100_v21, 1  ;;  %v13534_v50 = vld [vmem:[#allocation41_spill] sm:$0xff] }
 0x2df   : > { %v3126_v9 = vsel %vm13530_vm13, %v13522_v16, %v10497_v11  ;;  %v3127_v4 = vsel %vm13531_vm6, %v13522_v16, %v10503_v34  ;;  %vm13533_vm14 = vcmp.eq.s32.totalorder %v10103_v62, 1  ;;  %vm13535_vm10 = vcmp.eq.s32.totalorder %v10106_v12, 1  ;;  %v13536_v11 = vld [vmem:[#allocation90_spill] sm:$0xff]  ;;  %v13538_v34 = vld [vmem:[#allocation83_spill] sm:$0xff] }
 0x2e0   : > { %v3128_v59 = vsel %vm13533_vm14, %v13522_v16, %v13532_v45  ;;  %v3129_v57 = vsel %vm13535_vm10, %v13522_v16, %v13534_v50  ;;  %vm13537_vm13 = vcmp.eq.s32.totalorder %v10109_v26, 1  ;;  %vm13539_vm6 = vcmp.eq.s32.totalorder %v10112_v8, 1  ;;  %v13540_v45 = vld [vmem:[#allocation85_spill] sm:$0xff] }
 0x2e1   : > { %v3130_v21 = vsel %vm13537_vm13, %v13522_v16, %v13536_v11  ;;  %v3131_v62 = vsel %vm13539_vm6, %v13522_v16, %v13538_v34  ;;  %vm13541_vm14 = vcmp.eq.s32.totalorder %v10115_v0, 1  ;;  %vm2939_vm7 = vcmp.eq.s32.totalorder %v10148_v43, 0 }
 0x2e2   : > { %v3132_v19 = vsel %vm13541_vm14, %v13522_v16, %v13540_v45  ;;  %vm2940_vm1 = vcmp.eq.s32.totalorder %v13542_v27, 0  ;;  %vm2941_vm10 = vcmp.eq.s32.totalorder %v10154_v25, 0  ;;  %v3133_v50 = vsel %vm2961_vm3, %v13522_v16, %v3097_v10 }
 0x2e3   : > { %v3134_v11 = vsel %vm2962_vm4, %v13522_v16, %v3098_v18  ;;  %vm13543_vm13 = vcmp.eq.s32.totalorder %v10124_v38, 1  ;;  %vm13544_vm6 = vcmp.eq.s32.totalorder %v10127_v33, 1  ;;  %v3137_v0 = vsel %vm2965_vm5, %v13522_v16, %v3101_v31  ;;  %v13548_v38 = vld [vmem:[#allocation70_spill] sm:$0xff] }
 0x2e4   : > { %v3135_v34 = vsel %vm13543_vm13, %v13522_v16, %v3099_v54  ;;  %v3136_v45 = vsel %vm13544_vm6, %v13522_v16, %v3100_v30  ;;  %vm13545_vm14 = vcmp.eq.s32.totalorder %v10133_v13, 1  ;;  %vm13546_vm3 = vcmp.eq.s32.totalorder %v10136_v53, 1 }
 0x2e5   : > { %v3138_v10 = vsel %vm13545_vm14, %v13522_v16, %v3102_v14  ;;  %v3139_v18 = vsel %vm13546_vm3, %v13522_v16, %v3103_v46  ;;  %vm13547_vm4 = vcmp.eq.s32.totalorder %v10139_v2, 1  ;;  %vm3238_vm6 = vcmp.lt.s32.totalorder %v13548_v38, 16  ;;  %v13553_v2 = vld [vmem:[#allocation49_spill] sm:$0xff] }
 0x2e6   : > { %v3140_v54 = vsel %vm13547_vm4, %v13522_v16, %v3104_v36  ;;  %v3141_v30 = vsel %vm2969_vm11, %v13522_v16, %v3105_v49  ;;  %vm13549_vm5 = vcmp.eq.s32.totalorder %v10145_v37, 1  ;;  %vm13550_vm14 = vcmp.eq.s32.totalorder %v10148_v43, 1  ;;  %v13591_v43 = vld [vmem:[#allocation50_spill] sm:$0xff] }
 0x2e7   : > { %v3142_v31 = vsel %vm13549_vm5, %v13522_v16, %v3106_v32  ;;  %v3143_v14 = vsel %vm13550_vm14, %v13522_v16, %v3107_v55  ;;  %vm13551_vm3 = vcmp.eq.s32.totalorder %v13542_v27, 1  ;;  %vm13552_vm4 = vcmp.eq.s32.totalorder %v10154_v25, 1 }
 0x2e8   : > { %v3144_v36 = vsel %vm13551_vm3, %v13522_v16, %v3108_v29  ;;  %v3145_v46 = vsel %vm13552_vm4, %v13522_v16, %v3109_v63  ;;  %vm13554_vm13 = vcmp.eq.s32.totalorder %v10061_v40, 0  ;;  %vm13556_vm11 = vcmp.eq.s32.totalorder %v10064_v52, 0  ;;  %v13568_v16 = vld [vmem:[#allocation46_spill] sm:$0xff] }
 0x2e9   : > { %v10744_v49 = vsel %vm13554_vm13, %v13553_v2, %v3114_v1  ;;  %v10749_v32 = vsel %vm13556_vm11, %v13553_v2, %v3115_v15  ;;  %vm13558_vm5 = vcmp.eq.s32.totalorder %v10067_v51, 0  ;;  %vm13559_vm3 = vcmp.eq.s32.totalorder %v10070_v44, 0  ;;  %v13570_v1 = vld [vmem:[#allocation59_spill] sm:$0xff]  ;;  %v13572_v15 = vld [vmem:[#allocation74_spill] sm:$0xff] }
 0x2ea   : > { %13555 = vst [vmem:[#allocation91_spill] sm:$0xff] %v10744_v49  ;;  %13557 = vst [vmem:[#allocation67_spill] sm:$0xff] %v10749_v32  ;;  %v3152_v55 = vsel %vm13558_vm5, %v13553_v2, %v3116_v20  ;;  %v3153_v29 = vsel %vm13559_vm3, %v13553_v2, %v3117_v61  ;;  %vm13560_vm4 = vcmp.eq.s32.totalorder %v10073_v56, 0  ;;  %vm13561_vm13 = vcmp.eq.s32.totalorder %v10076_v60, 0  ;;  %v13566_v56 = vld [vmem:[#allocation71_spill] sm:$0xff]  ;;  %v13574_v61 = vld [vmem:[#allocation73_spill] sm:$0xff] }
 0x2eb   : > { %v3154_v40 = vsel %vm13560_vm4, %v13553_v2, %v3118_v17  ;;  %v3155_v52 = vsel %vm13561_vm13, %v13553_v2, %v3119_v48  ;;  %vm13562_vm11 = vcmp.eq.s32.totalorder %v10079_v39, 0  ;;  %vm13563_vm5 = vcmp.eq.s32.totalorder %v10082_v41, 0 }
 0x2ec   : > { %v3156_v63 = vsel %vm13562_vm11, %v13553_v2, %v3120_v35  ;;  %v3157_v20 = vsel %vm13563_vm5, %v13553_v2, %v3121_v6  ;;  %vm13564_vm14 = vcmp.eq.s32.totalorder %v10085_v3, 0  ;;  %vm13565_vm3 = vcmp.eq.s32.totalorder %v10088_v28, 0  ;;  %v13577_v6 = vld [vmem:[#allocation80_spill] sm:$0xff] }
 0x2ed   : > { %v3158_v51 = vsel %vm13564_vm14, %v13553_v2, %v3122_v7  ;;  %v3159_v44 = vsel %vm13565_vm3, %v13553_v2, %v3123_v24  ;;  %vm13567_vm4 = vcmp.eq.s32.totalorder %v13566_v56, 0  ;;  %vm13569_vm13 = vcmp.eq.s32.totalorder %v13568_v16, 0  ;;  %v13617_v16 = vld [vmem:[#allocation77_spill] sm:$0xff] }
 0x2ee   : > { %v3160_v60 = vsel %vm13567_vm4, %v13553_v2, %v3124_v42  ;;  %v3161_v39 = vsel %vm13569_vm13, %v13553_v2, %v3125_v58  ;;  %vm13571_vm11 = vcmp.eq.s32.totalorder %v13570_v1, 0  ;;  %vm13573_vm5 = vcmp.eq.s32.totalorder %v13572_v15, 0  ;;  %v13593_v42 = vld [vmem:[#allocation54_spill] sm:$0xff] }
 0x2ef   : > { %v3162_v41 = vsel %vm13571_vm11, %v13553_v2, %v3126_v9  ;;  %v3163_v3 = vsel %vm13573_vm5, %v13553_v2, %v3127_v4  ;;  %vm13575_vm14 = vcmp.eq.s32.totalorder %v13574_v61, 0  ;;  %v3165_v17 = vsel %vm2925_vm2, %v13553_v2, %v3129_v57  ;;  %v13579_v57 = vld [vmem:[#allocation42_spill] sm:$0xff]  ;;  %v13596_v4 = vld [vmem:[#allocation81_spill] sm:$0xff] }
 0x2f0   : > { %v3164_v28 = vsel %vm13575_vm14, %v13553_v2, %v3128_v59  ;;  %v3166_v48 = vsel %vm2926_vm12, %v13553_v2, %v3130_v21  ;;  %vm13576_vm3 = vcmp.eq.s32.totalorder %v10112_v8, 0  ;;  %vm13578_vm4 = vcmp.eq.s32.totalorder %v13577_v6, 0  ;;  %v13619_v1 = vld [vmem:[#allocation78_spill] sm:$0xff] }
 0x2f1   : > { %v3167_v35 = vsel %vm13576_vm3, %v13553_v2, %v3131_v62  ;;  %v3168_v7 = vsel %vm13578_vm4, %v13553_v2, %v3132_v19  ;;  %v3169_v24 = vsel %vm2929_vm15, %v13553_v2, %v3133_v50  ;;  %v3170_v12 = vsel %vm2930_vm8, %v13553_v2, %v3134_v11  ;;  %v13583_v62 = vld [vmem:[#allocation69_spill] sm:$0xff]  ;;  %v13598_v50 = vld [vmem:[#allocation51_spill] sm:$0xff] }
 0x2f2   : > { %vm13580_vm2 = vcmp.eq.s32.totalorder %v13579_v57, 0  ;;  %vm13581_vm12 = vcmp.eq.s32.totalorder %v10127_v33, 0  ;;  %v3173_v19 = vsel %vm2933_vm9, %v13553_v2, %v3137_v0  ;;  %v3174_v5 = vsel %vm2934_vm0, %v13553_v2, %v3138_v10  ;;  %v13587_v0 = vld [vmem:[#allocation58_spill] sm:$0xff]  ;;  %v13602_v10 = vld [vmem:[#allocation79_spill] sm:$0xff] }
 0x2f3   : > { %v3171_v26 = vsel %vm13580_vm2, %v13553_v2, %v3135_v34  ;;  %v3172_v8 = vsel %vm13581_vm12, %v13553_v2, %v3136_v45  ;;  %vm13582_vm15 = vcmp.eq.s32.totalorder %v10136_v53, 0  ;;  %vm13584_vm8 = vcmp.eq.s32.totalorder %v13583_v62, 0  ;;  %v13600_v34 = vld [vmem:[#allocation43_spill] sm:$0xff] }
 0x2f4   : > { %v3175_v47 = vsel %vm13582_vm15, %v13553_v2, %v3139_v18  ;;  %v3176_v21 = vsel %vm13584_vm8, %v13553_v2, %v3140_v54  ;;  %vm13585_vm13 = vcmp.eq.s32.totalorder %v10142_v23, 0  ;;  %vm13586_vm11 = vcmp.eq.s32.totalorder %v10145_v37, 0  ;;  %v13653_v54 = vld [vmem:[#allocation45_spill] sm:$0xff]  ;;  %v13655_v37 = vld [vmem:[#allocation48_spill] sm:$0xff] }
 0x2f5   : > { %v3177_v33 = vsel %vm13585_vm13, %v13553_v2, %v3141_v30  ;;  %v3178_v22 = vsel %vm13586_vm11, %v13553_v2, %v3142_v31  ;;  %vm3243_vm9 = vcmp.ge.s32.totalorder %v13587_v0, 0  ;;  %vm3244_vm0 = vcmp.lt.s32.totalorder %v13587_v0, 16  ;;  %v13606_v30 = vld [vmem:[#allocation33_spill] sm:$0xff] }
 0x2f6   : > { %v3179_v53 = vsel %vm2939_vm7, %v13553_v2, %v3143_v14  ;;  %v3180_v13 = vsel %vm2940_vm1, %v13553_v2, %v3144_v36  ;;  %v3181_v23 = vsel %vm2941_vm10, %v13553_v2, %v3145_v46  ;;  %vm3241_vm5 = vcmp.lt.s32.totalorder %v13548_v38, 15  ;;  %vm10876_vm1 = vmand %vm3243_vm9, %vm3244_vm0  ;;  %v13608_v14 = vld [vmem:[#allocation72_spill] sm:$0xff]  ;;  %v13610_v46 = vld [vmem:[#allocation82_spill] sm:$0xff] }
 0x2f7   : > { %vm13588_vm14 = vcmp.ge.s32.totalorder %v13548_v38, 0  ;;  %vm3246_vm7 = vcmp.ge.s32.totalorder %v13587_v0, 4294967295  ;;  %vm3247_vm4 = vcmp.lt.s32.totalorder %v13587_v0, 15  ;;  %v13592_v27 = vsub.f32 1.0, %v13591_v43 }
 0x2f8   : > { %vm10849_vm3 = vmand %vm13588_vm14, %vm3238_vm6  ;;  %v13594_v58 = vsub.f32 1.0, %v13593_v42  ;;  %v10863_v59 = vadd.f32 %v3152_v55, %v13596_v4  ;;  %v10866_v11 = vadd.f32 %v3153_v29, %v13598_v50  ;;  %v10869_v45 = vadd.f32 %v3154_v40, %v13600_v34  ;;  %v13631_v50 = vld [vmem:[#allocation62_spill] sm:$0xff] }
 0x2f9   : > { %v10872_v18 = vadd.f32 %v3155_v52, %v13602_v10  ;;  %v10881_v31 = vadd.f32 %v3156_v63, %v13606_v30  ;;  %v10884_v36 = vadd.f32 %v3157_v20, %v13608_v14  ;;  %v10887_v55 = vadd.f32 %v3158_v51, %v13610_v46  ;;  %v13615_v52 = vld [vmem:[#allocation76_spill] sm:$0xff]  ;;  %vm10909_vm2 = vmand %vm3246_vm7, %vm3247_vm4  ;;  %v13639_v10 = vld [vmem:[#allocation86_spill] sm:$0xff] }
 0x2fa   : > { %v3250_v25 = vmul.f32 %v13594_v58, %v13592_v27  ;;  %v13595_v2 = vmov %v13594_v58  ;;  %13597 = vst [vmem:[#allocation92_spill] sm:$0xff] %v10863_v59  ;;  %13599 = vst [vmem:[#allocation68_spill] sm:$0xff] %v10866_v11  ;;  %vm13612_vm10 = vcmp.ge.s32.totalorder %v13548_v38, 4294967295  ;;  %v3265_v40 = vmul.u32 16, %v13587_v0  ;;  %v13627_v0 = vld [vmem:[#allocation66_spill] sm:$0xff]  ;;  %v13629_v58 = vld [vmem:[#allocation61_spill] sm:$0xff] }
 0x2fb   : > { %v3254_v9 = vmul.f32 %v13595_v2, %v13591_v43  ;;  %13601 = vst [vmem:[#allocation53_spill] sm:$0xff] %v10869_v45  ;;  %13603 = vst [vmem:[#allocation57_spill] sm:$0xff] %v10872_v18  ;;  %v10897_v56 = vadd.f32 %v3159_v44, %v13615_v52  ;;  %v10900_v63 = vadd.f32 %v3160_v60, %v13617_v16  ;;  %v13623_v15 = vmov %v13592_v27  ;;  %v13624_v44 = vld [vmem:[#allocation55_spill] sm:$0xff]  ;;  %v13626_v60 = vld [vmem:[#allocation40_spill] sm:$0xff] }
 0x2fc   : > { %13607 = vst [vmem:[#allocation60_spill] sm:$0xff] %v10881_v31  ;;  %13609 = vst [vmem:[#allocation41_spill] sm:$0xff] %v10884_v36  ;;  %v10903_v20 = vadd.f32 %v3161_v39, %v13619_v1  ;;  %v3258_v61 = vmul.f32 %v13593_v42, %v13623_v15  ;;  %v10917_v6 = vadd.f32 %v3162_v41, %v13624_v44  ;;  %v13630_v41 = vld [vmem:[#allocation52_spill] sm:$0xff]  ;;  %v13643_v46 = vld [vmem:[#allocation5_spill] sm:$0xff] }
 0x2fd   : > { %13611 = vst [vmem:[#allocation90_spill] sm:$0xff] %v10887_v55  ;;  %vm10891_vm6 = vmand %vm13612_vm10, %vm3241_vm5  ;;  %v3251_v39 = vmul.f32 %v3250_v25, %v13626_v60  ;;  %v3255_v57 = vmul.f32 %v3254_v9, %v13626_v60  ;;  %v3262_v62 = vmul.f32 %v13593_v42, %v13591_v43  ;;  %v10928_v27 = vadd.f32 %v3163_v3, %v13627_v0  ;;  %v13633_v25 = vld [vmem:[#allocation63_spill] sm:$0xff]  ;;  %v13635_v43 = vld [vmem:[#allocation64_spill] sm:$0xff] }
 0x2fe   : > { %13616 = vst [vmem:[#allocation83_spill] sm:$0xff] %v10897_v56  ;;  %13618 = vst [vmem:[#allocation85_spill] sm:$0xff] %v10900_v63  ;;  %v10931_v2 = vadd.f32 %v3164_v28, %v13629_v58  ;;  %v10934_v4 = vadd.f32 %v3165_v17, %v13630_v41  ;;  %v10937_v34 = vadd.f32 %v3166_v48, %v13631_v50  ;;  %v13637_v42 = vld [vmem:[#allocation87_spill] sm:$0xff]  ;;  %v13641_v48 = vld [vmem:[#allocation84_spill] sm:$0xff] }
 0x2ff   : > { %13620 = vst [vmem:[#allocation65_spill] sm:$0xff] %v10903_v20  ;;  %13625 = vst [vmem:[#allocation70_spill] sm:$0xff] %v10917_v6  ;;  %v10944_v9 = vadd.f32 %v3167_v35, %v13633_v25  ;;  %v10947_v3 = vadd.f32 %v3168_v7, %v13635_v43  ;;  %v10950_v28 = vadd.f32 %v3169_v24, %v13637_v42  ;;  %v13645_v16 = vld [vmem:[#allocation56_spill] sm:$0xff]  ;;  %v13666_v42 = vld [vmem:[#allocation10_spill] sm:$0xff] }
 0x300   : > { %vm3249_vm12 = vmand %vm10849_vm3, %vm10876_vm1  ;;  %13628 = vst [vmem:[#allocation49_spill] sm:$0xff] %v10928_v27  ;;  %v3266_v17 = vadd.s32 %v13548_v38, %v3265_v40  ;;  %v10954_v30 = vadd.f32 %v3170_v12, %v13639_v10  ;;  %v10957_v14 = vadd.f32 %v3171_v26, %v13641_v48  ;;  %v10960_v52 = vadd.f32 %v3172_v8, %v13643_v46  ;;  %v13647_v12 = vld [vmem:[#allocation94_spill] sm:$0xff]  ;;  %v13649_v8 = vld [vmem:[#allocation95_spill] sm:$0xff] }
 0x301   : > { %13632 = vst [vmem:[#allocation71_spill] sm:$0xff] %v10937_v34  ;;  %vm3253_vm15 = vmand %vm10891_vm6, %vm10876_vm1  ;;  %v3259_v35 = vmul.f32 %v3258_v61, %v13626_v60  ;;  %v10964_v1 = vadd.f32 %v3173_v19, %v13645_v16  ;;  %v3252_v38 = vsel %vm3249_vm12, %v3251_v39, 0.0  ;;  %v3263_v24 = vmul.f32 %v3262_v62, %v13626_v60  ;;  %v13651_v40 = vld [vmem:[#allocation44_spill] sm:$0xff]  ;;  %v13656_v60 = vld [vmem:[#allocation47_spill] sm:$0xff] }
 0x302   : > { %13634 = vst [vmem:[#allocation46_spill] sm:$0xff] %v10944_v9  ;;  %13636 = vst [vmem:[#allocation59_spill] sm:$0xff] %v10947_v3  ;;  %v3256_v7 = vsel %vm3253_vm15, %v3255_v57, 0.0  ;;  %v10977_v26 = vadd.f32 %v3174_v5, %v13647_v12  ;;  %v10980_v19 = vadd.f32 %v3175_v47, %v13649_v8  ;;  %v10983_v15 = vadd.f32 %v3176_v21, %v13651_v40  ;;  %v13657_v39 = vld [vmem:[#allocation93_spill] sm:$0xff]  ;;  %v13658_v57 = vld [vmem:[#allocation39_spill] sm:$0xff] }
 0x303   : > { %13638 = vst [vmem:[#allocation74_spill] sm:$0xff] %v10950_v28  ;;  %13640 = vst [vmem:[#allocation73_spill] sm:$0xff] %v10954_v30  ;;  %v10986_v61 = vadd.f32 %v3177_v33, %v13653_v54  ;;  %v10993_v44 = vadd.f32 %v3178_v22, %v13655_v37  ;;  %v10996_v5 = vadd.f32 %v3179_v53, %v13656_v60  ;;  %v13659_v62 = vld [vmem:[#allocation75_spill] sm:$0xff]  ;;  %v13661_v53 = vld [vmem:[#allocation6_spill] sm:$0xff] }
 0x304   : > { %13642 = vst [vmem:[#allocation80_spill] sm:$0xff] %v10957_v14  ;;  %13644 = vst [vmem:[#allocation42_spill] sm:$0xff] %v10960_v52  ;;  %v10999_v47 = vadd.f32 %v3180_v13, %v13657_v39  ;;  %v3270_v21 = vrot.slane %v3266_v17, %v13658_v57  ;;  %v11003_v0 = vadd.f32 %v3181_v23, %v13659_v62  ;;  %v13662_v13 = vld [vmem:[#allocation7_spill] sm:$0xff]  ;;  %v13664_v50 = vld [vmem:[#allocation8_spill] sm:$0xff] }
 0x305   : > { %13646 = vst [vmem:[#allocation69_spill] sm:$0xff] %v10964_v1  ;;  %vm3257_vm8 = vmand %vm10849_vm3, %vm10909_vm2  ;;  %v11008_v51 = vrot.slane %v3256_v7, %v13658_v57  ;;  %v11011_v29 = vrot.slane %v3252_v38, %v13658_v57  ;;  %v13665_v23 = vld [vmem:[#allocation9_spill] sm:$0xff]  ;;  %v13667_v10 = vld [vmem:[#allocation11_spill] sm:$0xff] }
 0x306   : > { %13648 = vst [vmem:[#allocation58_spill] sm:$0xff] %v10977_v26  ;;  %13650 = vst [vmem:[#allocation50_spill] sm:$0xff] %v10980_v19  ;;  %v11005_v33 = vsel %vm3257_vm8, %v3259_v35, 0.0  ;;  %v11016_v58 = vsub.s32 %v13661_v53, %v3270_v21  ;;  %v11019_v41 = vsub.s32 %v13662_v13, %v3270_v21  ;;  %v11022_v25 = vsub.s32 %v13664_v50, %v3270_v21  ;;  %v13668_v46 = vld [vmem:[#allocation12_spill] sm:$0xff]  ;;  %v13669_v16 = vld [vmem:[#allocation13_spill] sm:$0xff] }
 0x307   : > { %13652 = vst [vmem:[#allocation54_spill] sm:$0xff] %v10983_v15  ;;  %13654 = vst [vmem:[#allocation81_spill] sm:$0xff] %v10986_v61  ;;  %v11025_v43 = vsub.s32 %v13665_v23, %v3270_v21  ;;  %v11028_v17 = vsub.s32 %v13666_v42, %v3270_v21  ;;  %v11031_v48 = vsub.s32 %v13667_v10, %v3270_v21  ;;  %v13670_v7 = vld [vmem:[#allocation14_spill] sm:$0xff]  ;;  %v13671_v12 = vld [vmem:[#allocation15_spill] sm:$0xff] }
 0x308   : > { %vm3261_vm13 = vmand %vm10891_vm6, %vm10909_vm2  ;;  %13660 = vst [vmem:[#allocation51_spill] sm:$0xff] %v11003_v0  ;;  %v11034_v35 = vsub.s32 %v13668_v46, %v3270_v21  ;;  %v11037_v38 = vsub.s32 %v13669_v16, %v3270_v21  ;;  %v11043_v8 = vsub.s32 %v13671_v12, %v3270_v21  ;;  %v13672_v40 = vld [vmem:[#allocation16_spill] sm:$0xff]  ;;  %v13673_v37 = vld [vmem:[#allocation17_spill] sm:$0xff]  ;;  %vm3399_vm11 = vcmp.eq.s32.totalorder %v11016_v58, 17 }
 0x309   : > { %v11013_v22 = vsel %vm3261_vm13, %v3263_v24, 0.0  ;;  %13663 = vst [vmem:[#allocation43_spill] sm:$0xff] %v11019_v41  ;;  %v11040_v24 = vsub.s32 %v13670_v7, %v3270_v21  ;;  %v11046_v54 = vsub.s32 %v13672_v40, %v3270_v21  ;;  %v11049_v60 = vsub.s32 %v13673_v37, %v3270_v21  ;;  %v13674_v39 = vld [vmem:[#allocation18_spill] sm:$0xff]  ;;  %v13675_v53 = vld [vmem:[#allocation19_spill] sm:$0xff]  ;;  %v13676_v50 = vld [vmem:[#allocation20_spill] sm:$0xff] }
 0x30a   : > { %v11052_v62 = vsub.s32 %v13674_v39, %v3270_v21  ;;  %v11055_v13 = vsub.s32 %v13675_v53, %v3270_v21  ;;  %v11058_v23 = vsub.s32 %v13676_v50, %v3270_v21  ;;  %v13677_v42 = vld [vmem:[#allocation21_spill] sm:$0xff]  ;;  %v13678_v46 = vld [vmem:[#allocation22_spill] sm:$0xff]  ;;  %v13680_v7 = vld [vmem:[#allocation23_spill] sm:$0xff]  ;;  %vm3400_vm9 = vcmp.eq.s32.totalorder %v11019_v41, 17 }
 0x30b   : > { %v11061_v10 = vsub.s32 %v13677_v42, %v3270_v21  ;;  %v11064_v16 = vsub.s32 %v13678_v46, %v3270_v21  ;;  %v11067_v12 = vsub.s32 %v13680_v7, %v3270_v21  ;;  %v13682_v40 = vld [vmem:[#allocation24_spill] sm:$0xff]  ;;  %v13683_v39 = vld [vmem:[#allocation25_spill] sm:$0xff]  ;;  %v13684_v53 = vld [vmem:[#allocation26_spill] sm:$0xff]  ;;  %vm3401_vm0 = vcmp.eq.s32.totalorder %v11022_v25, 17 }
 0x30c   : > { %v11070_v37 = vsub.s32 %v13682_v40, %v3270_v21  ;;  %v11073_v9 = vsub.s32 %v13683_v39, %v3270_v21  ;;  %v11076_v34 = vsub.s32 %v13684_v53, %v3270_v21  ;;  %v13685_v50 = vld [vmem:[#allocation27_spill] sm:$0xff]  ;;  %v13686_v42 = vld [vmem:[#allocation28_spill] sm:$0xff]  ;;  %v13687_v46 = vld [vmem:[#allocation29_spill] sm:$0xff]  ;;  %vm3402_vm5 = vcmp.eq.s32.totalorder %v11025_v43, 17 }
 0x30d   : > { %13679 = vst [vmem:[#allocation79_spill] sm:$0xff] %v11064_v16  ;;  %13681 = vst [vmem:[#allocation33_spill] sm:$0xff] %v11067_v12  ;;  %v11079_v11 = vsub.s32 %v13685_v50, %v3270_v21  ;;  %v11082_v59 = vsub.s32 %v13686_v42, %v3270_v21  ;;  %v11085_v32 = vsub.s32 %v13687_v46, %v3270_v21  ;;  %v13688_v7 = vld [vmem:[#allocation30_spill] sm:$0xff]  ;;  %v13689_v40 = vld [vmem:[#allocation31_spill] sm:$0xff]  ;;  %vm3403_vm14 = vcmp.eq.s32.totalorder %v11028_v17, 17 }
 0x30e   : > { %v11088_v49 = vsub.s32 %v13688_v7, %v3270_v21  ;;  %v11091_v28 = vsub.s32 %v13689_v40, %v3270_v21  ;;  %v13690_v39 = vld [vmem:[#allocation32_spill] sm:$0xff]  ;;  %v13691_v53 = vld [vmem:[#allocation34_spill] sm:$0xff]  ;;  %v13692_v50 = vld [vmem:[#allocation35_spill] sm:$0xff]  ;;  %vm3404_vm3 = vcmp.eq.s32.totalorder %v11031_v48, 17  ;;  %v11167_v40 = vrot.slane %v11005_v33, %v13658_v57 }
 0x30f   : > { %v11094_v3 = vsub.s32 %v13690_v39, %v3270_v21  ;;  %v11097_v18 = vsub.s32 %v13691_v53, %v3270_v21  ;;  %v11100_v45 = vsub.s32 %v13692_v50, %v3270_v21  ;;  %v13693_v42 = vld [vmem:[#allocation36_spill] sm:$0xff]  ;;  %v13694_v46 = vld [vmem:[#allocation37_spill] sm:$0xff]  ;;  %v13695_v7 = vld [vmem:[#allocation38_spill] sm:$0xff]  ;;  %vm3375_vm12 = vcmp.eq.s32.totalorder %v11040_v24, 16 }
 0x310   : > { %v11103_v14 = vsub.s32 %v13693_v42, %v3270_v21  ;;  %v11106_v30 = vsub.s32 %v13694_v46, %v3270_v21  ;;  %v11109_v36 = vsub.s32 %v13695_v7, %v3270_v21  ;;  %v11144_v21 = vrot.slane %v11013_v22, %v13658_v57 }
 0x311   : > { %vm3425_vm4 = vcmp.eq.s32.totalorder %v11094_v3, 17  ;;  %vm3426_vm1 = vcmp.eq.s32.totalorder %v11097_v18, 17  ;;  %vm3427_vm10 = vcmp.eq.s32.totalorder %v11100_v45, 17  ;;  %vm3376_vm2 = vcmp.eq.s32.totalorder %v11043_v8, 16 }
 0x312   : > { %vm3428_vm6 = vcmp.eq.s32.totalorder %v11103_v14, 17  ;;  %vm3429_vm13 = vcmp.eq.s32.totalorder %v11106_v30, 17  ;;  %vm3430_vm7 = vcmp.eq.s32.totalorder %v11109_v36, 17  ;;  %v11163_v22 = vsel %vm3399_vm11, %v11144_v21, 0.0 }
 0x313   : > { %v11176_v39 = vsel %vm3400_vm9, %v11144_v21, 0.0  ;;  %v3437_v53 = vsel %vm3401_vm0, %v11144_v21, 0.0  ;;  %v3438_v57 = vsel %vm3402_vm5, %v11144_v21, 0.0  ;;  %v3439_v33 = vsel %vm3403_vm14, %v11144_v21, 0.0 }
 0x314   : > { %13696 = vst [vmem:[#allocation72_spill] sm:$0xff] %v11176_v39  ;;  %vm3379_vm15 = vcmp.eq.s32.totalorder %v11052_v62, 16  ;;  %v3440_v50 = vsel %vm3404_vm3, %v11144_v21, 0.0  ;;  %vm13697_vm0 = vcmp.eq.s32.totalorder %v11034_v35, 17  ;;  %vm13698_vm5 = vcmp.eq.s32.totalorder %v11037_v38, 17 }
 0x315   : > { %v3441_v42 = vsel %vm13697_vm0, %v11144_v21, 0.0  ;;  %v3442_v46 = vsel %vm13698_vm5, %v11144_v21, 0.0  ;;  %vm13699_vm14 = vcmp.eq.s32.totalorder %v11040_v24, 17  ;;  %vm13700_vm0 = vcmp.eq.s32.totalorder %v11043_v8, 17 }
 0x316   : > { %v11203_v7 = vsel %vm13699_vm14, %v11144_v21, 0.0  ;;  %v11212_v39 = vsel %vm13700_vm0, %v11144_v21, 0.0  ;;  %vm13701_vm5 = vcmp.eq.s32.totalorder %v11046_v54, 17  ;;  %vm13702_vm14 = vcmp.eq.s32.totalorder %v11049_v60, 17 }
 0x317   : > { %v11217_v31 = vsel %vm13701_vm5, %v11144_v21, 0.0  ;;  %v11222_v1 = vsel %vm13702_vm14, %v11144_v21, 0.0  ;;  %vm13703_vm9 = vcmp.eq.s32.totalorder %v11052_v62, 17  ;;  %vm13704_vm5 = vcmp.eq.s32.totalorder %v11055_v13, 17 }
 0x318   : > { %v11227_v52 = vsel %vm13703_vm9, %v11144_v21, 0.0  ;;  %v3448_v56 = vsel %vm13704_vm5, %v11144_v21, 0.0  ;;  %vm13705_vm14 = vcmp.eq.s32.totalorder %v11058_v23, 17  ;;  %vm13706_vm9 = vcmp.eq.s32.totalorder %v11061_v10, 17 }
 0x319   : > { %v3449_v55 = vsel %vm13705_vm14, %v11144_v21, 0.0  ;;  %v3450_v19 = vsel %vm13706_vm9, %v11144_v21, 0.0  ;;  %vm13707_vm3 = vcmp.eq.s32.totalorder %v11064_v16, 17  ;;  %vm13709_vm14 = vcmp.eq.s32.totalorder %v11067_v12, 17 }
 0x31a   : > { %v11245_v26 = vsel %vm13707_vm3, %v11144_v21, 0.0  ;;  %v11254_v20 = vsel %vm13709_vm14, %v11144_v21, 0.0  ;;  %vm13711_vm9 = vcmp.eq.s32.totalorder %v11070_v37, 17  ;;  %vm13713_vm3 = vcmp.eq.s32.totalorder %v11073_v9, 17 }
 0x31b   : > { %13708 = vst [vmem:[#allocation82_spill] sm:$0xff] %v11245_v26  ;;  %13710 = vst [vmem:[#allocation76_spill] sm:$0xff] %v11254_v20  ;;  %v11259_v63 = vsel %vm13711_vm9, %v11144_v21, 0.0  ;;  %v11264_v26 = vsel %vm13713_vm3, %v11144_v21, 0.0  ;;  %vm13715_vm8 = vcmp.eq.s32.totalorder %v11076_v34, 17  ;;  %vm13717_vm9 = vcmp.eq.s32.totalorder %v11079_v11, 17 }
 0x31c   : > { %13712 = vst [vmem:[#allocation77_spill] sm:$0xff] %v11259_v63  ;;  %13714 = vst [vmem:[#allocation78_spill] sm:$0xff] %v11264_v26  ;;  %v11269_v41 = vsel %vm13715_vm8, %v11144_v21, 0.0  ;;  %v11278_v20 = vsel %vm13717_vm9, %v11144_v21, 0.0  ;;  %vm13719_vm3 = vcmp.eq.s32.totalorder %v11082_v59, 17  ;;  %vm13721_vm8 = vcmp.eq.s32.totalorder %v11085_v32, 17 }
 0x31d   : > { %13716 = vst [vmem:[#allocation55_spill] sm:$0xff] %v11269_v41  ;;  %13718 = vst [vmem:[#allocation40_spill] sm:$0xff] %v11278_v20  ;;  %v11283_v26 = vsel %vm13719_vm3, %v11144_v21, 0.0  ;;  %v11288_v63 = vsel %vm13721_vm8, %v11144_v21, 0.0  ;;  %vm13723_vm5 = vcmp.eq.s32.totalorder %v11088_v49, 17  ;;  %vm3345_vm0 = vcmp.eq.s32.totalorder %v11046_v54, 1 }
 0x31e   : > { %13720 = vst [vmem:[#allocation66_spill] sm:$0xff] %v11283_v26  ;;  %13722 = vst [vmem:[#allocation61_spill] sm:$0xff] %v11288_v63  ;;  %v3459_v41 = vsel %vm13723_vm5, %v11144_v21, 0.0  ;;  %vm3346_vm14 = vcmp.eq.s32.totalorder %v11049_v60, 1  ;;  %vm3361_vm9 = vcmp.eq.s32.totalorder %v11094_v3, 1  ;;  %vm3362_vm11 = vcmp.eq.s32.totalorder %v11097_v18, 1 }
 0x31f   : > { %vm13724_vm3 = vcmp.eq.s32.totalorder %v11091_v28, 17  ;;  %v3461_v61 = vsel %vm3425_vm4, %v11144_v21, 0.0  ;;  %v3462_v15 = vsel %vm3426_vm1, %v11144_v21, 0.0  ;;  %v3463_v27 = vsel %vm3427_vm10, %v11144_v21, 0.0 }
 0x320   : > { %v3460_v20 = vsel %vm13724_vm3, %v11144_v21, 0.0  ;;  %vm3315_vm5 = vcmp.eq.s32.totalorder %v11052_v62, 0  ;;  %v3464_v6 = vsel %vm3428_vm6, %v11144_v21, 0.0  ;;  %v3465_v12 = vsel %vm3429_vm13, %v11144_v21, 0.0 }
 0x321   : > { %v3466_v16 = vsel %vm3430_vm7, %v11144_v21, 0.0  ;;  %vm13725_vm4 = vcmp.eq.s32.totalorder %v11016_v58, 16  ;;  %vm13727_vm1 = vcmp.eq.s32.totalorder %v11022_v25, 16  ;;  %vm13728_vm10 = vcmp.eq.s32.totalorder %v11025_v43, 16 }
 0x322   : > { %v11324_v63 = vsel %vm13725_vm4, %v11167_v40, %v11163_v22  ;;  %v11329_v26 = vsel %vm13727_vm1, %v11167_v40, %v3437_v53  ;;  %v11334_v0 = vsel %vm13728_vm10, %v11167_v40, %v3438_v57  ;;  %vm13729_vm6 = vcmp.eq.s32.totalorder %v11028_v17, 16 }
 0x323   : > { %13726 = vst [vmem:[#allocation52_spill] sm:$0xff] %v11324_v63  ;;  %v11339_v21 = vsel %vm13729_vm6, %v11167_v40, %v3439_v33  ;;  %vm13730_vm7 = vcmp.eq.s32.totalorder %v11031_v48, 16  ;;  %vm13731_vm10 = vcmp.eq.s32.totalorder %v11034_v35, 16  ;;  %vm13732_vm6 = vcmp.eq.s32.totalorder %v11037_v38, 16 }
 0x324   : > { %v11344_v22 = vsel %vm13730_vm7, %v11167_v40, %v3440_v50  ;;  %v11353_v53 = vsel %vm13731_vm10, %v11167_v40, %v3441_v42  ;;  %v11358_v57 = vsel %vm13732_vm6, %v11167_v40, %v3442_v46  ;;  %vm13733_vm7 = vcmp.eq.s32.totalorder %v11058_v23, 16 }
 0x325   : > { %v3485_v33 = vsel %vm13733_vm7, %v11167_v40, %v3449_v55  ;;  %vm13734_vm3 = vcmp.eq.s32.totalorder %v11061_v10, 16  ;;  %vm3343_vm1 = vcmp.eq.s32.totalorder %v11040_v24, 1  ;;  %vm3359_vm10 = vcmp.eq.s32.totalorder %v11088_v49, 1 }
 0x326   : > { %v3486_v50 = vsel %vm13734_vm3, %v11167_v40, %v3450_v19  ;;  %vm3360_vm4 = vcmp.eq.s32.totalorder %v11091_v28, 1  ;;  %vm13735_vm6 = vcmp.eq.s32.totalorder %v11100_v45, 16  ;;  %vm13736_vm8 = vcmp.eq.s32.totalorder %v11103_v14, 16 }
 0x327   : > { %v3499_v42 = vsel %vm13735_vm6, %v11167_v40, %v3463_v27  ;;  %v3500_v55 = vsel %vm13736_vm8, %v11167_v40, %v3464_v6  ;;  %vm13737_vm7 = vcmp.eq.s32.totalorder %v11106_v30, 16  ;;  %vm13738_vm3 = vcmp.eq.s32.totalorder %v11109_v36, 16 }
 0x328   : > { %v3501_v19 = vsel %vm13737_vm7, %v11167_v40, %v3465_v12  ;;  %v3502_v46 = vsel %vm13738_vm3, %v11167_v40, %v3466_v16  ;;  %v11387_v63 = vsel %vm3375_vm12, %v11167_v40, %v11203_v7  ;;  %v11393_v6 = vsel %vm3376_vm2, %v11167_v40, %v11212_v39 }
 0x329   : > { %vm13739_vm8 = vcmp.eq.s32.totalorder %v11046_v54, 16  ;;  %vm13740_vm6 = vcmp.eq.s32.totalorder %v11049_v60, 16  ;;  %v3483_v12 = vsel %vm3379_vm15, %v11167_v40, %v11227_v52  ;;  %vm13741_vm12 = vcmp.eq.s32.totalorder %v11055_v13, 16 }
 0x32a   : > { %v3481_v27 = vsel %vm13739_vm8, %v11167_v40, %v11217_v31  ;;  %v3482_v16 = vsel %vm13740_vm6, %v11167_v40, %v11222_v1  ;;  %v3484_v39 = vsel %vm13741_vm12, %v11167_v40, %v3448_v56  ;;  %vm13742_vm2 = vcmp.eq.s32.totalorder %v11058_v23, 1 }
 0x32b   : > { %v3521_v7 = vsel %vm13742_vm2, %v11008_v51, %v3485_v33  ;;  %vm13743_vm7 = vcmp.eq.s32.totalorder %v11061_v10, 1  ;;  %vm13744_vm13 = vcmp.eq.s32.totalorder %v11100_v45, 1  ;;  %vm13745_vm12 = vcmp.eq.s32.totalorder %v11103_v14, 1 }
 0x32c   : > { %v3522_v31 = vsel %vm13743_vm7, %v11008_v51, %v3486_v50  ;;  %v3535_v56 = vsel %vm13744_vm13, %v11008_v51, %v3499_v42  ;;  %v3536_v52 = vsel %vm13745_vm12, %v11008_v51, %v3500_v55  ;;  %vm13746_vm2 = vcmp.eq.s32.totalorder %v11106_v30, 1 }
 0x32d   : > { %v3537_v1 = vsel %vm13746_vm2, %v11008_v51, %v3501_v19  ;;  %vm13747_vm7 = vcmp.eq.s32.totalorder %v11109_v36, 1  ;;  %vm3388_vm13 = vcmp.eq.s32.totalorder %v11079_v11, 16  ;;  %vm13748_vm15 = vcmp.eq.s32.totalorder %v11088_v49, 16 }
 0x32e   : > { %v3538_v33 = vsel %vm13747_vm7, %v11008_v51, %v3502_v46  ;;  %v3495_v50 = vsel %vm13748_vm15, %v11167_v40, %v3459_v41  ;;  %vm13749_vm12 = vcmp.eq.s32.totalorder %v11091_v28, 16  ;;  %vm13750_vm2 = vcmp.eq.s32.totalorder %v11094_v3, 16 }
 0x32f   : > { %v3496_v42 = vsel %vm13749_vm12, %v11167_v40, %v3460_v20  ;;  %v3497_v55 = vsel %vm13750_vm2, %v11167_v40, %v3461_v61  ;;  %vm13751_vm7 = vcmp.eq.s32.totalorder %v11097_v18, 16  ;;  %vm13752_vm3 = vcmp.eq.s32.totalorder %v11052_v62, 1  ;;  %v13762_v62 = vld [vmem:[#allocation66_spill] sm:$0xff] }
 0x330   : > { %v3498_v19 = vsel %vm13751_vm7, %v11167_v40, %v3462_v15  ;;  %v3519_v46 = vsel %vm13752_vm3, %v11008_v51, %v3483_v12  ;;  %vm13753_vm15 = vcmp.eq.s32.totalorder %v11055_v13, 1  ;;  %vm13754_vm12 = vcmp.eq.s32.totalorder %v11058_v23, 0 }
 0x331   : > { %v3520_v41 = vsel %vm13753_vm15, %v11008_v51, %v3484_v39  ;;  %v3557_v20 = vsel %vm13754_vm12, %v11011_v29, %v3521_v7  ;;  %vm13755_vm2 = vcmp.eq.s32.totalorder %v11061_v10, 0  ;;  %vm13756_vm6 = vcmp.eq.s32.totalorder %v11100_v45, 0 }
 0x332   : > { %v3558_v61 = vsel %vm13755_vm2, %v11011_v29, %v3522_v31  ;;  %v3571_v15 = vsel %vm13756_vm6, %v11011_v29, %v3535_v56  ;;  %vm13757_vm3 = vcmp.eq.s32.totalorder %v11103_v14, 0  ;;  %vm13758_vm15 = vcmp.eq.s32.totalorder %v11106_v30, 0 }
 0x333   : > { %v3572_v12 = vsel %vm13757_vm3, %v11011_v29, %v3536_v52  ;;  %v3573_v39 = vsel %vm13758_vm15, %v11011_v29, %v3537_v1  ;;  %vm13759_vm12 = vcmp.eq.s32.totalorder %v11109_v36, 0  ;;  %vm3325_vm2 = vcmp.eq.s32.totalorder %v11082_v59, 0  ;;  %v13761_v1 = vld [vmem:[#allocation51_spill] sm:$0xff] }
 0x334   : > { %v3574_v23 = vsel %vm13759_vm12, %v11011_v29, %v3538_v33  ;;  %vm3326_vm7 = vcmp.eq.s32.totalorder %v11085_v32, 0  ;;  %vm3342_vm8 = vcmp.eq.s32.totalorder %v11037_v38, 1  ;;  %vm3385_vm6 = vcmp.eq.s32.totalorder %v11070_v37, 16 }
 0x335   : > { %v3517_v45 = vsel %vm3345_vm0, %v11008_v51, %v3481_v27  ;;  %v3518_v30 = vsel %vm3346_vm14, %v11008_v51, %v3482_v16  ;;  %v3533_v36 = vsel %vm3361_vm9, %v11008_v51, %v3497_v55  ;;  %v3534_v14 = vsel %vm3362_vm11, %v11008_v51, %v3498_v19 }
 0x336   : > { %vm3386_vm0 = vcmp.eq.s32.totalorder %v11073_v9, 16  ;;  %v3555_v10 = vsel %vm3315_vm5, %v11011_v29, %v3519_v46  ;;  %vm13760_vm14 = vcmp.eq.s32.totalorder %v11055_v13, 0  ;;  %v3589_v16 = vadd.f32 %v3557_v20, %v10931_v2  ;;  %v13764_v2 = vld [vmem:[#allocation61_spill] sm:$0xff] }
 0x337   : > { %v3556_v27 = vsel %vm13760_vm14, %v11011_v29, %v3520_v41  ;;  %v3590_v7 = vadd.f32 %v3558_v61, %v10934_v4  ;;  %v3603_v31 = vadd.f32 %v3571_v15, %v10993_v44  ;;  %v3604_v56 = vadd.f32 %v3572_v12, %v10996_v5  ;;  %v13770_v46 = vld [vmem:[#allocation33_spill] sm:$0xff] }
 0x338   : > { %v3605_v52 = vadd.f32 %v3573_v39, %v10999_v47  ;;  %v3606_v33 = vadd.f32 %v3574_v23, %v13761_v1  ;;  %vm13763_vm5 = vcmp.eq.s32.totalorder %v11082_v59, 16  ;;  %vm13765_vm14 = vcmp.eq.s32.totalorder %v11085_v32, 16  ;;  %v13768_v47 = vld [vmem:[#allocation79_spill] sm:$0xff]  ;;  %v13773_v20 = vld [vmem:[#allocation49_spill] sm:$0xff] }
 0x339   : > { %v3493_v13 = vsel %vm13763_vm5, %v11167_v40, %v13762_v62  ;;  %v3494_v4 = vsel %vm13765_vm14, %v11167_v40, %v13764_v2  ;;  %vm13766_vm11 = vcmp.eq.s32.totalorder %v11094_v3, 0  ;;  %vm13767_vm12 = vcmp.eq.s32.totalorder %v11097_v18, 0  ;;  %v13775_v12 = vld [vmem:[#allocation81_spill] sm:$0xff] }
 0x33a   : > { %v3569_v44 = vsel %vm13766_vm11, %v11011_v29, %v3533_v36  ;;  %v3570_v5 = vsel %vm13767_vm12, %v11011_v29, %v3534_v14  ;;  %vm3340_vm3 = vcmp.eq.s32.totalorder %v11031_v48, 1  ;;  %vm3383_vm5 = vcmp.eq.s32.totalorder %v13768_v47, 16  ;;  %v13776_v36 = vld [vmem:[#allocation55_spill] sm:$0xff] }
 0x33b   : > { %v3515_v55 = vsel %vm3343_vm1, %v11008_v51, %v11387_v63  ;;  %v3531_v3 = vsel %vm3359_vm10, %v11008_v51, %v3495_v50  ;;  %v3532_v18 = vsel %vm3360_vm4, %v11008_v51, %v3496_v42  ;;  %vm13769_vm12 = vcmp.eq.s32.totalorder %v11046_v54, 0  ;;  %v13772_v50 = vld [vmem:[#allocation70_spill] sm:$0xff] }
 0x33c   : > { %v3553_v19 = vsel %vm13769_vm12, %v11011_v29, %v3517_v45  ;;  %vm3384_vm1 = vcmp.eq.s32.totalorder %v13770_v46, 16  ;;  %vm13771_vm9 = vcmp.eq.s32.totalorder %v11049_v60, 0  ;;  %v3587_v41 = vadd.f32 %v3555_v10, %v13772_v50  ;;  %v13774_v54 = vld [vmem:[#allocation54_spill] sm:$0xff] }
 0x33d   : > { %v3554_v63 = vsel %vm13771_vm9, %v11011_v29, %v3518_v30  ;;  %v3588_v42 = vadd.f32 %v3556_v27, %v13773_v20  ;;  %v3616_v61 = vpack.c.bf16 %v3590_v7, %v3589_v16  ;;  %v3601_v15 = vadd.f32 %v3569_v44, %v13774_v54  ;;  %v13781_v27 = vld [vmem:[#allocation40_spill] sm:$0xff]  ;;  %v13785_v7 = vld [vmem:[#allocation43_spill] sm:$0xff] }
 0x33e   : > { %v3602_v39 = vadd.f32 %v3570_v5, %v13775_v12  ;;  %v3623_v23 = vpack.c.bf16 %v3604_v56, %v3603_v31  ;;  %v3624_v45 = vpack.c.bf16 %v3606_v33, %v3605_v52  ;;  %vm13777_vm12 = vcmp.eq.s32.totalorder %v11076_v34, 16  ;;  %v13787_v31 = vld [vmem:[#allocation85_spill] sm:$0xff] }
 0x33f   : > { %v3491_v60 = vsel %vm13777_vm12, %v11167_v40, %v13776_v36  ;;  %vm13778_vm9 = vcmp.eq.s32.totalorder %v11043_v8, 1  ;;  %vm13779_vm4 = vcmp.eq.s32.totalorder %v11088_v49, 0  ;;  %vm13780_vm15 = vcmp.eq.s32.totalorder %v11091_v28, 0  ;;  %v13788_v52 = vld [vmem:[#allocation65_spill] sm:$0xff] }
 0x340   : > { %v3516_v30 = vsel %vm13778_vm9, %v11008_v51, %v11393_v6  ;;  %v3567_v14 = vsel %vm13779_vm4, %v11011_v29, %v3531_v3  ;;  %v3568_v10 = vsel %vm13780_vm15, %v11011_v29, %v3532_v18  ;;  %vm3338_vm11 = vcmp.eq.s32.totalorder %v11025_v43, 1  ;;  %3934 = vmatprep.subr.bf16.mxu1 %v3624_v45 }
 0x341   : > { %v3492_v16 = vsel %vm3388_vm13, %v11167_v40, %v13781_v27  ;;  %vm13782_vm12 = vcmp.eq.s32.totalorder %v11034_v35, 1  ;;  %vm13783_vm4 = vcmp.eq.s32.totalorder %v11082_v59, 1  ;;  %vm13784_vm15 = vcmp.eq.s32.totalorder %v11085_v32, 1  ;;  %3935 = vmatpush3.bf16.msra.mxu1 %v3616_v61 }
 0x342   : > { %v3513_v49 = vsel %vm13782_vm12, %v11008_v51, %v11353_v53  ;;  %v3529_v28 = vsel %vm13783_vm4, %v11008_v51, %v3493_v13  ;;  %v3530_v6 = vsel %vm13784_vm15, %v11008_v51, %v3494_v4  ;;  %vm3335_vm9 = vcmp.eq.s32.totalorder %v11016_v58, 1  ;;  %v13790_v13 = vld [vmem:[#allocation58_spill] sm:$0xff]  ;;  %3936 = vmatprep.subr.bf16.mxu1 %v3623_v23 }
 0x343   : > { %vm3351_vm14 = vcmp.eq.s32.totalorder %v13768_v47, 1  ;;  %vm3352_vm13 = vcmp.eq.s32.totalorder %v13770_v46, 1  ;;  %vm3368_vm10 = vcmp.eq.s32.totalorder %v13785_v7, 16  ;;  %vm13786_vm12 = vcmp.eq.s32.totalorder %v11040_v24, 0  ;;  %v13791_v4 = vld [vmem:[#allocation50_spill] sm:$0xff]  ;;  %v13792_v24 = vld [vmem:[#allocation77_spill] sm:$0xff] }
 0x344   : > { %v3551_v53 = vsel %vm13786_vm12, %v11011_v29, %v3515_v55  ;;  %v3585_v56 = vadd.f32 %v3553_v19, %v13787_v31  ;;  %v3586_v1 = vadd.f32 %v3554_v63, %v13788_v52  ;;  %v3615_v33 = vpack.c.bf16 %v3588_v42, %v3587_v41  ;;  %v13793_v19 = vld [vmem:[#allocation78_spill] sm:$0xff]  ;;  %v13799_v42 = vld [vmem:[#allocation83_spill] sm:$0xff]  ;;  %v13814_v31 = vld [vmem:[#allocation73_spill] sm:$0xff] }
 0x345   : > { %vm3305_vm4 = vcmp.eq.s32.totalorder %v11022_v25, 0  ;;  %vm13789_vm15 = vcmp.eq.s32.totalorder %v11043_v8, 0  ;;  %v3599_v2 = vadd.f32 %v3567_v14, %v13790_v13  ;;  %v3600_v44 = vadd.f32 %v3568_v10, %v13791_v4  ;;  %v13798_v41 = vld [vmem:[#allocation90_spill] sm:$0xff]  ;;  %v13806_v14 = vld [vmem:[#allocation76_spill] sm:$0xff] }
 0x346   : > { %v3552_v62 = vsel %vm13789_vm15, %v11011_v29, %v3516_v30  ;;  %v3622_v5 = vpack.c.bf16 %v3602_v39, %v3601_v15  ;;  %v3489_v55 = vsel %vm3385_vm6, %v11167_v40, %v13792_v24  ;;  %v3514_v3 = vsel %vm3342_vm8, %v11008_v51, %v11358_v57  ;;  %3937 = vmatpush3.bf16.msra.mxu1 %v3615_v33  ;;  %v13801_v15 = vld [vmem:[#allocation42_spill] sm:$0xff]  ;;  %v13802_v39 = vld [vmem:[#allocation69_spill] sm:$0xff]  ;;  %v13815_v52 = vld [vmem:[#allocation80_spill] sm:$0xff] }
 0x347   : > { %v3565_v8 = vsel %vm3325_vm2, %v11011_v29, %v3529_v28  ;;  %v3566_v18 = vsel %vm3326_vm7, %v11011_v29, %v3530_v6  ;;  %vm3319_vm15 = vcmp.eq.s32.totalorder %v13768_v47, 0  ;;  %vm3320_vm12 = vcmp.eq.s32.totalorder %v13770_v46, 0  ;;  %v13812_v28 = vld [vmem:[#allocation41_spill] sm:$0xff]  ;;  %v13818_v13 = vld [vmem:[#allocation72_spill] sm:$0xff] }
 0x348   : > { %v3490_v63 = vsel %vm3386_vm0, %v11167_v40, %v13793_v19  ;;  %vm13794_vm8 = vcmp.eq.s32.totalorder %v11028_v17, 1  ;;  %vm13795_vm2 = vcmp.eq.s32.totalorder %v11076_v34, 1  ;;  %vm13796_vm7 = vcmp.eq.s32.totalorder %v11079_v11, 1  ;;  %3938 = vmatprep.subr.bf16.mxu1 %v3622_v5  ;;  %v13819_v4 = vld [vmem:[#allocation52_spill] sm:$0xff]  ;;  %v13820_v5 = vld [vmem:[#allocation53_spill] sm:$0xff] }
 0x349   : > { %v3511_v57 = vsel %vm13794_vm8, %v11008_v51, %v11339_v21  ;;  %v3527_v59 = vsel %vm13795_vm2, %v11008_v51, %v3491_v60  ;;  %v3528_v32 = vsel %vm13796_vm7, %v11008_v51, %v3492_v16  ;;  %vm13797_vm6 = vcmp.eq.s32.totalorder %v11034_v35, 0  ;;  %v13803_v35 = vld [vmem:[#allocation82_spill] sm:$0xff]  ;;  %v13811_v16 = vld [vmem:[#allocation60_spill] sm:$0xff] }
 0x34a   : > { %v3549_v50 = vsel %vm13797_vm6, %v11011_v29, %v3513_v49  ;;  %v3583_v20 = vadd.f32 %v3551_v53, %v13798_v41  ;;  %v3584_v61 = vadd.f32 %v3552_v62, %v13799_v42  ;;  %v3614_v54 = vpack.c.bf16 %v3586_v1, %v3585_v56  ;;  %v13826_v41 = vld [vmem:[#allocation91_spill] sm:$0xff]  ;;  %v13827_v42 = vld [vmem:[#allocation88_spill] sm:$0xff] }
 0x34b   : > { %vm3303_vm0 = vcmp.eq.s32.totalorder %v11016_v58, 0  ;;  %vm13800_vm8 = vcmp.eq.s32.totalorder %v11037_v38, 0  ;;  %v3597_v12 = vadd.f32 %v3565_v8, %v13801_v15  ;;  %v3598_v23 = vadd.f32 %v3566_v18, %v13802_v39  ;;  %v13823_v18 = vld [vmem:[#allocation59_spill] sm:$0xff]  ;;  %v13830_v15 = vld [vmem:[#allocation68_spill] sm:$0xff] }
 0x34c   : > { %v3550_v21 = vsel %vm13800_vm8, %v11011_v29, %v3514_v3  ;;  %v3621_v45 = vpack.c.bf16 %v3600_v44, %v3599_v2  ;;  %v3487_v36 = vsel %vm3383_vm5, %v11167_v40, %v13803_v35  ;;  %v3512_v60 = vsel %vm3340_vm3, %v11008_v51, %v11344_v22  ;;  %3939 = vmatpush3.bf16.msra.mxu1 %v3614_v54  ;;  %v13831_v39 = vld [vmem:[#allocation71_spill] sm:$0xff] }
 0x34d   : > { %vm13804_vm2 = vcmp.eq.s32.totalorder %v11076_v34, 0  ;;  %vm13805_vm7 = vcmp.eq.s32.totalorder %v11079_v11, 0  ;;  %v3488_v10 = vsel %vm3384_vm1, %v11167_v40, %v13806_v14  ;;  %vm13807_vm5 = vcmp.eq.s32.totalorder %v11022_v25, 1 }
 0x34e   : > { %v3563_v38 = vsel %vm13804_vm2, %v11011_v29, %v3527_v59  ;;  %v3564_v30 = vsel %vm13805_vm7, %v11011_v29, %v3528_v32  ;;  %v3509_v27 = vsel %vm13807_vm5, %v11008_v51, %v11329_v26  ;;  %vm13808_vm3 = vcmp.eq.s32.totalorder %v11070_v37, 1  ;;  %3940 = vmatprep.subr.bf16.mxu1 %v3621_v45  ;;  %v13832_v45 = vld [vmem:[#allocation46_spill] sm:$0xff] }
 0x34f   : > { %v3525_v22 = vsel %vm13808_vm3, %v11008_v51, %v3489_v55  ;;  %vm13809_vm6 = vcmp.eq.s32.totalorder %v11073_v9, 1  ;;  %vm13810_vm8 = vcmp.eq.s32.totalorder %v11028_v17, 0  ;;  %v3581_v49 = vadd.f32 %v3549_v50, %v13811_v16  ;;  %v13825_v50 = vld [vmem:[#allocation89_spill] sm:$0xff] }
 0x350   : > { %v3526_v34 = vsel %vm13809_vm6, %v11008_v51, %v3490_v63  ;;  %v3547_v11 = vsel %vm13810_vm8, %v11011_v29, %v3511_v57  ;;  %v3582_v6 = vadd.f32 %v3550_v21, %v13812_v28  ;;  %v3613_v53 = vpack.c.bf16 %v3584_v61, %v3583_v20  ;;  %v13824_v63 = vld [vmem:[#allocation74_spill] sm:$0xff]  ;;  %v13828_v61 = vld [vmem:[#allocation67_spill] sm:$0xff] }
 0x351   : > { %vm13813_vm1 = vcmp.eq.s32.totalorder %v11031_v48, 0  ;;  %v3595_v56 = vadd.f32 %v3563_v38, %v13814_v31  ;;  %v3596_v1 = vadd.f32 %v3564_v30, %v13815_v52  ;;  %v3620_v33 = vpack.c.bf16 %v3598_v23, %v3597_v12 }
 0x352   : > { %v3548_v26 = vsel %vm13813_vm1, %v11011_v29, %v3512_v60  ;;  %vm3336_vm2 = vcmp.eq.s32.totalorder %v13785_v7, 1  ;;  %v3510_v17 = vsel %vm3338_vm11, %v11008_v51, %v11334_v0  ;;  %vm13816_vm7 = vcmp.eq.s32.totalorder %v11070_v37, 0  ;;  %3941 = vmatpush3.bf16.msra.mxu1 %v3613_v53 }
 0x353   : > { %v3561_v62 = vsel %vm13816_vm7, %v11011_v29, %v3525_v22  ;;  %vm13817_vm5 = vcmp.eq.s32.totalorder %v11073_v9, 0  ;;  %v3472_v2 = vsel %vm3368_vm10, %v11167_v40, %v13818_v13  ;;  %v3507_v44 = vsel %vm3335_vm9, %v11008_v51, %v13819_v4  ;;  %v13821_v40 = vld [vmem:[#allocation57_spill] sm:$0xff]  ;;  %3942 = vmatprep.subr.bf16.mxu1 %v3620_v33 }
 0x354   : > { %v3562_v48 = vsel %vm13817_vm5, %v11011_v29, %v3526_v34  ;;  %v3523_v0 = vsel %vm3351_vm14, %v11008_v51, %v3487_v36  ;;  %v3524_v37 = vsel %vm3352_vm13, %v11008_v51, %v3488_v10  ;;  %v3545_v9 = vsel %vm3305_vm4, %v11011_v29, %v3509_v27  ;;  %v4050_v10 = vld [vmem:[%s4239_s8 + $0x10] ss:$8 sps:$4 sm:$0xff]  }
 0x355   : > { %v3579_v24 = vadd.f32 %v3547_v11, %v13820_v5  ;;  %v3580_v55 = vadd.f32 %v3548_v26, %v13821_v40  ;;  %v3612_v3 = vpack.c.bf16 %v3582_v6, %v3581_v49  ;;  %vm13822_vm11 = vcmp.eq.s32.totalorder %v11025_v43, 0 }
 0x356   : > { %v3546_v8 = vsel %vm13822_vm11, %v11011_v29, %v3510_v17  ;;  %v3593_v19 = vadd.f32 %v3561_v62, %v13823_v18  ;;  %v3594_v57 = vadd.f32 %v3562_v48, %v13824_v63  ;;  %v3619_v59 = vpack.c.bf16 %v3596_v1, %v3595_v56 }
 0x357   : > { %vm3304_vm14 = vcmp.eq.s32.totalorder %v13785_v7, 0  ;;  %v3508_v25 = vsel %vm3336_vm2, %v11008_v51, %v3472_v2  ;;  %v3559_v32 = vsel %vm3319_vm15, %v11011_v29, %v3523_v0  ;;  %v3560_v43 = vsel %vm3320_vm12, %v11011_v29, %v3524_v37  ;;  %v13829_v7 = vld [vmem:[#allocation92_spill] sm:$0xff]  ;;  %3943 = vmatpush3.bf16.msra.mxu1 %v3612_v3 }
 0x358   : > { %v3182_v20 = vadd.f32 %v13826_v41, %v13825_v50  ;;  %v3183_v54 = vadd.f32 %v13828_v61, %v13827_v42  ;;  %v3543_v21 = vsel %vm3303_vm0, %v11011_v29, %v3507_v44  ;;  %v3577_v51 = vadd.f32 %v3545_v9, %v13829_v7  ;;  %3944 = vmatprep.subr.bf16.mxu1 %v3619_v59 }
 0x359   : > { %v3578_v12 = vadd.f32 %v3546_v8, %v13830_v15  ;;  %v3611_v47 = vpack.c.bf16 %v3580_v55, %v3579_v24  ;;  %v3544_v46 = vsel %vm3304_vm14, %v11011_v29, %v3508_v25  ;;  %v3591_v23 = vadd.f32 %v3559_v32, %v13831_v39  ;;  %v3928_v29 = vpop.f32.mrf.mxu0 }
 0x35a   : > { %v3592_v35 = vadd.f32 %v3560_v43, %v13832_v45  ;;  %v3618_v36 = vpack.c.bf16 %v3594_v57, %v3593_v19  ;;  %v3575_v60 = vadd.f32 %v3543_v21, %v3182_v20  ;;  %v3576_v38 = vadd.f32 %v3544_v46, %v3183_v54 }
 0x35b   : > { %v3610_v30 = vpack.c.bf16 %v3578_v12, %v3577_v51  ;;  %3945 = vmatpush3.bf16.msra.mxu1 %v3611_v47  ;;  %v3929_v27 = vpop.f32.mrf.mxu0 }
 0x35c   : > { %v3617_v58 = vpack.c.bf16 %v3592_v35, %v3591_v23  ;;  %3946 = vmatprep.subr.bf16.mxu1 %v3618_v36  ;;  %v3609_v14 = vpack.c.bf16 %v3576_v38, %v3575_v60  ;;  %v3930_v11 = vadd.f32 %v3929_v27, %v3928_v29 }
 0x35d   : > { %v3931_v22 = vpop.f32.mrf.mxu0 }
 0x35f   : > { %3947 = vmatpush3.bf16.msra.mxu1 %v3610_v30  ;;  %v3932_v34 = vpop.f32.mrf.mxu0 }
 0x360   : > { %3948 = vmatprep.subr.bf16.mxu1 %v3617_v58  ;;  %v3933_v16 = vadd.f32 %v3932_v34, %v3931_v22 }
 0x362   : > { %v3904_v49 = vpack.c.bf16 %v3933_v16, %v3930_v11 }
 0x363   : > { %3949 = vmatpush3.bf16.msra.mxu1 %v3609_v14 }
 0x364   : > { %3905 = vst [vmem:[%s303_s22] sm:$0xff] %v3904_v49  }
 0x366   : > { %3668 = vmatmul.mubr.bf16.vlgmr.msra.gmra.mxu1 %v4050_v10 }
 0x36b   : > { %v3713_v1 = vld [vmem:[%s303_s22] sm:$0xf] (%p4205_p6)  ;;  %v3715_v33 = vld [vmem:[%s303_s22 + $0x4] sm:$0xf] (%p4205_p6) }
 0x36c   : > { %3714 = vst [vmem:[%s3696_s4] sm:$0xf] (%p4205_p6), %v3713_v1  ;;  %3716 = vst [vmem:[%s3696_s4 + $0x8] sm:$0xf] (%p4205_p6), %v3715_v33 }
 0x426   : > { %v3950_v28 = vpop.f32.mrf.mxu1 }
 0x428   : > { %v3951_v6 = vpop.f32.mrf.mxu1 }
 0x429   : > { %v3952_v31 = vadd.f32 %v3951_v6, %v3950_v28 }
 0x42a   : > { %v3953_v53 = vpop.f32.mrf.mxu1 }
 0x42c   : > { %v3954_v26 = vpop.f32.mrf.mxu1 }
 0x42d   : > { %v3955_v56 = vadd.f32 %v3954_v26, %v3953_v53  ;;  %3692 = sbr.rel (!%p4205_p6) target bundleno = 1082 (0x43a), region = 112 }
 0x42f   : > { %v3909_v52 = vpack.c.bf16 %v3955_v56, %v3952_v31 }
 0x431   : > { %3911 = vst [vmem:[%s303_s22 + $0x8] sm:$0xff] %v3909_v52  }
 0x438   : > { %v3717_v17 = vld [vmem:[%s303_s22 + $0x8] sm:$0xf]  ;;  %v3719_v62 = vld [vmem:[%s303_s22 + $0xc] sm:$0xf] }
 0x439   : > { %3718 = vst [vmem:[%s3696_s4 + $0x10] sm:$0xf] %v3717_v17  ;;  %3720 = vst [vmem:[%s3696_s4 + $0x18] sm:$0xf] %v3719_v62 }
 0x43a PF: > { %s13_s18 = sadd.s32 1, %s4131_s18   ;;  %s13833_s12 = smov %s4111_s13 }
 0x43b   : > { %p10_p13 = scmp.ge.s32.totalorder %s13_s18, 6   ;;  %s13834_s13 = smov %s4213_s28 }
 0x43c   : > { %s13835_s14 = smov %s4123_s16  ;;  %s13836_s15 = smov %s4127_s17 }
 0x43d   : > { %s13837_s16 = smov %s13840_s19  ;;  %s13838_s17 = smov %s13844_s20 }
 0x43e   :  { %12 = sbr.rel (!%p10_p13) target bundleno = 4 (0x4), region = 195 }

</bundles_post_ra>
